<compile_context>
chip_gen: v5e
topology: v5e:2x2
jax: 0.10.0
libtpu: 0.0.40
codegen_flags: <defaults>
</compile_context>

<pallas_src>
import functools

import numpy as np
import jax
import jax.numpy as jnp
from jax.experimental import pallas as pl
from jax.experimental.pallas import tpu as pltpu


def _round_up(x, m):
    return (x + m - 1) // m * m


# ----------------------------- kernel ---------------------------------------
def _bigru_kernel(len_ref, xf_ref, xb_ref,
                  wih_f_ref, bih_f_ref, wih_b_ref, bih_b_ref,
                  whh_ref, bhh_ref,
                  outf_ref, outb_ref, hcat_ref,
                  xgf_sc, xgb_sc,
                  *, TC, Bp, Hp, Tp):
    c = pl.program_id(0)

    # hcat_ref (constant index_map -> resident in VMEM) is the recurrent carry
    # [h_f | h_b]; initialize it on the first chunk only.
    @pl.when(c == 0)
    def _():
        hcat_ref[...] = jnp.zeros_like(hcat_ref)

    # Per-chunk input projections (off the serial path): one GEMM per direction.
    # xf_ref is forward-time chunk c; xb_ref is forward-ordered chunk NC-1-c,
    # which the backward scan consumes in reverse row order.
    xgf_sc[...] = (jnp.dot(xf_ref[...], wih_f_ref[...],
                           preferred_element_type=jnp.float32)
                   + bih_f_ref[...])
    xgb_sc[...] = (jnp.dot(xb_ref[...], wih_b_ref[...],
                           preferred_element_type=jnp.float32)
                   + bih_b_ref[...])

    # Broadcasts hoisted out of the unrolled recurrence loop.
    lengths_b = jnp.broadcast_to(len_ref[...], (Bp, Hp))          # int32
    bhh_b = jnp.broadcast_to(bhh_ref[...], (Bp, 6 * Hp))          # f32

    h_f0 = hcat_ref[:, 0:Hp]
    h_b0 = hcat_ref[:, Hp:2 * Hp]

    def gru_gates(xg, hg, h_prev):
        # PyTorch packed gate order [r, z, n]; all elementwise math in f32.
        r = jax.nn.sigmoid(xg[:, 0:Hp] + hg[:, 0:Hp])
        z = jax.nn.sigmoid(xg[:, Hp:2 * Hp] + hg[:, Hp:2 * Hp])
        n = jnp.tanh(xg[:, 2 * Hp:3 * Hp] + r * hg[:, 2 * Hp:3 * Hp])
        return (1.0 - z) * n + z * h_prev

    def step(i, carry):
        h_f, h_b = carry
        t_f = c * TC + i            # forward global time index
        t_b = Tp - 1 - t_f          # backward global time index
        rf = i * Bp                 # row block (within chunk) of forward time
        rb = (TC - 1 - i) * Bp      # row block (within chunk) of backward time

        xg_f = xgf_sc[pl.ds(rf, Bp), :]
        xg_b = xgb_sc[pl.ds(rb, Bp), :]

        # Fused recurrent projection for both directions: one MXU push / step.
        h_cat = jnp.concatenate([h_f, h_b], axis=-1).astype(whh_ref.dtype)
        hg = jnp.dot(h_cat, whh_ref[...],
                     preferred_element_type=jnp.float32) + bhh_b
        h_new_f = gru_gates(xg_f, hg[:, 0:3 * Hp], h_f)
        h_new_b = gru_gates(xg_b, hg[:, 3 * Hp:6 * Hp], h_b)

        mask_f = t_f < lengths_b
        mask_b = t_b < lengths_b
        h_f = jnp.where(mask_f, h_new_f, h_f)
        h_b = jnp.where(mask_b, h_new_b, h_b)
        outf_ref[pl.ds(rf, Bp), :] = jnp.where(mask_f, h_new_f, 0.0)
        outb_ref[pl.ds(rb, Bp), :] = jnp.where(mask_b, h_new_b, 0.0)
        return h_f, h_b

    h_f, h_b = jax.lax.fori_loop(0, TC, step, (h_f0, h_b0), unroll=True)
    hcat_ref[...] = jnp.concatenate([h_f, h_b], axis=-1)


# -------------------------- pallas_call wrapper ------------------------------
def bigru_pallas(x_chunks, lengths_col, prepped, *, NC, TC, Bp, Hp, Tp):
    """x_chunks: (NC, TC*Bp, E) bf16 time-major chunked embedded input."""
    E = x_chunks.shape[-1]
    RB = TC * Bp
    kernel = functools.partial(_bigru_kernel, TC=TC, Bp=Bp, Hp=Hp, Tp=Tp)

    grid_spec = pltpu.PrefetchScalarGridSpec(
        num_scalar_prefetch=0,
        grid=(NC,),
        in_specs=[
            pl.BlockSpec((Bp, 1), lambda c: (0, 0)),                     # lengths
            pl.BlockSpec((None, RB, E), lambda c: (c, 0, 0)),            # x fwd chunk
            pl.BlockSpec((None, RB, E), lambda c: (NC - 1 - c, 0, 0)),   # x bwd chunk
            pl.BlockSpec((E, 3 * Hp), lambda c: (0, 0)),                 # W_ih fwd (bf16)
            pl.BlockSpec((1, 3 * Hp), lambda c: (0, 0)),                 # b_ih fwd
            pl.BlockSpec((E, 3 * Hp), lambda c: (0, 0)),                 # W_ih bwd (bf16)
            pl.BlockSpec((1, 3 * Hp), lambda c: (0, 0)),                 # b_ih bwd
            pl.BlockSpec((2 * Hp, 6 * Hp), lambda c: (0, 0)),            # W_hh block-diag
            pl.BlockSpec((1, 6 * Hp), lambda c: (0, 0)),                 # b_hh cat
        ],
        out_specs=[
            pl.BlockSpec((None, RB, Hp), lambda c: (c, 0, 0)),           # out fwd chunk
            pl.BlockSpec((None, RB, Hp), lambda c: (NC - 1 - c, 0, 0)),  # out bwd chunk
            pl.BlockSpec((Bp, 2 * Hp), lambda c: (0, 0)),                # final [h_f|h_b]
        ],
        scratch_shapes=[
            pltpu.VMEM((RB, 3 * Hp), jnp.float32),   # xg forward (whole chunk)
            pltpu.VMEM((RB, 3 * Hp), jnp.float32),   # xg backward (whole chunk)
        ],
    )
    out_shape = (
        jax.ShapeDtypeStruct((NC, RB, Hp), jnp.float32),
        jax.ShapeDtypeStruct((NC, RB, Hp), jnp.float32),
        jax.ShapeDtypeStruct((Bp, 2 * Hp), jnp.float32),
    )
    return pl.pallas_call(
        kernel,
        out_shape=out_shape,
        grid_spec=grid_spec,
        compiler_params=pltpu.CompilerParams(
            dimension_semantics=("arbitrary",),        # sequential recurrence
            vmem_limit_bytes=32 * 1024 * 1024,
        ),
    )(lengths_col, x_chunks, x_chunks,
      prepped["wih_f"], prepped["bih_f"],
      prepped["wih_b"], prepped["bih_b"],
      prepped["whh_cat"], prepped["bhh_cat"])


# -------------------------- parameter preparation ----------------------------
def prepare_gru_params(params, hidden_size):
    """Pad / transpose / fuse PyTorch-layout GRU weights into kernel layout.

    PyTorch: weight_ih (3H,E), weight_hh (3H,H), biases (3H,), gate order [r,z,n].
    Kernel (Hp = H padded to a multiple of 128):
      wih_{f,b}: (E, 3Hp) bf16     bih_{f,b}: (1, 3Hp) f32
      whh_cat : (2Hp, 6Hp) bf16 block-diag so [h_f|h_b]@whh_cat = [h_f@W_f | h_b@W_b]
      bhh_cat : (1, 6Hp) f32
    """
    H = hidden_size
    Hp = _round_up(H, 128)
    E = params["wih_f"].shape[1]

    def pad_ih(w, b):
        wt = jnp.zeros((E, 3 * Hp), jnp.float32)
        bt = jnp.zeros((3 * Hp,), jnp.float32)
        for g in range(3):
            wt = wt.at[:, g * Hp:g * Hp + H].set(w[g * H:(g + 1) * H, :].T)
            bt = bt.at[g * Hp:g * Hp + H].set(b[g * H:(g + 1) * H])
        return wt, bt

    def pad_hh(w, b):
        wt = jnp.zeros((Hp, 3 * Hp), jnp.float32)
        bt = jnp.zeros((3 * Hp,), jnp.float32)
        for g in range(3):
            wt = wt.at[:H, g * Hp:g * Hp + H].set(w[g * H:(g + 1) * H, :].T)
            bt = bt.at[g * Hp:g * Hp + H].set(b[g * H:(g + 1) * H])
        return wt, bt

    wih_f, bih_f = pad_ih(params["wih_f"], params["bih_f"])
    wih_b, bih_b = pad_ih(params["wih_b"], params["bih_b"])
    whh_f, bhh_f = pad_hh(params["whh_f"], params["bhh_f"])
    whh_b, bhh_b = pad_hh(params["whh_b"], params["bhh_b"])

    whh_cat = jnp.zeros((2 * Hp, 6 * Hp), jnp.float32)
    whh_cat = whh_cat.at[:Hp, :3 * Hp].set(whh_f)
    whh_cat = whh_cat.at[Hp:, 3 * Hp:].set(whh_b)
    bhh_cat = jnp.concatenate([bhh_f, bhh_b])

    return {
        "embedding": params["embedding"],
        "wih_f": wih_f.astype(jnp.bfloat16),
        "wih_b": wih_b.astype(jnp.bfloat16),
        "bih_f": bih_f.reshape(1, -1),
        "bih_b": bih_b.reshape(1, -1),
        "whh_cat": whh_cat.astype(jnp.bfloat16),
        "bhh_cat": bhh_cat.reshape(1, -1),
    }


# ------------------------------- forward -------------------------------------
@functools.partial(jax.jit, static_argnames=("hidden_size", "time_chunk"))
def bidirectional_encoder_forward(x_source, x_lengths, prepped, *,
                                  hidden_size, time_chunk=8):
    """Mirrors BiDirectionalEncoder.forward.

    x_source : (B, S) int32 token ids
    x_lengths: (B,)   int32 valid lengths (descending, as pack_padded requires)
    Returns  : (x_unpacked (B, S, 2H), x_bi_rnn_h (B, 2H))
    """
    B, S = x_source.shape
    H = hidden_size
    Hp = prepped["whh_cat"].shape[0] // 2
    E = prepped["wih_f"].shape[0]

    # Embedding lookup (glue: gather; padding_idx=0 row is zero).
    x_embedded = jnp.take(prepped["embedding"], x_source, axis=0)   # (B, S, E)

    # TODO(synk): pad_packed_sequence returns time extent max(x_lengths); we keep
    # the static T = S to avoid a host sync — extra positions are exact zeros.
    T = S
    TC = time_chunk
    Bp = _round_up(B, 8)
    Tp = _round_up(T, TC)
    NC = Tp // TC

    x_tbe = jnp.transpose(x_embedded, (1, 0, 2))                    # (T, B, E)
    x_tbe = jnp.pad(x_tbe, ((0, Tp - T), (0, Bp - B), (0, 0)))
    x_chunks = x_tbe.reshape(NC, TC * Bp, E).astype(jnp.bfloat16)   # (NC, TC*Bp, E)

    lens = jnp.pad(x_lengths.astype(jnp.int32), (0, Bp - B)).reshape(Bp, 1)

    # NOTE (v7x): the two directions could additionally be split across the two
    # TensorCores via a leading size-2 "parallel" grid axis; kept fused here
    # (single-TC v5e/v6e optimal) for simplicity/portability.
    out_f, out_b, h_cat = bigru_pallas(
        x_chunks, lens, prepped, NC=NC, TC=TC, Bp=Bp, Hp=Hp, Tp=Tp)

    out_f = out_f.reshape(Tp, Bp, Hp)[:T, :B, :H]
    out_b = out_b.reshape(Tp, Bp, Hp)[:T, :B, :H]
    x_unpacked = jnp.transpose(jnp.concatenate([out_f, out_b], axis=-1),
                               (1, 0, 2))                           # (B, T, 2H)
    x_bi_rnn_h = jnp.concatenate([h_cat[:B, :H], h_cat[:B, Hp:Hp + H]], axis=-1)
    return x_unpacked, x_bi_rnn_h


# --------------------------- pure-JAX reference -------------------------------
def _ref_gru_gates(xg, hg, h_prev, H):
    r = jax.nn.sigmoid(xg[:, 0:H] + hg[:, 0:H])
    z = jax.nn.sigmoid(xg[:, H:2 * H] + hg[:, H:2 * H])
    n = jnp.tanh(xg[:, 2 * H:3 * H] + r * hg[:, 2 * H:3 * H])
    return (1.0 - z) * n + z * h_prev


def _ref_gru_dir(x_tbe, lengths, wih, whh, bih, bhh, reverse):
    T, B, _ = x_tbe.shape
    H = whh.shape[1]
    h0 = jnp.zeros((B, H), jnp.float32)
    times = jnp.arange(T)[::-1] if reverse else jnp.arange(T)

    def step(h, t):
        x = x_tbe[t]
        xg = x @ wih.T + bih
        hg = h @ whh.T + bhh
        h_new = _ref_gru_gates(xg, hg, h, H)
        mask = (t < lengths)[:, None]
        h_upd = jnp.where(mask, h_new, h)
        out = jnp.where(mask, h_new, 0.0)
        return h_upd, (t, out)

    h_fin, (ts, outs) = jax.lax.scan(step, h0, times)
    out_full = jnp.zeros((T, B, H), jnp.float32).at[ts].set(outs)
    return out_full, h_fin


def _reference_forward(x_source, x_lengths, params):
    x_embedded = jnp.take(params["embedding"], x_source, axis=0)
    x_tbe = jnp.transpose(x_embedded, (1, 0, 2))
    lens = x_lengths.astype(jnp.int32)
    of, hf = _ref_gru_dir(x_tbe, lens, params["wih_f"], params["whh_f"],
                          params["bih_f"], params["bhh_f"], reverse=False)
    ob, hb = _ref_gru_dir(x_tbe, lens, params["wih_b"], params["whh_b"],
                          params["bih_b"], params["bhh_b"], reverse=True)
    x_unpacked = jnp.transpose(jnp.concatenate([of, ob], -1), (1, 0, 2))
    return x_unpacked, jnp.concatenate([hf, hb], -1)


# ----------------------------------- test -------------------------------------
if __name__ == "__main__":
    # Config consistent with BiDirectionalEncoder(num_embeddings=16,
    # embedding_size=32, rnn_hidden_size=32).
    V, E, H = 16, 32, 32
    B, S = 2, 16

    key = jax.random.PRNGKey(0)
    ks = jax.random.split(key, 12)

    emb = 0.1 * jax.random.normal(ks[0], (V, E), jnp.float32)
    emb = emb.at[0].set(0.0)                     # padding_idx=0

    def w(k, shape):
        return 0.1 * jax.random.normal(k, shape, jnp.float32)

    params = {
        "embedding": emb,
        # PyTorch GRU layout: weight_ih (3H, E), weight_hh (3H, H), biases (3H,)
        "wih_f": w(ks[1], (3 * H, E)), "whh_f": w(ks[2], (3 * H, H)),
        "bih_f": w(ks[3], (3 * H,)),   "bhh_f": w(ks[4], (3 * H,)),
        "wih_b": w(ks[5], (3 * H, E)), "whh_b": w(ks[6], (3 * H, H)),
        "bih_b": w(ks[7], (3 * H,)),   "bhh_b": w(ks[8], (3 * H,)),
    }

    # token ids (pad with 0 beyond each length), lengths sorted descending
    x_lengths = jnp.array([16, 11], dtype=jnp.int32)
    tokens = jax.random.randint(ks[9], (B, S), 1, V, dtype=jnp.int32)
    pad_mask = jnp.arange(S)[None, :] < x_lengths[:, None]
    x_source = jnp.where(pad_mask, tokens, 0)

    prepped = prepare_gru_params(params, H)

    x_unpacked, x_h = bidirectional_encoder_forward(
        x_source, x_lengths, prepped, hidden_size=H, time_chunk=8)
    jax.block_until_ready((x_unpacked, x_h))

    ref_unpacked, ref_h = _reference_forward(x_source, x_lengths, params)
    # bf16 MXU operands in the kernel -> widened tolerances vs the f32 reference.
    np.testing.assert_allclose(np.asarray(x_unpacked), np.asarray(ref_unpacked),
                               rtol=2e-2, atol=2e-2)
    np.testing.assert_allclose(np.asarray(x_h), np.asarray(ref_h),
                               rtol=2e-2, atol=2e-2)

    assert x_unpacked.shape == (B, S, 2 * H)
    assert x_h.shape == (B, 2 * H)
    print("KERNEL_OK")
</pallas_src>

<mosaic_0001>
module attributes {stable_mosaic.version = 11 : i64} {
  func.func @_bigru_kernel(%arg0: i32, %arg1: memref<8x1xi32, #tpu.memory_space<vmem>>, %arg2: memref<1x64x32xbf16, #tpu.memory_space<vmem>>, %arg3: memref<1x64x32xbf16, #tpu.memory_space<vmem>>, %arg4: memref<32x384xbf16, #tpu.memory_space<vmem>>, %arg5: memref<1x384xf32, #tpu.memory_space<vmem>>, %arg6: memref<32x384xbf16, #tpu.memory_space<vmem>>, %arg7: memref<1x384xf32, #tpu.memory_space<vmem>>, %arg8: memref<256x768xbf16, #tpu.memory_space<vmem>>, %arg9: memref<1x768xf32, #tpu.memory_space<vmem>>, %arg10: memref<1x64x128xf32, #tpu.memory_space<vmem>>, %arg11: memref<1x64x128xf32, #tpu.memory_space<vmem>>, %arg12: memref<8x256xf32, #tpu.memory_space<vmem>>, %arg13: memref<64x384xf32, #tpu.memory_space<vmem>>, %arg14: memref<64x384xf32, #tpu.memory_space<vmem>>) attributes {dimension_semantics = [#tpu.dimension_semantics<arbitrary>], iteration_bounds = array<i64: 2>, scalar_prefetch = 0 : i64, scratch_operands = 2 : i64, tpu.core_type = #tpu.core_type<tc>, window_params = [{pipeline_mode = #tpu.pipeline_mode<synchronous>, transform_indices = @transform_0, window_bounds = array<i64: 8, 1>}, {transform_indices = @transform_1, window_bounds = array<i64: 1, 64, 32>}, {transform_indices = @transform_2, window_bounds = array<i64: 1, 64, 32>}, {pipeline_mode = #tpu.pipeline_mode<synchronous>, transform_indices = @transform_3, window_bounds = array<i64: 32, 384>}, {pipeline_mode = #tpu.pipeline_mode<synchronous>, transform_indices = @transform_4, window_bounds = array<i64: 1, 384>}, {pipeline_mode = #tpu.pipeline_mode<synchronous>, transform_indices = @transform_5, window_bounds = array<i64: 32, 384>}, {pipeline_mode = #tpu.pipeline_mode<synchronous>, transform_indices = @transform_6, window_bounds = array<i64: 1, 384>}, {pipeline_mode = #tpu.pipeline_mode<synchronous>, transform_indices = @transform_7, window_bounds = array<i64: 256, 768>}, {pipeline_mode = #tpu.pipeline_mode<synchronous>, transform_indices = @transform_8, window_bounds = array<i64: 1, 768>}, {transform_indices = @transform_9, window_bounds = array<i64: 1, 64, 128>}, {transform_indices = @transform_10, window_bounds = array<i64: 1, 64, 128>}, {pipeline_mode = #tpu.pipeline_mode<synchronous>, transform_indices = @transform_11, window_bounds = array<i64: 8, 256>}]} {
    %c0_i32 = arith.constant 0 : i32
    %0 = arith.cmpi eq, %arg0, %c0_i32 : i32
    %1 = arith.extui %0 : i1 to i32
    %c0_i32_0 = arith.constant 0 : i32
    %2 = arith.cmpi ne, %1, %c0_i32_0 : i32
    scf.if %2 {
      %cst_204 = arith.constant 0.000000e+00 : f32
      %725 = vector.broadcast %cst_204 : f32 to vector<8x256xf32>
      %c0_205 = arith.constant 0 : index
      %c0_206 = arith.constant 0 : index
      %726 = vector.load %arg12[%c0_205, %c0_206] : memref<8x256xf32, #tpu.memory_space<vmem>>, vector<8x256xf32>
      tpu.vector_store %arg12[%c0_205, %c0_206], %725 {strides = array<i32>} : memref<8x256xf32, #tpu.memory_space<vmem>>, vector<8x256xf32>,
    } else {
    }
    %c0 = arith.constant 0 : index
    %c0_1 = arith.constant 0 : index
    %c0_2 = arith.constant 0 : index
    %3 = vector.load %arg2[%c0, %c0_1, %c0_2] : memref<1x64x32xbf16, #tpu.memory_space<vmem>>, vector<1x64x32xbf16>
    %4 = vector.shape_cast %3 : vector<1x64x32xbf16> to vector<64x32xbf16>
    %c0_3 = arith.constant 0 : index
    %c0_4 = arith.constant 0 : index
    %5 = vector.load %arg4[%c0_3, %c0_4] : memref<32x384xbf16, #tpu.memory_space<vmem>>, vector<32x384xbf16>
    %cst = arith.constant dense<0.000000e+00> : vector<64x384xf32>
    %6 = tpu.matmul %4, %5, %cst {dimension_numbers = #tpu.dot_dimension_numbers<[1], [0], [0], [1], [0, 0, 1, 1], [], []>} : vector<64x32xbf16>, vector<32x384xbf16>, vector<64x384xf32> -> vector<64x384xf32>
    %c0_5 = arith.constant 0 : index
    %c0_6 = arith.constant 0 : index
    %7 = vector.load %arg5[%c0_5, %c0_6] : memref<1x384xf32, #tpu.memory_space<vmem>>, vector<1x384xf32>
    %8 = vector.broadcast %7 : vector<1x384xf32> to vector<64x384xf32>
    %9 = arith.addf %6, %8 : vector<64x384xf32>
    %c0_7 = arith.constant 0 : index
    %c0_8 = arith.constant 0 : index
    %10 = vector.load %arg13[%c0_7, %c0_8] : memref<64x384xf32, #tpu.memory_space<vmem>>, vector<64x384xf32>
    tpu.vector_store %arg13[%c0_7, %c0_8], %9 {strides = array<i32>} : memref<64x384xf32, #tpu.memory_space<vmem>>, vector<64x384xf32>,
    %c0_9 = arith.constant 0 : index
    %c0_10 = arith.constant 0 : index
    %c0_11 = arith.constant 0 : index
    %11 = vector.load %arg3[%c0_9, %c0_10, %c0_11] : memref<1x64x32xbf16, #tpu.memory_space<vmem>>, vector<1x64x32xbf16>
    %12 = vector.shape_cast %11 : vector<1x64x32xbf16> to vector<64x32xbf16>
    %c0_12 = arith.constant 0 : index
    %c0_13 = arith.constant 0 : index
    %13 = vector.load %arg6[%c0_12, %c0_13] : memref<32x384xbf16, #tpu.memory_space<vmem>>, vector<32x384xbf16>
    %cst_14 = arith.constant dense<0.000000e+00> : vector<64x384xf32>
    %14 = tpu.matmul %12, %13, %cst_14 {dimension_numbers = #tpu.dot_dimension_numbers<[1], [0], [0], [1], [0, 0, 1, 1], [], []>} : vector<64x32xbf16>, vector<32x384xbf16>, vector<64x384xf32> -> vector<64x384xf32>
    %c0_15 = arith.constant 0 : index
    %c0_16 = arith.constant 0 : index
    %15 = vector.load %arg7[%c0_15, %c0_16] : memref<1x384xf32, #tpu.memory_space<vmem>>, vector<1x384xf32>
    %16 = vector.broadcast %15 : vector<1x384xf32> to vector<64x384xf32>
    %17 = arith.addf %14, %16 : vector<64x384xf32>
    %c0_17 = arith.constant 0 : index
    %c0_18 = arith.constant 0 : index
    %18 = vector.load %arg14[%c0_17, %c0_18] : memref<64x384xf32, #tpu.memory_space<vmem>>, vector<64x384xf32>
    tpu.vector_store %arg14[%c0_17, %c0_18], %17 {strides = array<i32>} : memref<64x384xf32, #tpu.memory_space<vmem>>, vector<64x384xf32>,
    %c0_19 = arith.constant 0 : index
    %c0_20 = arith.constant 0 : index
    %19 = vector.load %arg1[%c0_19, %c0_20] : memref<8x1xi32, #tpu.memory_space<vmem>>, vector<8x1xi32>
    %20 = vector.shape_cast %19 : vector<8x1xi32> to vector<8x1xi32>
    %21 = vector.broadcast %20 : vector<8x1xi32> to vector<8x128xi32>
    %c0_21 = arith.constant 0 : index
    %c0_22 = arith.constant 0 : index
    %22 = vector.load %arg9[%c0_21, %c0_22] : memref<1x768xf32, #tpu.memory_space<vmem>>, vector<1x768xf32>
    %23 = vector.shape_cast %22 : vector<1x768xf32> to vector<1x768xf32>
    %24 = vector.broadcast %23 : vector<1x768xf32> to vector<8x768xf32>
    %c0_23 = arith.constant 0 : index
    %c0_24 = arith.constant 0 : index
    %25 = vector.load %arg12[%c0_23, %c0_24] : memref<8x256xf32, #tpu.memory_space<vmem>>, vector<8x128xf32>
    %c0_25 = arith.constant 0 : index
    %c128 = arith.constant 128 : index
    %26 = vector.load %arg12[%c0_25, %c128] : memref<8x256xf32, #tpu.memory_space<vmem>>, vector<8x128xf32>
    %c0_i32_26 = arith.constant 0 : i32
    %c8_i32 = arith.constant 8 : i32
    %27 = arith.muli %arg0, %c8_i32 : i32
    %28 = arith.addi %27, %c0_i32_26 : i32
    %c15_i32 = arith.constant 15 : i32
    %29 = arith.subi %c15_i32, %28 : i32
    %c8_i32_27 = arith.constant 8 : i32
    %30 = arith.muli %c0_i32_26, %c8_i32_27 : i32
    %c7_i32 = arith.constant 7 : i32
    %31 = arith.subi %c7_i32, %c0_i32_26 : i32
    %c8_i32_28 = arith.constant 8 : i32
    %32 = arith.muli %31, %c8_i32_28 : i32
    %33 = arith.index_cast %30 : i32 to index
    %c0_29 = arith.constant 0 : index
    %34 = vector.load %arg13[%33, %c0_29] : memref<64x384xf32, #tpu.memory_space<vmem>>, vector<8x384xf32>
    %35 = arith.index_cast %32 : i32 to index
    %c0_30 = arith.constant 0 : index
    %36 = vector.load %arg14[%35, %c0_30] : memref<64x384xf32, #tpu.memory_space<vmem>>, vector<8x384xf32>
    %37 = tpu.concatenate %25, %26 in 1 : vector<8x128xf32>, vector<8x128xf32> -> vector<8x256xf32>
    %38 = arith.truncf %37 : vector<8x256xf32> to vector<8x256xbf16>
    %c0_31 = arith.constant 0 : index
    %c0_32 = arith.constant 0 : index
    %39 = vector.load %arg8[%c0_31, %c0_32] : memref<256x768xbf16, #tpu.memory_space<vmem>>, vector<256x768xbf16>
    %cst_33 = arith.constant dense<0.000000e+00> : vector<8x768xf32>
    %40 = tpu.matmul %38, %39, %cst_33 {dimension_numbers = #tpu.dot_dimension_numbers<[1], [0], [0], [1], [0, 0, 1, 1], [], []>} : vector<8x256xbf16>, vector<256x768xbf16>, vector<8x768xf32> -> vector<8x768xf32>
    %41 = arith.addf %40, %24 : vector<8x768xf32>
    %42 = vector.extract_strided_slice %41 {offsets = [0, 0], sizes = [8, 384], strides = [1, 1]} : vector<8x768xf32> to vector<8x384xf32>
    %43 = vector.extract_strided_slice %34 {offsets = [0, 0], sizes = [8, 128], strides = [1, 1]} : vector<8x384xf32> to vector<8x128xf32>
    %44 = vector.extract_strided_slice %42 {offsets = [0, 0], sizes = [8, 128], strides = [1, 1]} : vector<8x384xf32> to vector<8x128xf32>
    %45 = arith.addf %43, %44 : vector<8x128xf32>
    %46 = arith.negf %45 : vector<8x128xf32>
    %47 = math.exp %46 : vector<8x128xf32>
    %cst_34 = arith.constant 1.000000e+00 : f32
    %48 = vector.broadcast %cst_34 : f32 to vector<8x128xf32>
    %49 = arith.addf %48, %47 : vector<8x128xf32>
    %50 = arith.divf %48, %49 : vector<8x128xf32>
    %51 = vector.extract_strided_slice %34 {offsets = [0, 128], sizes = [8, 128], strides = [1, 1]} : vector<8x384xf32> to vector<8x128xf32>
    %52 = vector.extract_strided_slice %42 {offsets = [0, 128], sizes = [8, 128], strides = [1, 1]} : vector<8x384xf32> to vector<8x128xf32>
    %53 = arith.addf %51, %52 : vector<8x128xf32>
    %54 = arith.negf %53 : vector<8x128xf32>
    %55 = math.exp %54 : vector<8x128xf32>
    %cst_35 = arith.constant 1.000000e+00 : f32
    %56 = vector.broadcast %cst_35 : f32 to vector<8x128xf32>
    %57 = arith.addf %56, %55 : vector<8x128xf32>
    %58 = arith.divf %56, %57 : vector<8x128xf32>
    %59 = vector.extract_strided_slice %34 {offsets = [0, 256], sizes = [8, 128], strides = [1, 1]} : vector<8x384xf32> to vector<8x128xf32>
    %60 = vector.extract_strided_slice %42 {offsets = [0, 256], sizes = [8, 128], strides = [1, 1]} : vector<8x384xf32> to vector<8x128xf32>
    %61 = arith.mulf %50, %60 : vector<8x128xf32>
    %62 = arith.addf %59, %61 : vector<8x128xf32>
    %63 = math.tanh %62 : vector<8x128xf32>
    %cst_36 = arith.constant 1.000000e+00 : f32
    %64 = vector.broadcast %cst_36 : f32 to vector<8x128xf32>
    %65 = arith.subf %64, %58 : vector<8x128xf32>
    %66 = arith.mulf %65, %63 : vector<8x128xf32>
    %67 = arith.mulf %58, %25 : vector<8x128xf32>
    %68 = arith.addf %66, %67 : vector<8x128xf32>
    %69 = vector.extract_strided_slice %41 {offsets = [0, 384], sizes = [8, 384], strides = [1, 1]} : vector<8x768xf32> to vector<8x384xf32>
    %70 = vector.extract_strided_slice %36 {offsets = [0, 0], sizes = [8, 128], strides = [1, 1]} : vector<8x384xf32> to vector<8x128xf32>
    %71 = vector.extract_strided_slice %69 {offsets = [0, 0], sizes = [8, 128], strides = [1, 1]} : vector<8x384xf32> to vector<8x128xf32>
    %72 = arith.addf %70, %71 : vector<8x128xf32>
    %73 = arith.negf %72 : vector<8x128xf32>
    %74 = math.exp %73 : vector<8x128xf32>
    %cst_37 = arith.constant 1.000000e+00 : f32
    %75 = vector.broadcast %cst_37 : f32 to vector<8x128xf32>
    %76 = arith.addf %75, %74 : vector<8x128xf32>
    %77 = arith.divf %75, %76 : vector<8x128xf32>
    %78 = vector.extract_strided_slice %36 {offsets = [0, 128], sizes = [8, 128], strides = [1, 1]} : vector<8x384xf32> to vector<8x128xf32>
    %79 = vector.extract_strided_slice %69 {offsets = [0, 128], sizes = [8, 128], strides = [1, 1]} : vector<8x384xf32> to vector<8x128xf32>
    %80 = arith.addf %78, %79 : vector<8x128xf32>
    %81 = arith.negf %80 : vector<8x128xf32>
    %82 = math.exp %81 : vector<8x128xf32>
    %cst_38 = arith.constant 1.000000e+00 : f32
    %83 = vector.broadcast %cst_38 : f32 to vector<8x128xf32>
    %84 = arith.addf %83, %82 : vector<8x128xf32>
    %85 = arith.divf %83, %84 : vector<8x128xf32>
    %86 = vector.extract_strided_slice %36 {offsets = [0, 256], sizes = [8, 128], strides = [1, 1]} : vector<8x384xf32> to vector<8x128xf32>
    %87 = vector.extract_strided_slice %69 {offsets = [0, 256], sizes = [8, 128], strides = [1, 1]} : vector<8x384xf32> to vector<8x128xf32>
    %88 = arith.mulf %77, %87 : vector<8x128xf32>
    %89 = arith.addf %86, %88 : vector<8x128xf32>
    %90 = math.tanh %89 : vector<8x128xf32>
    %cst_39 = arith.constant 1.000000e+00 : f32
    %91 = vector.broadcast %cst_39 : f32 to vector<8x128xf32>
    %92 = arith.subf %91, %85 : vector<8x128xf32>
    %93 = arith.mulf %92, %90 : vector<8x128xf32>
    %94 = arith.mulf %85, %26 : vector<8x128xf32>
    %95 = arith.addf %93, %94 : vector<8x128xf32>
    %96 = vector.broadcast %28 : i32 to vector<8x128xi32>
    %97 = arith.cmpi slt, %96, %21 : vector<8x128xi32>
    %98 = vector.broadcast %29 : i32 to vector<8x128xi32>
    %99 = arith.cmpi slt, %98, %21 : vector<8x128xi32>
    %100 = arith.select %97, %68, %25 : vector<8x128xi1>, vector<8x128xf32>
    %101 = arith.select %99, %95, %26 : vector<8x128xi1>, vector<8x128xf32>
    %cst_40 = arith.constant 0.000000e+00 : f32
    %102 = vector.broadcast %cst_40 : f32 to vector<8x128xf32>
    %103 = arith.select %97, %68, %102 : vector<8x128xi1>, vector<8x128xf32>
    %c0_41 = arith.constant 0 : index
    %104 = arith.index_cast %30 : i32 to index
    %c0_42 = arith.constant 0 : index
    %105 = vector.load %arg10[%c0_41, %104, %c0_42] : memref<1x64x128xf32, #tpu.memory_space<vmem>>, vector<1x8x128xf32>
    %106 = vector.shape_cast %105 : vector<1x8x128xf32> to vector<8x128xf32>
    %107 = vector.shape_cast %103 : vector<8x128xf32> to vector<1x8x128xf32>
    tpu.vector_store %arg10[%c0_41, %104, %c0_42], %107 {strides = array<i32>} : memref<1x64x128xf32, #tpu.memory_space<vmem>>, vector<1x8x128xf32>,
    %cst_43 = arith.constant 0.000000e+00 : f32
    %108 = vector.broadcast %cst_43 : f32 to vector<8x128xf32>
    %109 = arith.select %99, %95, %108 : vector<8x128xi1>, vector<8x128xf32>
    %c0_44 = arith.constant 0 : index
    %110 = arith.index_cast %32 : i32 to index
    %c0_45 = arith.constant 0 : index
    %111 = vector.load %arg11[%c0_44, %110, %c0_45] : memref<1x64x128xf32, #tpu.memory_space<vmem>>, vector<1x8x128xf32>
    %112 = vector.shape_cast %111 : vector<1x8x128xf32> to vector<8x128xf32>
    %113 = vector.shape_cast %109 : vector<8x128xf32> to vector<1x8x128xf32>
    tpu.vector_store %arg11[%c0_44, %110, %c0_45], %113 {strides = array<i32>} : memref<1x64x128xf32, #tpu.memory_space<vmem>>, vector<1x8x128xf32>,
    %c1_i32 = arith.constant 1 : i32
    %c8_i32_46 = arith.constant 8 : i32
    %114 = arith.muli %arg0, %c8_i32_46 : i32
    %115 = arith.addi %114, %c1_i32 : i32
    %c15_i32_47 = arith.constant 15 : i32
    %116 = arith.subi %c15_i32_47, %115 : i32
    %c8_i32_48 = arith.constant 8 : i32
    %117 = arith.muli %c1_i32, %c8_i32_48 : i32
    %c7_i32_49 = arith.constant 7 : i32
    %118 = arith.subi %c7_i32_49, %c1_i32 : i32
    %c8_i32_50 = arith.constant 8 : i32
    %119 = arith.muli %118, %c8_i32_50 : i32
    %120 = arith.index_cast %117 : i32 to index
    %c0_51 = arith.constant 0 : index
    %121 = vector.load %arg13[%120, %c0_51] : memref<64x384xf32, #tpu.memory_space<vmem>>, vector<8x384xf32>
    %122 = arith.index_cast %119 : i32 to index
    %c0_52 = arith.constant 0 : index
    %123 = vector.load %arg14[%122, %c0_52] : memref<64x384xf32, #tpu.memory_space<vmem>>, vector<8x384xf32>
    %124 = tpu.concatenate %100, %101 in 1 : vector<8x128xf32>, vector<8x128xf32> -> vector<8x256xf32>
    %125 = arith.truncf %124 : vector<8x256xf32> to vector<8x256xbf16>
    %c0_53 = arith.constant 0 : index
    %c0_54 = arith.constant 0 : index
    %126 = vector.load %arg8[%c0_53, %c0_54] : memref<256x768xbf16, #tpu.memory_space<vmem>>, vector<256x768xbf16>
    %cst_55 = arith.constant dense<0.000000e+00> : vector<8x768xf32>
    %127 = tpu.matmul %125, %126, %cst_55 {dimension_numbers = #tpu.dot_dimension_numbers<[1], [0], [0], [1], [0, 0, 1, 1], [], []>} : vector<8x256xbf16>, vector<256x768xbf16>, vector<8x768xf32> -> vector<8x768xf32>
    %128 = arith.addf %127, %24 : vector<8x768xf32>
    %129 = vector.extract_strided_slice %128 {offsets = [0, 0], sizes = [8, 384], strides = [1, 1]} : vector<8x768xf32> to vector<8x384xf32>
    %130 = vector.extract_strided_slice %121 {offsets = [0, 0], sizes = [8, 128], strides = [1, 1]} : vector<8x384xf32> to vector<8x128xf32>
    %131 = vector.extract_strided_slice %129 {offsets = [0, 0], sizes = [8, 128], strides = [1, 1]} : vector<8x384xf32> to vector<8x128xf32>
    %132 = arith.addf %130, %131 : vector<8x128xf32>
    %133 = arith.negf %132 : vector<8x128xf32>
    %134 = math.exp %133 : vector<8x128xf32>
    %cst_56 = arith.constant 1.000000e+00 : f32
    %135 = vector.broadcast %cst_56 : f32 to vector<8x128xf32>
    %136 = arith.addf %135, %134 : vector<8x128xf32>
    %137 = arith.divf %135, %136 : vector<8x128xf32>
    %138 = vector.extract_strided_slice %121 {offsets = [0, 128], sizes = [8, 128], strides = [1, 1]} : vector<8x384xf32> to vector<8x128xf32>
    %139 = vector.extract_strided_slice %129 {offsets = [0, 128], sizes = [8, 128], strides = [1, 1]} : vector<8x384xf32> to vector<8x128xf32>
    %140 = arith.addf %138, %139 : vector<8x128xf32>
    %141 = arith.negf %140 : vector<8x128xf32>
    %142 = math.exp %141 : vector<8x128xf32>
    %cst_57 = arith.constant 1.000000e+00 : f32
    %143 = vector.broadcast %cst_57 : f32 to vector<8x128xf32>
    %144 = arith.addf %143, %142 : vector<8x128xf32>
    %145 = arith.divf %143, %144 : vector<8x128xf32>
    %146 = vector.extract_strided_slice %121 {offsets = [0, 256], sizes = [8, 128], strides = [1, 1]} : vector<8x384xf32> to vector<8x128xf32>
    %147 = vector.extract_strided_slice %129 {offsets = [0, 256], sizes = [8, 128], strides = [1, 1]} : vector<8x384xf32> to vector<8x128xf32>
    %148 = arith.mulf %137, %147 : vector<8x128xf32>
    %149 = arith.addf %146, %148 : vector<8x128xf32>
    %150 = math.tanh %149 : vector<8x128xf32>
    %cst_58 = arith.constant 1.000000e+00 : f32
    %151 = vector.broadcast %cst_58 : f32 to vector<8x128xf32>
    %152 = arith.subf %151, %145 : vector<8x128xf32>
    %153 = arith.mulf %152, %150 : vector<8x128xf32>
    %154 = arith.mulf %145, %100 : vector<8x128xf32>
    %155 = arith.addf %153, %154 : vector<8x128xf32>
    %156 = vector.extract_strided_slice %128 {offsets = [0, 384], sizes = [8, 384], strides = [1, 1]} : vector<8x768xf32> to vector<8x384xf32>
    %157 = vector.extract_strided_slice %123 {offsets = [0, 0], sizes = [8, 128], strides = [1, 1]} : vector<8x384xf32> to vector<8x128xf32>
    %158 = vector.extract_strided_slice %156 {offsets = [0, 0], sizes = [8, 128], strides = [1, 1]} : vector<8x384xf32> to vector<8x128xf32>
    %159 = arith.addf %157, %158 : vector<8x128xf32>
    %160 = arith.negf %159 : vector<8x128xf32>
    %161 = math.exp %160 : vector<8x128xf32>
    %cst_59 = arith.constant 1.000000e+00 : f32
    %162 = vector.broadcast %cst_59 : f32 to vector<8x128xf32>
    %163 = arith.addf %162, %161 : vector<8x128xf32>
    %164 = arith.divf %162, %163 : vector<8x128xf32>
    %165 = vector.extract_strided_slice %123 {offsets = [0, 128], sizes = [8, 128], strides = [1, 1]} : vector<8x384xf32> to vector<8x128xf32>
    %166 = vector.extract_strided_slice %156 {offsets = [0, 128], sizes = [8, 128], strides = [1, 1]} : vector<8x384xf32> to vector<8x128xf32>
    %167 = arith.addf %165, %166 : vector<8x128xf32>
    %168 = arith.negf %167 : vector<8x128xf32>
    %169 = math.exp %168 : vector<8x128xf32>
    %cst_60 = arith.constant 1.000000e+00 : f32
    %170 = vector.broadcast %cst_60 : f32 to vector<8x128xf32>
    %171 = arith.addf %170, %169 : vector<8x128xf32>
    %172 = arith.divf %170, %171 : vector<8x128xf32>
    %173 = vector.extract_strided_slice %123 {offsets = [0, 256], sizes = [8, 128], strides = [1, 1]} : vector<8x384xf32> to vector<8x128xf32>
    %174 = vector.extract_strided_slice %156 {offsets = [0, 256], sizes = [8, 128], strides = [1, 1]} : vector<8x384xf32> to vector<8x128xf32>
    %175 = arith.mulf %164, %174 : vector<8x128xf32>
    %176 = arith.addf %173, %175 : vector<8x128xf32>
    %177 = math.tanh %176 : vector<8x128xf32>
    %cst_61 = arith.constant 1.000000e+00 : f32
    %178 = vector.broadcast %cst_61 : f32 to vector<8x128xf32>
    %179 = arith.subf %178, %172 : vector<8x128xf32>
    %180 = arith.mulf %179, %177 : vector<8x128xf32>
    %181 = arith.mulf %172, %101 : vector<8x128xf32>
    %182 = arith.addf %180, %181 : vector<8x128xf32>
    %183 = vector.broadcast %115 : i32 to vector<8x128xi32>
    %184 = arith.cmpi slt, %183, %21 : vector<8x128xi32>
    %185 = vector.broadcast %116 : i32 to vector<8x128xi32>
    %186 = arith.cmpi slt, %185, %21 : vector<8x128xi32>
    %187 = arith.select %184, %155, %100 : vector<8x128xi1>, vector<8x128xf32>
    %188 = arith.select %186, %182, %101 : vector<8x128xi1>, vector<8x128xf32>
    %cst_62 = arith.constant 0.000000e+00 : f32
    %189 = vector.broadcast %cst_62 : f32 to vector<8x128xf32>
    %190 = arith.select %184, %155, %189 : vector<8x128xi1>, vector<8x128xf32>
    %c0_63 = arith.constant 0 : index
    %191 = arith.index_cast %117 : i32 to index
    %c0_64 = arith.constant 0 : index
    %192 = vector.load %arg10[%c0_63, %191, %c0_64] : memref<1x64x128xf32, #tpu.memory_space<vmem>>, vector<1x8x128xf32>
    %193 = vector.shape_cast %192 : vector<1x8x128xf32> to vector<8x128xf32>
    %194 = vector.shape_cast %190 : vector<8x128xf32> to vector<1x8x128xf32>
    tpu.vector_store %arg10[%c0_63, %191, %c0_64], %194 {strides = array<i32>} : memref<1x64x128xf32, #tpu.memory_space<vmem>>, vector<1x8x128xf32>,
    %cst_65 = arith.constant 0.000000e+00 : f32
    %195 = vector.broadcast %cst_65 : f32 to vector<8x128xf32>
    %196 = arith.select %186, %182, %195 : vector<8x128xi1>, vector<8x128xf32>
    %c0_66 = arith.constant 0 : index
    %197 = arith.index_cast %119 : i32 to index
    %c0_67 = arith.constant 0 : index
    %198 = vector.load %arg11[%c0_66, %197, %c0_67] : memref<1x64x128xf32, #tpu.memory_space<vmem>>, vector<1x8x128xf32>
    %199 = vector.shape_cast %198 : vector<1x8x128xf32> to vector<8x128xf32>
    %200 = vector.shape_cast %196 : vector<8x128xf32> to vector<1x8x128xf32>
    tpu.vector_store %arg11[%c0_66, %197, %c0_67], %200 {strides = array<i32>} : memref<1x64x128xf32, #tpu.memory_space<vmem>>, vector<1x8x128xf32>,
    %c2_i32 = arith.constant 2 : i32
    %c8_i32_68 = arith.constant 8 : i32
    %201 = arith.muli %arg0, %c8_i32_68 : i32
    %202 = arith.addi %201, %c2_i32 : i32
    %c15_i32_69 = arith.constant 15 : i32
    %203 = arith.subi %c15_i32_69, %202 : i32
    %c8_i32_70 = arith.constant 8 : i32
    %204 = arith.muli %c2_i32, %c8_i32_70 : i32
    %c7_i32_71 = arith.constant 7 : i32
    %205 = arith.subi %c7_i32_71, %c2_i32 : i32
    %c8_i32_72 = arith.constant 8 : i32
    %206 = arith.muli %205, %c8_i32_72 : i32
    %207 = arith.index_cast %204 : i32 to index
    %c0_73 = arith.constant 0 : index
    %208 = vector.load %arg13[%207, %c0_73] : memref<64x384xf32, #tpu.memory_space<vmem>>, vector<8x384xf32>
    %209 = arith.index_cast %206 : i32 to index
    %c0_74 = arith.constant 0 : index
    %210 = vector.load %arg14[%209, %c0_74] : memref<64x384xf32, #tpu.memory_space<vmem>>, vector<8x384xf32>
    %211 = tpu.concatenate %187, %188 in 1 : vector<8x128xf32>, vector<8x128xf32> -> vector<8x256xf32>
    %212 = arith.truncf %211 : vector<8x256xf32> to vector<8x256xbf16>
    %c0_75 = arith.constant 0 : index
    %c0_76 = arith.constant 0 : index
    %213 = vector.load %arg8[%c0_75, %c0_76] : memref<256x768xbf16, #tpu.memory_space<vmem>>, vector<256x768xbf16>
    %cst_77 = arith.constant dense<0.000000e+00> : vector<8x768xf32>
    %214 = tpu.matmul %212, %213, %cst_77 {dimension_numbers = #tpu.dot_dimension_numbers<[1], [0], [0], [1], [0, 0, 1, 1], [], []>} : vector<8x256xbf16>, vector<256x768xbf16>, vector<8x768xf32> -> vector<8x768xf32>
    %215 = arith.addf %214, %24 : vector<8x768xf32>
    %216 = vector.extract_strided_slice %215 {offsets = [0, 0], sizes = [8, 384], strides = [1, 1]} : vector<8x768xf32> to vector<8x384xf32>
    %217 = vector.extract_strided_slice %208 {offsets = [0, 0], sizes = [8, 128], strides = [1, 1]} : vector<8x384xf32> to vector<8x128xf32>
    %218 = vector.extract_strided_slice %216 {offsets = [0, 0], sizes = [8, 128], strides = [1, 1]} : vector<8x384xf32> to vector<8x128xf32>
    %219 = arith.addf %217, %218 : vector<8x128xf32>
    %220 = arith.negf %219 : vector<8x128xf32>
    %221 = math.exp %220 : vector<8x128xf32>
    %cst_78 = arith.constant 1.000000e+00 : f32
    %222 = vector.broadcast %cst_78 : f32 to vector<8x128xf32>
    %223 = arith.addf %222, %221 : vector<8x128xf32>
    %224 = arith.divf %222, %223 : vector<8x128xf32>
    %225 = vector.extract_strided_slice %208 {offsets = [0, 128], sizes = [8, 128], strides = [1, 1]} : vector<8x384xf32> to vector<8x128xf32>
    %226 = vector.extract_strided_slice %216 {offsets = [0, 128], sizes = [8, 128], strides = [1, 1]} : vector<8x384xf32> to vector<8x128xf32>
    %227 = arith.addf %225, %226 : vector<8x128xf32>
    %228 = arith.negf %227 : vector<8x128xf32>
    %229 = math.exp %228 : vector<8x128xf32>
    %cst_79 = arith.constant 1.000000e+00 : f32
    %230 = vector.broadcast %cst_79 : f32 to vector<8x128xf32>
    %231 = arith.addf %230, %229 : vector<8x128xf32>
    %232 = arith.divf %230, %231 : vector<8x128xf32>
    %233 = vector.extract_strided_slice %208 {offsets = [0, 256], sizes = [8, 128], strides = [1, 1]} : vector<8x384xf32> to vector<8x128xf32>
    %234 = vector.extract_strided_slice %216 {offsets = [0, 256], sizes = [8, 128], strides = [1, 1]} : vector<8x384xf32> to vector<8x128xf32>
    %235 = arith.mulf %224, %234 : vector<8x128xf32>
    %236 = arith.addf %233, %235 : vector<8x128xf32>
    %237 = math.tanh %236 : vector<8x128xf32>
    %cst_80 = arith.constant 1.000000e+00 : f32
    %238 = vector.broadcast %cst_80 : f32 to vector<8x128xf32>
    %239 = arith.subf %238, %232 : vector<8x128xf32>
    %240 = arith.mulf %239, %237 : vector<8x128xf32>
    %241 = arith.mulf %232, %187 : vector<8x128xf32>
    %242 = arith.addf %240, %241 : vector<8x128xf32>
    %243 = vector.extract_strided_slice %215 {offsets = [0, 384], sizes = [8, 384], strides = [1, 1]} : vector<8x768xf32> to vector<8x384xf32>
    %244 = vector.extract_strided_slice %210 {offsets = [0, 0], sizes = [8, 128], strides = [1, 1]} : vector<8x384xf32> to vector<8x128xf32>
    %245 = vector.extract_strided_slice %243 {offsets = [0, 0], sizes = [8, 128], strides = [1, 1]} : vector<8x384xf32> to vector<8x128xf32>
    %246 = arith.addf %244, %245 : vector<8x128xf32>
    %247 = arith.negf %246 : vector<8x128xf32>
    %248 = math.exp %247 : vector<8x128xf32>
    %cst_81 = arith.constant 1.000000e+00 : f32
    %249 = vector.broadcast %cst_81 : f32 to vector<8x128xf32>
    %250 = arith.addf %249, %248 : vector<8x128xf32>
    %251 = arith.divf %249, %250 : vector<8x128xf32>
    %252 = vector.extract_strided_slice %210 {offsets = [0, 128], sizes = [8, 128], strides = [1, 1]} : vector<8x384xf32> to vector<8x128xf32>
    %253 = vector.extract_strided_slice %243 {offsets = [0, 128], sizes = [8, 128], strides = [1, 1]} : vector<8x384xf32> to vector<8x128xf32>
    %254 = arith.addf %252, %253 : vector<8x128xf32>
    %255 = arith.negf %254 : vector<8x128xf32>
    %256 = math.exp %255 : vector<8x128xf32>
    %cst_82 = arith.constant 1.000000e+00 : f32
    %257 = vector.broadcast %cst_82 : f32 to vector<8x128xf32>
    %258 = arith.addf %257, %256 : vector<8x128xf32>
    %259 = arith.divf %257, %258 : vector<8x128xf32>
    %260 = vector.extract_strided_slice %210 {offsets = [0, 256], sizes = [8, 128], strides = [1, 1]} : vector<8x384xf32> to vector<8x128xf32>
    %261 = vector.extract_strided_slice %243 {offsets = [0, 256], sizes = [8, 128], strides = [1, 1]} : vector<8x384xf32> to vector<8x128xf32>
    %262 = arith.mulf %251, %261 : vector<8x128xf32>
    %263 = arith.addf %260, %262 : vector<8x128xf32>
    %264 = math.tanh %263 : vector<8x128xf32>
    %cst_83 = arith.constant 1.000000e+00 : f32
    %265 = vector.broadcast %cst_83 : f32 to vector<8x128xf32>
    %266 = arith.subf %265, %259 : vector<8x128xf32>
    %267 = arith.mulf %266, %264 : vector<8x128xf32>
    %268 = arith.mulf %259, %188 : vector<8x128xf32>
    %269 = arith.addf %267, %268 : vector<8x128xf32>
    %270 = vector.broadcast %202 : i32 to vector<8x128xi32>
    %271 = arith.cmpi slt, %270, %21 : vector<8x128xi32>
    %272 = vector.broadcast %203 : i32 to vector<8x128xi32>
    %273 = arith.cmpi slt, %272, %21 : vector<8x128xi32>
    %274 = arith.select %271, %242, %187 : vector<8x128xi1>, vector<8x128xf32>
    %275 = arith.select %273, %269, %188 : vector<8x128xi1>, vector<8x128xf32>
    %cst_84 = arith.constant 0.000000e+00 : f32
    %276 = vector.broadcast %cst_84 : f32 to vector<8x128xf32>
    %277 = arith.select %271, %242, %276 : vector<8x128xi1>, vector<8x128xf32>
    %c0_85 = arith.constant 0 : index
    %278 = arith.index_cast %204 : i32 to index
    %c0_86 = arith.constant 0 : index
    %279 = vector.load %arg10[%c0_85, %278, %c0_86] : memref<1x64x128xf32, #tpu.memory_space<vmem>>, vector<1x8x128xf32>
    %280 = vector.shape_cast %279 : vector<1x8x128xf32> to vector<8x128xf32>
    %281 = vector.shape_cast %277 : vector<8x128xf32> to vector<1x8x128xf32>
    tpu.vector_store %arg10[%c0_85, %278, %c0_86], %281 {strides = array<i32>} : memref<1x64x128xf32, #tpu.memory_space<vmem>>, vector<1x8x128xf32>,
    %cst_87 = arith.constant 0.000000e+00 : f32
    %282 = vector.broadcast %cst_87 : f32 to vector<8x128xf32>
    %283 = arith.select %273, %269, %282 : vector<8x128xi1>, vector<8x128xf32>
    %c0_88 = arith.constant 0 : index
    %284 = arith.index_cast %206 : i32 to index
    %c0_89 = arith.constant 0 : index
    %285 = vector.load %arg11[%c0_88, %284, %c0_89] : memref<1x64x128xf32, #tpu.memory_space<vmem>>, vector<1x8x128xf32>
    %286 = vector.shape_cast %285 : vector<1x8x128xf32> to vector<8x128xf32>
    %287 = vector.shape_cast %283 : vector<8x128xf32> to vector<1x8x128xf32>
    tpu.vector_store %arg11[%c0_88, %284, %c0_89], %287 {strides = array<i32>} : memref<1x64x128xf32, #tpu.memory_space<vmem>>, vector<1x8x128xf32>,
    %c3_i32 = arith.constant 3 : i32
    %c8_i32_90 = arith.constant 8 : i32
    %288 = arith.muli %arg0, %c8_i32_90 : i32
    %289 = arith.addi %288, %c3_i32 : i32
    %c15_i32_91 = arith.constant 15 : i32
    %290 = arith.subi %c15_i32_91, %289 : i32
    %c8_i32_92 = arith.constant 8 : i32
    %291 = arith.muli %c3_i32, %c8_i32_92 : i32
    %c7_i32_93 = arith.constant 7 : i32
    %292 = arith.subi %c7_i32_93, %c3_i32 : i32
    %c8_i32_94 = arith.constant 8 : i32
    %293 = arith.muli %292, %c8_i32_94 : i32
    %294 = arith.index_cast %291 : i32 to index
    %c0_95 = arith.constant 0 : index
    %295 = vector.load %arg13[%294, %c0_95] : memref<64x384xf32, #tpu.memory_space<vmem>>, vector<8x384xf32>
    %296 = arith.index_cast %293 : i32 to index
    %c0_96 = arith.constant 0 : index
    %297 = vector.load %arg14[%296, %c0_96] : memref<64x384xf32, #tpu.memory_space<vmem>>, vector<8x384xf32>
    %298 = tpu.concatenate %274, %275 in 1 : vector<8x128xf32>, vector<8x128xf32> -> vector<8x256xf32>
    %299 = arith.truncf %298 : vector<8x256xf32> to vector<8x256xbf16>
    %c0_97 = arith.constant 0 : index
    %c0_98 = arith.constant 0 : index
    %300 = vector.load %arg8[%c0_97, %c0_98] : memref<256x768xbf16, #tpu.memory_space<vmem>>, vector<256x768xbf16>
    %cst_99 = arith.constant dense<0.000000e+00> : vector<8x768xf32>
    %301 = tpu.matmul %299, %300, %cst_99 {dimension_numbers = #tpu.dot_dimension_numbers<[1], [0], [0], [1], [0, 0, 1, 1], [], []>} : vector<8x256xbf16>, vector<256x768xbf16>, vector<8x768xf32> -> vector<8x768xf32>
    %302 = arith.addf %301, %24 : vector<8x768xf32>
    %303 = vector.extract_strided_slice %302 {offsets = [0, 0], sizes = [8, 384], strides = [1, 1]} : vector<8x768xf32> to vector<8x384xf32>
    %304 = vector.extract_strided_slice %295 {offsets = [0, 0], sizes = [8, 128], strides = [1, 1]} : vector<8x384xf32> to vector<8x128xf32>
    %305 = vector.extract_strided_slice %303 {offsets = [0, 0], sizes = [8, 128], strides = [1, 1]} : vector<8x384xf32> to vector<8x128xf32>
    %306 = arith.addf %304, %305 : vector<8x128xf32>
    %307 = arith.negf %306 : vector<8x128xf32>
    %308 = math.exp %307 : vector<8x128xf32>
    %cst_100 = arith.constant 1.000000e+00 : f32
    %309 = vector.broadcast %cst_100 : f32 to vector<8x128xf32>
    %310 = arith.addf %309, %308 : vector<8x128xf32>
    %311 = arith.divf %309, %310 : vector<8x128xf32>
    %312 = vector.extract_strided_slice %295 {offsets = [0, 128], sizes = [8, 128], strides = [1, 1]} : vector<8x384xf32> to vector<8x128xf32>
    %313 = vector.extract_strided_slice %303 {offsets = [0, 128], sizes = [8, 128], strides = [1, 1]} : vector<8x384xf32> to vector<8x128xf32>
    %314 = arith.addf %312, %313 : vector<8x128xf32>
    %315 = arith.negf %314 : vector<8x128xf32>
    %316 = math.exp %315 : vector<8x128xf32>
    %cst_101 = arith.constant 1.000000e+00 : f32
    %317 = vector.broadcast %cst_101 : f32 to vector<8x128xf32>
    %318 = arith.addf %317, %316 : vector<8x128xf32>
    %319 = arith.divf %317, %318 : vector<8x128xf32>
    %320 = vector.extract_strided_slice %295 {offsets = [0, 256], sizes = [8, 128], strides = [1, 1]} : vector<8x384xf32> to vector<8x128xf32>
    %321 = vector.extract_strided_slice %303 {offsets = [0, 256], sizes = [8, 128], strides = [1, 1]} : vector<8x384xf32> to vector<8x128xf32>
    %322 = arith.mulf %311, %321 : vector<8x128xf32>
    %323 = arith.addf %320, %322 : vector<8x128xf32>
    %324 = math.tanh %323 : vector<8x128xf32>
    %cst_102 = arith.constant 1.000000e+00 : f32
    %325 = vector.broadcast %cst_102 : f32 to vector<8x128xf32>
    %326 = arith.subf %325, %319 : vector<8x128xf32>
    %327 = arith.mulf %326, %324 : vector<8x128xf32>
    %328 = arith.mulf %319, %274 : vector<8x128xf32>
    %329 = arith.addf %327, %328 : vector<8x128xf32>
    %330 = vector.extract_strided_slice %302 {offsets = [0, 384], sizes = [8, 384], strides = [1, 1]} : vector<8x768xf32> to vector<8x384xf32>
    %331 = vector.extract_strided_slice %297 {offsets = [0, 0], sizes = [8, 128], strides = [1, 1]} : vector<8x384xf32> to vector<8x128xf32>
    %332 = vector.extract_strided_slice %330 {offsets = [0, 0], sizes = [8, 128], strides = [1, 1]} : vector<8x384xf32> to vector<8x128xf32>
    %333 = arith.addf %331, %332 : vector<8x128xf32>
    %334 = arith.negf %333 : vector<8x128xf32>
    %335 = math.exp %334 : vector<8x128xf32>
    %cst_103 = arith.constant 1.000000e+00 : f32
    %336 = vector.broadcast %cst_103 : f32 to vector<8x128xf32>
    %337 = arith.addf %336, %335 : vector<8x128xf32>
    %338 = arith.divf %336, %337 : vector<8x128xf32>
    %339 = vector.extract_strided_slice %297 {offsets = [0, 128], sizes = [8, 128], strides = [1, 1]} : vector<8x384xf32> to vector<8x128xf32>
    %340 = vector.extract_strided_slice %330 {offsets = [0, 128], sizes = [8, 128], strides = [1, 1]} : vector<8x384xf32> to vector<8x128xf32>
    %341 = arith.addf %339, %340 : vector<8x128xf32>
    %342 = arith.negf %341 : vector<8x128xf32>
    %343 = math.exp %342 : vector<8x128xf32>
    %cst_104 = arith.constant 1.000000e+00 : f32
    %344 = vector.broadcast %cst_104 : f32 to vector<8x128xf32>
    %345 = arith.addf %344, %343 : vector<8x128xf32>
    %346 = arith.divf %344, %345 : vector<8x128xf32>
    %347 = vector.extract_strided_slice %297 {offsets = [0, 256], sizes = [8, 128], strides = [1, 1]} : vector<8x384xf32> to vector<8x128xf32>
    %348 = vector.extract_strided_slice %330 {offsets = [0, 256], sizes = [8, 128], strides = [1, 1]} : vector<8x384xf32> to vector<8x128xf32>
    %349 = arith.mulf %338, %348 : vector<8x128xf32>
    %350 = arith.addf %347, %349 : vector<8x128xf32>
    %351 = math.tanh %350 : vector<8x128xf32>
    %cst_105 = arith.constant 1.000000e+00 : f32
    %352 = vector.broadcast %cst_105 : f32 to vector<8x128xf32>
    %353 = arith.subf %352, %346 : vector<8x128xf32>
    %354 = arith.mulf %353, %351 : vector<8x128xf32>
    %355 = arith.mulf %346, %275 : vector<8x128xf32>
    %356 = arith.addf %354, %355 : vector<8x128xf32>
    %357 = vector.broadcast %289 : i32 to vector<8x128xi32>
    %358 = arith.cmpi slt, %357, %21 : vector<8x128xi32>
    %359 = vector.broadcast %290 : i32 to vector<8x128xi32>
    %360 = arith.cmpi slt, %359, %21 : vector<8x128xi32>
    %361 = arith.select %358, %329, %274 : vector<8x128xi1>, vector<8x128xf32>
    %362 = arith.select %360, %356, %275 : vector<8x128xi1>, vector<8x128xf32>
    %cst_106 = arith.constant 0.000000e+00 : f32
    %363 = vector.broadcast %cst_106 : f32 to vector<8x128xf32>
    %364 = arith.select %358, %329, %363 : vector<8x128xi1>, vector<8x128xf32>
    %c0_107 = arith.constant 0 : index
    %365 = arith.index_cast %291 : i32 to index
    %c0_108 = arith.constant 0 : index
    %366 = vector.load %arg10[%c0_107, %365, %c0_108] : memref<1x64x128xf32, #tpu.memory_space<vmem>>, vector<1x8x128xf32>
    %367 = vector.shape_cast %366 : vector<1x8x128xf32> to vector<8x128xf32>
    %368 = vector.shape_cast %364 : vector<8x128xf32> to vector<1x8x128xf32>
    tpu.vector_store %arg10[%c0_107, %365, %c0_108], %368 {strides = array<i32>} : memref<1x64x128xf32, #tpu.memory_space<vmem>>, vector<1x8x128xf32>,
    %cst_109 = arith.constant 0.000000e+00 : f32
    %369 = vector.broadcast %cst_109 : f32 to vector<8x128xf32>
    %370 = arith.select %360, %356, %369 : vector<8x128xi1>, vector<8x128xf32>
    %c0_110 = arith.constant 0 : index
    %371 = arith.index_cast %293 : i32 to index
    %c0_111 = arith.constant 0 : index
    %372 = vector.load %arg11[%c0_110, %371, %c0_111] : memref<1x64x128xf32, #tpu.memory_space<vmem>>, vector<1x8x128xf32>
    %373 = vector.shape_cast %372 : vector<1x8x128xf32> to vector<8x128xf32>
    %374 = vector.shape_cast %370 : vector<8x128xf32> to vector<1x8x128xf32>
    tpu.vector_store %arg11[%c0_110, %371, %c0_111], %374 {strides = array<i32>} : memref<1x64x128xf32, #tpu.memory_space<vmem>>, vector<1x8x128xf32>,
    %c4_i32 = arith.constant 4 : i32
    %c8_i32_112 = arith.constant 8 : i32
    %375 = arith.muli %arg0, %c8_i32_112 : i32
    %376 = arith.addi %375, %c4_i32 : i32
    %c15_i32_113 = arith.constant 15 : i32
    %377 = arith.subi %c15_i32_113, %376 : i32
    %c8_i32_114 = arith.constant 8 : i32
    %378 = arith.muli %c4_i32, %c8_i32_114 : i32
    %c7_i32_115 = arith.constant 7 : i32
    %379 = arith.subi %c7_i32_115, %c4_i32 : i32
    %c8_i32_116 = arith.constant 8 : i32
    %380 = arith.muli %379, %c8_i32_116 : i32
    %381 = arith.index_cast %378 : i32 to index
    %c0_117 = arith.constant 0 : index
    %382 = vector.load %arg13[%381, %c0_117] : memref<64x384xf32, #tpu.memory_space<vmem>>, vector<8x384xf32>
    %383 = arith.index_cast %380 : i32 to index
    %c0_118 = arith.constant 0 : index
    %384 = vector.load %arg14[%383, %c0_118] : memref<64x384xf32, #tpu.memory_space<vmem>>, vector<8x384xf32>
    %385 = tpu.concatenate %361, %362 in 1 : vector<8x128xf32>, vector<8x128xf32> -> vector<8x256xf32>
    %386 = arith.truncf %385 : vector<8x256xf32> to vector<8x256xbf16>
    %c0_119 = arith.constant 0 : index
    %c0_120 = arith.constant 0 : index
    %387 = vector.load %arg8[%c0_119, %c0_120] : memref<256x768xbf16, #tpu.memory_space<vmem>>, vector<256x768xbf16>
    %cst_121 = arith.constant dense<0.000000e+00> : vector<8x768xf32>
    %388 = tpu.matmul %386, %387, %cst_121 {dimension_numbers = #tpu.dot_dimension_numbers<[1], [0], [0], [1], [0, 0, 1, 1], [], []>} : vector<8x256xbf16>, vector<256x768xbf16>, vector<8x768xf32> -> vector<8x768xf32>
    %389 = arith.addf %388, %24 : vector<8x768xf32>
    %390 = vector.extract_strided_slice %389 {offsets = [0, 0], sizes = [8, 384], strides = [1, 1]} : vector<8x768xf32> to vector<8x384xf32>
    %391 = vector.extract_strided_slice %382 {offsets = [0, 0], sizes = [8, 128], strides = [1, 1]} : vector<8x384xf32> to vector<8x128xf32>
    %392 = vector.extract_strided_slice %390 {offsets = [0, 0], sizes = [8, 128], strides = [1, 1]} : vector<8x384xf32> to vector<8x128xf32>
    %393 = arith.addf %391, %392 : vector<8x128xf32>
    %394 = arith.negf %393 : vector<8x128xf32>
    %395 = math.exp %394 : vector<8x128xf32>
    %cst_122 = arith.constant 1.000000e+00 : f32
    %396 = vector.broadcast %cst_122 : f32 to vector<8x128xf32>
    %397 = arith.addf %396, %395 : vector<8x128xf32>
    %398 = arith.divf %396, %397 : vector<8x128xf32>
    %399 = vector.extract_strided_slice %382 {offsets = [0, 128], sizes = [8, 128], strides = [1, 1]} : vector<8x384xf32> to vector<8x128xf32>
    %400 = vector.extract_strided_slice %390 {offsets = [0, 128], sizes = [8, 128], strides = [1, 1]} : vector<8x384xf32> to vector<8x128xf32>
    %401 = arith.addf %399, %400 : vector<8x128xf32>
    %402 = arith.negf %401 : vector<8x128xf32>
    %403 = math.exp %402 : vector<8x128xf32>
    %cst_123 = arith.constant 1.000000e+00 : f32
    %404 = vector.broadcast %cst_123 : f32 to vector<8x128xf32>
    %405 = arith.addf %404, %403 : vector<8x128xf32>
    %406 = arith.divf %404, %405 : vector<8x128xf32>
    %407 = vector.extract_strided_slice %382 {offsets = [0, 256], sizes = [8, 128], strides = [1, 1]} : vector<8x384xf32> to vector<8x128xf32>
    %408 = vector.extract_strided_slice %390 {offsets = [0, 256], sizes = [8, 128], strides = [1, 1]} : vector<8x384xf32> to vector<8x128xf32>
    %409 = arith.mulf %398, %408 : vector<8x128xf32>
    %410 = arith.addf %407, %409 : vector<8x128xf32>
    %411 = math.tanh %410 : vector<8x128xf32>
    %cst_124 = arith.constant 1.000000e+00 : f32
    %412 = vector.broadcast %cst_124 : f32 to vector<8x128xf32>
    %413 = arith.subf %412, %406 : vector<8x128xf32>
    %414 = arith.mulf %413, %411 : vector<8x128xf32>
    %415 = arith.mulf %406, %361 : vector<8x128xf32>
    %416 = arith.addf %414, %415 : vector<8x128xf32>
    %417 = vector.extract_strided_slice %389 {offsets = [0, 384], sizes = [8, 384], strides = [1, 1]} : vector<8x768xf32> to vector<8x384xf32>
    %418 = vector.extract_strided_slice %384 {offsets = [0, 0], sizes = [8, 128], strides = [1, 1]} : vector<8x384xf32> to vector<8x128xf32>
    %419 = vector.extract_strided_slice %417 {offsets = [0, 0], sizes = [8, 128], strides = [1, 1]} : vector<8x384xf32> to vector<8x128xf32>
    %420 = arith.addf %418, %419 : vector<8x128xf32>
    %421 = arith.negf %420 : vector<8x128xf32>
    %422 = math.exp %421 : vector<8x128xf32>
    %cst_125 = arith.constant 1.000000e+00 : f32
    %423 = vector.broadcast %cst_125 : f32 to vector<8x128xf32>
    %424 = arith.addf %423, %422 : vector<8x128xf32>
    %425 = arith.divf %423, %424 : vector<8x128xf32>
    %426 = vector.extract_strided_slice %384 {offsets = [0, 128], sizes = [8, 128], strides = [1, 1]} : vector<8x384xf32> to vector<8x128xf32>
    %427 = vector.extract_strided_slice %417 {offsets = [0, 128], sizes = [8, 128], strides = [1, 1]} : vector<8x384xf32> to vector<8x128xf32>
    %428 = arith.addf %426, %427 : vector<8x128xf32>
    %429 = arith.negf %428 : vector<8x128xf32>
    %430 = math.exp %429 : vector<8x128xf32>
    %cst_126 = arith.constant 1.000000e+00 : f32
    %431 = vector.broadcast %cst_126 : f32 to vector<8x128xf32>
    %432 = arith.addf %431, %430 : vector<8x128xf32>
    %433 = arith.divf %431, %432 : vector<8x128xf32>
    %434 = vector.extract_strided_slice %384 {offsets = [0, 256], sizes = [8, 128], strides = [1, 1]} : vector<8x384xf32> to vector<8x128xf32>
    %435 = vector.extract_strided_slice %417 {offsets = [0, 256], sizes = [8, 128], strides = [1, 1]} : vector<8x384xf32> to vector<8x128xf32>
    %436 = arith.mulf %425, %435 : vector<8x128xf32>
    %437 = arith.addf %434, %436 : vector<8x128xf32>
    %438 = math.tanh %437 : vector<8x128xf32>
    %cst_127 = arith.constant 1.000000e+00 : f32
    %439 = vector.broadcast %cst_127 : f32 to vector<8x128xf32>
    %440 = arith.subf %439, %433 : vector<8x128xf32>
    %441 = arith.mulf %440, %438 : vector<8x128xf32>
    %442 = arith.mulf %433, %362 : vector<8x128xf32>
    %443 = arith.addf %441, %442 : vector<8x128xf32>
    %444 = vector.broadcast %376 : i32 to vector<8x128xi32>
    %445 = arith.cmpi slt, %444, %21 : vector<8x128xi32>
    %446 = vector.broadcast %377 : i32 to vector<8x128xi32>
    %447 = arith.cmpi slt, %446, %21 : vector<8x128xi32>
    %448 = arith.select %445, %416, %361 : vector<8x128xi1>, vector<8x128xf32>
    %449 = arith.select %447, %443, %362 : vector<8x128xi1>, vector<8x128xf32>
    %cst_128 = arith.constant 0.000000e+00 : f32
    %450 = vector.broadcast %cst_128 : f32 to vector<8x128xf32>
    %451 = arith.select %445, %416, %450 : vector<8x128xi1>, vector<8x128xf32>
    %c0_129 = arith.constant 0 : index
    %452 = arith.index_cast %378 : i32 to index
    %c0_130 = arith.constant 0 : index
    %453 = vector.load %arg10[%c0_129, %452, %c0_130] : memref<1x64x128xf32, #tpu.memory_space<vmem>>, vector<1x8x128xf32>
    %454 = vector.shape_cast %453 : vector<1x8x128xf32> to vector<8x128xf32>
    %455 = vector.shape_cast %451 : vector<8x128xf32> to vector<1x8x128xf32>
    tpu.vector_store %arg10[%c0_129, %452, %c0_130], %455 {strides = array<i32>} : memref<1x64x128xf32, #tpu.memory_space<vmem>>, vector<1x8x128xf32>,
    %cst_131 = arith.constant 0.000000e+00 : f32
    %456 = vector.broadcast %cst_131 : f32 to vector<8x128xf32>
    %457 = arith.select %447, %443, %456 : vector<8x128xi1>, vector<8x128xf32>
    %c0_132 = arith.constant 0 : index
    %458 = arith.index_cast %380 : i32 to index
    %c0_133 = arith.constant 0 : index
    %459 = vector.load %arg11[%c0_132, %458, %c0_133] : memref<1x64x128xf32, #tpu.memory_space<vmem>>, vector<1x8x128xf32>
    %460 = vector.shape_cast %459 : vector<1x8x128xf32> to vector<8x128xf32>
    %461 = vector.shape_cast %457 : vector<8x128xf32> to vector<1x8x128xf32>
    tpu.vector_store %arg11[%c0_132, %458, %c0_133], %461 {strides = array<i32>} : memref<1x64x128xf32, #tpu.memory_space<vmem>>, vector<1x8x128xf32>,
    %c5_i32 = arith.constant 5 : i32
    %c8_i32_134 = arith.constant 8 : i32
    %462 = arith.muli %arg0, %c8_i32_134 : i32
    %463 = arith.addi %462, %c5_i32 : i32
    %c15_i32_135 = arith.constant 15 : i32
    %464 = arith.subi %c15_i32_135, %463 : i32
    %c8_i32_136 = arith.constant 8 : i32
    %465 = arith.muli %c5_i32, %c8_i32_136 : i32
    %c7_i32_137 = arith.constant 7 : i32
    %466 = arith.subi %c7_i32_137, %c5_i32 : i32
    %c8_i32_138 = arith.constant 8 : i32
    %467 = arith.muli %466, %c8_i32_138 : i32
    %468 = arith.index_cast %465 : i32 to index
    %c0_139 = arith.constant 0 : index
    %469 = vector.load %arg13[%468, %c0_139] : memref<64x384xf32, #tpu.memory_space<vmem>>, vector<8x384xf32>
    %470 = arith.index_cast %467 : i32 to index
    %c0_140 = arith.constant 0 : index
    %471 = vector.load %arg14[%470, %c0_140] : memref<64x384xf32, #tpu.memory_space<vmem>>, vector<8x384xf32>
    %472 = tpu.concatenate %448, %449 in 1 : vector<8x128xf32>, vector<8x128xf32> -> vector<8x256xf32>
    %473 = arith.truncf %472 : vector<8x256xf32> to vector<8x256xbf16>
    %c0_141 = arith.constant 0 : index
    %c0_142 = arith.constant 0 : index
    %474 = vector.load %arg8[%c0_141, %c0_142] : memref<256x768xbf16, #tpu.memory_space<vmem>>, vector<256x768xbf16>
    %cst_143 = arith.constant dense<0.000000e+00> : vector<8x768xf32>
    %475 = tpu.matmul %473, %474, %cst_143 {dimension_numbers = #tpu.dot_dimension_numbers<[1], [0], [0], [1], [0, 0, 1, 1], [], []>} : vector<8x256xbf16>, vector<256x768xbf16>, vector<8x768xf32> -> vector<8x768xf32>
    %476 = arith.addf %475, %24 : vector<8x768xf32>
    %477 = vector.extract_strided_slice %476 {offsets = [0, 0], sizes = [8, 384], strides = [1, 1]} : vector<8x768xf32> to vector<8x384xf32>
    %478 = vector.extract_strided_slice %469 {offsets = [0, 0], sizes = [8, 128], strides = [1, 1]} : vector<8x384xf32> to vector<8x128xf32>
    %479 = vector.extract_strided_slice %477 {offsets = [0, 0], sizes = [8, 128], strides = [1, 1]} : vector<8x384xf32> to vector<8x128xf32>
    %480 = arith.addf %478, %479 : vector<8x128xf32>
    %481 = arith.negf %480 : vector<8x128xf32>
    %482 = math.exp %481 : vector<8x128xf32>
    %cst_144 = arith.constant 1.000000e+00 : f32
    %483 = vector.broadcast %cst_144 : f32 to vector<8x128xf32>
    %484 = arith.addf %483, %482 : vector<8x128xf32>
    %485 = arith.divf %483, %484 : vector<8x128xf32>
    %486 = vector.extract_strided_slice %469 {offsets = [0, 128], sizes = [8, 128], strides = [1, 1]} : vector<8x384xf32> to vector<8x128xf32>
    %487 = vector.extract_strided_slice %477 {offsets = [0, 128], sizes = [8, 128], strides = [1, 1]} : vector<8x384xf32> to vector<8x128xf32>
    %488 = arith.addf %486, %487 : vector<8x128xf32>
    %489 = arith.negf %488 : vector<8x128xf32>
    %490 = math.exp %489 : vector<8x128xf32>
    %cst_145 = arith.constant 1.000000e+00 : f32
    %491 = vector.broadcast %cst_145 : f32 to vector<8x128xf32>
    %492 = arith.addf %491, %490 : vector<8x128xf32>
    %493 = arith.divf %491, %492 : vector<8x128xf32>
    %494 = vector.extract_strided_slice %469 {offsets = [0, 256], sizes = [8, 128], strides = [1, 1]} : vector<8x384xf32> to vector<8x128xf32>
    %495 = vector.extract_strided_slice %477 {offsets = [0, 256], sizes = [8, 128], strides = [1, 1]} : vector<8x384xf32> to vector<8x128xf32>
    %496 = arith.mulf %485, %495 : vector<8x128xf32>
    %497 = arith.addf %494, %496 : vector<8x128xf32>
    %498 = math.tanh %497 : vector<8x128xf32>
    %cst_146 = arith.constant 1.000000e+00 : f32
    %499 = vector.broadcast %cst_146 : f32 to vector<8x128xf32>
    %500 = arith.subf %499, %493 : vector<8x128xf32>
    %501 = arith.mulf %500, %498 : vector<8x128xf32>
    %502 = arith.mulf %493, %448 : vector<8x128xf32>
    %503 = arith.addf %501, %502 : vector<8x128xf32>
    %504 = vector.extract_strided_slice %476 {offsets = [0, 384], sizes = [8, 384], strides = [1, 1]} : vector<8x768xf32> to vector<8x384xf32>
    %505 = vector.extract_strided_slice %471 {offsets = [0, 0], sizes = [8, 128], strides = [1, 1]} : vector<8x384xf32> to vector<8x128xf32>
    %506 = vector.extract_strided_slice %504 {offsets = [0, 0], sizes = [8, 128], strides = [1, 1]} : vector<8x384xf32> to vector<8x128xf32>
    %507 = arith.addf %505, %506 : vector<8x128xf32>
    %508 = arith.negf %507 : vector<8x128xf32>
    %509 = math.exp %508 : vector<8x128xf32>
    %cst_147 = arith.constant 1.000000e+00 : f32
    %510 = vector.broadcast %cst_147 : f32 to vector<8x128xf32>
    %511 = arith.addf %510, %509 : vector<8x128xf32>
    %512 = arith.divf %510, %511 : vector<8x128xf32>
    %513 = vector.extract_strided_slice %471 {offsets = [0, 128], sizes = [8, 128], strides = [1, 1]} : vector<8x384xf32> to vector<8x128xf32>
    %514 = vector.extract_strided_slice %504 {offsets = [0, 128], sizes = [8, 128], strides = [1, 1]} : vector<8x384xf32> to vector<8x128xf32>
    %515 = arith.addf %513, %514 : vector<8x128xf32>
    %516 = arith.negf %515 : vector<8x128xf32>
    %517 = math.exp %516 : vector<8x128xf32>
    %cst_148 = arith.constant 1.000000e+00 : f32
    %518 = vector.broadcast %cst_148 : f32 to vector<8x128xf32>
    %519 = arith.addf %518, %517 : vector<8x128xf32>
    %520 = arith.divf %518, %519 : vector<8x128xf32>
    %521 = vector.extract_strided_slice %471 {offsets = [0, 256], sizes = [8, 128], strides = [1, 1]} : vector<8x384xf32> to vector<8x128xf32>
    %522 = vector.extract_strided_slice %504 {offsets = [0, 256], sizes = [8, 128], strides = [1, 1]} : vector<8x384xf32> to vector<8x128xf32>
    %523 = arith.mulf %512, %522 : vector<8x128xf32>
    %524 = arith.addf %521, %523 : vector<8x128xf32>
    %525 = math.tanh %524 : vector<8x128xf32>
    %cst_149 = arith.constant 1.000000e+00 : f32
    %526 = vector.broadcast %cst_149 : f32 to vector<8x128xf32>
    %527 = arith.subf %526, %520 : vector<8x128xf32>
    %528 = arith.mulf %527, %525 : vector<8x128xf32>
    %529 = arith.mulf %520, %449 : vector<8x128xf32>
    %530 = arith.addf %528, %529 : vector<8x128xf32>
    %531 = vector.broadcast %463 : i32 to vector<8x128xi32>
    %532 = arith.cmpi slt, %531, %21 : vector<8x128xi32>
    %533 = vector.broadcast %464 : i32 to vector<8x128xi32>
    %534 = arith.cmpi slt, %533, %21 : vector<8x128xi32>
    %535 = arith.select %532, %503, %448 : vector<8x128xi1>, vector<8x128xf32>
    %536 = arith.select %534, %530, %449 : vector<8x128xi1>, vector<8x128xf32>
    %cst_150 = arith.constant 0.000000e+00 : f32
    %537 = vector.broadcast %cst_150 : f32 to vector<8x128xf32>
    %538 = arith.select %532, %503, %537 : vector<8x128xi1>, vector<8x128xf32>
    %c0_151 = arith.constant 0 : index
    %539 = arith.index_cast %465 : i32 to index
    %c0_152 = arith.constant 0 : index
    %540 = vector.load %arg10[%c0_151, %539, %c0_152] : memref<1x64x128xf32, #tpu.memory_space<vmem>>, vector<1x8x128xf32>
    %541 = vector.shape_cast %540 : vector<1x8x128xf32> to vector<8x128xf32>
    %542 = vector.shape_cast %538 : vector<8x128xf32> to vector<1x8x128xf32>
    tpu.vector_store %arg10[%c0_151, %539, %c0_152], %542 {strides = array<i32>} : memref<1x64x128xf32, #tpu.memory_space<vmem>>, vector<1x8x128xf32>,
    %cst_153 = arith.constant 0.000000e+00 : f32
    %543 = vector.broadcast %cst_153 : f32 to vector<8x128xf32>
    %544 = arith.select %534, %530, %543 : vector<8x128xi1>, vector<8x128xf32>
    %c0_154 = arith.constant 0 : index
    %545 = arith.index_cast %467 : i32 to index
    %c0_155 = arith.constant 0 : index
    %546 = vector.load %arg11[%c0_154, %545, %c0_155] : memref<1x64x128xf32, #tpu.memory_space<vmem>>, vector<1x8x128xf32>
    %547 = vector.shape_cast %546 : vector<1x8x128xf32> to vector<8x128xf32>
    %548 = vector.shape_cast %544 : vector<8x128xf32> to vector<1x8x128xf32>
    tpu.vector_store %arg11[%c0_154, %545, %c0_155], %548 {strides = array<i32>} : memref<1x64x128xf32, #tpu.memory_space<vmem>>, vector<1x8x128xf32>,
    %c6_i32 = arith.constant 6 : i32
    %c8_i32_156 = arith.constant 8 : i32
    %549 = arith.muli %arg0, %c8_i32_156 : i32
    %550 = arith.addi %549, %c6_i32 : i32
    %c15_i32_157 = arith.constant 15 : i32
    %551 = arith.subi %c15_i32_157, %550 : i32
    %c8_i32_158 = arith.constant 8 : i32
    %552 = arith.muli %c6_i32, %c8_i32_158 : i32
    %c7_i32_159 = arith.constant 7 : i32
    %553 = arith.subi %c7_i32_159, %c6_i32 : i32
    %c8_i32_160 = arith.constant 8 : i32
    %554 = arith.muli %553, %c8_i32_160 : i32
    %555 = arith.index_cast %552 : i32 to index
    %c0_161 = arith.constant 0 : index
    %556 = vector.load %arg13[%555, %c0_161] : memref<64x384xf32, #tpu.memory_space<vmem>>, vector<8x384xf32>
    %557 = arith.index_cast %554 : i32 to index
    %c0_162 = arith.constant 0 : index
    %558 = vector.load %arg14[%557, %c0_162] : memref<64x384xf32, #tpu.memory_space<vmem>>, vector<8x384xf32>
    %559 = tpu.concatenate %535, %536 in 1 : vector<8x128xf32>, vector<8x128xf32> -> vector<8x256xf32>
    %560 = arith.truncf %559 : vector<8x256xf32> to vector<8x256xbf16>
    %c0_163 = arith.constant 0 : index
    %c0_164 = arith.constant 0 : index
    %561 = vector.load %arg8[%c0_163, %c0_164] : memref<256x768xbf16, #tpu.memory_space<vmem>>, vector<256x768xbf16>
    %cst_165 = arith.constant dense<0.000000e+00> : vector<8x768xf32>
    %562 = tpu.matmul %560, %561, %cst_165 {dimension_numbers = #tpu.dot_dimension_numbers<[1], [0], [0], [1], [0, 0, 1, 1], [], []>} : vector<8x256xbf16>, vector<256x768xbf16>, vector<8x768xf32> -> vector<8x768xf32>
    %563 = arith.addf %562, %24 : vector<8x768xf32>
    %564 = vector.extract_strided_slice %563 {offsets = [0, 0], sizes = [8, 384], strides = [1, 1]} : vector<8x768xf32> to vector<8x384xf32>
    %565 = vector.extract_strided_slice %556 {offsets = [0, 0], sizes = [8, 128], strides = [1, 1]} : vector<8x384xf32> to vector<8x128xf32>
    %566 = vector.extract_strided_slice %564 {offsets = [0, 0], sizes = [8, 128], strides = [1, 1]} : vector<8x384xf32> to vector<8x128xf32>
    %567 = arith.addf %565, %566 : vector<8x128xf32>
    %568 = arith.negf %567 : vector<8x128xf32>
    %569 = math.exp %568 : vector<8x128xf32>
    %cst_166 = arith.constant 1.000000e+00 : f32
    %570 = vector.broadcast %cst_166 : f32 to vector<8x128xf32>
    %571 = arith.addf %570, %569 : vector<8x128xf32>
    %572 = arith.divf %570, %571 : vector<8x128xf32>
    %573 = vector.extract_strided_slice %556 {offsets = [0, 128], sizes = [8, 128], strides = [1, 1]} : vector<8x384xf32> to vector<8x128xf32>
    %574 = vector.extract_strided_slice %564 {offsets = [0, 128], sizes = [8, 128], strides = [1, 1]} : vector<8x384xf32> to vector<8x128xf32>
    %575 = arith.addf %573, %574 : vector<8x128xf32>
    %576 = arith.negf %575 : vector<8x128xf32>
    %577 = math.exp %576 : vector<8x128xf32>
    %cst_167 = arith.constant 1.000000e+00 : f32
    %578 = vector.broadcast %cst_167 : f32 to vector<8x128xf32>
    %579 = arith.addf %578, %577 : vector<8x128xf32>
    %580 = arith.divf %578, %579 : vector<8x128xf32>
    %581 = vector.extract_strided_slice %556 {offsets = [0, 256], sizes = [8, 128], strides = [1, 1]} : vector<8x384xf32> to vector<8x128xf32>
    %582 = vector.extract_strided_slice %564 {offsets = [0, 256], sizes = [8, 128], strides = [1, 1]} : vector<8x384xf32> to vector<8x128xf32>
    %583 = arith.mulf %572, %582 : vector<8x128xf32>
    %584 = arith.addf %581, %583 : vector<8x128xf32>
    %585 = math.tanh %584 : vector<8x128xf32>
    %cst_168 = arith.constant 1.000000e+00 : f32
    %586 = vector.broadcast %cst_168 : f32 to vector<8x128xf32>
    %587 = arith.subf %586, %580 : vector<8x128xf32>
    %588 = arith.mulf %587, %585 : vector<8x128xf32>
    %589 = arith.mulf %580, %535 : vector<8x128xf32>
    %590 = arith.addf %588, %589 : vector<8x128xf32>
    %591 = vector.extract_strided_slice %563 {offsets = [0, 384], sizes = [8, 384], strides = [1, 1]} : vector<8x768xf32> to vector<8x384xf32>
    %592 = vector.extract_strided_slice %558 {offsets = [0, 0], sizes = [8, 128], strides = [1, 1]} : vector<8x384xf32> to vector<8x128xf32>
    %593 = vector.extract_strided_slice %591 {offsets = [0, 0], sizes = [8, 128], strides = [1, 1]} : vector<8x384xf32> to vector<8x128xf32>
    %594 = arith.addf %592, %593 : vector<8x128xf32>
    %595 = arith.negf %594 : vector<8x128xf32>
    %596 = math.exp %595 : vector<8x128xf32>
    %cst_169 = arith.constant 1.000000e+00 : f32
    %597 = vector.broadcast %cst_169 : f32 to vector<8x128xf32>
    %598 = arith.addf %597, %596 : vector<8x128xf32>
    %599 = arith.divf %597, %598 : vector<8x128xf32>
    %600 = vector.extract_strided_slice %558 {offsets = [0, 128], sizes = [8, 128], strides = [1, 1]} : vector<8x384xf32> to vector<8x128xf32>
    %601 = vector.extract_strided_slice %591 {offsets = [0, 128], sizes = [8, 128], strides = [1, 1]} : vector<8x384xf32> to vector<8x128xf32>
    %602 = arith.addf %600, %601 : vector<8x128xf32>
    %603 = arith.negf %602 : vector<8x128xf32>
    %604 = math.exp %603 : vector<8x128xf32>
    %cst_170 = arith.constant 1.000000e+00 : f32
    %605 = vector.broadcast %cst_170 : f32 to vector<8x128xf32>
    %606 = arith.addf %605, %604 : vector<8x128xf32>
    %607 = arith.divf %605, %606 : vector<8x128xf32>
    %608 = vector.extract_strided_slice %558 {offsets = [0, 256], sizes = [8, 128], strides = [1, 1]} : vector<8x384xf32> to vector<8x128xf32>
    %609 = vector.extract_strided_slice %591 {offsets = [0, 256], sizes = [8, 128], strides = [1, 1]} : vector<8x384xf32> to vector<8x128xf32>
    %610 = arith.mulf %599, %609 : vector<8x128xf32>
    %611 = arith.addf %608, %610 : vector<8x128xf32>
    %612 = math.tanh %611 : vector<8x128xf32>
    %cst_171 = arith.constant 1.000000e+00 : f32
    %613 = vector.broadcast %cst_171 : f32 to vector<8x128xf32>
    %614 = arith.subf %613, %607 : vector<8x128xf32>
    %615 = arith.mulf %614, %612 : vector<8x128xf32>
    %616 = arith.mulf %607, %536 : vector<8x128xf32>
    %617 = arith.addf %615, %616 : vector<8x128xf32>
    %618 = vector.broadcast %550 : i32 to vector<8x128xi32>
    %619 = arith.cmpi slt, %618, %21 : vector<8x128xi32>
    %620 = vector.broadcast %551 : i32 to vector<8x128xi32>
    %621 = arith.cmpi slt, %620, %21 : vector<8x128xi32>
    %622 = arith.select %619, %590, %535 : vector<8x128xi1>, vector<8x128xf32>
    %623 = arith.select %621, %617, %536 : vector<8x128xi1>, vector<8x128xf32>
    %cst_172 = arith.constant 0.000000e+00 : f32
    %624 = vector.broadcast %cst_172 : f32 to vector<8x128xf32>
    %625 = arith.select %619, %590, %624 : vector<8x128xi1>, vector<8x128xf32>
    %c0_173 = arith.constant 0 : index
    %626 = arith.index_cast %552 : i32 to index
    %c0_174 = arith.constant 0 : index
    %627 = vector.load %arg10[%c0_173, %626, %c0_174] : memref<1x64x128xf32, #tpu.memory_space<vmem>>, vector<1x8x128xf32>
    %628 = vector.shape_cast %627 : vector<1x8x128xf32> to vector<8x128xf32>
    %629 = vector.shape_cast %625 : vector<8x128xf32> to vector<1x8x128xf32>
    tpu.vector_store %arg10[%c0_173, %626, %c0_174], %629 {strides = array<i32>} : memref<1x64x128xf32, #tpu.memory_space<vmem>>, vector<1x8x128xf32>,
    %cst_175 = arith.constant 0.000000e+00 : f32
    %630 = vector.broadcast %cst_175 : f32 to vector<8x128xf32>
    %631 = arith.select %621, %617, %630 : vector<8x128xi1>, vector<8x128xf32>
    %c0_176 = arith.constant 0 : index
    %632 = arith.index_cast %554 : i32 to index
    %c0_177 = arith.constant 0 : index
    %633 = vector.load %arg11[%c0_176, %632, %c0_177] : memref<1x64x128xf32, #tpu.memory_space<vmem>>, vector<1x8x128xf32>
    %634 = vector.shape_cast %633 : vector<1x8x128xf32> to vector<8x128xf32>
    %635 = vector.shape_cast %631 : vector<8x128xf32> to vector<1x8x128xf32>
    tpu.vector_store %arg11[%c0_176, %632, %c0_177], %635 {strides = array<i32>} : memref<1x64x128xf32, #tpu.memory_space<vmem>>, vector<1x8x128xf32>,
    %c7_i32_178 = arith.constant 7 : i32
    %c8_i32_179 = arith.constant 8 : i32
    %636 = arith.muli %arg0, %c8_i32_179 : i32
    %637 = arith.addi %636, %c7_i32_178 : i32
    %c15_i32_180 = arith.constant 15 : i32
    %638 = arith.subi %c15_i32_180, %637 : i32
    %c8_i32_181 = arith.constant 8 : i32
    %639 = arith.muli %c7_i32_178, %c8_i32_181 : i32
    %c7_i32_182 = arith.constant 7 : i32
    %640 = arith.subi %c7_i32_182, %c7_i32_178 : i32
    %c8_i32_183 = arith.constant 8 : i32
    %641 = arith.muli %640, %c8_i32_183 : i32
    %642 = arith.index_cast %639 : i32 to index
    %c0_184 = arith.constant 0 : index
    %643 = vector.load %arg13[%642, %c0_184] : memref<64x384xf32, #tpu.memory_space<vmem>>, vector<8x384xf32>
    %644 = arith.index_cast %641 : i32 to index
    %c0_185 = arith.constant 0 : index
    %645 = vector.load %arg14[%644, %c0_185] : memref<64x384xf32, #tpu.memory_space<vmem>>, vector<8x384xf32>
    %646 = tpu.concatenate %622, %623 in 1 : vector<8x128xf32>, vector<8x128xf32> -> vector<8x256xf32>
    %647 = arith.truncf %646 : vector<8x256xf32> to vector<8x256xbf16>
    %c0_186 = arith.constant 0 : index
    %c0_187 = arith.constant 0 : index
    %648 = vector.load %arg8[%c0_186, %c0_187] : memref<256x768xbf16, #tpu.memory_space<vmem>>, vector<256x768xbf16>
    %cst_188 = arith.constant dense<0.000000e+00> : vector<8x768xf32>
    %649 = tpu.matmul %647, %648, %cst_188 {dimension_numbers = #tpu.dot_dimension_numbers<[1], [0], [0], [1], [0, 0, 1, 1], [], []>} : vector<8x256xbf16>, vector<256x768xbf16>, vector<8x768xf32> -> vector<8x768xf32>
    %650 = arith.addf %649, %24 : vector<8x768xf32>
    %651 = vector.extract_strided_slice %650 {offsets = [0, 0], sizes = [8, 384], strides = [1, 1]} : vector<8x768xf32> to vector<8x384xf32>
    %652 = vector.extract_strided_slice %643 {offsets = [0, 0], sizes = [8, 128], strides = [1, 1]} : vector<8x384xf32> to vector<8x128xf32>
    %653 = vector.extract_strided_slice %651 {offsets = [0, 0], sizes = [8, 128], strides = [1, 1]} : vector<8x384xf32> to vector<8x128xf32>
    %654 = arith.addf %652, %653 : vector<8x128xf32>
    %655 = arith.negf %654 : vector<8x128xf32>
    %656 = math.exp %655 : vector<8x128xf32>
    %cst_189 = arith.constant 1.000000e+00 : f32
    %657 = vector.broadcast %cst_189 : f32 to vector<8x128xf32>
    %658 = arith.addf %657, %656 : vector<8x128xf32>
    %659 = arith.divf %657, %658 : vector<8x128xf32>
    %660 = vector.extract_strided_slice %643 {offsets = [0, 128], sizes = [8, 128], strides = [1, 1]} : vector<8x384xf32> to vector<8x128xf32>
    %661 = vector.extract_strided_slice %651 {offsets = [0, 128], sizes = [8, 128], strides = [1, 1]} : vector<8x384xf32> to vector<8x128xf32>
    %662 = arith.addf %660, %661 : vector<8x128xf32>
    %663 = arith.negf %662 : vector<8x128xf32>
    %664 = math.exp %663 : vector<8x128xf32>
    %cst_190 = arith.constant 1.000000e+00 : f32
    %665 = vector.broadcast %cst_190 : f32 to vector<8x128xf32>
    %666 = arith.addf %665, %664 : vector<8x128xf32>
    %667 = arith.divf %665, %666 : vector<8x128xf32>
    %668 = vector.extract_strided_slice %643 {offsets = [0, 256], sizes = [8, 128], strides = [1, 1]} : vector<8x384xf32> to vector<8x128xf32>
    %669 = vector.extract_strided_slice %651 {offsets = [0, 256], sizes = [8, 128], strides = [1, 1]} : vector<8x384xf32> to vector<8x128xf32>
    %670 = arith.mulf %659, %669 : vector<8x128xf32>
    %671 = arith.addf %668, %670 : vector<8x128xf32>
    %672 = math.tanh %671 : vector<8x128xf32>
    %cst_191 = arith.constant 1.000000e+00 : f32
    %673 = vector.broadcast %cst_191 : f32 to vector<8x128xf32>
    %674 = arith.subf %673, %667 : vector<8x128xf32>
    %675 = arith.mulf %674, %672 : vector<8x128xf32>
    %676 = arith.mulf %667, %622 : vector<8x128xf32>
    %677 = arith.addf %675, %676 : vector<8x128xf32>
    %678 = vector.extract_strided_slice %650 {offsets = [0, 384], sizes = [8, 384], strides = [1, 1]} : vector<8x768xf32> to vector<8x384xf32>
    %679 = vector.extract_strided_slice %645 {offsets = [0, 0], sizes = [8, 128], strides = [1, 1]} : vector<8x384xf32> to vector<8x128xf32>
    %680 = vector.extract_strided_slice %678 {offsets = [0, 0], sizes = [8, 128], strides = [1, 1]} : vector<8x384xf32> to vector<8x128xf32>
    %681 = arith.addf %679, %680 : vector<8x128xf32>
    %682 = arith.negf %681 : vector<8x128xf32>
    %683 = math.exp %682 : vector<8x128xf32>
    %cst_192 = arith.constant 1.000000e+00 : f32
    %684 = vector.broadcast %cst_192 : f32 to vector<8x128xf32>
    %685 = arith.addf %684, %683 : vector<8x128xf32>
    %686 = arith.divf %684, %685 : vector<8x128xf32>
    %687 = vector.extract_strided_slice %645 {offsets = [0, 128], sizes = [8, 128], strides = [1, 1]} : vector<8x384xf32> to vector<8x128xf32>
    %688 = vector.extract_strided_slice %678 {offsets = [0, 128], sizes = [8, 128], strides = [1, 1]} : vector<8x384xf32> to vector<8x128xf32>
    %689 = arith.addf %687, %688 : vector<8x128xf32>
    %690 = arith.negf %689 : vector<8x128xf32>
    %691 = math.exp %690 : vector<8x128xf32>
    %cst_193 = arith.constant 1.000000e+00 : f32
    %692 = vector.broadcast %cst_193 : f32 to vector<8x128xf32>
    %693 = arith.addf %692, %691 : vector<8x128xf32>
    %694 = arith.divf %692, %693 : vector<8x128xf32>
    %695 = vector.extract_strided_slice %645 {offsets = [0, 256], sizes = [8, 128], strides = [1, 1]} : vector<8x384xf32> to vector<8x128xf32>
    %696 = vector.extract_strided_slice %678 {offsets = [0, 256], sizes = [8, 128], strides = [1, 1]} : vector<8x384xf32> to vector<8x128xf32>
    %697 = arith.mulf %686, %696 : vector<8x128xf32>
    %698 = arith.addf %695, %697 : vector<8x128xf32>
    %699 = math.tanh %698 : vector<8x128xf32>
    %cst_194 = arith.constant 1.000000e+00 : f32
    %700 = vector.broadcast %cst_194 : f32 to vector<8x128xf32>
    %701 = arith.subf %700, %694 : vector<8x128xf32>
    %702 = arith.mulf %701, %699 : vector<8x128xf32>
    %703 = arith.mulf %694, %623 : vector<8x128xf32>
    %704 = arith.addf %702, %703 : vector<8x128xf32>
    %705 = vector.broadcast %637 : i32 to vector<8x128xi32>
    %706 = arith.cmpi slt, %705, %21 : vector<8x128xi32>
    %707 = vector.broadcast %638 : i32 to vector<8x128xi32>
    %708 = arith.cmpi slt, %707, %21 : vector<8x128xi32>
    %709 = arith.select %706, %677, %622 : vector<8x128xi1>, vector<8x128xf32>
    %710 = arith.select %708, %704, %623 : vector<8x128xi1>, vector<8x128xf32>
    %cst_195 = arith.constant 0.000000e+00 : f32
    %711 = vector.broadcast %cst_195 : f32 to vector<8x128xf32>
    %712 = arith.select %706, %677, %711 : vector<8x128xi1>, vector<8x128xf32>
    %c0_196 = arith.constant 0 : index
    %713 = arith.index_cast %639 : i32 to index
    %c0_197 = arith.constant 0 : index
    %714 = vector.load %arg10[%c0_196, %713, %c0_197] : memref<1x64x128xf32, #tpu.memory_space<vmem>>, vector<1x8x128xf32>
    %715 = vector.shape_cast %714 : vector<1x8x128xf32> to vector<8x128xf32>
    %716 = vector.shape_cast %712 : vector<8x128xf32> to vector<1x8x128xf32>
    tpu.vector_store %arg10[%c0_196, %713, %c0_197], %716 {strides = array<i32>} : memref<1x64x128xf32, #tpu.memory_space<vmem>>, vector<1x8x128xf32>,
    %cst_198 = arith.constant 0.000000e+00 : f32
    %717 = vector.broadcast %cst_198 : f32 to vector<8x128xf32>
    %718 = arith.select %708, %704, %717 : vector<8x128xi1>, vector<8x128xf32>
    %c0_199 = arith.constant 0 : index
    %719 = arith.index_cast %641 : i32 to index
    %c0_200 = arith.constant 0 : index
    %720 = vector.load %arg11[%c0_199, %719, %c0_200] : memref<1x64x128xf32, #tpu.memory_space<vmem>>, vector<1x8x128xf32>
    %721 = vector.shape_cast %720 : vector<1x8x128xf32> to vector<8x128xf32>
    %722 = vector.shape_cast %718 : vector<8x128xf32> to vector<1x8x128xf32>
    tpu.vector_store %arg11[%c0_199, %719, %c0_200], %722 {strides = array<i32>} : memref<1x64x128xf32, #tpu.memory_space<vmem>>, vector<1x8x128xf32>,
    %c8_i32_201 = arith.constant 8 : i32
    %723 = tpu.concatenate %709, %710 in 1 : vector<8x128xf32>, vector<8x128xf32> -> vector<8x256xf32>
    %c0_202 = arith.constant 0 : index
    %c0_203 = arith.constant 0 : index
    %724 = vector.load %arg12[%c0_202, %c0_203] : memref<8x256xf32, #tpu.memory_space<vmem>>, vector<8x256xf32>
    tpu.vector_store %arg12[%c0_202, %c0_203], %723 {strides = array<i32>} : memref<8x256xf32, #tpu.memory_space<vmem>>, vector<8x256xf32>,
    return
  }
  func.func @transform_0(%arg0: i32) -> (i32, i32) {
    %c0_i32 = arith.constant 0 : i32
    %c0_i32_0 = arith.constant 0 : i32
    %c0_i32_1 = arith.constant 0 : i32
    return %c0_i32, %c0_i32_0 : i32, i32
  }
  func.func @transform_1(%arg0: i32) -> (i32, i32, i32) {
    %c0_i32 = arith.constant 0 : i32
    %c0_i32_0 = arith.constant 0 : i32
    %c0_i32_1 = arith.constant 0 : i32
    return %arg0, %c0_i32, %c0_i32_0 : i32, i32, i32
  }
  func.func @transform_2(%arg0: i32) -> (i32, i32, i32) {
    %c1_i32 = arith.constant 1 : i32
    %0 = arith.subi %c1_i32, %arg0 : i32
    %c0_i32 = arith.constant 0 : i32
    %c0_i32_0 = arith.constant 0 : i32
    %c0_i32_1 = arith.constant 0 : i32
    return %0, %c0_i32, %c0_i32_0 : i32, i32, i32
  }
  func.func @transform_3(%arg0: i32) -> (i32, i32) {
    %c0_i32 = arith.constant 0 : i32
    %c0_i32_0 = arith.constant 0 : i32
    %c0_i32_1 = arith.constant 0 : i32
    return %c0_i32, %c0_i32_0 : i32, i32
  }
  func.func @transform_4(%arg0: i32) -> (i32, i32) {
    %c0_i32 = arith.constant 0 : i32
    %c0_i32_0 = arith.constant 0 : i32
    %c0_i32_1 = arith.constant 0 : i32
    return %c0_i32, %c0_i32_0 : i32, i32
  }
  func.func @transform_5(%arg0: i32) -> (i32, i32) {
    %c0_i32 = arith.constant 0 : i32
    %c0_i32_0 = arith.constant 0 : i32
    %c0_i32_1 = arith.constant 0 : i32
    return %c0_i32, %c0_i32_0 : i32, i32
  }
  func.func @transform_6(%arg0: i32) -> (i32, i32) {
    %c0_i32 = arith.constant 0 : i32
    %c0_i32_0 = arith.constant 0 : i32
    %c0_i32_1 = arith.constant 0 : i32
    return %c0_i32, %c0_i32_0 : i32, i32
  }
  func.func @transform_7(%arg0: i32) -> (i32, i32) {
    %c0_i32 = arith.constant 0 : i32
    %c0_i32_0 = arith.constant 0 : i32
    %c0_i32_1 = arith.constant 0 : i32
    return %c0_i32, %c0_i32_0 : i32, i32
  }
  func.func @transform_8(%arg0: i32) -> (i32, i32) {
    %c0_i32 = arith.constant 0 : i32
    %c0_i32_0 = arith.constant 0 : i32
    %c0_i32_1 = arith.constant 0 : i32
    return %c0_i32, %c0_i32_0 : i32, i32
  }
  func.func @transform_9(%arg0: i32) -> (i32, i32, i32) {
    %c0_i32 = arith.constant 0 : i32
    %c0_i32_0 = arith.constant 0 : i32
    %c0_i32_1 = arith.constant 0 : i32
    return %arg0, %c0_i32, %c0_i32_0 : i32, i32, i32
  }
  func.func @transform_10(%arg0: i32) -> (i32, i32, i32) {
    %c1_i32 = arith.constant 1 : i32
    %0 = arith.subi %c1_i32, %arg0 : i32
    %c0_i32 = arith.constant 0 : i32
    %c0_i32_0 = arith.constant 0 : i32
    %c0_i32_1 = arith.constant 0 : i32
    return %0, %c0_i32, %c0_i32_0 : i32, i32, i32
  }
  func.func @transform_11(%arg0: i32) -> (i32, i32) {
    %c0_i32 = arith.constant 0 : i32
    %c0_i32_0 = arith.constant 0 : i32
    %c0_i32_1 = arith.constant 0 : i32
    return %c0_i32, %c0_i32_0 : i32, i32
  }
}

</mosaic_0001>

<bundles_post_ra>
// kernel: bidirectional_encoder_forward.1
= control target key start
LH: loop header
LB: loop body
LE: loop exit
PB: predicated region body
PF: predicated region fallthrough
CT: control target
= control target key end

     0   :  { %17 = vsyncpa [#allocation5], 0  ;;  %s12075_s17 = smov 0   ;;  %s13435_s0 = inlined_call_operand.vmem [shape: s32[8,1], index: 0, kind: input, shape index: {}]   ;;  %s13436_s1 = inlined_call_operand.vmem [shape: bf16[2,64,32], index: 1, kind: input, shape index: {}, may-alias: {1,2}]   ;;  %s13437_s2 = inlined_call_operand.vmem [shape: bf16[2,64,32], index: 2, kind: input, shape index: {}, may-alias: {1,2}]   ;;  %s13438_s3 = inlined_call_operand.vmem [shape: bf16[32,384], index: 3, kind: input, shape index: {}]   ;;  %s13439_s4 = inlined_call_operand.vmem [shape: f32[1,384], index: 4, kind: input, shape index: {}]   ;;  %s13440_s5 = inlined_call_operand.vmem [shape: bf16[32,384], index: 5, kind: input, shape index: {}]   ;;  %s13441_s6 = inlined_call_operand.vmem [shape: f32[1,384], index: 6, kind: input, shape index: {}]   ;;  %s13442_s7 = inlined_call_operand.hbm [shape: bf16[256,768], index: 7, kind: input, shape index: {}]   ;;  %s13443_s8 = inlined_call_operand.vmem [shape: f32[1,768], index: 8, kind: input, shape index: {}]   ;;  %s13444_s9 = inlined_call_operand.vmem [shape: f32[2,64,128], index: 9, kind: output, shape index: {0}]   ;;  %s13445_s10 = inlined_call_operand.vmem [shape: f32[2,64,128], index: 10, kind: output, shape index: {1}]   ;;  %s13446_s11 = inlined_call_operand.vmem [shape: f32[8,256], index: 11, kind: output, shape index: {2}]  }
   0x1 LB: > { %s330_s20 = sshll.u32 %s13442_s7, 4  ;;  %s12084_s21 = sadd.s32 4294967295, %s12008_s17   ;;  %s12008_s17 = sphi %s12075_s17, %s23_s17   ;;  %s331_s20 = int_to_ptr.hbm [resolvable:$true] %s330_s20 }
   0x2   : > { %p7765_p0 = scmp.ge.s32.totalorder %s12008_s17, 1  ;;  %p304_p1 = scmp.lt.s32.totalorder %s12008_s17, 3 }
   0x3   : > { %p7766_p2 = scmp.ne.s32.totalorder %s12084_s21, 0  ;;  %p11790_p3 = scmp.eq.s32.totalorder %s12084_s21, 0 }
   0x4   : > { %p305_p4 = pnand %p7765_p0, %p304_p1  ;;  %s12010_s22 = smov [#allocation4]  }
   0x5   : > { %s332_s23 = sshll.u32 %s12010_s22, 4  ;;  %s12011_s24 = smov 384   ;;  %s333_s23 = int_to_ptr.vmem [resolvable:$true] %s332_s23 }
   0x6   : > { %p11786_p5 = pneg %p305_p4  ;;  %s12012_s25 = smov 24  }
   0x7   : > { %369 = sbr.rel (%p305_p4) target bundleno = 1744 (0x6d0), region = 56 }
   0x8   : > { %p11787_p6 = pnand %p11790_p3, %p11786_p5 }
   0xa   : > { %11789 = dma.hbm_to_vmem [thread:$0]  (!%p11787_p6), %s331_s20, 12288, %s333_s23, [#allocation5], %s12011_s24, %s12011_s24, %s12012_s25  }
   0xc   : > { %12003 = dma.done.wait (%p11790_p3), [#allocation5], 12288  }
   0xd   : > { %12005 = vsyncadd (%p11790_p3), [#allocation5], 4294955008  ;;  %p422_p7 = scmp.lt.s32.totalorder %s12084_s21, 1  ;;  %s427_s26 = ssub.s32 1, %s12084_s21 }
   0xe   : > { %p428_p8 = scmp.lt.s32.totalorder %s427_s26, 1 }
   0xf   : > { %s423_s27 = scalar_select %p422_p7, %s12084_s21, 1 }
  0x10   : > { %s13554_s26 = smov (!%p428_p8, %s427_s26), 1 }
  0x11   : > { %s10990_s28 = sshll.u32 %s423_s27, 5  ;;  %s10992_s29 = sshll.u32 %s423_s27, 6 }
  0x12   : > { %s12096_s13 = scalar_lea.vmem %s13436_s1, %s10990_s28  ;;  %s10991_s14 = sshll.u32 %s13554_s26, 5 }
  0x13   : > { %s12101_s18 = scalar_lea.vmem %s13437_s2, %s10991_s14  ;;  %s12106_s22 = scalar_lea.vmem %s13444_s9, %s10992_s29 }
  0x14   : > { %s10993_s23 = sshll.u32 %s13554_s26, 6  ;;  %450 = sbr.rel (%p7766_p2) target bundleno = 28 (0x1c), region = 64 }
  0x15   : > { %s12111_s27 = scalar_lea.vmem %s13445_s10, %s10993_s23 }
  0x19   : > { %v12013_v0 = vmov 0.0  }
  0x1a   : > { %451 = vst [vmem:[%s13446_s11] sm:$0xff] %v12013_v0 }
  0x1b   : > { %452 = vst [vmem:[%s13446_s11 + $0x8] sm:$0xff] %v12013_v0 }
  0x1c PF: > { %v7809_v1 = vld [vmem:[%s13438_s3 + $0x18] sm:$0xf]  ;;  %v11002_v2 = vld [vmem:[%s13438_s3 + $0x20] sm:$0xf0]  ;;  %v11001_v3 = vld [vmem:[%s13438_s3 + $0x1c] sm:$0xf] }
  0x1d   : > { %v7810_v4 = vor.u32 %v11002_v2, %v7809_v1  ;;  %v7811_v5 = vld [vmem:[%s13438_s3 + $0x24] sm:$0xf0]  ;;  %v7817_v6 = vld [vmem:[%s13438_s3 + $0x20] sm:$0xf]  ;;  %v11003_v7 = vld [vmem:[%s13438_s3 + $0x28] sm:$0xf0] }
  0x1e   : > { %v7814_v8 = vor.u32 %v11001_v3, %v7811_v5  ;;  %v7818_v9 = vor.u32 %v11003_v7, %v7817_v6  ;;  %v7861_v10 = vld [vmem:[%s13440_s5 + $0x18] sm:$0xf]  ;;  %v11012_v11 = vld [vmem:[%s13440_s5 + $0x20] sm:$0xf0]  ;;  %v7797_v12 = vld [vmem:[%s13438_s3] sm:$0xf] }
  0x1f   : > { %548 = vmatpush.bf16.msra.mxu0 %v7810_v4  ;;  %v7862_v13 = vor.u32 %v11012_v11, %v7861_v10  ;;  %v10999_v14 = vld [vmem:[%s13438_s3 + $0x8] sm:$0xf0]  ;;  %v10998_v15 = vld [vmem:[%s13438_s3 + $0x4] sm:$0xf]  ;;  %v7799_v16 = vld [vmem:[%s13438_s3 + $0xc] sm:$0xf0] }
  0x20   : > { %577 = vmatpush.bf16.msra.mxu1 %v7814_v8  ;;  %606 = vmatpush.bf16.msra.mxu2 %v7818_v9  ;;  %v7798_v17 = vor.u32 %v10999_v14, %v7797_v12  ;;  %v7802_v18 = vor.u32 %v10998_v15, %v7799_v16  ;;  %v7805_v19 = vld [vmem:[%s13438_s3 + $0x8] sm:$0xf]  ;;  %v11000_v20 = vld [vmem:[%s13438_s3 + $0x10] sm:$0xf0]  ;;  %v7849_v21 = vld [vmem:[%s13440_s5] sm:$0xf] }
  0x21   : > { %747 = vmatpush.bf16.msra.mxu3 %v7862_v13  ;;  %v7806_v22 = vor.u32 %v11000_v20, %v7805_v19  ;;  %v11009_v23 = vld [vmem:[%s13440_s5 + $0x8] sm:$0xf0]  ;;  %v11011_v24 = vld [vmem:[%s13440_s5 + $0x1c] sm:$0xf]  ;;  %v10994_v26 = vld [vmem:[%s12096_s13] sm:$0xff]  ;;  %vm529_vm0 = vcmask 261120  }
  0x22   : > { %v7850_v25 = vor.u32 %v11009_v23, %v7849_v21  ;;  %v7863_v27 = vld [vmem:[%s13440_s5 + $0x24] sm:$0xf0]  ;;  %v7869_v28 = vld [vmem:[%s13440_s5 + $0x20] sm:$0xf]  ;;  %v11013_v30 = vld [vmem:[%s13440_s5 + $0x28] sm:$0xf0] }
  0x23   : > { %549 = vmatpush.bf16.msra.mxu0 %v7798_v17  ;;  %v7866_v29 = vor.u32 %v11011_v24, %v7863_v27  ;;  %v8054_v31 = vld [vmem:[#allocation4 + $0x150] sm:$0xf]  ;;  %v11059_v32 = vld [vmem:[#allocation4 + $0x164] sm:$0xf0]  ;;  %v7870_v34 = vor.u32 %v11013_v30, %v7869_v28  ;;  %v8030_v39 = vld [vmem:[#allocation4 + $0x120] sm:$0xf] }
  0x24   : > { %578 = vmatpush.bf16.msra.mxu1 %v7802_v18  ;;  %607 = vmatpush.bf16.msra.mxu2 %v7806_v22  ;;  %v12183_v33 = vld [vmem:[%s12101_s18] sm:$0xff]  ;;  %v8055_v35 = vor.u32 %v11059_v32, %v8054_v31  ;;  %v11107_v37 = vld [vmem:[#allocation4 + $0x2e4] sm:$0xf0]  ;;  %v11053_v40 = vld [vmem:[#allocation4 + $0x134] sm:$0xf0]  ;;  %s12492_s23 = sshll.u32 %s12084_s21, 3 }
  0x25   : > { %v8246_v36 = vld [vmem:[#allocation4 + $0x2d0] sm:$0xf]  ;;  %748 = vmatpush.bf16.msra.mxu3 %v7850_v25  ;;  %v8222_v41 = vld [vmem:[#allocation4 + $0x2a0] sm:$0xf]  ;;  %v11101_v42 = vld [vmem:[#allocation4 + $0x2b4] sm:$0xf0]  ;;  %v8031_v43 = vor.u32 %v11053_v40, %v8030_v39 }
  0x26   : > { %v8247_v38 = vor.u32 %v11107_v37, %v8246_v36  ;;  %7819 = vmatmul.msk.bf16.vlgmr.msra.gmra.mxu0 %vm529_vm0, %v10994_v26  ;;  %v8223_v44 = vor.u32 %v11101_v42, %v8222_v41  ;;  %v8006_v45 = vld [vmem:[#allocation4 + $0xf0] sm:$0xf]  ;;  %v11047_v46 = vld [vmem:[#allocation4 + $0x104] sm:$0xf0]  ;;  %v7982_v50 = vld [vmem:[#allocation4 + $0xc0] sm:$0xf] }
  0x27   : > { %776 = vmatpush.bf16.msrb.mxu0 %v7866_v29  ;;  %7823 = vmatmul.msk.bf16.vlgmr.msra.gmra.mxu1 %vm529_vm0, %v10994_v26  ;;  %v8198_v47 = vld [vmem:[#allocation4 + $0x270] sm:$0xf]  ;;  %v11095_v48 = vld [vmem:[#allocation4 + $0x284] sm:$0xf0]  ;;  %v8007_v49 = vor.u32 %v11047_v46, %v8006_v45  ;;  %v11041_v52 = vld [vmem:[#allocation4 + $0xd4] sm:$0xf0] }
  0x28   : > { %805 = vmatpush.bf16.msrb.mxu1 %v7870_v34  ;;  %7827 = vmatmul.msk.bf16.vlgmr.msra.gmra.mxu2 %vm529_vm0, %v10994_v26  ;;  %v8199_v51 = vor.u32 %v11095_v48, %v8198_v47  ;;  %v11008_v53 = vld [vmem:[%s13440_s5 + $0x4] sm:$0xf]  ;;  %v7851_v54 = vld [vmem:[%s13440_s5 + $0xc] sm:$0xf0]  ;;  %v11089_v56 = vld [vmem:[#allocation4 + $0x254] sm:$0xf0]  ;;  %v7983_v60 = vor.u32 %v11041_v52, %v7982_v50 }
  0x29   : > { %7871 = vmatmul.msk.bf16.vlgmr.msra.gmra.mxu3 %vm529_vm0, %v12183_v33  ;;  %1458 = vmatpush.bf16.msrb.mxu2 %v8055_v35  ;;  %v8174_v55 = vld [vmem:[#allocation4 + $0x240] sm:$0xf]  ;;  %v7854_v57 = vor.u32 %v11008_v53, %v7851_v54  ;;  %v7857_v58 = vld [vmem:[%s13440_s5 + $0x8] sm:$0xf]  ;;  %v11010_v59 = vld [vmem:[%s13440_s5 + $0x10] sm:$0xf0] }
  0x2a   : > { %1471 = vmatpush.bf16.msrb.mxu3 %v8247_v38  ;;  %v7858_v61 = vor.u32 %v11010_v59, %v7857_v58  ;;  %v8175_v62 = vor.u32 %v11089_v56, %v8174_v55  ;;  %v7958_v63 = vld [vmem:[#allocation4 + $0x90] sm:$0xf]  ;;  %v11035_v0 = vld [vmem:[#allocation4 + $0xa4] sm:$0xf0]  ;;  %v10995_v1 = vld [vmem:[%s12096_s13 + $0x8] sm:$0xff]  ;;  %s1718_s21 = sadd.s32 1, %s12492_s23 }
  0x2b   : > { %777 = vmatpush.bf16.msrb.mxu0 %v7854_v57  ;;  %v8150_v2 = vld [vmem:[#allocation4 + $0x210] sm:$0xf]  ;;  %v11083_v3 = vld [vmem:[#allocation4 + $0x224] sm:$0xf0]  ;;  %v12204_v4 = vld [vmem:[%s12101_s18 + $0x8] sm:$0xff]  ;;  %v7959_v5 = vor.u32 %v11035_v0, %v7958_v63  ;;  %s2565_s28 = ssub.s32 13, %s12492_s23 }
  0x2c   : > { %806 = vmatpush.bf16.msrb.mxu1 %v7858_v61  ;;  %v8151_v6 = vor.u32 %v11083_v3, %v8150_v2  ;;  %v7934_v7 = vld [vmem:[#allocation4 + $0x60] sm:$0xf]  ;;  %v11029_v8 = vld [vmem:[#allocation4 + $0x74] sm:$0xf0]  ;;  %v7910_v13 = vld [vmem:[#allocation4 + $0x30] sm:$0xf] }
  0x2d   : > { %1459 = vmatpush.bf16.msrb.mxu2 %v8031_v43  ;;  %v8126_v9 = vld [vmem:[#allocation4 + $0x1e0] sm:$0xf]  ;;  %v11077_v10 = vld [vmem:[#allocation4 + $0x1f4] sm:$0xf0]  ;;  %v7935_v11 = vor.u32 %v11029_v8, %v7934_v7  ;;  %v11023_v14 = vld [vmem:[#allocation4 + $0x44] sm:$0xf0] }
  0x2e   : > { %1472 = vmatpush.bf16.msrb.mxu3 %v8223_v44  ;;  %v8127_v12 = vor.u32 %v11077_v10, %v8126_v9  ;;  %v8102_v15 = vld [vmem:[#allocation4 + $0x1b0] sm:$0xf]  ;;  %v11071_v16 = vld [vmem:[#allocation4 + $0x1c4] sm:$0xf0]  ;;  %v7911_v17 = vor.u32 %v11023_v14, %v7910_v13  ;;  %v7886_v19 = vld [vmem:[#allocation4] sm:$0xf] }
  0x2f   : > { %v8103_v18 = vor.u32 %v11071_v16, %v8102_v15  ;;  %v11017_v20 = vld [vmem:[#allocation4 + $0x14] sm:$0xf0]  ;;  %v11056_v21 = vld [vmem:[#allocation4 + $0x154] sm:$0xf]  ;;  %v8056_v22 = vld [vmem:[#allocation4 + $0x168] sm:$0xf0] }
  0x30   : > { %v8078_v23 = vld [vmem:[#allocation4 + $0x180] sm:$0xf]  ;;  %v11065_v24 = vld [vmem:[#allocation4 + $0x194] sm:$0xf0]  ;;  %v11104_v25 = vld [vmem:[#allocation4 + $0x2d4] sm:$0xf]  ;;  %v7887_v27 = vor.u32 %v11017_v20, %v7886_v19  ;;  %v8059_v28 = vor.u32 %v11056_v21, %v8056_v22 }
  0x31   : > { %1460 = vmatpush.bf16.msrb.mxu2 %v8007_v49  ;;  %v8248_v26 = vld [vmem:[#allocation4 + $0x2e8] sm:$0xf0]  ;;  %v8079_v29 = vor.u32 %v11065_v24, %v8078_v23  ;;  %v10996_v30 = vld [vmem:[%s12096_s13 + $0x10] sm:$0xff]  ;;  %v8032_v34 = vld [vmem:[#allocation4 + $0x138] sm:$0xf0]  ;;  %s3410_s30 = sadd.s32 3, %s12492_s23 }
  0x32   : > { %1473 = vmatpush.bf16.msrb.mxu3 %v8199_v51  ;;  %v8251_v31 = vor.u32 %v11104_v25, %v8248_v26  ;;  %v11050_v32 = vld [vmem:[#allocation4 + $0x124] sm:$0xf]  ;;  %v8224_v36 = vld [vmem:[#allocation4 + $0x2b8] sm:$0xf0]  ;;  %v11044_v40 = vld [vmem:[#allocation4 + $0xf4] sm:$0xf] }
  0x33   : > { %v11098_v35 = vld [vmem:[#allocation4 + $0x2a4] sm:$0xf]  ;;  %v8035_v38 = vor.u32 %v11050_v32, %v8032_v34  ;;  %v8008_v41 = vld [vmem:[#allocation4 + $0x108] sm:$0xf0]  ;;  %v11092_v42 = vld [vmem:[#allocation4 + $0x274] sm:$0xf] }
  0x34   : > { %v12213_v37 = vld [vmem:[%s12101_s18 + $0x10] sm:$0xff]  ;;  %v8227_v39 = vor.u32 %v11098_v35, %v8224_v36  ;;  %v8200_v43 = vld [vmem:[#allocation4 + $0x288] sm:$0xf0]  ;;  %v8062_v44 = vld [vmem:[#allocation4 + $0x158] sm:$0xf]  ;;  %v8011_v49 = vor.u32 %v11044_v40, %v8008_v41  ;;  %s3411_s12 = ssub.s32 12, %s12492_s23 }
  0x35   : > { %1461 = vmatpush.bf16.msrb.mxu2 %v7983_v60  ;;  %v11060_v45 = vld [vmem:[#allocation4 + $0x16c] sm:$0xf0]  ;;  %v8254_v47 = vld [vmem:[#allocation4 + $0x2d8] sm:$0xf]  ;;  %v8203_v51 = vor.u32 %v11092_v42, %v8200_v43  ;;  %v11038_v52 = vld [vmem:[#allocation4 + $0xc4] sm:$0xf] }
  0x36   : > { %1474 = vmatpush.bf16.msrb.mxu3 %v8175_v62  ;;  %7820 = vmatmul.msk.bf16.gmra.mxu0 %vm529_vm0, %v10995_v1  ;;  %v8063_v46 = vor.u32 %v11060_v45, %v8062_v44  ;;  %v11108_v48 = vld [vmem:[#allocation4 + $0x2ec] sm:$0xf0]  ;;  %v7984_v53 = vld [vmem:[#allocation4 + $0xd8] sm:$0xf0]  ;;  %v11086_v54 = vld [vmem:[#allocation4 + $0x244] sm:$0xf] }
  0x37   : > { %7824 = vmatmul.msk.bf16.gmra.mxu1 %vm529_vm0, %v10995_v1  ;;  %v8255_v50 = vor.u32 %v11108_v48, %v8254_v47  ;;  %v8176_v55 = vld [vmem:[#allocation4 + $0x258] sm:$0xf0]  ;;  %v7987_v56 = vor.u32 %v11038_v52, %v7984_v53  ;;  %v8038_v57 = vld [vmem:[#allocation4 + $0x128] sm:$0xf]  ;;  %v11054_v58 = vld [vmem:[#allocation4 + $0x13c] sm:$0xf0] }
  0x38   : > { %7828 = vmatmul.msk.bf16.gmra.mxu2 %vm529_vm0, %v10995_v1  ;;  %1510 = vmatpush.bf16.msra.mxu0 %v8063_v46  ;;  %v8179_v59 = vor.u32 %v11086_v54, %v8176_v55  ;;  %v11032_v60 = vld [vmem:[#allocation4 + $0x94] sm:$0xf]  ;;  %v7960_v61 = vld [vmem:[#allocation4 + $0xa8] sm:$0xf0]  ;;  %v8039_v62 = vor.u32 %v11054_v58, %v8038_v57  ;;  %v8230_v1 = vld [vmem:[#allocation4 + $0x2a8] sm:$0xf] }
  0x39   : > { %7872 = vmatmul.msk.bf16.gmra.mxu3 %vm529_vm0, %v12204_v4  ;;  %1462 = vmatpush.bf16.msrb.mxu2 %v7959_v5  ;;  %v11080_v63 = vld [vmem:[#allocation4 + $0x214] sm:$0xf]  ;;  %v8152_v0 = vld [vmem:[#allocation4 + $0x228] sm:$0xf0]  ;;  %v11102_v2 = vld [vmem:[#allocation4 + $0x2bc] sm:$0xf0]  ;;  %v7963_v3 = vor.u32 %v11032_v60, %v7960_v61 }
  0x3a   : > { %1475 = vmatpush.bf16.msrb.mxu3 %v8151_v6  ;;  %1523 = vmatpush.bf16.msra.mxu1 %v8255_v50  ;;  %v8231_v5 = vor.u32 %v11102_v2, %v8230_v1  ;;  %v10997_v6 = vld [vmem:[%s12096_s13 + $0x18] sm:$0xff]  ;;  %v8155_v7 = vor.u32 %v11080_v63, %v8152_v0  ;;  %v11026_v8 = vld [vmem:[#allocation4 + $0x64] sm:$0xf]  ;;  %v7936_v9 = vld [vmem:[#allocation4 + $0x78] sm:$0xf0]  ;;  %s1719_s13 = ssub.s32 14, %s12492_s23 }
  0x3b   : > { %v11074_v10 = vld [vmem:[#allocation4 + $0x1e4] sm:$0xf]  ;;  %v7939_v13 = vor.u32 %v11026_v8, %v7936_v9  ;;  %v11020_v15 = vld [vmem:[#allocation4 + $0x34] sm:$0xf]  ;;  %v7912_v16 = vld [vmem:[#allocation4 + $0x48] sm:$0xf0] }
  0x3c   : > { %1511 = vmatpush.bf16.msra.mxu0 %v8039_v62  ;;  %v8014_v19 = vld [vmem:[#allocation4 + $0xf8] sm:$0xf]  ;;  %v11048_v20 = vld [vmem:[#allocation4 + $0x10c] sm:$0xf0]  ;;  %v7915_v24 = vor.u32 %v11020_v15, %v7912_v16  ;;  %v7990_v32 = vld [vmem:[#allocation4 + $0xc8] sm:$0xf] }
  0x3d   : > { %1463 = vmatpush.bf16.msrb.mxu2 %v7935_v11  ;;  %v8128_v11 = vld [vmem:[#allocation4 + $0x1f8] sm:$0xf0]  ;;  %v8015_v21 = vor.u32 %v11048_v20, %v8014_v19  ;;  %v8206_v22 = vld [vmem:[#allocation4 + $0x278] sm:$0xf]  ;;  %v11096_v23 = vld [vmem:[#allocation4 + $0x28c] sm:$0xf0] }
  0x3e   : > { %1476 = vmatpush.bf16.msrb.mxu3 %v8127_v12  ;;  %1524 = vmatpush.bf16.msra.mxu1 %v8231_v5  ;;  %v12222_v12 = vld [vmem:[%s12101_s18 + $0x18] sm:$0xff]  ;;  %v8131_v14 = vor.u32 %v11074_v10, %v8128_v11  ;;  %v8207_v25 = vor.u32 %v11096_v23, %v8206_v22  ;;  %v11042_v34 = vld [vmem:[#allocation4 + $0xdc] sm:$0xf0]  ;;  %v11057_v41 = vld [vmem:[#allocation4 + $0x15c] sm:$0xf]  ;;  %s2564_s18 = sadd.s32 2, %s12492_s23 }
  0x3f   : > { %v7991_v36 = vor.u32 %v11042_v34, %v7990_v32  ;;  %v11090_v40 = vld [vmem:[#allocation4 + $0x25c] sm:$0xf0]  ;;  %v8064_v42 = vld [vmem:[#allocation4 + $0x170] sm:$0xf0]  ;;  %v871_v43 = vld [vmem:[%s13446_s11 + $0x8] sm:$0xff]  ;;  %s4256_s14 = sadd.s32 4, %s12492_s23 }
  0x40   : > { %1512 = vmatpush.bf16.msra.mxu0 %v8015_v21  ;;  %v11105_v45 = vld [vmem:[#allocation4 + $0x2dc] sm:$0xf]  ;;  %v8256_v46 = vld [vmem:[#allocation4 + $0x2f0] sm:$0xf0]  ;;  %v8067_v48 = vor.u32 %v11057_v41, %v8064_v42  ;;  %v8040_v52 = vld [vmem:[#allocation4 + $0x140] sm:$0xf0] }
  0x41   : > { %1464 = vmatpush.bf16.msrb.mxu2 %v7911_v17  ;;  %v11068_v17 = vld [vmem:[#allocation4 + $0x1b4] sm:$0xf]  ;;  %v8259_v50 = vor.u32 %v11105_v45, %v8256_v46  ;;  %v11099_v53 = vld [vmem:[#allocation4 + $0x2ac] sm:$0xf]  ;;  %v8232_v54 = vld [vmem:[#allocation4 + $0x2c0] sm:$0xf0] }
  0x42   : > { %1477 = vmatpush.bf16.msrb.mxu3 %v8103_v18  ;;  %v8104_v18 = vld [vmem:[#allocation4 + $0x1c8] sm:$0xf0]  ;;  %1525 = vmatpush.bf16.msra.mxu1 %v8207_v25  ;;  %v7966_v55 = vld [vmem:[#allocation4 + $0x98] sm:$0xf]  ;;  %v11084_v60 = vld [vmem:[#allocation4 + $0x22c] sm:$0xf0]  ;;  %v8235_v61 = vor.u32 %v11099_v53, %v8232_v54 }
  0x43   : > { %v8107_v26 = vor.u32 %v11068_v17, %v8104_v18  ;;  %v8158_v57 = vld [vmem:[#allocation4 + $0x218] sm:$0xf]  ;;  %v11045_v62 = vld [vmem:[#allocation4 + $0xfc] sm:$0xf]  ;;  %v8016_v63 = vld [vmem:[#allocation4 + $0x110] sm:$0xf0] }
  0x44   : > { %1513 = vmatpush.bf16.msra.mxu0 %v7991_v36  ;;  %v8159_v0 = vor.u32 %v11084_v60, %v8158_v57  ;;  %v11093_v1 = vld [vmem:[#allocation4 + $0x27c] sm:$0xf]  ;;  %v8208_v2 = vld [vmem:[#allocation4 + $0x290] sm:$0xf0]  ;;  %v11030_v5 = vld [vmem:[#allocation4 + $0x7c] sm:$0xf0] }
  0x45   : > { %1465 = vmatpush.bf16.msrb.mxu2 %v7887_v27  ;;  %v11014_v27 = vld [vmem:[#allocation4 + $0x4] sm:$0xf]  ;;  %v11039_v8 = vld [vmem:[#allocation4 + $0xcc] sm:$0xf]  ;;  %v11078_v11 = vld [vmem:[#allocation4 + $0x1fc] sm:$0xf0] }
  0x46   : > { %1478 = vmatpush.bf16.msrb.mxu3 %v8079_v29  ;;  %7821 = vmatmul.msk.bf16.gmra.mxu0 %vm529_vm0, %v10996_v30  ;;  %v11062_v29 = vld [vmem:[#allocation4 + $0x184] sm:$0xf]  ;;  %v7918_v17 = vld [vmem:[#allocation4 + $0x38] sm:$0xf]  ;;  %v11024_v18 = vld [vmem:[#allocation4 + $0x4c] sm:$0xf0] }
  0x47   : > { %7825 = vmatmul.msk.bf16.gmra.mxu1 %vm529_vm0, %v10996_v30  ;;  %v7992_v9 = vld [vmem:[#allocation4 + $0xe0] sm:$0xf0]  ;;  %v8110_v19 = vld [vmem:[#allocation4 + $0x1b8] sm:$0xf]  ;;  %v11033_v21 = vld [vmem:[#allocation4 + $0x9c] sm:$0xf]  ;;  %v7919_v23 = vor.u32 %v11024_v18, %v7918_v17 }
  0x48   : > { %7829 = vmatmul.msk.bf16.gmra.mxu2 %vm529_vm0, %v10996_v30  ;;  %v8080_v30 = vld [vmem:[#allocation4 + $0x198] sm:$0xf0]  ;;  %v7995_v16 = vor.u32 %v11039_v8, %v7992_v9  ;;  %v7968_v22 = vld [vmem:[#allocation4 + $0xb0] sm:$0xf0]  ;;  %v7894_v32 = vld [vmem:[#allocation4 + $0x8] sm:$0xf] }
  0x49   : > { %1484 = vmatpush.bf16.msra.mxu2 %v8059_v28  ;;  %7873 = vmatmul.msk.bf16.gmra.mxu3 %vm529_vm0, %v12213_v37  ;;  %v7888_v28 = vld [vmem:[#allocation4 + $0x18] sm:$0xf0]  ;;  %v8083_v35 = vor.u32 %v11062_v29, %v8080_v30  ;;  %v7944_v29 = vld [vmem:[#allocation4 + $0x80] sm:$0xf0]  ;;  %v7971_v30 = vor.u32 %v11033_v21, %v7968_v22  ;;  %v11018_v34 = vld [vmem:[#allocation4 + $0x1c] sm:$0xf0] }
  0x4a   : > { %1497 = vmatpush.bf16.msra.mxu3 %v8251_v31  ;;  %v7891_v31 = vor.u32 %v11014_v27, %v7888_v28  ;;  %v11081_v25 = vld [vmem:[#allocation4 + $0x21c] sm:$0xf]  ;;  %v11027_v28 = vld [vmem:[#allocation4 + $0x6c] sm:$0xf]  ;;  %v11061_v41 = vld [vmem:[#allocation4 + $0x174] sm:$0xf0] }
  0x4b   : > { %v8136_v42 = vld [vmem:[#allocation4 + $0x200] sm:$0xf0]  ;;  %v8262_v45 = vld [vmem:[#allocation4 + $0x2e0] sm:$0xf]  ;;  %v11109_v46 = vld [vmem:[#allocation4 + $0x2f4] sm:$0xf0] }
  0x4c   : > { %v8046_v54 = vld [vmem:[#allocation4 + $0x130] sm:$0xf]  ;;  %v11069_v57 = vld [vmem:[#allocation4 + $0x1bc] sm:$0xf]  ;;  %v11015_v60 = vld [vmem:[#allocation4 + $0xc] sm:$0xf] }
  0x4d   : > { %1485 = vmatpush.bf16.msra.mxu2 %v8035_v38  ;;  %v870_v38 = vld [vmem:[%s13446_s11] sm:$0xff]  ;;  %v11097_v9 = vld [vmem:[#allocation4 + $0x294] sm:$0xf0]  ;;  %v8048_v21 = vld [vmem:[#allocation4 + $0x148] sm:$0xf0]  ;;  %s4257_s29 = ssub.s32 11, %s12492_s23 }
  0x4e   : > { %1498 = vmatpush.bf16.msra.mxu3 %v8227_v39  ;;  %v8182_v39 = vld [vmem:[#allocation4 + $0x248] sm:$0xf]  ;;  %v12235_v47 = vpack.c.bf16 %v870_v38, %v870_v38  ;;  %v7895_v38 = vor.u32 %v11018_v34, %v7894_v32  ;;  %v11052_v17 = vld [vmem:[#allocation4 + $0x134] sm:$0xf]  ;;  %v7998_v18 = vld [vmem:[#allocation4 + $0xd0] sm:$0xf] }
  0x4f   : > { %v8183_v44 = vor.u32 %v11090_v40, %v8182_v39  ;;  %v11066_v39 = vld [vmem:[#allocation4 + $0x19c] sm:$0xf0]  ;;  %v8190_v22 = vld [vmem:[#allocation4 + $0x250] sm:$0xf]  ;;  %v8024_v34 = vld [vmem:[#allocation4 + $0x118] sm:$0xf0] }
  0x50   : > { %v8070_v40 = vld [vmem:[#allocation4 + $0x160] sm:$0xf]  ;;  %s5102_s26 = sadd.s32 5, %s12492_s23  ;;  %s5103_s15 = ssub.s32 10, %s12492_s23 }
  0x51   : > { %1486 = vmatpush.bf16.msra.mxu2 %v8011_v49  ;;  %1526 = vmatpush.bf16.msra.mxu1 %v8183_v44  ;;  %v12237_v49 = vpack.c.bf16 %v871_v43, %v871_v43  ;;  %v8071_v44 = vor.u32 %v11061_v41, %v8070_v40  ;;  %s5948_s16 = sadd.s32 6, %s12492_s23  ;;  %s5949_s19 = ssub.s32 9, %s12492_s23 }
  0x52   : > { %1499 = vmatpush.bf16.msra.mxu3 %v8203_v51  ;;  %v11051_v51 = vld [vmem:[#allocation4 + $0x12c] sm:$0xf]  ;;  %s6794_s20 = sadd.s32 7, %s12492_s23  ;;  %s873_s24 = ssub.s32 15, %s12492_s23 }
  0x53   : > { %v8043_v58 = vor.u32 %v11051_v51, %v8040_v52  ;;  %v11021_v51 = vld [vmem:[#allocation4 + $0x3c] sm:$0xf]  ;;  %v7920_v52 = vld [vmem:[#allocation4 + $0x50] sm:$0xf0] }
  0x55   : > { %1487 = vmatpush.bf16.msra.mxu2 %v7987_v56  ;;  %v11036_v56 = vld [vmem:[#allocation4 + $0xac] sm:$0xf0]  ;;  %1527 = vmatpush.bf16.msra.mxu1 %v8159_v0  ;;  %v11063_v0 = vld [vmem:[#allocation4 + $0x18c] sm:$0xf] }
  0x56   : > { %1500 = vmatpush.bf16.msra.mxu3 %v8179_v59  ;;  %7822 = vmatmul.msk.bf16.gmra.mxu0 %vm529_vm0, %v10997_v6  ;;  %v7967_v59 = vor.u32 %v11036_v56, %v7966_v55  ;;  %v11055_v55 = vld [vmem:[#allocation4 + $0x144] sm:$0xf0]  ;;  %v8238_v56 = vld [vmem:[#allocation4 + $0x2b0] sm:$0xf] }
  0x57   : > { %7826 = vmatmul.msk.bf16.gmra.mxu1 %vm529_vm0, %v10997_v6 }
  0x58   : > { %7830 = vmatmul.msk.bf16.gmra.mxu2 %vm529_vm0, %v10997_v6  ;;  %1514 = vmatpush.bf16.msra.mxu0 %v7967_v59  ;;  %v8134_v6 = vld [vmem:[#allocation4 + $0x1e8] sm:$0xf] }
  0x59   : > { %1488 = vmatpush.bf16.msra.mxu2 %v7963_v3  ;;  %7874 = vmatmul.msk.bf16.gmra.mxu3 %vm529_vm0, %v12222_v12  ;;  %v7942_v3 = vld [vmem:[#allocation4 + $0x68] sm:$0xf]  ;;  %v8135_v15 = vor.u32 %v11078_v11, %v8134_v6  ;;  %v11058_v6 = vld [vmem:[#allocation4 + $0x164] sm:$0xf]  ;;  %v8264_v11 = vld [vmem:[#allocation4 + $0x2f8] sm:$0xf0] }
  0x5a   : > { %1501 = vmatpush.bf16.msra.mxu3 %v8155_v7  ;;  %v8211_v7 = vor.u32 %v11093_v1, %v8208_v2  ;;  %v7943_v10 = vor.u32 %v11030_v5, %v7942_v3  ;;  %v11103_v59 = vld [vmem:[#allocation4 + $0x2c4] sm:$0xf0]  ;;  %v8088_v1 = vld [vmem:[#allocation4 + $0x1a0] sm:$0xf0]  ;;  %v11049_v3 = vld [vmem:[#allocation4 + $0x114] sm:$0xf0] }
  0x5b   : > { %1528 = vmatpush.bf16.msra.mxu1 %v8135_v15  ;;  %v8214_v5 = vld [vmem:[#allocation4 + $0x280] sm:$0xf]  ;;  %v8091_v15 = vor.u32 %v11063_v0, %v8088_v1 }
  0x5c   : > { %1515 = vmatpush.bf16.msra.mxu0 %v7943_v10  ;;  %v11106_v10 = vld [vmem:[#allocation4 + $0x2e4] sm:$0xf] }
  0x5d   : > { %1489 = vmatpush.bf16.msra.mxu2 %v7939_v13  ;;  %v11087_v13 = vld [vmem:[#allocation4 + $0x24c] sm:$0xf] }
  0x5e   : > { %1502 = vmatpush.bf16.msra.mxu3 %v8131_v14  ;;  %v8184_v14 = vld [vmem:[#allocation4 + $0x260] sm:$0xf0] }
  0x5f   : > { %v8187_v20 = vor.u32 %v11087_v13, %v8184_v14  ;;  %v8215_v13 = vor.u32 %v11097_v9, %v8214_v5  ;;  %v11019_v5 = vld [vmem:[#allocation4 + $0x24] sm:$0xf0] }
  0x60   : > { %1516 = vmatpush.bf16.msra.mxu0 %v7919_v23  ;;  %v11091_v23 = vld [vmem:[#allocation4 + $0x264] sm:$0xf0] }
  0x61   : > { %1490 = vmatpush.bf16.msra.mxu2 %v7915_v24  ;;  %v11072_v24 = vld [vmem:[#allocation4 + $0x1cc] sm:$0xf0]  ;;  %v11067_v9 = vld [vmem:[#allocation4 + $0x1a4] sm:$0xf0] }
  0x62   : > { %1503 = vmatpush.bf16.msra.mxu3 %v8107_v26  ;;  %v8160_v26 = vld [vmem:[#allocation4 + $0x230] sm:$0xf0]  ;;  %v8111_v27 = vor.u32 %v11072_v24, %v8110_v19  ;;  %v11043_v19 = vld [vmem:[#allocation4 + $0xe4] sm:$0xf0] }
  0x63   : > { %v8163_v36 = vor.u32 %v11081_v25, %v8160_v26  ;;  %v11100_v24 = vld [vmem:[#allocation4 + $0x2b4] sm:$0xf]  ;;  %v8240_v25 = vld [vmem:[#allocation4 + $0x2c8] sm:$0xf0]  ;;  %v7999_v26 = vor.u32 %v11043_v19, %v7998_v18  ;;  %v7928_v18 = vld [vmem:[#allocation4 + $0x58] sm:$0xf0] }
  0x64   : > { %1529 = vmatpush.bf16.msra.mxu1 %v8111_v27  ;;  %1517 = vmatpush.bf16.msra.mxu0 %v7895_v38  ;;  %v8051_v27 = vor.u32 %v11052_v17, %v8048_v21  ;;  %v8243_v32 = vor.u32 %v11100_v24, %v8240_v25  ;;  %v11094_v38 = vld [vmem:[#allocation4 + $0x284] sm:$0xf]  ;;  %v7904_v24 = vld [vmem:[#allocation4 + $0x28] sm:$0xf0]  ;;  %v11064_v25 = vld [vmem:[#allocation4 + $0x194] sm:$0xf] }
  0x65   : > { %1491 = vmatpush.bf16.msra.mxu2 %v7891_v31  ;;  %v11075_v31 = vld [vmem:[#allocation4 + $0x1ec] sm:$0xf]  ;;  %v11022_v17 = vld [vmem:[#allocation4 + $0x44] sm:$0xf] }
  0x66   : > { %1504 = vmatpush.bf16.msra.mxu3 %v8083_v35  ;;  %7875 = vmatmul.msk.bf16.vlgmr.msrb.gmra.mxu0 %vm529_vm0, %v12183_v33  ;;  %v8086_v35 = vld [vmem:[#allocation4 + $0x188] sm:$0xf]  ;;  %v8139_v53 = vor.u32 %v11075_v31, %v8136_v42  ;;  %v11037_v31 = vld [vmem:[#allocation4 + $0xb4] sm:$0xf0]  ;;  %v11040_v42 = vld [vmem:[#allocation4 + $0xd4] sm:$0xf]  ;;  %v7931_v21 = vor.u32 %v11022_v17, %v7928_v18 }
  0x67   : > { %7879 = vmatmul.msk.bf16.vlgmr.msrb.gmra.mxu1 %vm529_vm0, %v12183_v33  ;;  %v8019_v33 = vor.u32 %v11045_v62, %v8016_v63  ;;  %v8087_v43 = vor.u32 %v11066_v39, %v8086_v35  ;;  %v7923_v62 = vor.u32 %v11021_v51, %v7920_v52  ;;  %v7896_v63 = vld [vmem:[#allocation4 + $0x20] sm:$0xf0]  ;;  %v8166_v35 = vld [vmem:[#allocation4 + $0x220] sm:$0xf]  ;;  %v8216_v39 = vld [vmem:[#allocation4 + $0x298] sm:$0xf0] }
  0x68   : > { %1466 = vmatmul.bf16.vlgmr.msrb.gmra.mxu2 %v12235_v47  ;;  %1562 = vmatpush.bf16.msrb.mxu0 %v8071_v44  ;;  %v7899_v14 = vor.u32 %v11015_v60, %v7896_v63  ;;  %v7950_v44 = vld [vmem:[#allocation4 + $0x70] sm:$0xf]  ;;  %v11088_v51 = vld [vmem:[#allocation4 + $0x254] sm:$0xf]  ;;  %v8192_v52 = vld [vmem:[#allocation4 + $0x268] sm:$0xf0] }
  0x69   : > { %1536 = vmatpush.bf16.msrb.mxu2 %v8067_v48  ;;  %1479 = vmatmul.bf16.vlgmr.msrb.gmra.mxu3 %v12237_v49  ;;  %v8263_v48 = vor.u32 %v11109_v46, %v8262_v45  ;;  %v11031_v45 = vld [vmem:[#allocation4 + $0x84] sm:$0xf0]  ;;  %v8219_v46 = vor.u32 %v11094_v38, %v8216_v39  ;;  %v8118_v60 = vld [vmem:[#allocation4 + $0x1c0] sm:$0xf]  ;;  %v8168_v63 = vld [vmem:[#allocation4 + $0x238] sm:$0xf0] }
  0x6a   : > { %1549 = vmatpush.bf16.msrb.mxu3 %v8259_v50  ;;  %v7947_v50 = vor.u32 %v11027_v28, %v7944_v29  ;;  %1530 = vmatpush.bf16.msra.mxu1 %v8087_v43  ;;  %v11046_v28 = vld [vmem:[#allocation4 + $0x104] sm:$0xf]  ;;  %v8191_v29 = vor.u32 %v11091_v23, %v8190_v22  ;;  %v11016_v23 = vld [vmem:[#allocation4 + $0x14] sm:$0xf]  ;;  %v11155_v17 = vld [vmem:[#allocation4 + $0x164] sm:$0xf0] }
  0x6b   : > { %v8027_v41 = vor.u32 %v11046_v28, %v8024_v34  ;;  %v11070_v19 = vld [vmem:[#allocation4 + $0x1c4] sm:$0xf]  ;;  %v11152_v18 = vld [vmem:[#allocation4 + $0x154] sm:$0xf] }
  0x6d   : > { %1537 = vmatpush.bf16.msrb.mxu2 %v8043_v58  ;;  %v8112_v58 = vld [vmem:[#allocation4 + $0x1d0] sm:$0xf0] }
  0x6e   : > { %1550 = vmatpush.bf16.msrb.mxu3 %v8235_v61  ;;  %1575 = vmatpush.bf16.msrb.mxu1 %v8263_v48  ;;  %v8239_v61 = vor.u32 %v11103_v59, %v8238_v56  ;;  %v8115_v2 = vor.u32 %v11069_v57, %v8112_v58  ;;  %v8000_v48 = vld [vmem:[#allocation4 + $0xe8] sm:$0xf0]  ;;  %v7926_v57 = vld [vmem:[#allocation4 + $0x40] sm:$0xf]  ;;  %v11025_v58 = vld [vmem:[#allocation4 + $0x54] sm:$0xf0] }
  0x6f   : > { %v7976_v59 = vld [vmem:[#allocation4 + $0xb8] sm:$0xf0]  ;;  %v7927_v0 = vor.u32 %v11025_v58, %v7926_v57 }
  0x71   : > { %1538 = vmatpush.bf16.msrb.mxu2 %v8019_v33  ;;  %v8022_v33 = vld [vmem:[#allocation4 + $0x100] sm:$0xf] }
  0x72   : > { %1551 = vmatpush.bf16.msrb.mxu3 %v8211_v7  ;;  %v8072_v7 = vld [vmem:[#allocation4 + $0x178] sm:$0xf0]  ;;  %v8023_v8 = vor.u32 %v11049_v3, %v8022_v33  ;;  %1576 = vmatpush.bf16.msrb.mxu1 %v8239_v61  ;;  %v11073_v61 = vld [vmem:[#allocation4 + $0x1d4] sm:$0xf0]  ;;  %v7902_v3 = vld [vmem:[#allocation4 + $0x10] sm:$0xf] }
  0x73   : > { %v8119_v33 = vor.u32 %v11073_v61, %v8118_v60 }
  0x75   : > { %1539 = vmatpush.bf16.msrb.mxu2 %v7995_v16  ;;  %v8075_v16 = vor.u32 %v11058_v6, %v8072_v7  ;;  %v7952_v7 = vld [vmem:[#allocation4 + $0x88] sm:$0xf0] }
  0x76   : > { %1552 = vmatpush.bf16.msrb.mxu3 %v8187_v20  ;;  %7876 = vmatmul.msk.bf16.gmra.mxu0 %vm529_vm0, %v12204_v4  ;;  %v8267_v20 = vor.u32 %v11106_v10, %v8264_v11  ;;  %v11076_v10 = vld [vmem:[#allocation4 + $0x1f4] sm:$0xf]  ;;  %v8144_v11 = vld [vmem:[#allocation4 + $0x208] sm:$0xf0] }
  0x77   : > { %7880 = vmatmul.msk.bf16.gmra.mxu1 %vm529_vm0, %v12204_v4  ;;  %v8047_v4 = vor.u32 %v11055_v55, %v8046_v54  ;;  %v8003_v54 = vor.u32 %v11040_v42, %v8000_v48  ;;  %v11034_v55 = vld [vmem:[#allocation4 + $0xa4] sm:$0xf] }
  0x78   : > { %1492 = vmatmul.bf16.vlgmr.msra.gmra.mxu2 %v12235_v47  ;;  %1577 = vmatpush.bf16.msrb.mxu1 %v8215_v13  ;;  %v7979_v1 = vor.u32 %v11034_v55, %v7976_v59  ;;  %v7903_v13 = vor.u32 %v11019_v5, %v7902_v3 }
  0x79   : > { %1540 = vmatpush.bf16.msrb.mxu2 %v7971_v30  ;;  %1505 = vmatmul.bf16.vlgmr.msra.gmra.mxu3 %v12237_v49  ;;  %v7974_v30 = vld [vmem:[#allocation4 + $0xa0] sm:$0xf] }
  0x7a   : > { %1553 = vmatpush.bf16.msrb.mxu3 %v8163_v36  ;;  %1563 = vmatpush.bf16.msrb.mxu0 %v8047_v4  ;;  %v11085_v36 = vld [vmem:[#allocation4 + $0x234] sm:$0xf0]  ;;  %v7975_v40 = vor.u32 %v11037_v31, %v7974_v30  ;;  %v8195_v4 = vor.u32 %v11088_v51, %v8192_v52  ;;  %v852_v30 = vld [vmem:[%s13435_s0] sm:$0xff] }
  0x7b   : > { %v8167_v43 = vor.u32 %v11085_v36, %v8166_v35 }
  0x7c   : > { %1578 = vmatpush.bf16.msrb.mxu1 %v8191_v29 }
  0x7d   : > { %1541 = vmatpush.bf16.msrb.mxu2 %v7947_v50  ;;  %v8142_v50 = vld [vmem:[#allocation4 + $0x1f0] sm:$0xf] }
  0x7e   : > { %1554 = vmatpush.bf16.msrb.mxu3 %v8139_v53  ;;  %1564 = vmatpush.bf16.msrb.mxu0 %v8023_v8  ;;  %v7951_v53 = vor.u32 %v11031_v45, %v7950_v44  ;;  %v8094_v8 = vld [vmem:[#allocation4 + $0x190] sm:$0xf] }
  0x80   : > { %1579 = vmatpush.bf16.msrb.mxu1 %v8167_v43 }
  0x81   : > { %1542 = vmatpush.bf16.msrb.mxu2 %v7923_v62  ;;  %v11082_v62 = vld [vmem:[#allocation4 + $0x224] sm:$0xf] }
  0x82   : > { %1555 = vmatpush.bf16.msrb.mxu3 %v8115_v2  ;;  %1565 = vmatpush.bf16.msrb.mxu0 %v7999_v26  ;;  %v11028_v2 = vld [vmem:[#allocation4 + $0x74] sm:$0xf]  ;;  %v8171_v6 = vor.u32 %v11082_v62, %v8168_v63  ;;  %v8096_v26 = vld [vmem:[#allocation4 + $0x1a8] sm:$0xf0] }
  0x83   : > { %v8099_v28 = vor.u32 %v11064_v25, %v8096_v26 }
  0x85   : > { %1543 = vmatpush.bf16.msrb.mxu2 %v7899_v14  ;;  %v7955_v14 = vor.u32 %v11028_v2, %v7952_v7 }
  0x86   : > { %1556 = vmatpush.bf16.msrb.mxu3 %v8091_v15  ;;  %7877 = vmatmul.msk.bf16.gmra.mxu0 %vm529_vm0, %v12213_v37  ;;  %v8095_v15 = vor.u32 %v11067_v9, %v8094_v8 }
  0x87   : > { %7881 = vmatmul.msk.bf16.gmra.mxu1 %vm529_vm0, %v12213_v37  ;;  %v11079_v37 = vld [vmem:[#allocation4 + $0x204] sm:$0xf0]  ;;  %1566 = vmatpush.bf16.msrb.mxu0 %v7975_v40 }
  0x88   : > { %1544 = vmatmul.bf16.vlgmr.msrb.gmra.mxu2 %v12235_v47  ;;  %v8143_v56 = vor.u32 %v11079_v37, %v8142_v50 }
  0x89   : > { %1588 = vmatpush.bf16.msra.mxu2 %v8075_v16  ;;  %1557 = vmatmul.bf16.vlgmr.msrb.gmra.mxu3 %v12237_v49  ;;  %v8147_v16 = vor.u32 %v11076_v10, %v8144_v11 }
  0x8a   : > { %1601 = vmatpush.bf16.msra.mxu3 %v8267_v20  ;;  %1580 = vmatpush.bf16.msrb.mxu1 %v8143_v56  ;;  %v8120_v20 = vld [vmem:[#allocation4 + $0x1d8] sm:$0xf0] }
  0x8b   : > { %1567 = vmatpush.bf16.msrb.mxu0 %v7951_v53  ;;  %v8123_v22 = vor.u32 %v11070_v19, %v8120_v20 }
  0x8d   : > { %1589 = vmatpush.bf16.msra.mxu2 %v8051_v27  ;;  %v7907_v27 = vor.u32 %v11016_v23, %v7904_v24 }
  0x8e   : > { %1602 = vmatpush.bf16.msra.mxu3 %v8243_v32  ;;  %1581 = vmatpush.bf16.msrb.mxu1 %v8119_v33  ;;  %v669_v32 = vld [vmem:[%s13441_s6] sm:$0x7] }
  0x8f   : > { %1568 = vmatpush.bf16.msrb.mxu0 %v7927_v0  ;;  %v12275_v34 = vperm.slane %v669_v32, 0  ;;  %v12357_v19 = vperm.slane %v669_v32, 1 }
  0x91   : > { %1590 = vmatpush.bf16.msra.mxu2 %v8027_v41  ;;  %v469_v41 = vld [vmem:[%s13439_s4] sm:$0x7] }
  0x92   : > { %1603 = vmatpush.bf16.msra.mxu3 %v8219_v46  ;;  %1582 = vmatpush.bf16.msrb.mxu1 %v8095_v15  ;;  %v12289_v42 = vperm.slane %v469_v41, 0  ;;  %v12293_v44 = vperm.slane %v469_v41, 1  ;;  %v12305_v51 = vperm.slane %v469_v41, 2 }
  0x93   : > { %1569 = vmatpush.bf16.msrb.mxu0 %v7903_v13 }
  0x95   : > { %1591 = vmatpush.bf16.msra.mxu2 %v8003_v54 }
  0x96   : > { %1604 = vmatpush.bf16.msra.mxu3 %v8195_v4  ;;  %7878 = vmatmul.msk.bf16.gmra.mxu0 %vm529_vm0, %v12222_v12 }
  0x97   : > { %7882 = vmatmul.msk.bf16.gmra.mxu1 %vm529_vm0, %v12222_v12  ;;  %v12014_v12 = vmov 0  }
  0x98   : > { %11805 = vset.pattern.permute.xlu0 %v12014_v12  ;;  %v11146_v12 = vld [vmem:[#allocation4 + $0x124] sm:$0xf] }
  0x99   : > { %1592 = vmatpush.bf16.msra.mxu2 %v7979_v1  ;;  %854 = vperm.xlu0 %11805, %v852_v30  }
  0x9a   : > { %1605 = vmatpush.bf16.msra.mxu3 %v8171_v6 }
  0x9d   : > { %1593 = vmatpush.bf16.msra.mxu2 %v7955_v14 }
  0x9e   : > { %1606 = vmatpush.bf16.msra.mxu3 %v8147_v16  ;;  %v8442_v16 = vld [vmem:[#allocation4 + $0x150] sm:$0xf] }
  0x9f   : > { %v8443_v20 = vor.u32 %v11155_v17, %v8442_v16  ;;  %v8370_v17 = vld [vmem:[#allocation4 + $0xc0] sm:$0xf] }
  0xa1   : > { %1594 = vmatpush.bf16.msra.mxu2 %v7931_v21  ;;  %v8444_v21 = vld [vmem:[#allocation4 + $0x168] sm:$0xf0] }
  0xa2   : > { %1607 = vmatpush.bf16.msra.mxu3 %v8123_v22  ;;  %v12359_v22 = vperm.slane %v669_v32, 2  ;;  %v8447_v23 = vor.u32 %v11152_v18, %v8444_v21  ;;  %v11137_v18 = vld [vmem:[#allocation4 + $0xd4] sm:$0xf0] }
  0xa3   : > { %v12261_v29 = vpop.f32.mrf.mxu0 }
  0xa4   : > { %v12266_v31 = vpop.f32.mrf.mxu1 }
  0xa5   : > { %1595 = vmatpush.bf16.msra.mxu2 %v7907_v27  ;;  %v8418_v27 = vld [vmem:[#allocation4 + $0x120] sm:$0xf] }
  0xa6   : > { %1608 = vmatpush.bf16.msra.mxu3 %v8099_v28  ;;  %1518 = vmatmul.bf16.vlgmr.msra.gmra.mxu0 %v12235_v47  ;;  %v11149_v28 = vld [vmem:[#allocation4 + $0x134] sm:$0xf0] }
  0xa7   : > { %1531 = vmatmul.bf16.vlgmr.msra.gmra.mxu1 %v12237_v49  ;;  %2304 = vmatpush.bf16.msra.mxu0 %v8443_v20  ;;  %v8419_v41 = vor.u32 %v11149_v28, %v8418_v27  ;;  %v11134_v20 = vld [vmem:[#allocation4 + $0xc4] sm:$0xf] }
  0xa8   : > { %1596 = vmatmul.bf16.vlgmr.msra.gmra.mxu2 %v12235_v47 }
  0xa9   : > { %1609 = vmatmul.bf16.vlgmr.msra.gmra.mxu3 %v12237_v49  ;;  %2330 = vmatpush.bf16.msrb.mxu2 %v8447_v23  ;;  %v8371_v23 = vor.u32 %v11137_v18, %v8370_v17  ;;  %v8322_v17 = vld [vmem:[#allocation4 + $0x60] sm:$0xf]  ;;  %v11122_v18 = vld [vmem:[#allocation4 + $0x64] sm:$0xf] }
  0xab   : > { %v12277_v35 = vpop.f32.mrf.mxu2  ;;  %v12279_v36 = vpop.f32.mrf.mxu0  ;;  %2305 = vmatpush.bf16.msra.mxu0 %v8419_v41  ;;  %v11128_v41 = vld [vmem:[#allocation4 + $0x94] sm:$0xf] }
  0xac   : > { %v750_v38 = vpop.f32.mrf.mxu3  ;;  %v12281_v39 = vpop.f32.mrf.mxu1 }
  0xad   : > { %v12284_v40 = vadd.f32 %v750_v38, %v12275_v34 }
  0xaf   : > { %13459 = vst [vmem:[#allocation7_spill] sm:$0xff] %v12284_v40  ;;  %v11147_v40 = vld [vmem:[#allocation4 + $0x12c] sm:$0xf] }
  0xb3   : > { %v12291_v43 = vpop.f32.mrf.mxu2  ;;  %v556_v45 = vpop.f32.mrf.mxu0 }
  0xb4   : > { %v12295_v46 = vpop.f32.mrf.mxu3  ;;  %v12298_v48 = vadd.f32 %v556_v45, %v12289_v42  ;;  %v585_v50 = vpop.f32.mrf.mxu1  ;;  %v8420_v45 = vld [vmem:[#allocation4 + $0x138] sm:$0xf0] }
  0xb5   : > { %13460 = vst [vmem:[#allocation8_spill] sm:$0xff] %v12295_v46  ;;  %v12301_v37 = vadd.f32 %v585_v50, %v12293_v44  ;;  %v8423_v50 = vor.u32 %v11146_v12, %v8420_v45  ;;  %v8346_v12 = vld [vmem:[#allocation4 + $0x90] sm:$0xf] }
  0xb6   : > { %1570 = vmatmul.bf16.vlgmr.msrb.gmra.mxu0 %v12235_v47 }
  0xb7   : > { %1583 = vmatmul.bf16.vlgmr.msrb.gmra.mxu1 %v12237_v49  ;;  %2331 = vmatpush.bf16.msrb.mxu2 %v8423_v50  ;;  %v8348_v50 = vld [vmem:[#allocation4 + $0xa8] sm:$0xf0] }
  0xbb   : > { %v614_v52 = vpop.f32.mrf.mxu2  ;;  %v12310_v54 = vpop.f32.mrf.mxu0 }
  0xbc   : > { %v12308_v53 = vadd.f32 %v614_v52, %v12305_v51  ;;  %v755_v55 = vpop.f32.mrf.mxu3  ;;  %v12312_v56 = vpop.f32.mrf.mxu1  ;;  %v12374_v52 = vld [vmem:[%s13443_s8] sm:$0x3f] }
  0xbd   : > { %v12315_v57 = vadd.f32 %v755_v55, %v12275_v34  ;;  %v8394_v55 = vld [vmem:[#allocation4 + $0xf0] sm:$0xf] }
  0xbf   : > { %13461 = vst [vmem:[#allocation9_spill] sm:$0xff] %v12315_v57  ;;  %v8284_v57 = vld [vmem:[#allocation4 + $0x20] sm:$0xf0] }
  0xc3   : > { %v12317_v58 = vpop.f32.mrf.mxu2  ;;  %v561_v4 = vpop.f32.mrf.mxu0 }
  0xc4   : > { %13462 = vst [vmem:[#allocation10_spill] sm:$0xff] %v12317_v58  ;;  %v12319_v47 = vpop.f32.mrf.mxu3  ;;  %v12322_v49 = vadd.f32 %v561_v4, %v12289_v42  ;;  %v590_v59 = vpop.f32.mrf.mxu1  ;;  %v11143_v4 = vld [vmem:[#allocation4 + $0x104] sm:$0xf0] }
  0xc5   : > { %13463 = vst [vmem:[#allocation11_spill] sm:$0xff] %v12319_v47  ;;  %v12325_v60 = vadd.f32 %v590_v59, %v12293_v44  ;;  %v11140_v59 = vld [vmem:[#allocation4 + $0xf4] sm:$0xf] }
  0xc6   : > { %13464 = vst [vmem:[#allocation12_spill] sm:$0xff] %v12322_v49  ;;  %v8436_v49 = vld [vmem:[#allocation4 + $0x148] sm:$0xf0] }
  0xc7   : > { %13465 = vst [vmem:[#allocation13_spill] sm:$0xff] %v12325_v60 }
  0xcb   : > { %v619_v61 = vpop.f32.mrf.mxu2  ;;  %v12330_v63 = vpop.f32.mrf.mxu0 }
  0xcc   : > { %v12328_v62 = vadd.f32 %v619_v61, %v12305_v51  ;;  %13467 = vst [vmem:[#allocation15_spill] sm:$0xff] %v12330_v63  ;;  %v760_v0 = vpop.f32.mrf.mxu3  ;;  %v12332_v1 = vpop.f32.mrf.mxu1  ;;  %v8395_v61 = vor.u32 %v11143_v4, %v8394_v55  ;;  %v8351_v4 = vor.u32 %v11128_v41, %v8348_v50  ;;  %v11119_v41 = vld [vmem:[#allocation4 + $0x44] sm:$0xf0]  ;;  %v8594_v63 = vld [vmem:[#allocation4 + $0x278] sm:$0xf] }
  0xcd   : > { %13468 = vst [vmem:[#allocation16_spill] sm:$0xff] %v12332_v1  ;;  %v12335_v2 = vadd.f32 %v760_v0, %v12275_v34  ;;  %v8396_v0 = vld [vmem:[#allocation4 + $0x108] sm:$0xf0]  ;;  %v610_v1 = vadd.f32 %v12277_v35, %v12305_v51  ;;  %v11198_v35 = vld [vmem:[#allocation4 + $0x2bc] sm:$0xf0] }
  0xce   : > { %13466 = vst [vmem:[#allocation14_spill] sm:$0xff] %v12328_v62  ;;  %2306 = vmatpush.bf16.msra.mxu0 %v8395_v61  ;;  %v552_v61 = vadd.f32 %v12261_v29, %v12289_v42  ;;  %v8298_v29 = vld [vmem:[#allocation4 + $0x30] sm:$0xf]  ;;  %v12521_v62 = vld [vmem:[#allocation4 + $0x144] sm:$0xf0] }
  0xcf   : > { %v8299_v50 = vor.u32 %v11119_v41, %v8298_v29  ;;  %v8276_v29 = vld [vmem:[#allocation4 + $0x18] sm:$0xf0]  ;;  %v11156_v41 = vld [vmem:[#allocation4 + $0x16c] sm:$0xf0] }
  0xd2   : > { %2307 = vmatpush.bf16.msra.mxu0 %v8371_v23 }
  0xd3   : > { %v12337_v33 = vpop.f32.mrf.mxu2  ;;  %v566_v3 = vpop.f32.mrf.mxu0 }
  0xd4   : > { %13469 = vst [vmem:[#allocation17_spill] sm:$0xff] %v12337_v33  ;;  %v12339_v5 = vpop.f32.mrf.mxu3  ;;  %v12342_v6 = vadd.f32 %v566_v3, %v12289_v42  ;;  %v595_v7 = vpop.f32.mrf.mxu1  ;;  %v12377_v3 = vperm.slane %v12374_v52, 0 }
  0xd5   : > { %v12345_v8 = vadd.f32 %v595_v7, %v12293_v44  ;;  %v8399_v7 = vor.u32 %v11140_v59, %v8396_v0 }
  0xd6   : > { %13470 = vst [vmem:[#allocation18_spill] sm:$0xff] %v12342_v6  ;;  %v11179_v6 = vld [vmem:[#allocation4 + $0x224] sm:$0xf0] }
  0xd7   : > { %13471 = vst [vmem:[#allocation19_spill] sm:$0xff] %v12345_v8  ;;  %2332 = vmatpush.bf16.msrb.mxu2 %v8399_v7  ;;  %v11188_v8 = vld [vmem:[#allocation4 + $0x274] sm:$0xf] }
  0xdb   : > { %v624_v9 = vpop.f32.mrf.mxu2  ;;  %v12350_v11 = vpop.f32.mrf.mxu0 }
  0xdc   : > { %v12348_v10 = vadd.f32 %v624_v9, %v12305_v51  ;;  %13473 = vst [vmem:[#allocation21_spill] sm:$0xff] %v12350_v11  ;;  %v765_v13 = vpop.f32.mrf.mxu3  ;;  %v12352_v14 = vpop.f32.mrf.mxu1 }
  0xdd   : > { %13474 = vst [vmem:[#allocation22_spill] sm:$0xff] %v12352_v14  ;;  %v12355_v15 = vadd.f32 %v765_v13, %v12275_v34  ;;  %v8428_v14 = vld [vmem:[#allocation4 + $0x140] sm:$0xf0] }
  0xde   : > { %13472 = vst [vmem:[#allocation20_spill] sm:$0xff] %v12348_v10  ;;  %v8378_v10 = vld [vmem:[#allocation4 + $0xc8] sm:$0xf] }
  0xe3   : > { %v12361_v24 = vpop.f32.mrf.mxu2  ;;  %v779_v26 = vpop.f32.mrf.mxu0 }
  0xe4   : > { %13475 = vst [vmem:[#allocation23_spill] sm:$0xff] %v12361_v24  ;;  %v12363_v25 = vpop.f32.mrf.mxu3  ;;  %v12366_v30 = vadd.f32 %v779_v26, %v12357_v19  ;;  %v808_v38 = vpop.f32.mrf.mxu1  ;;  %v8372_v26 = vld [vmem:[#allocation4 + $0xd8] sm:$0xf0]  ;;  %v11150_v24 = vld [vmem:[#allocation4 + $0x13c] sm:$0xf0] }
  0xe5   : > { %v12369_v32 = vadd.f32 %v808_v38, %v12359_v22  ;;  %v8375_v28 = vor.u32 %v11134_v20, %v8372_v26  ;;  %v11131_v38 = vld [vmem:[#allocation4 + $0xa4] sm:$0xf0] }
  0xe6   : > { %13476 = vst [vmem:[#allocation24_spill] sm:$0xff] %v12366_v30  ;;  %v8347_v45 = vor.u32 %v11131_v38, %v8346_v12  ;;  %v12393_v38 = vperm.slane %v12374_v52, 1  ;;  %v8426_v30 = vld [vmem:[#allocation4 + $0x128] sm:$0xf] }
  0xe7   : > { %13477 = vst [vmem:[#allocation25_spill] sm:$0xff] %v12369_v32  ;;  %2333 = vmatpush.bf16.msrb.mxu2 %v8375_v28  ;;  %v8324_v28 = vld [vmem:[#allocation4 + $0x78] sm:$0xf0]  ;;  %v8452_v32 = vld [vmem:[#allocation4 + $0x170] sm:$0xf0] }
  0xe8   : > { %2308 = vmatpush.bf16.msra.mxu0 %v8347_v45  ;;  %v11116_v45 = vld [vmem:[#allocation4 + $0x34] sm:$0xf] }
  0xeb   : > { %v1467_v9 = vpop.f32.mrf.mxu2  ;;  %v12379_v13 = vpop.f32.mrf.mxu0  ;;  %2334 = vmatpush.bf16.msrb.mxu2 %v8351_v4  ;;  %v8300_v4 = vld [vmem:[#allocation4 + $0x48] sm:$0xf0] }
  0xec   : > { %13478 = vst [vmem:[#allocation26_spill] sm:$0xff] %v12379_v13  ;;  %v1480_v16 = vpop.f32.mrf.mxu3  ;;  %v12381_v21 = vpop.f32.mrf.mxu1  ;;  %v1468_v27 = vadd.f32 %v1467_v9, %v12377_v3  ;;  %v11125_v9 = vld [vmem:[#allocation4 + $0x74] sm:$0xf0]  ;;  %v11135_v13 = vld [vmem:[#allocation4 + $0xcc] sm:$0xf] }
  0xed   : > { %13479 = vst [vmem:[#allocation27_spill] sm:$0xff] %v12381_v21  ;;  %v8323_v26 = vor.u32 %v11125_v9, %v8322_v17  ;;  %v8274_v9 = vld [vmem:[#allocation4] sm:$0xf] }
  0xee   : > { %v1481_v55 = vadd.f32 %v1480_v16, %v1468_v27  ;;  %v8327_v27 = vor.u32 %v11122_v18, %v8324_v28  ;;  %v11113_v18 = vld [vmem:[#allocation4 + $0x14] sm:$0xf0] }
  0xef   : > { %2309 = vmatpush.bf16.msra.mxu0 %v8323_v26  ;;  %v581_v26 = vadd.f32 %v12266_v31, %v12293_v44  ;;  %v8427_v31 = vor.u32 %v11150_v24, %v8426_v30  ;;  %v12411_v24 = vperm.slane %v12374_v52, 3 }
  0xf0   : > { %v1614_v12 = vadd.f32 %v1481_v55, %v552_v61  ;;  %2335 = vmatpush.bf16.msrb.mxu2 %v8327_v27  ;;  %v8275_v27 = vor.u32 %v11113_v18, %v8274_v9  ;;  %v8431_v9 = vor.u32 %v11147_v40, %v8428_v14  ;;  %v8634_v40 = vld [vmem:[#allocation4 + $0x2d0] sm:$0xf]  ;;  %v11200_v14 = vld [vmem:[#allocation4 + $0x2d4] sm:$0xf] }
  0xf3   : > { %v1469_v59 = vpop.f32.mrf.mxu2  ;;  %v784_v0 = vpop.f32.mrf.mxu0  ;;  %2310 = vmatpush.bf16.msra.mxu0 %v8299_v50 }
  0xf4   : > { %v1482_v7 = vpop.f32.mrf.mxu3  ;;  %v12387_v20 = vadd.f32 %v784_v0, %v12357_v19  ;;  %v813_v23 = vpop.f32.mrf.mxu1  ;;  %v8268_v59 = vmul.f32 -1.442695, %v1614_v12  ;;  %v8303_v0 = vor.u32 %v11116_v45, %v8300_v4  ;;  %v8450_v12 = vld [vmem:[#allocation4 + $0x158] sm:$0xf] }
  0xf5   : > { %v12390_v16 = vadd.f32 %v813_v23, %v12359_v22  ;;  %v11110_v23 = vld [vmem:[#allocation4 + $0x4] sm:$0xf]  ;;  %v8451_v4 = vor.u32 %v11156_v41, %v8450_v12  ;;  %v11144_v12 = vld [vmem:[#allocation4 + $0x10c] sm:$0xf0] }
  0xf6   : > { %13480 = vst [vmem:[#allocation28_spill] sm:$0xff] %v12387_v20  ;;  %2336 = vmatpush.bf16.msrb.mxu2 %v8303_v0  ;;  %11806 = vpow2.f32 %v8268_v59  ;;  %v8279_v50 = vor.u32 %v11110_v23, %v8276_v29  ;;  %v8402_v29 = vld [vmem:[#allocation4 + $0xf8] sm:$0xf]  ;;  %v8516_v20 = vld [vmem:[#allocation4 + $0x1f8] sm:$0xf0] }
  0xf7   : > { %13481 = vst [vmem:[#allocation29_spill] sm:$0xff] %v12390_v16  ;;  %2311 = vmatpush.bf16.msra.mxu0 %v8275_v27 }
  0xfa   : > { %2337 = vmatpush.bf16.msrb.mxu2 %v8279_v50 }
  0xfb   : > { %v1493_v7 = vpop.f32.mrf.mxu2  ;;  %v12396_v61 = vpop.f32.mrf.mxu0  ;;  %2356 = vmatpush.bf16.msrb.mxu0 %v8451_v4  ;;  %v8403_v4 = vor.u32 %v11144_v12, %v8402_v29  ;;  %v8612_v29 = vld [vmem:[#allocation4 + $0x2b8] sm:$0xf0] }
  0xfc   : > { %v1494_v55 = vadd.f32 %v1493_v7, %v12393_v38  ;;  %13482 = vst [vmem:[#allocation30_spill] sm:$0xff] %v12396_v61  ;;  %v1506_v17 = vpop.f32.mrf.mxu3  ;;  %v12400_v28 = vpop.f32.mrf.mxu1  ;;  %v11153_v7 = vld [vmem:[#allocation4 + $0x15c] sm:$0xf]  ;;  %v12523_v61 = vld [vmem:[#allocation4 + $0x134] sm:$0xf] }
  0xfd   : > { %13483 = vst [vmem:[#allocation31_spill] sm:$0xff] %v12400_v28  ;;  %v8455_v0 = vor.u32 %v11153_v7, %v8452_v32  ;;  %v11807_v59 = vpop.eup %11806  ;;  %v11141_v7 = vld [vmem:[#allocation4 + $0xfc] sm:$0xf]  ;;  %v11192_v28 = vld [vmem:[#allocation4 + $0x28c] sm:$0xf0] }
  0xfe   : > { %v1507_v45 = vadd.f32 %v1506_v17, %v1494_v55 }
  0xff   : > { %2382 = vmatpush.bf16.msra.mxu2 %v8455_v0  ;;  %2357 = vmatpush.bf16.msrb.mxu0 %v8427_v31  ;;  %v8404_v0 = vld [vmem:[#allocation4 + $0x110] sm:$0xf0] }
 0x100   : > { %v1634_v11 = vadd.f32 %v1507_v45, %v581_v26  ;;  %v12408_v26 = vadd.f32 1.0, %v11807_v59  ;;  %v8407_v59 = vor.u32 %v11141_v7, %v8404_v0 }
 0x102   : > { %v8269_v18 = vmul.f32 -1.442695, %v1634_v11  ;;  %v11203_v11 = vld [vmem:[#allocation4 + $0x2e4] sm:$0xf0]  ;;  %vm1624_vm2 = vweird.f32 %v12408_v26 }
 0x103   : > { %v1495_v21 = vpop.f32.mrf.mxu2  ;;  %v789_v55 = vpop.f32.mrf.mxu0  ;;  %2383 = vmatpush.bf16.msra.mxu2 %v8431_v9  ;;  %v8635_v30 = vor.u32 %v11203_v11, %v8634_v40  ;;  %2358 = vmatpush.bf16.msrb.mxu0 %v8403_v4  ;;  %v768_v40 = vadd.f32 %v12363_v25, %v12275_v34  ;;  %v8586_v25 = vld [vmem:[#allocation4 + $0x270] sm:$0xf] }
 0x104   : > { %v1508_v17 = vpop.f32.mrf.mxu3  ;;  %11808 = vpow2.f32 %v8269_v18  ;;  %v12403_v23 = vadd.f32 %v789_v55, %v12357_v19  ;;  %v818_v32 = vpop.f32.mrf.mxu1  ;;  %v8636_v21 = vld [vmem:[#allocation4 + $0x2e8] sm:$0xf0] }
 0x105   : > { %v12406_v27 = vadd.f32 %v818_v32, %v12359_v22  ;;  %11810 = vrcp.f32 %v12408_v26  ;;  %v8639_v50 = vor.u32 %v11200_v14, %v8636_v21  ;;  %2317 = vmatpush.bf16.msra.mxu1 %v8635_v30  ;;  %v8610_v17 = vld [vmem:[#allocation4 + $0x2a0] sm:$0xf]  ;;  %v11197_v32 = vld [vmem:[#allocation4 + $0x2b4] sm:$0xf0]  ;;  %v11194_v21 = vld [vmem:[#allocation4 + $0x2a4] sm:$0xf] }
 0x106   : > { %13484 = vst [vmem:[#allocation32_spill] sm:$0xff] %v12403_v23  ;;  %v8611_v12 = vor.u32 %v11197_v32, %v8610_v17  ;;  %v11138_v30 = vld [vmem:[#allocation4 + $0xdc] sm:$0xf0]  ;;  %v8354_v17 = vld [vmem:[#allocation4 + $0x98] sm:$0xf] }
 0x107   : > { %13485 = vst [vmem:[#allocation33_spill] sm:$0xff] %v12406_v27  ;;  %2343 = vmatpush.bf16.msrb.mxu3 %v8639_v50  ;;  %2384 = vmatpush.bf16.msra.mxu2 %v8407_v59  ;;  %v8379_v0 = vor.u32 %v11138_v30, %v8378_v10  ;;  %v8380_v50 = vld [vmem:[#allocation4 + $0xe0] sm:$0xf0]  ;;  %v8588_v59 = vld [vmem:[#allocation4 + $0x288] sm:$0xf0] }
 0x108   : > { %v8383_v46 = vor.u32 %v11135_v13, %v8380_v50  ;;  %v8591_v10 = vor.u32 %v11188_v8, %v8588_v59  ;;  %v8562_v50 = vld [vmem:[#allocation4 + $0x240] sm:$0xf]  ;;  %v8564_v59 = vld [vmem:[#allocation4 + $0x258] sm:$0xf0] }
 0x109   : > { %2318 = vmatpush.bf16.msra.mxu1 %v8611_v12  ;;  %2359 = vmatpush.bf16.msrb.mxu0 %v8379_v0  ;;  %v12531_v27 = vld [vmem:[#allocation4 + $0x100] sm:$0xf] }
 0x10a   : > { %v11809_v41 = vpop.eup %11808 }
 0x10b   : > { %v1545_v45 = vpop.f32.mrf.mxu2  ;;  %v12415_v9 = vpop.f32.mrf.mxu0  ;;  %v12421_v11 = vadd.f32 1.0, %v11809_v41  ;;  %v11191_v41 = vld [vmem:[#allocation4 + $0x284] sm:$0xf0]  ;;  %2385 = vmatpush.bf16.msra.mxu2 %v8383_v46 }
 0x10c   : > { %v1546_v31 = vadd.f32 %v1545_v45, %v12411_v24  ;;  %v1558_v18 = vpop.f32.mrf.mxu3  ;;  %v12417_v55 = vpop.f32.mrf.mxu1  ;;  %v8615_v45 = vor.u32 %v11194_v21, %v8612_v29  ;;  %v8356_v21 = vld [vmem:[#allocation4 + $0xb0] sm:$0xf0] }
 0x10d   : > { %v12423_v4 = vpop.eup %11810  ;;  %11812 = vrcp.f32 %v12421_v11  ;;  %vm1644_vm6 = vweird.f32 %v12421_v11 }
 0x10e   : > { %v1559_v14 = vadd.f32 %v1558_v18, %v1546_v31  ;;  %2344 = vmatpush.bf16.msrb.mxu3 %v8615_v45  ;;  %v8587_v18 = vor.u32 %v11191_v41, %v8586_v25  ;;  %v1620_v13 = vmul.f32 %v12423_v4, %v12408_v26  ;;  %v11185_v25 = vld [vmem:[#allocation4 + $0x254] sm:$0xf0]  ;;  %v11182_v41 = vld [vmem:[#allocation4 + $0x244] sm:$0xf]  ;;  %vm1625_vm1 = vweird.f32 %v12423_v4 }
 0x10f   : > { %v8563_v8 = vor.u32 %v11185_v25, %v8562_v50  ;;  %v8540_v25 = vld [vmem:[#allocation4 + $0x228] sm:$0xf0]  ;;  %vm12457_vm3 = vmor %vm1624_vm2, %vm1625_vm1 }
 0x110   : > { %v1661_v7 = vadd.f32 %v1559_v14, %v768_v40  ;;  %v11132_v40 = vld [vmem:[#allocation4 + $0xac] sm:$0xf0]  ;;  %v11129_v14 = vld [vmem:[#allocation4 + $0x9c] sm:$0xf]  ;;  %2319 = vmatpush.bf16.msra.mxu1 %v8587_v18  ;;  %v1621_v18 = vsub.f32 1.0, %v1620_v13 }
 0x111   : > { %v8355_v45 = vor.u32 %v11132_v40, %v8354_v17  ;;  %v8359_v0 = vor.u32 %v11129_v14, %v8356_v21  ;;  %v8330_v17 = vld [vmem:[#allocation4 + $0x68] sm:$0xf]  ;;  %v11126_v40 = vld [vmem:[#allocation4 + $0x7c] sm:$0xf0]  ;;  %v8332_v14 = vld [vmem:[#allocation4 + $0x80] sm:$0xf0] }
 0x112   : > { %v8270_v31 = vmul.f32 -1.442695, %v1661_v7  ;;  %2345 = vmatpush.bf16.msrb.mxu3 %v8591_v10  ;;  %v8331_v10 = vor.u32 %v11126_v40, %v8330_v17  ;;  %v11117_v13 = vld [vmem:[#allocation4 + $0x3c] sm:$0xf]  ;;  %v8308_v17 = vld [vmem:[#allocation4 + $0x50] sm:$0xf0] }
 0x113   : > { %v1547_v32 = vpop.f32.mrf.mxu2  ;;  %v794_v29 = vpop.f32.mrf.mxu0  ;;  %2360 = vmatpush.bf16.msrb.mxu0 %v8355_v45  ;;  %2386 = vmatpush.bf16.msra.mxu2 %v8359_v0  ;;  %v11176_v45 = vld [vmem:[#allocation4 + $0x214] sm:$0xf]  ;;  %v11120_v0 = vld [vmem:[#allocation4 + $0x4c] sm:$0xf0] }
 0x114   : > { %v1560_v12 = vpop.f32.mrf.mxu3  ;;  %v12429_v30 = vadd.f32 %v794_v29, %v12357_v19  ;;  %v823_v7 = vpop.f32.mrf.mxu1  ;;  %11814 = vpow2.f32 %v8270_v31  ;;  %v8567_v32 = vor.u32 %v11182_v41, %v8564_v59  ;;  %v11123_v29 = vld [vmem:[#allocation4 + $0x6c] sm:$0xf]  ;;  %2320 = vmatpush.bf16.msra.mxu1 %v8563_v8  ;;  %v8306_v31 = vld [vmem:[#allocation4 + $0x38] sm:$0xf]  ;;  %v8543_v59 = vor.u32 %v11176_v45, %v8540_v25 }
 0x115   : > { %v12432_v46 = vadd.f32 %v823_v7, %v12359_v22  ;;  %v12434_v12 = vpop.eup %11812  ;;  %v8335_v21 = vor.u32 %v11123_v29, %v8332_v14  ;;  %v8538_v7 = vld [vmem:[#allocation4 + $0x210] sm:$0xf]  ;;  %v8307_v16 = vor.u32 %v11120_v0, %v8306_v31  ;;  %v8311_v8 = vor.u32 %v11117_v13, %v8308_v17  ;;  %v11173_v14 = vld [vmem:[#allocation4 + $0x1f4] sm:$0xf0]  ;;  %v8282_v31 = vld [vmem:[#allocation4 + $0x8] sm:$0xf] }
 0x116   : > { %2346 = vmatpush.bf16.msrb.mxu3 %v8567_v32  ;;  %v8539_v50 = vor.u32 %v11179_v6, %v8538_v7  ;;  %v1640_v41 = vmul.f32 %v12434_v12, %v12421_v11  ;;  %v8514_v6 = vld [vmem:[#allocation4 + $0x1e0] sm:$0xf]  ;;  %v11170_v7 = vld [vmem:[#allocation4 + $0x1e4] sm:$0xf]  ;;  %v11111_v17 = vld [vmem:[#allocation4 + $0xc] sm:$0xf]  ;;  %vm1645_vm4 = vweird.f32 %v12434_v12 }
 0x117   : > { %2361 = vmatpush.bf16.msrb.mxu0 %v8331_v10  ;;  %2387 = vmatpush.bf16.msra.mxu2 %v8335_v21  ;;  %v1622_v10 = vmul.f32 %v12423_v4, %v1621_v18  ;;  %v8515_v45 = vor.u32 %v11173_v14, %v8514_v6  ;;  %v8519_v25 = vor.u32 %v11170_v7, %v8516_v20  ;;  %v11114_v0 = vld [vmem:[#allocation4 + $0x1c] sm:$0xf0]  ;;  %v12446_v18 = vperm.slane %v12374_v52, 2  ;;  %v11164_v6 = vld [vmem:[#allocation4 + $0x1b4] sm:$0xf]  ;;  %vm12477_vm7 = vmor %vm1644_vm6, %vm1645_vm4 }
 0x118   : > { %2321 = vmatpush.bf16.msra.mxu1 %v8539_v50  ;;  %v1641_v21 = vsub.f32 1.0, %v1640_v41  ;;  %v8283_v13 = vor.u32 %v11114_v0, %v8282_v31  ;;  %v1628_v41 = vand.u32 2147483647, %v12408_v26  ;;  %v1630_v20 = vand.u32 2147483648, %v12408_v26  ;;  %v8492_v14 = vld [vmem:[#allocation4 + $0x1c8] sm:$0xf0] }
 0x119   : > { %v1623_v50 = vadd.f32 %v12423_v4, %v1622_v10  ;;  %v8466_v31 = vld [vmem:[#allocation4 + $0x180] sm:$0xf] }
 0x11a   : > { %v11815_v32 = vpop.eup %11814  ;;  %2347 = vmatpush.bf16.msrb.mxu3 %v8543_v59  ;;  %v8490_v59 = vld [vmem:[#allocation4 + $0x1b0] sm:$0xf]  ;;  %vm1629_vm5 = vcmp.eq.f32.partialorder %v1628_v41, 8.507059e+37  ;;  %v1631_v0 = vor.u32 1.1754944e-38, %v1630_v20 }
 0x11b   : > { %v12438_v40 = vpop.f32.mrf.mxu0  ;;  %2362 = vmatpush.bf16.msrb.mxu0 %v8307_v16  ;;  %2388 = vmatpush.bf16.msra.mxu2 %v8311_v8  ;;  %v12443_v33 = vadd.f32 1.0, %v11815_v32  ;;  %v8287_v16 = vor.u32 %v11111_v17, %v8284_v57  ;;  %v1642_v8 = vmul.f32 %v12434_v12, %v1641_v21  ;;  %v11167_v32 = vld [vmem:[#allocation4 + $0x1c4] sm:$0xf0]  ;;  %v1627_v26 = vsel %vm12457_vm3, %v12423_v4, %v1623_v50  ;;  %v11158_v17 = vld [vmem:[#allocation4 + $0x184] sm:$0xf] }
 0x11c   : > { %v12440_v29 = vpop.f32.mrf.mxu1  ;;  %2322 = vmatpush.bf16.msra.mxu1 %v8515_v45  ;;  %v8491_v7 = vor.u32 %v11167_v32, %v8490_v59  ;;  %v8495_v45 = vor.u32 %v11164_v6, %v8492_v14  ;;  %v8468_v6 = vld [vmem:[#allocation4 + $0x198] sm:$0xf0]  ;;  %v8642_v14 = vld [vmem:[#allocation4 + $0x2d8] sm:$0xf]  ;;  %v1650_v4 = vand.u32 2147483648, %v12421_v11  ;;  %v1632_v50 = vsel %vm1629_vm5, %v1631_v0, %v1627_v26 }
 0x11d   : > { %11816 = vrcp.f32 %v12443_v33  ;;  %v1643_v59 = vadd.f32 %v12434_v12, %v1642_v8  ;;  %v8471_v41 = vor.u32 %v11158_v17, %v8468_v6  ;;  %v11195_v17 = vld [vmem:[#allocation4 + $0x2ac] sm:$0xf]  ;;  %v11189_v8 = vld [vmem:[#allocation4 + $0x27c] sm:$0xf]  ;;  %vm1671_vm11 = vweird.f32 %v12443_v33 }
 0x11e   : > { %2348 = vmatpush.bf16.msrb.mxu3 %v8519_v25 }
 0x11f   : > { %2363 = vmatpush.bf16.msrb.mxu0 %v8283_v13  ;;  %2389 = vmatpush.bf16.msra.mxu2 %v8287_v16  ;;  %v11161_v13 = vld [vmem:[#allocation4 + $0x194] sm:$0xf0]  ;;  %v1647_v6 = vsel %vm12477_vm7, %v12434_v12, %v1643_v59  ;;  %v8596_v12 = vld [vmem:[#allocation4 + $0x290] sm:$0xf0] }
 0x120   : > { %2323 = vmatpush.bf16.msra.mxu1 %v8491_v7  ;;  %v8467_v32 = vor.u32 %v11161_v13, %v8466_v31  ;;  %v11201_v7 = vld [vmem:[#allocation4 + $0x2dc] sm:$0xf]  ;;  %v8618_v13 = vld [vmem:[#allocation4 + $0x2a8] sm:$0xf] }
 0x122   : > { %2349 = vmatpush.bf16.msrb.mxu3 %v8495_v45  ;;  %v8644_v45 = vld [vmem:[#allocation4 + $0x2f0] sm:$0xf0] }
 0x123   : > { %v1519_v10 = vpop.f32.mrf.mxu0  ;;  %v8647_v31 = vor.u32 %v11201_v7, %v8644_v45  ;;  %v12484_v0 = vpop.eup %11816 }
 0x124   : > { %v1520_v25 = vadd.f32 %v1519_v10, %v12446_v18  ;;  %v1532_v21 = vpop.f32.mrf.mxu1  ;;  %v11204_v10 = vld [vmem:[#allocation4 + $0x2ec] sm:$0xf0]  ;;  %2324 = vmatpush.bf16.msra.mxu1 %v8467_v32  ;;  %v1667_v32 = vmul.f32 %v12484_v0, %v12443_v33  ;;  %vm1672_vm10 = vweird.f32 %v12484_v0 }
 0x125   : > { %v8643_v20 = vor.u32 %v11204_v10, %v8642_v14  ;;  %v1651_v10 = vor.u32 1.1754944e-38, %v1650_v4  ;;  %v8599_v4 = vor.u32 %v11189_v8, %v8596_v12  ;;  %v8458_v8 = vld [vmem:[#allocation4 + $0x160] sm:$0xf]  ;;  %vm12570_vm12 = vmor %vm1671_vm11, %vm1672_vm10 }
 0x126   : > { %v1533_v16 = vadd.f32 %v1532_v21, %v1520_v25  ;;  %v1648_v25 = vand.u32 2147483647, %v12421_v11  ;;  %2350 = vmatpush.bf16.msrb.mxu3 %v8471_v41  ;;  %v8619_v11 = vor.u32 %v11198_v35, %v8618_v13  ;;  %v12497_v13 = vpop.permute.xlu0 %854  ;;  %v1708_v35 = vstv %s12492_s23 }
 0x127   : > { %vm12512_vm9 = vcmp.lt.s32.totalorder %v1708_v35, %v12497_v13 }
 0x128   : > { %v1654_v21 = vmul.f32 %v1632_v50, %v1533_v16  ;;  %2369 = vmatpush.bf16.msrb.mxu1 %v8643_v20  ;;  %v8620_v16 = vld [vmem:[#allocation4 + $0x2c0] sm:$0xf0]  ;;  %vm1649_vm8 = vcmp.eq.f32.partialorder %v1648_v25, 8.507059e+37  ;;  %v1668_v25 = vsub.f32 1.0, %v1667_v32  ;;  %v1677_v32 = vand.u32 2147483648, %v12443_v33 }
 0x129   : > { %v8623_v7 = vor.u32 %v11195_v17, %v8620_v16  ;;  %v1652_v45 = vsel %vm1649_vm8, %v1651_v10, %v1647_v6  ;;  %v8570_v17 = vld [vmem:[#allocation4 + $0x248] sm:$0xf]  ;;  %v11186_v6 = vld [vmem:[#allocation4 + $0x25c] sm:$0xf0]  ;;  %v8572_v16 = vld [vmem:[#allocation4 + $0x260] sm:$0xf0] }
 0x12a   : > { %v1655_v14 = vadd.f32 %v1654_v21, %v610_v1  ;;  %2395 = vmatpush.bf16.msra.mxu3 %v8647_v31  ;;  %v8595_v1 = vor.u32 %v11192_v28, %v8594_v63  ;;  %v1657_v20 = vsub.f32 1.0, %v1652_v45  ;;  %v12495_v21 = vperm.slane %v12374_v52, 4 }
 0x12b   : > { %v12469_v57 = vpop.f32.mrf.mxu2  ;;  %v1521_v50 = vpop.f32.mrf.mxu0  ;;  %v12501_v63 = vperm.slane %v12374_v52, 5  ;;  %v8571_v28 = vor.u32 %v11186_v6, %v8570_v17  ;;  %v12517_v6 = vld [vmem:[#allocation4 + $0x130] sm:$0xf] }
 0x12c   : > { %v12482_v26 = vpop.f32.mrf.mxu3  ;;  %11818 = vtanh.f32 %v1655_v14  ;;  %v1534_v41 = vpop.f32.mrf.mxu1  ;;  %2370 = vmatpush.bf16.msrb.mxu1 %v8619_v11  ;;  %v11183_v14 = vld [vmem:[#allocation4 + $0x24c] sm:$0xf]  ;;  %v11966_v50 = vld [vmem:[%s13446_s11] sm:$0xff] }
 0x12d   : > { %v8575_v12 = vor.u32 %v11183_v14, %v8572_v16  ;;  %v11180_v14 = vld [vmem:[#allocation4 + $0x22c] sm:$0xf0]  ;;  %v11177_v16 = vld [vmem:[#allocation4 + $0x21c] sm:$0xf] }
 0x12e   : > { %2396 = vmatpush.bf16.msra.mxu3 %v8623_v7  ;;  %v1659_v7 = vmul.f32 %v11966_v50, %v1652_v45  ;;  %v1669_v45 = vmul.f32 %v12484_v0, %v1668_v25 }
 0x130   : > { %2371 = vmatpush.bf16.msrb.mxu1 %v8595_v1 }
 0x132   : > { %v11819_v11 = vpop.eup %11818  ;;  %2397 = vmatpush.bf16.msra.mxu3 %v8599_v4  ;;  %v11157_v4 = vld [vmem:[#allocation4 + $0x174] sm:$0xf0] }
 0x133   : > { %v1599_v59 = vpop.f32.mrf.mxu2  ;;  %v1658_v10 = vmul.f32 %v11819_v11, %v1657_v20  ;;  %v1571_v41 = vpop.f32.mrf.mxu0  ;;  %v11154_v20 = vld [vmem:[#allocation4 + $0x164] sm:$0xf]  ;;  %v8546_v11 = vld [vmem:[#allocation4 + $0x218] sm:$0xf]  ;;  %v8459_v47 = vor.u32 %v11157_v4, %v8458_v8  ;;  %v12546_v8 = vadd.f32 %v12484_v0, %v1669_v45  ;;  %v8522_v4 = vld [vmem:[#allocation4 + $0x1e8] sm:$0xf]  ;;  %v8435_v45 = vor.u32 %v12521_v62, %v12517_v6 }
 0x134   : > { %v1612_v31 = vpop.f32.mrf.mxu3  ;;  %v1572_v52 = vadd.f32 %v1571_v41, %v12495_v21  ;;  %v1584_v1 = vpop.f32.mrf.mxu1  ;;  %v797_v41 = vadd.f32 %v12438_v40, %v12357_v19  ;;  %2372 = vmatpush.bf16.msrb.mxu1 %v8571_v28  ;;  %v12582_v6 = vld [vmem:[#allocation4 + $0xd0] sm:$0xf] }
 0x135   : > { %v8460_v31 = vld [vmem:[#allocation4 + $0x178] sm:$0xf0]  ;;  %v1660_v17 = vadd.f32 %v1659_v7, %v1658_v10  ;;  %v8548_v10 = vld [vmem:[#allocation4 + $0x230] sm:$0xf0] }
 0x136   : > { %v1585_v35 = vadd.f32 %v1584_v1, %v1572_v52  ;;  %2398 = vmatpush.bf16.msra.mxu3 %v8575_v12  ;;  %v8463_v60 = vor.u32 %v11154_v20, %v8460_v31  ;;  %v12539_v12 = vld [vmem:[#allocation4 + $0x114] sm:$0xf0]  ;;  %v12541_v52 = vld [vmem:[#allocation4 + $0x104] sm:$0xf]  ;;  %v8547_v1 = vor.u32 %v11180_v14, %v8546_v11  ;;  %v8551_v59 = vor.u32 %v11177_v16, %v8548_v10  ;;  %v11174_v20 = vld [vmem:[#allocation4 + $0x1fc] sm:$0xf0] }
 0x137   : > { %v12527_v25 = vsel %vm12512_vm9, %v1660_v17, %v11966_v50  ;;  %v1714_v7 = vsel %vm12512_vm9, %v1660_v17, 0.0  ;;  %v12543_v50 = vld [vmem:[#allocation4 + $0x118] sm:$0xf0]  ;;  %v11171_v31 = vld [vmem:[#allocation4 + $0x1ec] sm:$0xf]  ;;  %v12557_v14 = vadd.f32 %v12469_v57, %v12501_v63  ;;  %v12559_v16 = vor.u32 1.1754944e-38, %v1677_v32 }
 0x138   : > { %v1681_v40 = vadd.f32 %v1585_v35, %v797_v41  ;;  %1715 = vst [vmem:[%s12106_s22] sm:$0xff] %v1714_v7  ;;  %v12537_v28 = vpack.c.bf16 %v12527_v25, %v12527_v25  ;;  %v8524_v11 = vld [vmem:[#allocation4 + $0x200] sm:$0xf0]  ;;  %v8439_v10 = vor.u32 %v12523_v61, %v8436_v49  ;;  %v8411_v7 = vor.u32 %v12539_v12, %v12531_v27  ;;  %v8498_v27 = vld [vmem:[#allocation4 + $0x1b8] sm:$0xf]  ;;  %v11168_v57 = vld [vmem:[#allocation4 + $0x1cc] sm:$0xf0] }
 0x139   : > { %v8415_v49 = vor.u32 %v12541_v52, %v12543_v50  ;;  %2373 = vmatpush.bf16.msrb.mxu1 %v8547_v1  ;;  %v8527_v61 = vor.u32 %v11171_v31, %v8524_v11  ;;  %v8500_v12 = vld [vmem:[#allocation4 + $0x1d0] sm:$0xf0]  ;;  %v12586_v52 = vstv %s1718_s21  ;;  %v12590_v50 = vstv %s1719_s13  ;;  %v11162_v11 = vld [vmem:[#allocation4 + $0x19c] sm:$0xf0]  ;;  %v8476_v32 = vld [vmem:[#allocation4 + $0x1a0] sm:$0xf0] }
 0x13a   : > { %v8271_v41 = vmul.f32 -1.442695, %v1681_v40  ;;  %2312 = vmatmul.bf16.vlgmr.msra.gmra.mxu0 %v12537_v28  ;;  %2338 = vmatmul.bf16.vlgmr.msrb.gmra.mxu2 %v12537_v28  ;;  %v11165_v40 = vld [vmem:[#allocation4 + $0x1bc] sm:$0xf]  ;;  %v12594_v1 = vstv %s2564_s18  ;;  %v8499_v31 = vor.u32 %v11168_v57, %v8498_v27  ;;  %vm2555_vm13 = vcmp.lt.s32.totalorder %v12586_v52, %v12497_v13  ;;  %s6795_s21 = ssub.s32 8, %s12492_s23 }
 0x13b   : > { %v1573_v35 = vpop.f32.mrf.mxu0  ;;  %2408 = vmatpush.bf16.msra.mxu0 %v8459_v47  ;;  %2434 = vmatpush.bf16.msrb.mxu2 %v8463_v60  ;;  %v8523_v60 = vor.u32 %v11174_v20, %v8522_v4  ;;  %v11136_v4 = vld [vmem:[#allocation4 + $0xd4] sm:$0xf]  ;;  %v8388_v20 = vld [vmem:[#allocation4 + $0xe8] sm:$0xf0]  ;;  %vm2557_vm14 = vcmp.lt.s32.totalorder %v12590_v50, %v12497_v13  ;;  %vm3401_vm15 = vcmp.lt.s32.totalorder %v12594_v1, %v12497_v13  ;;  %v12612_v27 = vstv %s3411_s12 }
 0x13c   : > { %11820 = vpow2.f32 %v8271_v41  ;;  %v1586_v47 = vpop.f32.mrf.mxu1  ;;  %2399 = vmatpush.bf16.msra.mxu3 %v8551_v59  ;;  %v11139_v59 = vld [vmem:[#allocation4 + $0xe4] sm:$0xf0]  ;;  %v12604_v35 = vstv %s2565_s28  ;;  %v12614_v57 = vstv %s4256_s14  ;;  %v12624_v17 = vstv %s4257_s29 }
 0x13d   : > { %v8474_v41 = vld [vmem:[#allocation4 + $0x188] sm:$0xf]  ;;  %v12608_v47 = vstv %s3410_s30  ;;  %2374 = vmatpush.bf16.msrb.mxu1 %v8523_v60  ;;  %vm3403_vm0 = vcmp.lt.s32.totalorder %v12604_v35, %v12497_v13  ;;  %13495 = vst [vmem:[#allocation35_spill] sm:$0xff] %v12624_v17  ;;  %v8387_v23 = vor.u32 %v11139_v59, %v12582_v6  ;;  %v8391_v58 = vor.u32 %v11136_v4, %v8388_v20  ;;  %v8362_v6 = vld [vmem:[#allocation4 + $0xa0] sm:$0xf] }
 0x13e   : > { %13494 = vst [vmem:[#allocation34_spill] sm:$0xff] %v12608_v47  ;;  %vm4247_vm1 = vcmp.lt.s32.totalorder %v12608_v47, %v12497_v13  ;;  %vm4249_vm2 = vcmp.lt.s32.totalorder %v12612_v27, %v12497_v13  ;;  %vm5093_vm3 = vcmp.lt.s32.totalorder %v12614_v57, %v12497_v13  ;;  %vm5095_vm4 = vcmp.lt.s32.totalorder %v12624_v17, %v12497_v13  ;;  %v11133_v59 = vld [vmem:[#allocation4 + $0xb4] sm:$0xf0]  ;;  %v11130_v20 = vld [vmem:[#allocation4 + $0xa4] sm:$0xf] }
 0x13f   : > { %2409 = vmatpush.bf16.msra.mxu0 %v8435_v45  ;;  %2435 = vmatpush.bf16.msrb.mxu2 %v8439_v10  ;;  %v8503_v45 = vor.u32 %v11165_v40, %v8500_v12  ;;  %v11159_v10 = vld [vmem:[#allocation4 + $0x18c] sm:$0xf]  ;;  %v12637_v40 = vstv %s5102_s26  ;;  %v12639_v12 = vstv %s5103_s15  ;;  %v12649_v17 = vstv %s5949_s19 }
 0x140   : > { %2400 = vmatpush.bf16.msra.mxu3 %v8527_v61  ;;  %v8475_v61 = vor.u32 %v11162_v11, %v8474_v41  ;;  %v8479_v4 = vor.u32 %v11159_v10, %v8476_v32  ;;  %vm5939_vm5 = vcmp.lt.s32.totalorder %v12637_v40, %v12497_v13  ;;  %vm5941_vm6 = vcmp.lt.s32.totalorder %v12639_v12, %v12497_v13  ;;  %v8364_v41 = vld [vmem:[#allocation4 + $0xb8] sm:$0xf0] }
 0x141   : > { %2375 = vmatpush.bf16.msrb.mxu1 %v8499_v31  ;;  %v12647_v11 = vstv %s5948_s16  ;;  %13497 = vst [vmem:[#allocation37_spill] sm:$0xff] %v12649_v17  ;;  %v13500_v32 = vand.u32 2147483647, %v12443_v33  ;;  %v13501_v31 = vsel %vm12570_vm12, %v12484_v0, %v12546_v8  ;;  %v8363_v10 = vor.u32 %v11133_v59, %v8362_v6  ;;  %v11127_v0 = vld [vmem:[#allocation4 + $0x84] sm:$0xf0] }
 0x142   : > { %v11821_v60 = vpop.eup %11820  ;;  %13496 = vst [vmem:[#allocation36_spill] sm:$0xff] %v12647_v11  ;;  %vm6785_vm8 = vcmp.lt.s32.totalorder %v12647_v11, %v12497_v13  ;;  %v8367_v33 = vor.u32 %v11130_v20, %v8364_v41  ;;  %v11124_v8 = vld [vmem:[#allocation4 + $0x74] sm:$0xf]  ;;  %v8314_v59 = vld [vmem:[#allocation4 + $0x40] sm:$0xf] }
 0x143   : > { %v12641_v47 = vadd.f32 1.0, %v11821_v60  ;;  %2410 = vmatpush.bf16.msra.mxu0 %v8411_v7  ;;  %2436 = vmatpush.bf16.msrb.mxu2 %v8415_v49  ;;  %v12651_v60 = vstv %s6794_s20  ;;  %v12653_v7 = vstv %s6795_s21  ;;  %v1611_v49 = vadd.f32 %v12482_v26, %v12557_v14  ;;  %v8338_v26 = vld [vmem:[#allocation4 + $0x70] sm:$0xf]  ;;  %v8340_v14 = vld [vmem:[#allocation4 + $0x88] sm:$0xf0] }
 0x144   : > { %2401 = vmatpush.bf16.msra.mxu3 %v8503_v45  ;;  %13498 = vst [vmem:[#allocation38_spill] sm:$0xff] %v12651_v60  ;;  %vm1676_vm7 = vcmp.eq.f32.partialorder %v13500_v32, 8.507059e+37  ;;  %v8339_v62 = vor.u32 %v11127_v0, %v8338_v26  ;;  %v8343_v6 = vor.u32 %v11124_v8, %v8340_v14  ;;  %v11121_v41 = vld [vmem:[#allocation4 + $0x54] sm:$0xf0]  ;;  %v11118_v32 = vld [vmem:[#allocation4 + $0x44] sm:$0xf] }
 0x145   : > { %13499 = vst [vmem:[#allocation39_spill] sm:$0xff] %v12653_v7  ;;  %11822 = vrcp.f32 %v12641_v47  ;;  %v1679_v45 = vsel %vm1676_vm7, %v12559_v16, %v13501_v31  ;;  %2376 = vmatpush.bf16.msrb.mxu1 %v8475_v61  ;;  %v8316_v61 = vld [vmem:[#allocation4 + $0x58] sm:$0xf0]  ;;  %v1697_v31 = vand.u32 2147483648, %v12641_v47  ;;  %v8290_v60 = vld [vmem:[#allocation4 + $0x10] sm:$0xf]  ;;  %vm1691_vm7 = vweird.f32 %v12641_v47 }
 0x146   : > { %v1701_v16 = vmul.f32 %v1679_v45, %v1611_v49  ;;  %v8315_v45 = vor.u32 %v11121_v41, %v8314_v59  ;;  %v8319_v7 = vor.u32 %v11118_v32, %v8316_v61  ;;  %v11112_v26 = vld [vmem:[#allocation4 + $0x14] sm:$0xf]  ;;  %v8292_v0 = vld [vmem:[#allocation4 + $0x28] sm:$0xf0]  ;;  %v11967_v32 = vld [vmem:[%s13446_s11 + $0x8] sm:$0xff]  ;;  %v1710_v61 = vstv %s873_s24 }
 0x147   : > { %2411 = vmatpush.bf16.msra.mxu0 %v8387_v23  ;;  %2437 = vmatpush.bf16.msrb.mxu2 %v8391_v58  ;;  %v826_v58 = vadd.f32 %v12440_v29, %v12359_v22  ;;  %v11115_v29 = vld [vmem:[#allocation4 + $0x24] sm:$0xf0]  ;;  %v1698_v14 = vor.u32 1.1754944e-38, %v1697_v31  ;;  %v11206_v17 = vld [vmem:[#allocation4 + $0x4] sm:$0xf] }
 0x148   : > { %2402 = vmatpush.bf16.msra.mxu3 %v8479_v4  ;;  %v11272_v11 = vld [vmem:[#allocation4 + $0x214] sm:$0xf] }
 0x149   : > { %v1702_v4 = vadd.f32 %v1701_v16, %v826_v58  ;;  %v8291_v16 = vor.u32 %v11115_v29, %v8290_v60  ;;  %v8295_v58 = vor.u32 %v11112_v26, %v8292_v0  ;;  %v11202_v60 = vld [vmem:[#allocation4 + $0x2e4] sm:$0xf]  ;;  %v11199_v26 = vld [vmem:[#allocation4 + $0x2c4] sm:$0xf0] }
 0x14a   : > { %2364 = vmatmul.bf16.vlgmr.msrb.gmra.mxu0 %v12537_v28  ;;  %2390 = vmatmul.bf16.vlgmr.msra.gmra.mxu2 %v12537_v28 }
 0x14b   : > { %v11823_v23 = vpop.eup %11822  ;;  %2412 = vmatpush.bf16.msra.mxu0 %v8363_v10  ;;  %2438 = vmatpush.bf16.msrb.mxu2 %v8367_v33  ;;  %v1695_v33 = vand.u32 2147483647, %v12641_v47  ;;  %11824 = vtanh.f32 %v1702_v4  ;;  %v8650_v4 = vld [vmem:[#allocation4 + $0x2e0] sm:$0xf] }
 0x14c   : > { %v1687_v20 = vmul.f32 %v11823_v23, %v12641_v47  ;;  %vm1692_vm12 = vweird.f32 %v11823_v23 }
 0x14d   : > { %vm1693_vm11 = vmor %vm1691_vm7, %vm1692_vm12  ;;  %vm1696_vm10 = vcmp.eq.f32.partialorder %v1695_v33, 8.507059e+37  ;;  %v8626_v33 = vld [vmem:[#allocation4 + $0x2b0] sm:$0xf] }
 0x14e   : > { %v1688_v49 = vsub.f32 1.0, %v1687_v20 }
 0x14f   : > { %2413 = vmatpush.bf16.msra.mxu0 %v8339_v62  ;;  %2439 = vmatpush.bf16.msrb.mxu2 %v8343_v6 }
 0x150   : > { %v1689_v10 = vmul.f32 %v11823_v23, %v1688_v49  ;;  %v8652_v49 = vld [vmem:[#allocation4 + $0x2f8] sm:$0xf0] }
 0x151   : > { %v11825_v20 = vpop.eup %11824 }
 0x152   : > { %v1690_v8 = vadd.f32 %v11823_v23, %v1689_v10  ;;  %v8655_v10 = vor.u32 %v11202_v60, %v8652_v49  ;;  %v8554_v49 = vld [vmem:[#allocation4 + $0x220] sm:$0xf] }
 0x153   : > { %2414 = vmatpush.bf16.msra.mxu0 %v8315_v45  ;;  %2440 = vmatpush.bf16.msrb.mxu2 %v8319_v7  ;;  %v11205_v7 = vld [vmem:[#allocation4 + $0x2f4] sm:$0xf0] }
 0x154   : > { %v1694_v62 = vsel %vm1693_vm11, %v11823_v23, %v1690_v8  ;;  %v8651_v29 = vor.u32 %v11205_v7, %v8650_v4  ;;  %v11196_v8 = vld [vmem:[#allocation4 + $0x2b4] sm:$0xf]  ;;  %v8580_v4 = vld [vmem:[#allocation4 + $0x268] sm:$0xf0] }
 0x155   : > { %v1699_v6 = vsel %vm1696_vm10, %v1698_v14, %v1694_v62  ;;  %vm1711_vm10 = vcmp.lt.s32.totalorder %v1710_v61, %v12497_v13  ;;  %v8628_v14 = vld [vmem:[#allocation4 + $0x2c8] sm:$0xf0]  ;;  %v11193_v62 = vld [vmem:[#allocation4 + $0x294] sm:$0xf0]  ;;  %v11184_v61 = vld [vmem:[#allocation4 + $0x254] sm:$0xf] }
 0x156   : > { %v1704_v59 = vsub.f32 1.0, %v1699_v6  ;;  %v1706_v47 = vmul.f32 %v11967_v32, %v1699_v6  ;;  %v11190_v6 = vld [vmem:[#allocation4 + $0x284] sm:$0xf]  ;;  %v8583_v60 = vor.u32 %v11184_v61, %v8580_v4  ;;  %v11163_v61 = vld [vmem:[#allocation4 + $0x1a4] sm:$0xf0] }
 0x157   : > { %2415 = vmatpush.bf16.msra.mxu0 %v8291_v16  ;;  %2441 = vmatpush.bf16.msrb.mxu2 %v8295_v58  ;;  %v8631_v16 = vor.u32 %v11196_v8, %v8628_v14  ;;  %v8602_v58 = vld [vmem:[#allocation4 + $0x280] sm:$0xf]  ;;  %v11175_v8 = vld [vmem:[#allocation4 + $0x204] sm:$0xf0]  ;;  %v11172_v14 = vld [vmem:[#allocation4 + $0x1f4] sm:$0xf] }
 0x158   : > { %v1705_v41 = vmul.f32 %v11825_v20, %v1704_v59  ;;  %v8604_v59 = vld [vmem:[#allocation4 + $0x298] sm:$0xf0]  ;;  %v8603_v20 = vor.u32 %v11193_v62, %v8602_v58  ;;  %v8506_v62 = vld [vmem:[#allocation4 + $0x1c0] sm:$0xf]  ;;  %v11160_v4 = vld [vmem:[#allocation4 + $0x194] sm:$0xf] }
 0x15a   : > { %v1707_v23 = vadd.f32 %v1706_v47, %v1705_v41  ;;  %2416 = vmatmul.bf16.vlgmr.msra.gmra.mxu0 %v12537_v28  ;;  %2442 = vmatmul.bf16.vlgmr.msrb.gmra.mxu2 %v12537_v28  ;;  %v8627_v28 = vor.u32 %v11199_v26, %v8626_v33  ;;  %v8607_v41 = vor.u32 %v11190_v6, %v8604_v59  ;;  %v11187_v47 = vld [vmem:[#allocation4 + $0x264] sm:$0xf0]  ;;  %v8530_v26 = vld [vmem:[#allocation4 + $0x1f0] sm:$0xf]  ;;  %v11169_v6 = vld [vmem:[#allocation4 + $0x1d4] sm:$0xf0] }
 0x15b   : > { %v11166_v59 = vld [vmem:[#allocation4 + $0x1c4] sm:$0xf] }
 0x15c   : > { %v12689_v31 = vsel %vm1711_vm10, %v1707_v23, %v11967_v32  ;;  %v1716_v45 = vsel %vm1711_vm10, %v1707_v23, 0.0  ;;  %v8578_v32 = vld [vmem:[#allocation4 + $0x250] sm:$0xf]  ;;  %v11181_v23 = vld [vmem:[#allocation4 + $0x234] sm:$0xf0] }
 0x15d   : > { %1717 = vst [vmem:[%s12111_s27 + $0x38] sm:$0xff] %v1716_v45  ;;  %v1727_v0 = vpack.c.bf16 %v12689_v31, %v12689_v31  ;;  %v8579_v7 = vor.u32 %v11187_v47, %v8578_v32  ;;  %v11178_v45 = vld [vmem:[#allocation4 + $0x224] sm:$0xf]  ;;  %v8482_v47 = vld [vmem:[#allocation4 + $0x190] sm:$0xf] }
 0x15f   : > { %2325 = vmatmul.bf16.vlgmr.msra.gmra.mxu1 %v1727_v0  ;;  %2351 = vmatmul.bf16.vlgmr.msrb.gmra.mxu3 %v1727_v0 }
 0x160   : > { %2421 = vmatpush.bf16.msra.mxu1 %v8651_v29  ;;  %2447 = vmatpush.bf16.msrb.mxu3 %v8655_v10  ;;  %v8556_v29 = vld [vmem:[#allocation4 + $0x238] sm:$0xf0]  ;;  %v8555_v10 = vor.u32 %v11181_v23, %v8554_v49  ;;  %v8830_v23 = vld [vmem:[#allocation4 + $0x150] sm:$0xf] }
 0x161   : > { %v8559_v33 = vor.u32 %v11178_v45, %v8556_v29  ;;  %v11251_v45 = vld [vmem:[#allocation4 + $0x164] sm:$0xf0]  ;;  %v11248_v29 = vld [vmem:[#allocation4 + $0x154] sm:$0xf] }
 0x164   : > { %2422 = vmatpush.bf16.msra.mxu1 %v8627_v28  ;;  %2448 = vmatpush.bf16.msrb.mxu3 %v8631_v16  ;;  %v8532_v28 = vld [vmem:[#allocation4 + $0x208] sm:$0xf0]  ;;  %v8531_v16 = vor.u32 %v11175_v8, %v8530_v26 }
 0x165   : > { %v8535_v58 = vor.u32 %v11172_v14, %v8532_v28  ;;  %v8806_v14 = vld [vmem:[#allocation4 + $0x120] sm:$0xf]  ;;  %v11245_v28 = vld [vmem:[#allocation4 + $0x134] sm:$0xf0] }
 0x168   : > { %2423 = vmatpush.bf16.msra.mxu1 %v8603_v20  ;;  %2449 = vmatpush.bf16.msrb.mxu3 %v8607_v41  ;;  %v8508_v20 = vld [vmem:[#allocation4 + $0x1d8] sm:$0xf0]  ;;  %v8507_v41 = vor.u32 %v11169_v6, %v8506_v62 }
 0x169   : > { %v8511_v32 = vor.u32 %v11166_v59, %v8508_v20  ;;  %v8808_v62 = vld [vmem:[#allocation4 + $0x138] sm:$0xf0]  ;;  %v8782_v20 = vld [vmem:[#allocation4 + $0xf0] sm:$0xf] }
 0x16c   : > { %2424 = vmatpush.bf16.msra.mxu1 %v8579_v7  ;;  %2450 = vmatpush.bf16.msrb.mxu3 %v8583_v60  ;;  %v8484_v7 = vld [vmem:[#allocation4 + $0x1a8] sm:$0xf0]  ;;  %v8483_v60 = vor.u32 %v11163_v61, %v8482_v47 }
 0x16d   : > { %v8487_v49 = vor.u32 %v11160_v4, %v8484_v7  ;;  %v8784_v61 = vld [vmem:[#allocation4 + $0x108] sm:$0xf0]  ;;  %v8758_v7 = vld [vmem:[#allocation4 + $0xc0] sm:$0xf] }
 0x16f   : > { %2377 = vmatmul.bf16.vlgmr.msrb.gmra.mxu1 %v1727_v0  ;;  %2403 = vmatmul.bf16.vlgmr.msra.gmra.mxu3 %v1727_v0 }
 0x170   : > { %2425 = vmatpush.bf16.msra.mxu1 %v8555_v10  ;;  %2451 = vmatpush.bf16.msrb.mxu3 %v8559_v33  ;;  %v8831_v10 = vor.u32 %v11251_v45, %v8830_v23  ;;  %v8832_v33 = vld [vmem:[#allocation4 + $0x168] sm:$0xf0] }
 0x171   : > { %v8835_v8 = vor.u32 %v11248_v29, %v8832_v33  ;;  %v8760_v29 = vld [vmem:[#allocation4 + $0xd8] sm:$0xf0] }
 0x172   : > { %3150 = vmatpush.bf16.msrb.mxu0 %v8831_v10 }
 0x173   : > { %3176 = vmatpush.bf16.msra.mxu2 %v8835_v8  ;;  %v8734_v8 = vld [vmem:[#allocation4 + $0x90] sm:$0xf] }
 0x174   : > { %2426 = vmatpush.bf16.msra.mxu1 %v8531_v16  ;;  %2452 = vmatpush.bf16.msrb.mxu3 %v8535_v58  ;;  %v11242_v16 = vld [vmem:[#allocation4 + $0x124] sm:$0xf]  ;;  %v8807_v58 = vor.u32 %v11245_v28, %v8806_v14  ;;  %v11227_v14 = vld [vmem:[#allocation4 + $0xa4] sm:$0xf0]  ;;  %v11224_v28 = vld [vmem:[#allocation4 + $0x94] sm:$0xf] }
 0x175   : > { %v8811_v6 = vor.u32 %v11242_v16, %v8808_v62  ;;  %v8735_v16 = vor.u32 %v11227_v14, %v8734_v8 }
 0x176   : > { %3151 = vmatpush.bf16.msrb.mxu0 %v8807_v58  ;;  %v8736_v58 = vld [vmem:[#allocation4 + $0xa8] sm:$0xf0] }
 0x177   : > { %3177 = vmatpush.bf16.msra.mxu2 %v8811_v6  ;;  %v8739_v62 = vor.u32 %v11224_v28, %v8736_v58  ;;  %v8710_v6 = vld [vmem:[#allocation4 + $0x60] sm:$0xf]  ;;  %v11212_v28 = vld [vmem:[#allocation4 + $0x34] sm:$0xf] }
 0x178   : > { %2427 = vmatpush.bf16.msra.mxu1 %v8507_v41  ;;  %2453 = vmatpush.bf16.msrb.mxu3 %v8511_v32  ;;  %v11239_v41 = vld [vmem:[#allocation4 + $0x104] sm:$0xf0]  ;;  %v11236_v32 = vld [vmem:[#allocation4 + $0xf4] sm:$0xf] }
 0x179   : > { %v8783_v47 = vor.u32 %v11239_v41, %v8782_v20  ;;  %v8787_v4 = vor.u32 %v11236_v32, %v8784_v61  ;;  %v11218_v20 = vld [vmem:[#allocation4 + $0x64] sm:$0xf] }
 0x17b   : > { %3152 = vmatpush.bf16.msrb.mxu0 %v8783_v47  ;;  %3178 = vmatpush.bf16.msra.mxu2 %v8787_v4  ;;  %v8712_v47 = vld [vmem:[#allocation4 + $0x78] sm:$0xf0] }
 0x17c   : > { %2428 = vmatpush.bf16.msra.mxu1 %v8483_v60  ;;  %2454 = vmatpush.bf16.msrb.mxu3 %v8487_v49  ;;  %v11233_v60 = vld [vmem:[#allocation4 + $0xd4] sm:$0xf0]  ;;  %v11230_v49 = vld [vmem:[#allocation4 + $0xc4] sm:$0xf]  ;;  %v8715_v61 = vor.u32 %v11218_v20, %v8712_v47  ;;  %v8662_v47 = vld [vmem:[#allocation4] sm:$0xf] }
 0x17d   : > { %v8759_v45 = vor.u32 %v11233_v60, %v8758_v7  ;;  %v8763_v10 = vor.u32 %v11230_v49, %v8760_v29  ;;  %v9022_v7 = vld [vmem:[#allocation4 + $0x2d0] sm:$0xf]  ;;  %v11299_v60 = vld [vmem:[#allocation4 + $0x2e4] sm:$0xf0]  ;;  %v11296_v49 = vld [vmem:[#allocation4 + $0x2d4] sm:$0xf] }
 0x17e   : > { %v8686_v29 = vld [vmem:[#allocation4 + $0x30] sm:$0xf] }
 0x17f   : > { %2429 = vmatmul.bf16.vlgmr.msra.gmra.mxu1 %v1727_v0  ;;  %2455 = vmatmul.bf16.vlgmr.msrb.gmra.mxu3 %v1727_v0 }
 0x180   : > { %3153 = vmatpush.bf16.msrb.mxu0 %v8759_v45  ;;  %3179 = vmatpush.bf16.msra.mxu2 %v8763_v10  ;;  %v9024_v45 = vld [vmem:[#allocation4 + $0x2e8] sm:$0xf0]  ;;  %v11215_v10 = vld [vmem:[#allocation4 + $0x44] sm:$0xf0] }
 0x181   : > { %v9027_v8 = vor.u32 %v11296_v49, %v9024_v45  ;;  %v8687_v14 = vor.u32 %v11215_v10, %v8686_v29  ;;  %v8664_v49 = vld [vmem:[#allocation4 + $0x18] sm:$0xf0]  ;;  %v8838_v45 = vld [vmem:[#allocation4 + $0x158] sm:$0xf] }
 0x182   : > { %v8667_v29 = vor.u32 %v11206_v17, %v8664_v49  ;;  %v11249_v10 = vld [vmem:[#allocation4 + $0x15c] sm:$0xf]  ;;  %v11246_v17 = vld [vmem:[#allocation4 + $0x13c] sm:$0xf0]  ;;  %v8816_v49 = vld [vmem:[#allocation4 + $0x140] sm:$0xf0] }
 0x183   : > { %3189 = vmatpush.bf16.msra.mxu3 %v9027_v8  ;;  %v8840_v8 = vld [vmem:[#allocation4 + $0x170] sm:$0xf0] }
 0x184   : > { %3154 = vmatpush.bf16.msrb.mxu0 %v8735_v16  ;;  %3180 = vmatpush.bf16.msra.mxu2 %v8739_v62  ;;  %v8688_v16 = vld [vmem:[#allocation4 + $0x48] sm:$0xf0]  ;;  %v8998_v62 = vld [vmem:[#allocation4 + $0x2a0] sm:$0xf] }
 0x185   : > { %v8691_v58 = vor.u32 %v11212_v28, %v8688_v16  ;;  %v8843_v16 = vor.u32 %v11249_v10, %v8840_v8  ;;  %v11278_v10 = vld [vmem:[#allocation4 + $0x244] sm:$0xf] }
 0x188   : > { %3181 = vmatpush.bf16.msra.mxu2 %v8715_v61  ;;  %v11209_v61 = vld [vmem:[#allocation4 + $0x14] sm:$0xf0] }
 0x18c   : > { %3182 = vmatpush.bf16.msra.mxu2 %v8691_v58  ;;  %v8974_v58 = vld [vmem:[#allocation4 + $0x270] sm:$0xf] }
 0x190   : > { %3183 = vmatpush.bf16.msra.mxu2 %v8667_v29 }
 0x194   : > { %3228 = vmatpush.bf16.msrb.mxu2 %v8843_v16 }
 0x1b7   : > { %v12694_v26 = vpop.f32.mrf.mxu0 }
 0x1bd   : > { %v12696_v59 = vpop.f32.mrf.mxu2 }
 0x1bf   : > { %v2315_v0 = vpop.f32.mrf.mxu0 }
 0x1c0   : > { %v11221_v0 = vld [vmem:[#allocation4 + $0x74] sm:$0xf0] }
 0x1c1   : > { %v8711_v32 = vor.u32 %v11221_v0, %v8710_v6  ;;  %v11293_v6 = vld [vmem:[#allocation4 + $0x2b4] sm:$0xf0]  ;;  %v11290_v0 = vld [vmem:[#allocation4 + $0x2a4] sm:$0xf] }
 0x1c2   : > { %v8999_v20 = vor.u32 %v11293_v6, %v8998_v62  ;;  %v11287_v62 = vld [vmem:[#allocation4 + $0x284] sm:$0xf0]  ;;  %v11284_v6 = vld [vmem:[#allocation4 + $0x274] sm:$0xf] }
 0x1c3   : > { %3155 = vmatpush.bf16.msrb.mxu0 %v8711_v32  ;;  %v9000_v32 = vld [vmem:[#allocation4 + $0x2b8] sm:$0xf0] }
 0x1c5   : > { %v2341_v23 = vpop.f32.mrf.mxu2 }
 0x1c6   : > { %v9023_v23 = vor.u32 %v11299_v60, %v9022_v7  ;;  %v9003_v7 = vor.u32 %v11290_v0, %v9000_v32  ;;  %v8663_v60 = vor.u32 %v11209_v61, %v8662_v47  ;;  %v8975_v0 = vor.u32 %v11287_v62, %v8974_v58  ;;  %v8976_v32 = vld [vmem:[#allocation4 + $0x288] sm:$0xf0]  ;;  %v8952_v58 = vld [vmem:[#allocation4 + $0x258] sm:$0xf0] }
 0x1c7   : > { %v12698_v33 = vpop.f32.mrf.mxu0  ;;  %3156 = vmatpush.bf16.msrb.mxu0 %v8687_v14  ;;  %v8979_v47 = vor.u32 %v11284_v6, %v8976_v32  ;;  %v11243_v61 = vld [vmem:[#allocation4 + $0x12c] sm:$0xf]  ;;  %v8955_v6 = vor.u32 %v11278_v10, %v8952_v58  ;;  %v11240_v32 = vld [vmem:[#allocation4 + $0x10c] sm:$0xf0] }
 0x1c8   : > { %3163 = vmatpush.bf16.msrb.mxu1 %v9023_v23  ;;  %v11252_v23 = vld [vmem:[#allocation4 + $0x16c] sm:$0xf0]  ;;  %3190 = vmatpush.bf16.msra.mxu3 %v9003_v7  ;;  %v2314_v7 = vadd.f32 %v12694_v26, %v12377_v3  ;;  %v11237_v26 = vld [vmem:[#allocation4 + $0xfc] sm:$0xf] }
 0x1c9   : > { %v8839_v28 = vor.u32 %v11252_v23, %v8838_v45  ;;  %v8950_v45 = vld [vmem:[#allocation4 + $0x240] sm:$0xf]  ;;  %v11281_v23 = vld [vmem:[#allocation4 + $0x254] sm:$0xf0] }
 0x1ca   : > { %v8951_v8 = vor.u32 %v11281_v23, %v8950_v45  ;;  %v8926_v45 = vld [vmem:[#allocation4 + $0x210] sm:$0xf]  ;;  %v11275_v23 = vld [vmem:[#allocation4 + $0x224] sm:$0xf0] }
 0x1cb   : > { %3157 = vmatpush.bf16.msrb.mxu0 %v8663_v60  ;;  %v8819_v60 = vor.u32 %v11243_v61, %v8816_v49 }
 0x1cc   : > { %3164 = vmatpush.bf16.msrb.mxu1 %v8999_v20  ;;  %v8814_v20 = vld [vmem:[#allocation4 + $0x128] sm:$0xf]  ;;  %3191 = vmatpush.bf16.msra.mxu3 %v8979_v47 }
 0x1cd   : > { %v12700_v41 = vpop.f32.mrf.mxu2  ;;  %3229 = vmatpush.bf16.msrb.mxu2 %v8819_v60 }
 0x1cf   : > { %v2367_v4 = vpop.f32.mrf.mxu0  ;;  %3202 = vmatpush.bf16.msra.mxu0 %v8839_v28  ;;  %v554_v28 = vadd.f32 %v12279_v36, %v12289_v42  ;;  %v8927_v36 = vor.u32 %v11275_v23, %v8926_v45 }
 0x1d0   : > { %3165 = vmatpush.bf16.msrb.mxu1 %v8975_v0  ;;  %v8790_v0 = vld [vmem:[#allocation4 + $0xf8] sm:$0xf]  ;;  %3192 = vmatpush.bf16.msra.mxu3 %v8955_v6  ;;  %v8768_v6 = vld [vmem:[#allocation4 + $0xe0] sm:$0xf0] }
 0x1d1   : > { %v8791_v47 = vor.u32 %v11240_v32, %v8790_v0  ;;  %v583_v0 = vadd.f32 %v12281_v39, %v12293_v44 }
 0x1d4   : > { %3166 = vmatpush.bf16.msrb.mxu1 %v8951_v8  ;;  %v11234_v8 = vld [vmem:[#allocation4 + $0xdc] sm:$0xf0] }
 0x1d5   : > { %v2393_v4 = vpop.f32.mrf.mxu2 }
 0x1d6   : > { %v8815_v4 = vor.u32 %v11246_v17, %v8814_v20  ;;  %v8792_v20 = vld [vmem:[#allocation4 + $0x110] sm:$0xf0] }
 0x1d7   : > { %v12702_v14 = vpop.f32.mrf.mxu0  ;;  %v8795_v49 = vor.u32 %v11237_v26, %v8792_v20  ;;  %v8902_v20 = vld [vmem:[#allocation4 + $0x1e0] sm:$0xf] }
 0x1d8   : > { %3203 = vmatpush.bf16.msra.mxu0 %v8815_v4  ;;  %v2340_v4 = vadd.f32 %v12696_v59, %v12393_v38  ;;  %3167 = vmatpush.bf16.msrb.mxu1 %v8927_v36  ;;  %v11269_v59 = vld [vmem:[#allocation4 + $0x1f4] sm:$0xf0] }
 0x1d9   : > { %3230 = vmatpush.bf16.msrb.mxu2 %v8795_v49  ;;  %v8742_v36 = vld [vmem:[#allocation4 + $0x98] sm:$0xf] }
 0x1dc   : > { %v2326_v29 = vpop.f32.mrf.mxu1  ;;  %3204 = vmatpush.bf16.msra.mxu0 %v8791_v47 }
 0x1dd   : > { %v2327_v16 = vadd.f32 %v2326_v29, %v2314_v7  ;;  %v12708_v62 = vpop.f32.mrf.mxu2  ;;  %v8928_v7 = vld [vmem:[#allocation4 + $0x228] sm:$0xf0]  ;;  %v8766_v29 = vld [vmem:[#allocation4 + $0xc8] sm:$0xf] }
 0x1de   : > { %v8931_v10 = vor.u32 %v11272_v11, %v8928_v7  ;;  %v8904_v11 = vld [vmem:[#allocation4 + $0x1f8] sm:$0xf0]  ;;  %v11228_v7 = vld [vmem:[#allocation4 + $0xac] sm:$0xf0]  ;;  %v2444_v52 = vadd.f32 %v12708_v62, %v12501_v63  ;;  %v11238_v62 = vld [vmem:[#allocation4 + $0x104] sm:$0xf] }
 0x1df   : > { %v2460_v17 = vadd.f32 %v2327_v16, %v554_v28  ;;  %v2419_v61 = vpop.f32.mrf.mxu0  ;;  %v8767_v28 = vor.u32 %v11234_v8, %v8766_v29  ;;  %v11231_v16 = vld [vmem:[#allocation4 + $0xcc] sm:$0xf]  ;;  %v11225_v29 = vld [vmem:[#allocation4 + $0x9c] sm:$0xf]  ;;  %v8743_v39 = vor.u32 %v11228_v7, %v8742_v36  ;;  %v8878_v8 = vld [vmem:[#allocation4 + $0x1b0] sm:$0xf] }
 0x1e0   : > { %3193 = vmatpush.bf16.msra.mxu3 %v8931_v10  ;;  %v8771_v26 = vor.u32 %v11231_v16, %v8768_v6  ;;  %v8903_v61 = vor.u32 %v11269_v59, %v8902_v20  ;;  %v11260_v6 = vld [vmem:[#allocation4 + $0x1b4] sm:$0xf]  ;;  %v8880_v20 = vld [vmem:[#allocation4 + $0x1c8] sm:$0xf0]  ;;  %v11254_v36 = vld [vmem:[#allocation4 + $0x184] sm:$0xf] }
 0x1e1   : > { %v8656_v60 = vmul.f32 -1.442695, %v2460_v17  ;;  %v11266_v17 = vld [vmem:[#allocation4 + $0x1e4] sm:$0xf]  ;;  %3205 = vmatpush.bf16.msra.mxu0 %v8767_v28  ;;  %v8883_v28 = vor.u32 %v11260_v6, %v8880_v20  ;;  %v8694_v6 = vld [vmem:[#allocation4 + $0x38] sm:$0xf] }
 0x1e2   : > { %v2352_v58 = vpop.f32.mrf.mxu3  ;;  %3231 = vmatpush.bf16.msrb.mxu2 %v8771_v26  ;;  %v8907_v23 = vor.u32 %v11266_v17, %v8904_v11  ;;  %3168 = vmatpush.bf16.msrb.mxu1 %v8903_v61  ;;  %v11219_v26 = vld [vmem:[#allocation4 + $0x6c] sm:$0xf]  ;;  %v8720_v11 = vld [vmem:[#allocation4 + $0x80] sm:$0xf0] }
 0x1e3   : > { %11826 = vpow2.f32 %v8656_v60  ;;  %v2353_v32 = vadd.f32 %v2352_v58, %v2340_v4  ;;  %v8744_v60 = vld [vmem:[#allocation4 + $0xb0] sm:$0xf0]  ;;  %v11263_v58 = vld [vmem:[#allocation4 + $0x1c4] sm:$0xf0] }
 0x1e4   : > { %v2328_v47 = vpop.f32.mrf.mxu1  ;;  %3194 = vmatpush.bf16.msra.mxu3 %v8907_v23  ;;  %v8747_v10 = vor.u32 %v11225_v29, %v8744_v60  ;;  %v8879_v16 = vor.u32 %v11263_v58, %v8878_v8  ;;  %v11257_v23 = vld [vmem:[#allocation4 + $0x194] sm:$0xf0]  ;;  %v8856_v29 = vld [vmem:[#allocation4 + $0x198] sm:$0xf0] }
 0x1e5   : > { %v2480_v49 = vadd.f32 %v2353_v32, %v583_v0  ;;  %v2445_v45 = vpop.f32.mrf.mxu2  ;;  %3206 = vmatpush.bf16.msra.mxu0 %v8743_v39  ;;  %v8718_v0 = vld [vmem:[#allocation4 + $0x68] sm:$0xf]  ;;  %v11222_v32 = vld [vmem:[#allocation4 + $0x7c] sm:$0xf0]  ;;  %v8859_v60 = vor.u32 %v11254_v36, %v8856_v29  ;;  %v11297_v8 = vld [vmem:[#allocation4 + $0x2dc] sm:$0xf] }
 0x1e6   : > { %3232 = vmatpush.bf16.msrb.mxu2 %v8747_v10  ;;  %3169 = vmatpush.bf16.msrb.mxu1 %v8879_v16  ;;  %v8719_v61 = vor.u32 %v11222_v32, %v8718_v0  ;;  %v8854_v45 = vld [vmem:[#allocation4 + $0x180] sm:$0xf]  ;;  %v11300_v10 = vld [vmem:[#allocation4 + $0x2ec] sm:$0xf0]  ;;  %v9032_v16 = vld [vmem:[#allocation4 + $0x2f0] sm:$0xf0] }
 0x1e7   : > { %v8657_v4 = vmul.f32 -1.442695, %v2480_v49  ;;  %v8723_v49 = vor.u32 %v11219_v26, %v8720_v11  ;;  %v8855_v39 = vor.u32 %v11257_v23, %v8854_v45  ;;  %v11213_v0 = vld [vmem:[#allocation4 + $0x3c] sm:$0xf]  ;;  %v8696_v32 = vld [vmem:[#allocation4 + $0x50] sm:$0xf0]  ;;  %v2392_v45 = vadd.f32 %v12700_v41, %v12411_v24 }
 0x1e8   : > { %3195 = vmatpush.bf16.msra.mxu3 %v8883_v28  ;;  %v11216_v28 = vld [vmem:[#allocation4 + $0x4c] sm:$0xf0]  ;;  %v9006_v11 = vld [vmem:[#allocation4 + $0x2a8] sm:$0xf]  ;;  %v11291_v36 = vld [vmem:[#allocation4 + $0x2ac] sm:$0xf] }
 0x1e9   : > { %v11827_v59 = vpop.eup %11826  ;;  %11828 = vpow2.f32 %v8657_v4  ;;  %3207 = vmatpush.bf16.msra.mxu0 %v8719_v61  ;;  %v9030_v4 = vld [vmem:[#allocation4 + $0x2d8] sm:$0xf]  ;;  %v8699_v61 = vor.u32 %v11213_v0, %v8696_v32  ;;  %v9008_v29 = vld [vmem:[#allocation4 + $0x2c0] sm:$0xf0] }
 0x1ea   : > { %v12714_v17 = vadd.f32 1.0, %v11827_v59  ;;  %v2354_v47 = vpop.f32.mrf.mxu3  ;;  %3233 = vmatpush.bf16.msrb.mxu2 %v8723_v49  ;;  %v9031_v58 = vor.u32 %v11300_v10, %v9030_v4  ;;  %3170 = vmatpush.bf16.msrb.mxu1 %v8855_v39  ;;  %v9035_v59 = vor.u32 %v11297_v8, %v9032_v16  ;;  %v11294_v49 = vld [vmem:[#allocation4 + $0x2bc] sm:$0xf0]  ;;  %v8670_v39 = vld [vmem:[#allocation4 + $0x8] sm:$0xf]  ;;  %v9011_v16 = vor.u32 %v11291_v36, %v9008_v29 }
 0x1eb   : > { %v8695_v47 = vor.u32 %v11216_v28, %v8694_v6  ;;  %v9007_v23 = vor.u32 %v11294_v49, %v9006_v11  ;;  %v11210_v10 = vld [vmem:[#allocation4 + $0x1c] sm:$0xf0]  ;;  %v11207_v6 = vld [vmem:[#allocation4 + $0xc] sm:$0xf]  ;;  %v8984_v36 = vld [vmem:[#allocation4 + $0x290] sm:$0xf0] }
 0x1ec   : > { %11830 = vrcp.f32 %v12714_v17  ;;  %v12717_v7 = vpop.f32.mrf.mxu1  ;;  %3196 = vmatpush.bf16.msra.mxu3 %v8859_v60  ;;  %v8671_v41 = vor.u32 %v11210_v10, %v8670_v39  ;;  %v2474_v32 = vand.u32 2147483647, %v12714_v17  ;;  %v2476_v11 = vand.u32 2147483648, %v12714_v17 }
 0x1ed   : > { %3208 = vmatpush.bf16.msra.mxu0 %v8695_v47  ;;  %v8982_v47 = vld [vmem:[#allocation4 + $0x278] sm:$0xf]  ;;  %vm2470_vm12 = vweird.f32 %v12714_v17 }
 0x1ee   : > { %3215 = vmatpush.bf16.msra.mxu1 %v9031_v58  ;;  %3234 = vmatpush.bf16.msrb.mxu2 %v8699_v61  ;;  %v11288_v61 = vld [vmem:[#allocation4 + $0x28c] sm:$0xf0]  ;;  %vm2475_vm10 = vcmp.eq.f32.partialorder %v2474_v32, 8.507059e+37 }
 0x1ef   : > { %v11829_v20 = vpop.eup %11828 }
 0x1f0   : > { %v12719_v26 = vadd.f32 1.0, %v11829_v20  ;;  %3241 = vmatpush.bf16.msrb.mxu3 %v9035_v59  ;;  %v8672_v20 = vld [vmem:[#allocation4 + $0x20] sm:$0xf0] }
 0x1f1   : > { %v8675_v59 = vor.u32 %v11207_v6, %v8672_v20  ;;  %3209 = vmatpush.bf16.msra.mxu0 %v8671_v41  ;;  %v2418_v6 = vadd.f32 %v12702_v14, %v12495_v21  ;;  %v11282_v20 = vld [vmem:[#allocation4 + $0x25c] sm:$0xf0]  ;;  %v8960_v41 = vld [vmem:[#allocation4 + $0x260] sm:$0xf0] }
 0x1f2   : > { %v11831_v60 = vpop.eup %11830  ;;  %11832 = vrcp.f32 %v12719_v26  ;;  %v2404_v4 = vpop.f32.mrf.mxu3  ;;  %3216 = vmatpush.bf16.msra.mxu1 %v9007_v23  ;;  %v8983_v23 = vor.u32 %v11288_v61, %v8982_v47  ;;  %v2496_v61 = vand.u32 2147483648, %v12719_v26 }
 0x1f3   : > { %v2466_v8 = vmul.f32 %v11831_v60, %v12714_v17  ;;  %v2405_v58 = vadd.f32 %v2404_v4, %v2392_v45  ;;  %vm2471_vm11 = vweird.f32 %v11831_v60  ;;  %3235 = vmatpush.bf16.msrb.mxu2 %v8675_v59  ;;  %v11285_v45 = vld [vmem:[#allocation4 + $0x27c] sm:$0xf]  ;;  %v612_v17 = vadd.f32 %v12291_v43, %v12305_v51 }
 0x1f4   : > { %v2380_v28 = vpop.f32.mrf.mxu1  ;;  %3242 = vmatpush.bf16.msrb.mxu3 %v9011_v16  ;;  %v8987_v39 = vor.u32 %v11285_v45, %v8984_v36  ;;  %vm2472_vm7 = vmor %vm2470_vm12, %vm2471_vm11  ;;  %vm2490_vm11 = vweird.f32 %v12719_v26 }
 0x1f5   : > { %v2467_v0 = vsub.f32 1.0, %v2466_v8  ;;  %v2507_v49 = vadd.f32 %v2405_v58, %v12355_v15  ;;  %v2366_v8 = vadd.f32 %v12698_v33, %v12446_v18  ;;  %v8958_v15 = vld [vmem:[#allocation4 + $0x248] sm:$0xf]  ;;  %v11279_v28 = vld [vmem:[#allocation4 + $0x24c] sm:$0xf]  ;;  %v2477_v33 = vor.u32 1.1754944e-38, %v2476_v11 }
 0x1f6   : > { %3217 = vmatpush.bf16.msra.mxu1 %v8983_v23  ;;  %v8963_v14 = vor.u32 %v11279_v28, %v8960_v41  ;;  %v11276_v23 = vld [vmem:[#allocation4 + $0x22c] sm:$0xf0]  ;;  %v8848_v41 = vld [vmem:[#allocation4 + $0x178] sm:$0xf0] }
 0x1f7   : > { %v2468_v29 = vmul.f32 %v11831_v60, %v2467_v0  ;;  %v8658_v4 = vmul.f32 -1.442695, %v2507_v49  ;;  %v2379_v59 = vadd.f32 %v12717_v7, %v2366_v8  ;;  %v8959_v49 = vor.u32 %v11282_v20, %v8958_v15  ;;  %v8936_v15 = vld [vmem:[#allocation4 + $0x230] sm:$0xf0] }
 0x1f8   : > { %v11833_v10 = vpop.eup %11832  ;;  %3243 = vmatpush.bf16.msrb.mxu3 %v8987_v39  ;;  %v11273_v39 = vld [vmem:[#allocation4 + $0x21c] sm:$0xf] }
 0x1f9   : > { %v2486_v58 = vmul.f32 %v11833_v10, %v12719_v26  ;;  %v2469_v16 = vadd.f32 %v11831_v60, %v2468_v29  ;;  %11834 = vpow2.f32 %v8658_v4  ;;  %v8934_v4 = vld [vmem:[#allocation4 + $0x218] sm:$0xf]  ;;  %vm2491_vm9 = vweird.f32 %v11833_v10 }
 0x1fa   : > { %v2406_v0 = vpop.f32.mrf.mxu3  ;;  %3218 = vmatpush.bf16.msra.mxu1 %v8959_v49  ;;  %v8935_v20 = vor.u32 %v11276_v23, %v8934_v4  ;;  %vm12742_vm12 = vmor %vm2490_vm11, %vm2491_vm9  ;;  %v11264_v4 = vld [vmem:[#allocation4 + $0x1cc] sm:$0xf0]  ;;  %v11261_v23 = vld [vmem:[#allocation4 + $0x1bc] sm:$0xf] }
 0x1fb   : > { %v2487_v47 = vsub.f32 1.0, %v2486_v58  ;;  %v2473_v45 = vsel %vm2472_vm7, %v11831_v60, %v2469_v16  ;;  %v2494_v58 = vand.u32 2147483647, %v12719_v26  ;;  %v8939_v60 = vor.u32 %v11273_v39, %v8936_v15  ;;  %v11270_v0 = vld [vmem:[#allocation4 + $0x1fc] sm:$0xf0] }
 0x1fc   : > { %v2478_v36 = vsel %vm2475_vm10, %v2477_v33, %v2473_v45  ;;  %v2430_v29 = vpop.f32.mrf.mxu1  ;;  %3244 = vmatpush.bf16.msrb.mxu3 %v8963_v14  ;;  %v8910_v33 = vld [vmem:[#allocation4 + $0x1e8] sm:$0xf]  ;;  %v8912_v45 = vld [vmem:[#allocation4 + $0x200] sm:$0xf0]  ;;  %v8888_v39 = vld [vmem:[#allocation4 + $0x1d0] sm:$0xf0] }
 0x1fd   : > { %v2488_v7 = vmul.f32 %v11833_v10, %v2487_v47  ;;  %v2500_v8 = vmul.f32 %v2478_v36, %v2379_v59  ;;  %v2431_v11 = vadd.f32 %v2430_v29, %v2418_v6  ;;  %v2497_v59 = vor.u32 1.1754944e-38, %v2496_v61  ;;  %v11267_v47 = vld [vmem:[#allocation4 + $0x1ec] sm:$0xf]  ;;  %v8886_v29 = vld [vmem:[#allocation4 + $0x1b8] sm:$0xf] }
 0x1fe   : > { %3219 = vmatpush.bf16.msra.mxu1 %v8935_v20  ;;  %v8911_v26 = vor.u32 %v11270_v0, %v8910_v33  ;;  %vm2495_vm7 = vcmp.eq.f32.partialorder %v2494_v58, 8.507059e+37  ;;  %v8915_v36 = vor.u32 %v11267_v47, %v8912_v45  ;;  %v8891_v15 = vor.u32 %v11261_v23, %v8888_v39  ;;  %v11250_v20 = vld [vmem:[#allocation4 + $0x164] sm:$0xf]  ;;  %v8822_v23 = vld [vmem:[#allocation4 + $0x130] sm:$0xf] }
 0x1ff   : > { %v11835_v32 = vpop.eup %11834  ;;  %v2489_v43 = vadd.f32 %v11833_v10, %v2488_v7  ;;  %v2501_v16 = vadd.f32 %v2500_v8, %v612_v17  ;;  %v2527_v28 = vadd.f32 %v2431_v11, %v12429_v30  ;;  %v8846_v8 = vld [vmem:[#allocation4 + $0x160] sm:$0xf]  ;;  %v11253_v11 = vld [vmem:[#allocation4 + $0x174] sm:$0xf0]  ;;  %v8864_v33 = vld [vmem:[#allocation4 + $0x1a0] sm:$0xf0] }
 0x200   : > { %v12746_v6 = vadd.f32 1.0, %v11835_v32  ;;  %3245 = vmatpush.bf16.msrb.mxu3 %v8939_v60  ;;  %v8862_v60 = vld [vmem:[#allocation4 + $0x188] sm:$0xf]  ;;  %v11258_v32 = vld [vmem:[#allocation4 + $0x19c] sm:$0xf0] }
 0x201   : > { %v2493_v49 = vsel %vm12742_vm12, %v11833_v10, %v2489_v43  ;;  %11836 = vtanh.f32 %v2501_v16  ;;  %v8659_v14 = vmul.f32 -1.442695, %v2527_v28  ;;  %v8887_v10 = vor.u32 %v11264_v4, %v8886_v29 }
 0x202   : > { %11838 = vrcp.f32 %v12746_v6  ;;  %v12751_v30 = vpop.f32.mrf.mxu3  ;;  %v2498_v61 = vsel %vm2495_vm7, %v2497_v59, %v2493_v49  ;;  %3220 = vmatpush.bf16.msra.mxu1 %v8911_v26  ;;  %v11255_v59 = vld [vmem:[#allocation4 + $0x18c] sm:$0xf]  ;;  %v8847_v29 = vor.u32 %v11253_v11, %v8846_v8  ;;  %v8851_v4 = vor.u32 %v11250_v20, %v8848_v41  ;;  %v11241_v41 = vld [vmem:[#allocation4 + $0x114] sm:$0xf0] }
 0x203   : > { %11840 = vpow2.f32 %v8659_v14  ;;  %v2503_v7 = vsub.f32 1.0, %v2498_v61  ;;  %v2505_v28 = vmul.f32 %v2498_v61, %v12527_v25  ;;  %v8863_v14 = vor.u32 %v11258_v32, %v8862_v60 }
 0x204   : > { %v2432_v17 = vpop.f32.mrf.mxu1  ;;  %3246 = vmatpush.bf16.msrb.mxu3 %v8915_v36  ;;  %v2523_v39 = vand.u32 2147483648, %v12746_v6  ;;  %v2521_v11 = vand.u32 2147483647, %v12746_v6 }
 0x205   : > { %v8867_v17 = vor.u32 %v11255_v59, %v8864_v33  ;;  %v2457_v59 = vadd.f32 %v12751_v30, %v2444_v52  ;;  %v8776_v30 = vld [vmem:[#allocation4 + $0xe8] sm:$0xf0]  ;;  %v11229_v52 = vld [vmem:[#allocation4 + $0xb4] sm:$0xf0] }
 0x206   : > { %3221 = vmatpush.bf16.msra.mxu1 %v8887_v10  ;;  %v2524_v60 = vor.u32 1.1754944e-38, %v2523_v39  ;;  %vm2522_vm11 = vcmp.eq.f32.partialorder %v2521_v11, 8.507059e+37  ;;  %v8750_v11 = vld [vmem:[#allocation4 + $0xa0] sm:$0xf] }
 0x207   : > { %v11837_v58 = vpop.eup %11836 }
 0x208   : > { %v11839_v43 = vpop.eup %11838  ;;  %v2504_v16 = vmul.f32 %v11837_v58, %v2503_v7  ;;  %3247 = vmatpush.bf16.msrb.mxu3 %v8891_v15  ;;  %v11247_v7 = vld [vmem:[#allocation4 + $0x144] sm:$0xf0]  ;;  %v11244_v15 = vld [vmem:[#allocation4 + $0x134] sm:$0xf] }
 0x209   : > { %v11841_v0 = vpop.eup %11840  ;;  %v2513_v49 = vmul.f32 %v11839_v43, %v12746_v6  ;;  %vm2518_vm9 = vweird.f32 %v11839_v43  ;;  %v8823_v32 = vor.u32 %v11247_v7, %v8822_v23 }
 0x20a   : > { %v2506_v26 = vadd.f32 %v2505_v28, %v2504_v16  ;;  %v12755_v47 = vadd.f32 1.0, %v11841_v0  ;;  %v2458_v45 = vpop.f32.mrf.mxu3  ;;  %3222 = vmatpush.bf16.msra.mxu1 %v8863_v14  ;;  %v8798_v28 = vld [vmem:[#allocation4 + $0x100] sm:$0xf]  ;;  %v8800_v0 = vld [vmem:[#allocation4 + $0x118] sm:$0xf0] }
 0x20b   : > { %v2514_v36 = vsub.f32 1.0, %v2513_v49  ;;  %v8799_v45 = vor.u32 %v11241_v41, %v8798_v28  ;;  %v8751_v28 = vor.u32 %v11229_v52, %v8750_v11  ;;  %v11295_v52 = vld [vmem:[#allocation4 + $0x2c4] sm:$0xf0] }
 0x20c   : > { %v12761_v61 = vsel %vm2555_vm13, %v2506_v26, %v12527_v25  ;;  %v2560_v10 = vsel %vm2555_vm13, %v2506_v26, 0.0  ;;  %11842 = vrcp.f32 %v12755_v47  ;;  %v8824_v25 = vld [vmem:[#allocation4 + $0x148] sm:$0xf0]  ;;  %3248 = vmatpush.bf16.msrb.mxu3 %v8867_v17  ;;  %vm2517_vm13 = vweird.f32 %v12746_v6 }
 0x20d   : > { %2561 = vst [vmem:[%s12106_s22 + $0x8] sm:$0xff] %v2560_v10  ;;  %v2515_v8 = vmul.f32 %v11839_v43, %v2514_v36  ;;  %v12772_v58 = vpack.c.bf16 %v12761_v61, %v12761_v61  ;;  %vm2519_vm10 = vmor %vm2517_vm13, %vm2518_vm9  ;;  %v8827_v16 = vor.u32 %v11244_v15, %v8824_v25  ;;  %v8803_v17 = vor.u32 %v11238_v62, %v8800_v0  ;;  %v8774_v36 = vld [vmem:[#allocation4 + $0xd0] sm:$0xf]  ;;  %v11232_v10 = vld [vmem:[#allocation4 + $0xd4] sm:$0xf] }
 0x20e   : > { %v2541_v7 = vand.u32 2147483647, %v12755_v47  ;;  %vm2537_vm7 = vweird.f32 %v12755_v47 }
 0x20f   : > { %v2516_v20 = vadd.f32 %v11839_v43, %v2515_v8  ;;  %3158 = vmatmul.bf16.vlgmr.msrb.gmra.mxu0 %v12772_v58  ;;  %3184 = vmatmul.bf16.vlgmr.msra.gmra.mxu2 %v12772_v58  ;;  %v8779_v8 = vor.u32 %v11232_v10, %v8776_v30  ;;  %v11217_v30 = vld [vmem:[#allocation4 + $0x54] sm:$0xf0] }
 0x210   : > { %3254 = vmatpush.bf16.msrb.mxu0 %v8847_v29  ;;  %3280 = vmatpush.bf16.msra.mxu2 %v8851_v4  ;;  %v11235_v29 = vld [vmem:[#allocation4 + $0xe4] sm:$0xf0]  ;;  %vm2542_vm13 = vcmp.eq.f32.partialorder %v2541_v7, 8.507059e+37  ;;  %v9014_v7 = vld [vmem:[#allocation4 + $0x2b0] sm:$0xf] }
 0x211   : > { %v2520_v33 = vsel %vm2519_vm10, %v11839_v43, %v2516_v20  ;;  %v2543_v43 = vand.u32 2147483648, %v12755_v47  ;;  %v8775_v15 = vor.u32 %v11235_v29, %v8774_v36  ;;  %v11226_v20 = vld [vmem:[#allocation4 + $0xa4] sm:$0xf]  ;;  %v9015_v50 = vor.u32 %v11295_v52, %v9014_v7  ;;  %v8944_v7 = vld [vmem:[#allocation4 + $0x238] sm:$0xf0] }
 0x212   : > { %v11843_v49 = vpop.eup %11842  ;;  %v2525_v6 = vsel %vm2522_vm11, %v2524_v60, %v2520_v33  ;;  %v11223_v33 = vld [vmem:[#allocation4 + $0x84] sm:$0xf0]  ;;  %v11298_v29 = vld [vmem:[#allocation4 + $0x2e4] sm:$0xf] }
 0x213   : > { %v2533_v14 = vmul.f32 %v11843_v49, %v12755_v47  ;;  %v2547_v26 = vmul.f32 %v2525_v6, %v2457_v59  ;;  %vm2538_vm12 = vweird.f32 %v11843_v49  ;;  %v2544_v60 = vor.u32 1.1754944e-38, %v2543_v43  ;;  %v8726_v59 = vld [vmem:[#allocation4 + $0x70] sm:$0xf]  ;;  %v11220_v6 = vld [vmem:[#allocation4 + $0x74] sm:$0xf] }
 0x214   : > { %3255 = vmatpush.bf16.msrb.mxu0 %v8823_v32  ;;  %3281 = vmatpush.bf16.msra.mxu2 %v8827_v16  ;;  %vm2539_vm9 = vmor %vm2537_vm7, %vm2538_vm12  ;;  %v11214_v43 = vld [vmem:[#allocation4 + $0x44] sm:$0xf]  ;;  %v11271_v52 = vld [vmem:[#allocation4 + $0x204] sm:$0xf0] }
 0x215   : > { %v2534_v4 = vsub.f32 1.0, %v2533_v14  ;;  %v2548_v23 = vadd.f32 %v2547_v26, %v12432_v46  ;;  %v8752_v46 = vld [vmem:[#allocation4 + $0xb8] sm:$0xf0]  ;;  %v8728_v14 = vld [vmem:[#allocation4 + $0x88] sm:$0xf0] }
 0x216   : > { %v8755_v41 = vor.u32 %v11226_v20, %v8752_v46  ;;  %v8731_v36 = vor.u32 %v11220_v6, %v8728_v14  ;;  %v11292_v20 = vld [vmem:[#allocation4 + $0x2b4] sm:$0xf]  ;;  %v8990_v6 = vld [vmem:[#allocation4 + $0x280] sm:$0xf]  ;;  %v11289_v14 = vld [vmem:[#allocation4 + $0x294] sm:$0xf0] }
 0x217   : > { %v2535_v39 = vmul.f32 %v11843_v49, %v2534_v4  ;;  %11844 = vtanh.f32 %v2548_v23  ;;  %v9040_v4 = vld [vmem:[#allocation4 + $0x2f8] sm:$0xf0]  ;;  %v8702_v23 = vld [vmem:[#allocation4 + $0x40] sm:$0xf] }
 0x218   : > { %3256 = vmatpush.bf16.msrb.mxu0 %v8799_v45  ;;  %3282 = vmatpush.bf16.msra.mxu2 %v8803_v17  ;;  %v11301_v45 = vld [vmem:[#allocation4 + $0x2f4] sm:$0xf0]  ;;  %v8727_v17 = vor.u32 %v11223_v33, %v8726_v59  ;;  %v8680_v59 = vld [vmem:[#allocation4 + $0x28] sm:$0xf0] }
 0x219   : > { %v2536_v25 = vadd.f32 %v11843_v49, %v2535_v39  ;;  %v8704_v39 = vld [vmem:[#allocation4 + $0x58] sm:$0xf0] }
 0x21b   : > { %v2540_v32 = vsel %vm2539_vm9, %v11843_v49, %v2536_v25  ;;  %v9038_v49 = vld [vmem:[#allocation4 + $0x2e0] sm:$0xf]  ;;  %v9043_v25 = vor.u32 %v11298_v29, %v9040_v4  ;;  %v11280_v29 = vld [vmem:[#allocation4 + $0x254] sm:$0xf]  ;;  %v8968_v4 = vld [vmem:[#allocation4 + $0x268] sm:$0xf0] }
 0x21c   : > { %v2545_v16 = vsel %vm2542_vm13, %v2544_v60, %v2540_v32  ;;  %3257 = vmatpush.bf16.msrb.mxu0 %v8775_v15  ;;  %3283 = vmatpush.bf16.msra.mxu2 %v8779_v8  ;;  %v9039_v11 = vor.u32 %v11301_v45, %v9038_v49  ;;  %v8703_v60 = vor.u32 %v11217_v30, %v8702_v23  ;;  %v8942_v30 = vld [vmem:[#allocation4 + $0x220] sm:$0xf] }
 0x21d   : > { %v11845_v62 = vpop.eup %11844  ;;  %v2550_v0 = vsub.f32 1.0, %v2545_v16  ;;  %v2552_v26 = vmul.f32 %v2545_v16, %v12689_v31  ;;  %v8707_v32 = vor.u32 %v11214_v43, %v8704_v39  ;;  %v9016_v16 = vld [vmem:[#allocation4 + $0x2c8] sm:$0xf0]  ;;  %v8991_v49 = vor.u32 %v11289_v14, %v8990_v6  ;;  %v11277_v43 = vld [vmem:[#allocation4 + $0x234] sm:$0xf0] }
 0x21e   : > { %v9019_v33 = vor.u32 %v11292_v20, %v9016_v16  ;;  %v11274_v39 = vld [vmem:[#allocation4 + $0x224] sm:$0xf]  ;;  %v11268_v20 = vld [vmem:[#allocation4 + $0x1f4] sm:$0xf]  ;;  %v8894_v16 = vld [vmem:[#allocation4 + $0x1c0] sm:$0xf] }
 0x21f   : > { %v2551_v47 = vmul.f32 %v11845_v62, %v2550_v0  ;;  %3210 = vmatmul.bf16.vlgmr.msra.gmra.mxu0 %v12772_v58  ;;  %3236 = vmatmul.bf16.vlgmr.msrb.gmra.mxu2 %v12772_v58  ;;  %v8872_v6 = vld [vmem:[#allocation4 + $0x1a8] sm:$0xf0] }
 0x220   : > { %3258 = vmatpush.bf16.msrb.mxu0 %v8751_v28  ;;  %3284 = vmatpush.bf16.msra.mxu2 %v8755_v41  ;;  %v11211_v28 = vld [vmem:[#allocation4 + $0x24] sm:$0xf0]  ;;  %v11208_v41 = vld [vmem:[#allocation4 + $0x14] sm:$0xf] }
 0x221   : > { %v2553_v10 = vadd.f32 %v2552_v26, %v2551_v47  ;;  %v8683_v0 = vor.u32 %v11208_v41, %v8680_v59  ;;  %v11286_v47 = vld [vmem:[#allocation4 + $0x284] sm:$0xf]  ;;  %v8992_v26 = vld [vmem:[#allocation4 + $0x298] sm:$0xf0] }
 0x222   : > { %v8995_v45 = vor.u32 %v11286_v47, %v8992_v26  ;;  %v8896_v41 = vld [vmem:[#allocation4 + $0x1d8] sm:$0xf0]  ;;  %v9218_v26 = vld [vmem:[#allocation4 + $0x150] sm:$0xf] }
 0x223   : > { %v12792_v15 = vsel %vm2557_vm14, %v2553_v10, %v12689_v31  ;;  %v2562_v8 = vsel %vm2557_vm14, %v2553_v10, 0.0  ;;  %v8678_v31 = vld [vmem:[#allocation4 + $0x10] sm:$0xf]  ;;  %v8971_v10 = vor.u32 %v11280_v29, %v8968_v4  ;;  %v9194_v29 = vld [vmem:[#allocation4 + $0x120] sm:$0xf] }
 0x224   : > { %2563 = vst [vmem:[%s12111_s27 + $0x30] sm:$0xff] %v2562_v8  ;;  %3259 = vmatpush.bf16.msrb.mxu0 %v8727_v17  ;;  %3285 = vmatpush.bf16.msra.mxu2 %v8731_v36  ;;  %v12800_v46 = vpack.c.bf16 %v12792_v15, %v12792_v15  ;;  %v8679_v62 = vor.u32 %v11211_v28, %v8678_v31  ;;  %v8966_v17 = vld [vmem:[#allocation4 + $0x250] sm:$0xf]  ;;  %v11283_v36 = vld [vmem:[#allocation4 + $0x264] sm:$0xf0] }
 0x225   : > { %v8967_v23 = vor.u32 %v11283_v36, %v8966_v17  ;;  %v8943_v8 = vor.u32 %v11277_v43, %v8942_v30  ;;  %v11265_v31 = vld [vmem:[#allocation4 + $0x1d4] sm:$0xf0]  ;;  %v11262_v28 = vld [vmem:[#allocation4 + $0x1c4] sm:$0xf]  ;;  %v9220_v36 = vld [vmem:[#allocation4 + $0x168] sm:$0xf0] }
 0x226   : > { %3171 = vmatmul.bf16.vlgmr.msrb.gmra.mxu1 %v12800_v46  ;;  %3197 = vmatmul.bf16.vlgmr.msra.gmra.mxu3 %v12800_v46  ;;  %v8895_v59 = vor.u32 %v11265_v31, %v8894_v16  ;;  %v11341_v4 = vld [vmem:[#allocation4 + $0x134] sm:$0xf0]  ;;  %v9196_v30 = vld [vmem:[#allocation4 + $0x138] sm:$0xf0] }
 0x227   : > { %3267 = vmatpush.bf16.msrb.mxu1 %v9039_v11  ;;  %3293 = vmatpush.bf16.msra.mxu3 %v9043_v25  ;;  %v8947_v11 = vor.u32 %v11274_v39, %v8944_v7  ;;  %v8918_v25 = vld [vmem:[#allocation4 + $0x1f0] sm:$0xf]  ;;  %v9195_v43 = vor.u32 %v11341_v4, %v9194_v29  ;;  %v9148_v31 = vld [vmem:[#allocation4 + $0xd8] sm:$0xf0]  ;;  %v11395_v4 = vld [vmem:[#allocation4 + $0x2e4] sm:$0xf0] }
 0x228   : > { %3260 = vmatpush.bf16.msrb.mxu0 %v8703_v60  ;;  %3286 = vmatpush.bf16.msra.mxu2 %v8707_v32  ;;  %v8920_v60 = vld [vmem:[#allocation4 + $0x208] sm:$0xf0]  ;;  %v9170_v7 = vld [vmem:[#allocation4 + $0xf0] sm:$0xf] }
 0x229   : > { %v8923_v32 = vor.u32 %v11268_v20, %v8920_v60  ;;  %v9146_v20 = vld [vmem:[#allocation4 + $0xc0] sm:$0xf]  ;;  %v11329_v60 = vld [vmem:[#allocation4 + $0xd4] sm:$0xf0]  ;;  %v9410_v29 = vld [vmem:[#allocation4 + $0x2d0] sm:$0xf] }
 0x22a   : > { %v9147_v16 = vor.u32 %v11329_v60, %v9146_v20  ;;  %v9386_v20 = vld [vmem:[#allocation4 + $0x2a0] sm:$0xf]  ;;  %v11389_v60 = vld [vmem:[#allocation4 + $0x2b4] sm:$0xf0] }
 0x22b   : > { %3268 = vmatpush.bf16.msrb.mxu1 %v9015_v50  ;;  %3294 = vmatpush.bf16.msra.mxu3 %v9019_v33  ;;  %v8899_v50 = vor.u32 %v11262_v28, %v8896_v41  ;;  %v8870_v33 = vld [vmem:[#allocation4 + $0x190] sm:$0xf] }
 0x22c   : > { %3261 = vmatpush.bf16.msrb.mxu0 %v8679_v62  ;;  %3287 = vmatpush.bf16.msra.mxu2 %v8683_v0  ;;  %v11259_v62 = vld [vmem:[#allocation4 + $0x1a4] sm:$0xf0]  ;;  %v11256_v0 = vld [vmem:[#allocation4 + $0x194] sm:$0xf]  ;;  %v9122_v41 = vld [vmem:[#allocation4 + $0x90] sm:$0xf] }
 0x22d   : > { %v8871_v14 = vor.u32 %v11259_v62, %v8870_v33  ;;  %v8875_v47 = vor.u32 %v11256_v0, %v8872_v6  ;;  %v9124_v62 = vld [vmem:[#allocation4 + $0xa8] sm:$0xf0] }
 0x22f   : > { %3262 = vmatmul.bf16.vlgmr.msrb.gmra.mxu0 %v12772_v58  ;;  %3269 = vmatpush.bf16.msrb.mxu1 %v8991_v49  ;;  %v11347_v49 = vld [vmem:[#allocation4 + $0x164] sm:$0xf0] }
 0x230   : > { %3288 = vmatmul.bf16.vlgmr.msra.gmra.mxu2 %v12772_v58  ;;  %3295 = vmatpush.bf16.msra.mxu3 %v8995_v45  ;;  %v8919_v58 = vor.u32 %v11271_v52, %v8918_v25  ;;  %v11344_v45 = vld [vmem:[#allocation4 + $0x154] sm:$0xf]  ;;  %v9219_v17 = vor.u32 %v11347_v49, %v9218_v26  ;;  %v9172_v25 = vld [vmem:[#allocation4 + $0x108] sm:$0xf0]  ;;  %v11314_v26 = vld [vmem:[#allocation4 + $0x64] sm:$0xf] }
 0x232   : > { %3996 = vmatpush.bf16.msra.mxu0 %v9219_v17  ;;  %v9100_v17 = vld [vmem:[#allocation4 + $0x78] sm:$0xf0] }
 0x233   : > { %3270 = vmatpush.bf16.msrb.mxu1 %v8967_v23  ;;  %v9223_v23 = vor.u32 %v11344_v45, %v9220_v36  ;;  %v9103_v36 = vor.u32 %v11314_v26, %v9100_v17  ;;  %v11348_v26 = vld [vmem:[#allocation4 + $0x16c] sm:$0xf0] }
 0x234   : > { %3296 = vmatpush.bf16.msra.mxu3 %v8971_v10  ;;  %v11338_v10 = vld [vmem:[#allocation4 + $0x124] sm:$0xf] }
 0x235   : > { %4022 = vmatpush.bf16.msrb.mxu2 %v9223_v23  ;;  %v9199_v39 = vor.u32 %v11338_v10, %v9196_v30  ;;  %v11392_v23 = vld [vmem:[#allocation4 + $0x2d4] sm:$0xf]  ;;  %v9411_v10 = vor.u32 %v11395_v4, %v9410_v29  ;;  %v9412_v30 = vld [vmem:[#allocation4 + $0x2e8] sm:$0xf0]  ;;  %v9362_v29 = vld [vmem:[#allocation4 + $0x270] sm:$0xf] }
 0x236   : > { %3223 = vmatmul.bf16.vlgmr.msra.gmra.mxu1 %v12800_v46  ;;  %3249 = vmatmul.bf16.vlgmr.msrb.gmra.mxu3 %v12800_v46  ;;  %v11383_v4 = vld [vmem:[#allocation4 + $0x284] sm:$0xf0] }
 0x237   : > { %3271 = vmatpush.bf16.msrb.mxu1 %v8943_v8  ;;  %3997 = vmatpush.bf16.msra.mxu0 %v9195_v43  ;;  %v11335_v8 = vld [vmem:[#allocation4 + $0x104] sm:$0xf0]  ;;  %v9074_v43 = vld [vmem:[#allocation4 + $0x30] sm:$0xf] }
 0x238   : > { %3297 = vmatpush.bf16.msra.mxu3 %v8947_v11  ;;  %v11332_v11 = vld [vmem:[#allocation4 + $0xf4] sm:$0xf] }
 0x239   : > { %4023 = vmatpush.bf16.msrb.mxu2 %v9199_v39  ;;  %v9175_v52 = vor.u32 %v11332_v11, %v9172_v25  ;;  %v11311_v39 = vld [vmem:[#allocation4 + $0x44] sm:$0xf0]  ;;  %v11308_v11 = vld [vmem:[#allocation4 + $0x34] sm:$0xf] }
 0x23b   : > { %3272 = vmatpush.bf16.msrb.mxu1 %v8919_v58  ;;  %v11326_v58 = vld [vmem:[#allocation4 + $0xc4] sm:$0xf] }
 0x23c   : > { %3298 = vmatpush.bf16.msra.mxu3 %v8923_v32  ;;  %v9151_v28 = vor.u32 %v11326_v58, %v9148_v31  ;;  %v11386_v58 = vld [vmem:[#allocation4 + $0x2a4] sm:$0xf]  ;;  %v9388_v31 = vld [vmem:[#allocation4 + $0x2b8] sm:$0xf0] }
 0x23d   : > { %4024 = vmatpush.bf16.msrb.mxu2 %v9175_v52 }
 0x23f   : > { %3273 = vmatpush.bf16.msrb.mxu1 %v8895_v59  ;;  %v11323_v59 = vld [vmem:[#allocation4 + $0xa4] sm:$0xf0] }
 0x240   : > { %3299 = vmatpush.bf16.msra.mxu3 %v8899_v50  ;;  %v11320_v50 = vld [vmem:[#allocation4 + $0x94] sm:$0xf]  ;;  %v9123_v33 = vor.u32 %v11323_v59, %v9122_v41  ;;  %v11305_v41 = vld [vmem:[#allocation4 + $0x14] sm:$0xf0] }
 0x241   : > { %4025 = vmatpush.bf16.msrb.mxu2 %v9151_v28  ;;  %v9127_v0 = vor.u32 %v11320_v50, %v9124_v62  ;;  %v9050_v28 = vld [vmem:[#allocation4] sm:$0xf]  ;;  %v9391_v50 = vor.u32 %v11386_v58, %v9388_v31  ;;  %v11302_v62 = vld [vmem:[#allocation4 + $0x4] sm:$0xf]  ;;  %v11377_v58 = vld [vmem:[#allocation4 + $0x254] sm:$0xf0] }
 0x243   : > { %3274 = vmatpush.bf16.msrb.mxu1 %v8871_v14  ;;  %v9098_v14 = vld [vmem:[#allocation4 + $0x60] sm:$0xf] }
 0x244   : > { %3300 = vmatpush.bf16.msra.mxu3 %v8875_v47  ;;  %v11317_v47 = vld [vmem:[#allocation4 + $0x74] sm:$0xf0] }
 0x245   : > { %4026 = vmatpush.bf16.msrb.mxu2 %v9127_v0  ;;  %v9099_v45 = vor.u32 %v11317_v47, %v9098_v14  ;;  %v9052_v0 = vld [vmem:[#allocation4 + $0x18] sm:$0xf0]  ;;  %v9226_v14 = vld [vmem:[#allocation4 + $0x158] sm:$0xf] }
 0x246   : > { %3275 = vmatmul.bf16.vlgmr.msrb.gmra.mxu1 %v12800_v46  ;;  %v9055_v47 = vor.u32 %v11302_v62, %v9052_v0  ;;  %v9227_v17 = vor.u32 %v11348_v26, %v9226_v14  ;;  %v9178_v0 = vld [vmem:[#allocation4 + $0xf8] sm:$0xf]  ;;  %v11336_v14 = vld [vmem:[#allocation4 + $0x10c] sm:$0xf0]  ;;  %v9180_v26 = vld [vmem:[#allocation4 + $0x110] sm:$0xf0] }
 0x247   : > { %3301 = vmatmul.bf16.vlgmr.msra.gmra.mxu3 %v12800_v46  ;;  %v9171_v46 = vor.u32 %v11335_v8, %v9170_v7  ;;  %v9415_v7 = vor.u32 %v11392_v23, %v9412_v30  ;;  %v9075_v8 = vor.u32 %v11311_v39, %v9074_v43  ;;  %4009 = vmatpush.bf16.msra.mxu1 %v9411_v10  ;;  %v11380_v23 = vld [vmem:[#allocation4 + $0x274] sm:$0xf]  ;;  %v9364_v30 = vld [vmem:[#allocation4 + $0x288] sm:$0xf0]  ;;  %v9202_v39 = vld [vmem:[#allocation4 + $0x128] sm:$0xf] }
 0x248   : > { %v9363_v10 = vor.u32 %v11383_v4, %v9362_v29  ;;  %v9367_v43 = vor.u32 %v11380_v23, %v9364_v30  ;;  %v11368_v29 = vld [vmem:[#allocation4 + $0x214] sm:$0xf]  ;;  %v9316_v23 = vld [vmem:[#allocation4 + $0x228] sm:$0xf0] }
 0x249   : > { %3998 = vmatpush.bf16.msra.mxu0 %v9171_v46  ;;  %4027 = vmatpush.bf16.msrb.mxu2 %v9103_v36  ;;  %v9076_v46 = vld [vmem:[#allocation4 + $0x48] sm:$0xf0] }
 0x24a   : > { %v9079_v25 = vor.u32 %v11308_v11, %v9076_v46  ;;  %4035 = vmatpush.bf16.msrb.mxu3 %v9415_v7  ;;  %v11342_v7 = vld [vmem:[#allocation4 + $0x13c] sm:$0xf0]  ;;  %v9204_v46 = vld [vmem:[#allocation4 + $0x140] sm:$0xf0] }
 0x24b   : > { %v9203_v11 = vor.u32 %v11342_v7, %v9202_v39  ;;  %v9154_v39 = vld [vmem:[#allocation4 + $0xc8] sm:$0xf]  ;;  %v11330_v7 = vld [vmem:[#allocation4 + $0xdc] sm:$0xf0] }
 0x24d   : > { %3999 = vmatpush.bf16.msra.mxu0 %v9147_v16  ;;  %4028 = vmatpush.bf16.msrb.mxu2 %v9079_v25  ;;  %v9387_v16 = vor.u32 %v11389_v60, %v9386_v20  ;;  %v9338_v60 = vld [vmem:[#allocation4 + $0x240] sm:$0xf] }
 0x24e   : > { %4036 = vmatpush.bf16.msrb.mxu3 %v9391_v50 }
 0x24f   : > { %4010 = vmatpush.bf16.msra.mxu1 %v9387_v16  ;;  %v11374_v16 = vld [vmem:[#allocation4 + $0x244] sm:$0xf] }
 0x251   : > { %4000 = vmatpush.bf16.msra.mxu0 %v9123_v33  ;;  %v9051_v33 = vor.u32 %v11305_v41, %v9050_v28  ;;  %4029 = vmatpush.bf16.msrb.mxu2 %v9055_v47  ;;  %v9339_v28 = vor.u32 %v11377_v58, %v9338_v60  ;;  %v9340_v41 = vld [vmem:[#allocation4 + $0x258] sm:$0xf0]  ;;  %v9290_v58 = vld [vmem:[#allocation4 + $0x1e0] sm:$0xf] }
 0x252   : > { %4037 = vmatpush.bf16.msrb.mxu3 %v9367_v43  ;;  %v9343_v62 = vor.u32 %v11374_v16, %v9340_v41  ;;  %v11333_v47 = vld [vmem:[#allocation4 + $0xfc] sm:$0xf]  ;;  %v9319_v43 = vor.u32 %v11368_v29, %v9316_v23  ;;  %v11365_v16 = vld [vmem:[#allocation4 + $0x1f4] sm:$0xf0]  ;;  %v9268_v23 = vld [vmem:[#allocation4 + $0x1c8] sm:$0xf0] }
 0x253   : > { %4011 = vmatpush.bf16.msra.mxu1 %v9363_v10  ;;  %v9292_v41 = vld [vmem:[#allocation4 + $0x1f8] sm:$0xf0] }
 0x255   : > { %4001 = vmatpush.bf16.msra.mxu0 %v9099_v45  ;;  %v9228_v45 = vld [vmem:[#allocation4 + $0x170] sm:$0xf0] }
 0x256   : > { %4038 = vmatpush.bf16.msrb.mxu3 %v9343_v62 }
 0x257   : > { %4012 = vmatpush.bf16.msra.mxu1 %v9339_v28  ;;  %v9291_v28 = vor.u32 %v11365_v16, %v9290_v58 }
 0x259   : > { %4002 = vmatpush.bf16.msra.mxu0 %v9075_v8  ;;  %v11339_v8 = vld [vmem:[#allocation4 + $0x12c] sm:$0xf] }
 0x25a   : > { %v9207_v20 = vor.u32 %v11339_v8, %v9204_v46  ;;  %v9156_v46 = vld [vmem:[#allocation4 + $0xe0] sm:$0xf0]  ;;  %4039 = vmatpush.bf16.msrb.mxu3 %v9319_v43  ;;  %v11318_v43 = vld [vmem:[#allocation4 + $0x7c] sm:$0xf0] }
 0x25d   : > { %4003 = vmatpush.bf16.msra.mxu0 %v9051_v33 }
 0x261   : > { %4048 = vmatpush.bf16.msrb.mxu0 %v9227_v17  ;;  %v9314_v17 = vld [vmem:[#allocation4 + $0x210] sm:$0xf] }
 0x265   : > { %4049 = vmatpush.bf16.msrb.mxu0 %v9203_v11  ;;  %v9155_v11 = vor.u32 %v11330_v7, %v9154_v39  ;;  %v11315_v39 = vld [vmem:[#allocation4 + $0x6c] sm:$0xf] }
 0x28c   : > { %v12810_v32 = vpop.f32.mrf.mxu0 }
 0x28d   : > { %v3160_v25 = vadd.f32 %v12810_v32, %v12377_v3  ;;  %v9179_v32 = vor.u32 %v11336_v14, %v9178_v0  ;;  %v9130_v0 = vld [vmem:[#allocation4 + $0x98] sm:$0xf]  ;;  %v11324_v14 = vld [vmem:[#allocation4 + $0xac] sm:$0xf0] }
 0x28f   : > { %4050 = vmatpush.bf16.msrb.mxu0 %v9179_v32  ;;  %v9131_v32 = vor.u32 %v11324_v14, %v9130_v0 }
 0x292   : > { %v12812_v6 = vpop.f32.mrf.mxu2 }
 0x293   : > { %v3186_v10 = vadd.f32 %v12812_v6, %v12393_v38  ;;  %4051 = vmatpush.bf16.msrb.mxu0 %v9155_v11 }
 0x294   : > { %v3161_v49 = vpop.f32.mrf.mxu0 }
 0x295   : > { %v11345_v49 = vld [vmem:[#allocation4 + $0x15c] sm:$0xf] }
 0x296   : > { %v9231_v36 = vor.u32 %v11345_v49, %v9228_v45  ;;  %v9183_v45 = vor.u32 %v11333_v47, %v9180_v26  ;;  %v11321_v47 = vld [vmem:[#allocation4 + $0x9c] sm:$0xf]  ;;  %v9132_v26 = vld [vmem:[#allocation4 + $0xb0] sm:$0xf0] }
 0x297   : > { %4052 = vmatpush.bf16.msrb.mxu0 %v9131_v32  ;;  %v9082_v32 = vld [vmem:[#allocation4 + $0x38] sm:$0xf] }
 0x298   : > { %4074 = vmatpush.bf16.msra.mxu2 %v9231_v36  ;;  %v11371_v36 = vld [vmem:[#allocation4 + $0x224] sm:$0xf0] }
 0x299   : > { %v9315_v4 = vor.u32 %v11371_v36, %v9314_v17  ;;  %v9266_v17 = vld [vmem:[#allocation4 + $0x1b0] sm:$0xf]  ;;  %v11359_v36 = vld [vmem:[#allocation4 + $0x1c4] sm:$0xf0] }
 0x29a   : > { %v3187_v52 = vpop.f32.mrf.mxu2  ;;  %v9267_v29 = vor.u32 %v11359_v36, %v9266_v17  ;;  %v11309_v17 = vld [vmem:[#allocation4 + $0x3c] sm:$0xf]  ;;  %v9084_v36 = vld [vmem:[#allocation4 + $0x50] sm:$0xf0] }
 0x29b   : > { %4013 = vmatpush.bf16.msra.mxu1 %v9315_v4  ;;  %v11356_v4 = vld [vmem:[#allocation4 + $0x1b4] sm:$0xf] }
 0x29c   : > { %v12814_v59 = vpop.f32.mrf.mxu0  ;;  %4075 = vmatpush.bf16.msra.mxu2 %v9207_v20 }
 0x29f   : > { %4014 = vmatpush.bf16.msra.mxu1 %v9291_v28 }
 0x2a0   : > { %4076 = vmatpush.bf16.msra.mxu2 %v9183_v45  ;;  %v9135_v45 = vor.u32 %v11321_v47, %v9132_v26  ;;  %v9420_v47 = vld [vmem:[#allocation4 + $0x2f0] sm:$0xf0] }
 0x2a2   : > { %v12818_v52 = vpop.f32.mrf.mxu2 }
 0x2a3   : > { %v3172_v31 = vpop.f32.mrf.mxu1  ;;  %4015 = vmatpush.bf16.msra.mxu1 %v9267_v29 }
 0x2a4   : > { %v3173_v50 = vadd.f32 %v3172_v31, %v3160_v25  ;;  %v3213_v33 = vpop.f32.mrf.mxu0  ;;  %v11362_v31 = vld [vmem:[#allocation4 + $0x1e4] sm:$0xf] }
 0x2a5   : > { %v9295_v62 = vor.u32 %v11362_v31, %v9292_v41  ;;  %v9244_v31 = vld [vmem:[#allocation4 + $0x198] sm:$0xf0]  ;;  %v9418_v41 = vld [vmem:[#allocation4 + $0x2d8] sm:$0xf] }
 0x2a6   : > { %v3306_v49 = vadd.f32 %v3173_v50, %v12298_v48  ;;  %v11327_v48 = vld [vmem:[#allocation4 + $0xcc] sm:$0xf] }
 0x2a7   : > { %v9159_v60 = vor.u32 %v11327_v48, %v9156_v46  ;;  %4040 = vmatpush.bf16.msrb.mxu3 %v9295_v62  ;;  %v9108_v48 = vld [vmem:[#allocation4 + $0x80] sm:$0xf0]  ;;  %v11393_v62 = vld [vmem:[#allocation4 + $0x2dc] sm:$0xf] }
 0x2a8   : > { %v9044_v30 = vmul.f32 -1.442695, %v3306_v49  ;;  %v9111_v46 = vor.u32 %v11315_v39, %v9108_v48  ;;  %v11387_v39 = vld [vmem:[#allocation4 + $0x2ac] sm:$0xf] }
 0x2a9   : > { %v3198_v8 = vpop.f32.mrf.mxu3  ;;  %4077 = vmatpush.bf16.msra.mxu2 %v9159_v60  ;;  %v11350_v60 = vld [vmem:[#allocation4 + $0x184] sm:$0xf] }
 0x2aa   : > { %11846 = vpow2.f32 %v9044_v30  ;;  %v3199_v25 = vadd.f32 %v3198_v8, %v3186_v10  ;;  %v3239_v20 = vpop.f32.mrf.mxu2  ;;  %v9271_v10 = vor.u32 %v11356_v4, %v9268_v23  ;;  %v9106_v30 = vld [vmem:[#allocation4 + $0x68] sm:$0xf]  ;;  %v9247_v0 = vor.u32 %v11350_v60, %v9244_v31 }
 0x2ab   : > { %v3174_v6 = vpop.f32.mrf.mxu1  ;;  %v9107_v11 = vor.u32 %v11318_v43, %v9106_v30  ;;  %v11353_v20 = vld [vmem:[#allocation4 + $0x194] sm:$0xf0]  ;;  %v9087_v23 = vor.u32 %v11309_v17, %v9084_v36  ;;  %v3238_v30 = vadd.f32 %v12818_v52, %v12411_v24  ;;  %v11303_v52 = vld [vmem:[#allocation4 + $0xc] sm:$0xf]  ;;  %v9372_v17 = vld [vmem:[#allocation4 + $0x290] sm:$0xf0] }
 0x2ac   : > { %v3326_v50 = vadd.f32 %v3199_v25, %v12301_v37  ;;  %v12824_v33 = vpop.f32.mrf.mxu0  ;;  %4041 = vmatpush.bf16.msrb.mxu3 %v9271_v10  ;;  %v9242_v25 = vld [vmem:[#allocation4 + $0x180] sm:$0xf] }
 0x2ad   : > { %4078 = vmatpush.bf16.msra.mxu2 %v9135_v45  ;;  %4053 = vmatpush.bf16.msrb.mxu0 %v9107_v11  ;;  %v9243_v28 = vor.u32 %v11353_v20, %v9242_v25  ;;  %v11312_v45 = vld [vmem:[#allocation4 + $0x4c] sm:$0xf0]  ;;  %v11390_v10 = vld [vmem:[#allocation4 + $0x2bc] sm:$0xf0]  ;;  %v9058_v11 = vld [vmem:[#allocation4 + $0x8] sm:$0xf]  ;;  %v763_v20 = vadd.f32 %v12339_v5, %v12275_v34 }
 0x2ae   : > { %v9045_v49 = vmul.f32 -1.442695, %v3326_v50  ;;  %v11396_v50 = vld [vmem:[#allocation4 + $0x2ec] sm:$0xf0]  ;;  %v9083_v4 = vor.u32 %v11312_v45, %v9082_v32  ;;  %v11306_v25 = vld [vmem:[#allocation4 + $0x1c] sm:$0xf0] }
 0x2af   : > { %v9419_v14 = vor.u32 %v11396_v50, %v9418_v41  ;;  %4016 = vmatpush.bf16.msra.mxu1 %v9243_v28  ;;  %v9060_v28 = vld [vmem:[#allocation4 + $0x20] sm:$0xf0]  ;;  %v11384_v5 = vld [vmem:[#allocation4 + $0x28c] sm:$0xf0]  ;;  %v11381_v45 = vld [vmem:[#allocation4 + $0x27c] sm:$0xf] }
 0x2b0   : > { %v11847_v37 = vpop.eup %11846  ;;  %11848 = vpow2.f32 %v9045_v49  ;;  %v9423_v49 = vor.u32 %v11393_v62, %v9420_v47  ;;  %4042 = vmatpush.bf16.msrb.mxu3 %v9247_v0  ;;  %v9059_v62 = vor.u32 %v11306_v25, %v9058_v11  ;;  %v9063_v0 = vor.u32 %v11303_v52, %v9060_v28  ;;  %v11375_v25 = vld [vmem:[#allocation4 + $0x24c] sm:$0xf] }
 0x2b1   : > { %v12826_v7 = vadd.f32 1.0, %v11847_v37  ;;  %v3200_v8 = vpop.f32.mrf.mxu3  ;;  %4079 = vmatpush.bf16.msra.mxu2 %v9111_v46  ;;  %v9394_v37 = vld [vmem:[#allocation4 + $0x2a8] sm:$0xf]  ;;  %4054 = vmatpush.bf16.msrb.mxu0 %v9083_v4 }
 0x2b2   : > { %v9395_v43 = vor.u32 %v11390_v10, %v9394_v37  ;;  %v9396_v8 = vld [vmem:[#allocation4 + $0x2c0] sm:$0xf0]  ;;  %v9375_v37 = vor.u32 %v11381_v45, %v9372_v17 }
 0x2b3   : > { %11850 = vrcp.f32 %v12826_v7  ;;  %v12829_v58 = vpop.f32.mrf.mxu2  ;;  %v12831_v16 = vpop.f32.mrf.mxu1  ;;  %4061 = vmatpush.bf16.msrb.mxu1 %v9419_v14  ;;  %v3320_v47 = vand.u32 2147483647, %v12826_v7  ;;  %v3322_v32 = vand.u32 2147483648, %v12826_v7  ;;  %vm3316_vm10 = vweird.f32 %v12826_v7 }
 0x2b4   : > { %v3265_v6 = vpop.f32.mrf.mxu0  ;;  %4087 = vmatpush.bf16.msra.mxu3 %v9423_v49  ;;  %v9370_v49 = vld [vmem:[#allocation4 + $0x278] sm:$0xf]  ;;  %v3290_v1 = vadd.f32 %v12829_v58, %v12501_v63  ;;  %v11334_v58 = vld [vmem:[#allocation4 + $0x104] sm:$0xf] }
 0x2b5   : > { %4080 = vmatpush.bf16.msra.mxu2 %v9087_v23  ;;  %v9399_v6 = vor.u32 %v11387_v39, %v9396_v8  ;;  %4055 = vmatpush.bf16.msrb.mxu0 %v9059_v62  ;;  %v9371_v23 = vor.u32 %v11384_v5, %v9370_v49  ;;  %v9346_v39 = vld [vmem:[#allocation4 + $0x248] sm:$0xf]  ;;  %vm3321_vm12 = vcmp.eq.f32.partialorder %v3320_v47, 8.507059e+37  ;;  %v9324_v5 = vld [vmem:[#allocation4 + $0x230] sm:$0xf0] }
 0x2b6   : > { %v11849_v26 = vpop.eup %11848 }
 0x2b7   : > { %v12833_v29 = vadd.f32 1.0, %v11849_v26  ;;  %4062 = vmatpush.bf16.msrb.mxu1 %v9395_v43  ;;  %v3264_v43 = vadd.f32 %v12824_v33, %v12495_v21 }
 0x2b8   : > { %4088 = vmatpush.bf16.msra.mxu3 %v9399_v6 }
 0x2b9   : > { %v11851_v48 = vpop.eup %11850  ;;  %11852 = vrcp.f32 %v12833_v29  ;;  %v3250_v46 = vpop.f32.mrf.mxu3  ;;  %4081 = vmatpush.bf16.msra.mxu2 %v9063_v0  ;;  %v3342_v28 = vand.u32 2147483648, %v12833_v29  ;;  %v9322_v0 = vld [vmem:[#allocation4 + $0x218] sm:$0xf]  ;;  %v3340_v45 = vand.u32 2147483647, %v12833_v29  ;;  %vm3336_vm9 = vweird.f32 %v12833_v29 }
 0x2ba   : > { %v3312_v60 = vmul.f32 %v11851_v48, %v12826_v7  ;;  %v3251_v31 = vadd.f32 %v3250_v46, %v3238_v30  ;;  %vm3317_vm14 = vweird.f32 %v11851_v48  ;;  %v3212_v30 = vadd.f32 %v12814_v59, %v12446_v18  ;;  %v11378_v46 = vld [vmem:[#allocation4 + $0x25c] sm:$0xf0] }
 0x2bb   : > { %v3291_v41 = vpop.f32.mrf.mxu2  ;;  %v3226_v50 = vpop.f32.mrf.mxu1  ;;  %4063 = vmatpush.bf16.msrb.mxu1 %v9371_v23  ;;  %vm3318_vm11 = vmor %vm3316_vm10, %vm3317_vm14  ;;  %v3323_v59 = vor.u32 1.1754944e-38, %v3322_v32  ;;  %v9347_v6 = vor.u32 %v11378_v46, %v9346_v39  ;;  %v792_v7 = vadd.f32 %v12415_v9, %v12357_v19  ;;  %v11366_v39 = vld [vmem:[#allocation4 + $0x1fc] sm:$0xf0]  ;;  %v11363_v46 = vld [vmem:[#allocation4 + $0x1ec] sm:$0xf]  ;;  %vm3341_vm14 = vcmp.eq.f32.partialorder %v3340_v45, 8.507059e+37 }
 0x2bc   : > { %v3313_v14 = vsub.f32 1.0, %v3312_v60  ;;  %v3353_v26 = vadd.f32 %v3251_v31, %v763_v20  ;;  %4089 = vmatpush.bf16.msra.mxu3 %v9375_v37  ;;  %v9348_v20 = vld [vmem:[#allocation4 + $0x260] sm:$0xf0]  ;;  %v3225_v60 = vadd.f32 %v12831_v16, %v3212_v30  ;;  %v3343_v37 = vor.u32 1.1754944e-38, %v3342_v28  ;;  %v11351_v45 = vld [vmem:[#allocation4 + $0x18c] sm:$0xf] }
 0x2bd   : > { %v9351_v33 = vor.u32 %v11375_v25, %v9348_v20 }
 0x2be   : > { %v3314_v36 = vmul.f32 %v11851_v48, %v3313_v14  ;;  %v9046_v4 = vmul.f32 -1.442695, %v3353_v26  ;;  %v11372_v14 = vld [vmem:[#allocation4 + $0x22c] sm:$0xf0]  ;;  %v11369_v26 = vld [vmem:[#allocation4 + $0x21c] sm:$0xf] }
 0x2bf   : > { %v11853_v10 = vpop.eup %11852  ;;  %4064 = vmatpush.bf16.msrb.mxu1 %v9347_v6  ;;  %v9323_v17 = vor.u32 %v11372_v14, %v9322_v0  ;;  %v11360_v6 = vld [vmem:[#allocation4 + $0x1cc] sm:$0xf0]  ;;  %v11346_v0 = vld [vmem:[#allocation4 + $0x164] sm:$0xf]  ;;  %v9250_v14 = vld [vmem:[#allocation4 + $0x188] sm:$0xf] }
 0x2c0   : > { %v3332_v8 = vmul.f32 %v11853_v10, %v12833_v29  ;;  %v3315_v11 = vadd.f32 %v11851_v48, %v3314_v36  ;;  %11854 = vpow2.f32 %v9046_v4  ;;  %vm3337_vm7 = vweird.f32 %v11853_v10  ;;  %4090 = vmatpush.bf16.msra.mxu3 %v9351_v33  ;;  %v11357_v33 = vld [vmem:[#allocation4 + $0x1bc] sm:$0xf] }
 0x2c1   : > { %v3252_v31 = vpop.f32.mrf.mxu3  ;;  %vm12857_vm13 = vmor %vm3336_vm9, %vm3337_vm7 }
 0x2c2   : > { %v3333_v52 = vsub.f32 1.0, %v3332_v8  ;;  %v3319_v41 = vsel %vm3318_vm11, %v11851_v48, %v3315_v11  ;;  %v9327_v48 = vor.u32 %v11369_v26, %v9324_v5  ;;  %v9274_v31 = vld [vmem:[#allocation4 + $0x1b8] sm:$0xf]  ;;  %v11354_v26 = vld [vmem:[#allocation4 + $0x19c] sm:$0xf0] }
 0x2c3   : > { %v3324_v50 = vsel %vm3321_vm12, %v3323_v59, %v3319_v41  ;;  %v3276_v62 = vpop.f32.mrf.mxu1  ;;  %4065 = vmatpush.bf16.msrb.mxu1 %v9323_v17  ;;  %v9234_v41 = vld [vmem:[#allocation4 + $0x160] sm:$0xf]  ;;  %v9236_v5 = vld [vmem:[#allocation4 + $0x178] sm:$0xf0]  ;;  %v9252_v17 = vld [vmem:[#allocation4 + $0x1a0] sm:$0xf0] }
 0x2c4   : > { %v3334_v16 = vmul.f32 %v11853_v10, %v3333_v52  ;;  %v3346_v49 = vmul.f32 %v3324_v50, %v3225_v60  ;;  %v3277_v32 = vadd.f32 %v3276_v62, %v3264_v43  ;;  %v9298_v43 = vld [vmem:[#allocation4 + $0x1e8] sm:$0xf]  ;;  %4091 = vmatpush.bf16.msra.mxu3 %v9327_v48  ;;  %v9276_v52 = vld [vmem:[#allocation4 + $0x1d0] sm:$0xf0]  ;;  %v9255_v23 = vor.u32 %v11351_v45, %v9252_v17  ;;  %v9162_v17 = vld [vmem:[#allocation4 + $0xd0] sm:$0xf] }
 0x2c5   : > { %v9299_v29 = vor.u32 %v11366_v39, %v9298_v43  ;;  %v9279_v50 = vor.u32 %v11357_v33, %v9276_v52 }
 0x2c6   : > { %v11855_v47 = vpop.eup %11854  ;;  %v3335_v9 = vadd.f32 %v11853_v10, %v3334_v16  ;;  %v3347_v36 = vadd.f32 %v3346_v49, %v12308_v53  ;;  %v3373_v4 = vadd.f32 %v3277_v32, %v792_v7  ;;  %v9300_v53 = vld [vmem:[#allocation4 + $0x200] sm:$0xf0]  ;;  %v11349_v7 = vld [vmem:[#allocation4 + $0x174] sm:$0xf0] }
 0x2c7   : > { %v12861_v30 = vadd.f32 1.0, %v11855_v47  ;;  %v9303_v59 = vor.u32 %v11363_v46, %v9300_v53  ;;  %4066 = vmatpush.bf16.msrb.mxu1 %v9299_v29  ;;  %v9235_v39 = vor.u32 %v11349_v7, %v9234_v41  ;;  %v9186_v41 = vld [vmem:[#allocation4 + $0x100] sm:$0xf]  ;;  %v11337_v7 = vld [vmem:[#allocation4 + $0x114] sm:$0xf0] }
 0x2c8   : > { %v3339_v8 = vsel %vm12857_vm13, %v11853_v10, %v3335_v9  ;;  %11856 = vtanh.f32 %v3347_v36  ;;  %v9047_v11 = vmul.f32 -1.442695, %v3373_v4  ;;  %v9275_v10 = vor.u32 %v11360_v6, %v9274_v31 }
 0x2c9   : > { %11858 = vrcp.f32 %v12861_v30  ;;  %v3344_v25 = vsel %vm3341_vm14, %v3343_v37, %v3339_v8  ;;  %4092 = vmatpush.bf16.msra.mxu3 %v9303_v59  ;;  %v9251_v9 = vor.u32 %v11354_v26, %v9250_v14  ;;  %v9239_v8 = vor.u32 %v11346_v0, %v9236_v5  ;;  %v9188_v0 = vld [vmem:[#allocation4 + $0x118] sm:$0xf0] }
 0x2ca   : > { %11860 = vpow2.f32 %v9047_v11  ;;  %v12866_v20 = vpop.f32.mrf.mxu3  ;;  %v3349_v28 = vsub.f32 1.0, %v3344_v25  ;;  %v3351_v32 = vmul.f32 %v3344_v25, %v12761_v61  ;;  %v9210_v11 = vld [vmem:[#allocation4 + $0x130] sm:$0xf]  ;;  %v3369_v53 = vand.u32 2147483648, %v12861_v30  ;;  %v11343_v25 = vld [vmem:[#allocation4 + $0x144] sm:$0xf0] }
 0x2cb   : > { %v3278_v60 = vpop.f32.mrf.mxu1  ;;  %4067 = vmatpush.bf16.msrb.mxu1 %v9275_v10  ;;  %v3367_v31 = vand.u32 2147483647, %v12861_v30  ;;  %v9211_v52 = vor.u32 %v11343_v25, %v9210_v11  ;;  %v821_v26 = vadd.f32 %v12417_v55, %v12359_v22  ;;  %v9187_v5 = vor.u32 %v11337_v7, %v9186_v41  ;;  %v11325_v11 = vld [vmem:[#allocation4 + $0xb4] sm:$0xf0]  ;;  %v9116_v41 = vld [vmem:[#allocation4 + $0x88] sm:$0xf0] }
 0x2cc   : > { %v11340_v60 = vld [vmem:[#allocation4 + $0x134] sm:$0xf]  ;;  %v3370_v33 = vor.u32 1.1754944e-38, %v3369_v53  ;;  %v9191_v45 = vor.u32 %v11334_v58, %v9188_v0  ;;  %v9140_v53 = vld [vmem:[#allocation4 + $0xb8] sm:$0xf0] }
 0x2cd   : > { %4093 = vmatpush.bf16.msra.mxu3 %v9279_v50  ;;  %v3303_v50 = vadd.f32 %v12866_v20, %v3290_v1  ;;  %vm3368_vm12 = vcmp.eq.f32.partialorder %v3367_v31, 8.507059e+37  ;;  %v9114_v1 = vld [vmem:[#allocation4 + $0x70] sm:$0xf] }
 0x2ce   : > { %v11857_v62 = vpop.eup %11856 }
 0x2cf   : > { %v11859_v16 = vpop.eup %11858  ;;  %v3350_v49 = vmul.f32 %v11857_v62, %v3349_v28  ;;  %4068 = vmatpush.bf16.msrb.mxu1 %v9251_v9  ;;  %v9164_v9 = vld [vmem:[#allocation4 + $0xe8] sm:$0xf0] }
 0x2d0   : > { %v11861_v48 = vpop.eup %11860  ;;  %v3359_v47 = vmul.f32 %v11859_v16, %v12861_v30  ;;  %vm3364_vm10 = vweird.f32 %v11859_v16 }
 0x2d1   : > { %v3352_v36 = vadd.f32 %v3351_v32, %v3350_v49  ;;  %v12870_v4 = vadd.f32 1.0, %v11861_v48  ;;  %4094 = vmatpush.bf16.msra.mxu3 %v9255_v23  ;;  %v11331_v48 = vld [vmem:[#allocation4 + $0xe4] sm:$0xf0] }
 0x2d2   : > { %v3360_v37 = vsub.f32 1.0, %v3359_v47  ;;  %v3304_v43 = vpop.f32.mrf.mxu3  ;;  %v9163_v55 = vor.u32 %v11331_v48, %v9162_v17  ;;  %v9402_v17 = vld [vmem:[#allocation4 + $0x2b0] sm:$0xf] }
 0x2d3   : > { %v12876_v29 = vsel %vm3401_vm15, %v3352_v36, %v12761_v61  ;;  %v3406_v46 = vsel %vm3401_vm15, %v3352_v36, 0.0  ;;  %11862 = vrcp.f32 %v12870_v4  ;;  %v9212_v61 = vld [vmem:[#allocation4 + $0x148] sm:$0xf0]  ;;  %vm3363_vm15 = vweird.f32 %v12861_v30 }
 0x2d4   : > { %3407 = vst [vmem:[%s12106_s22 + $0x10] sm:$0xff] %v3406_v46  ;;  %v3361_v59 = vmul.f32 %v11859_v16, %v3360_v37  ;;  %v12887_v6 = vpack.c.bf16 %v12876_v29, %v12876_v29  ;;  %vm3365_vm11 = vmor %vm3363_vm15, %vm3364_vm10  ;;  %v9215_v28 = vor.u32 %v11340_v60, %v9212_v61  ;;  %v3389_v36 = vand.u32 2147483648, %v12870_v4  ;;  %v11322_v46 = vld [vmem:[#allocation4 + $0xa4] sm:$0xf] }
 0x2d5   : > { %v3387_v37 = vand.u32 2147483647, %v12870_v4  ;;  %vm3383_vm9 = vweird.f32 %v12870_v4  ;;  %v9143_v61 = vor.u32 %v11322_v46, %v9140_v53 }
 0x2d6   : > { %v3362_v10 = vadd.f32 %v11859_v16, %v3361_v59  ;;  %4004 = vmatmul.bf16.vlgmr.msra.gmra.mxu0 %v12887_v6  ;;  %4030 = vmatmul.bf16.vlgmr.msrb.gmra.mxu2 %v12887_v6  ;;  %v3390_v25 = vor.u32 1.1754944e-38, %v3389_v36  ;;  %v11388_v36 = vld [vmem:[#allocation4 + $0x2b4] sm:$0xf] }
 0x2d7   : > { %4100 = vmatpush.bf16.msra.mxu0 %v9235_v39  ;;  %4126 = vmatpush.bf16.msrb.mxu2 %v9239_v8  ;;  %v9138_v39 = vld [vmem:[#allocation4 + $0xa0] sm:$0xf]  ;;  %vm3388_vm14 = vcmp.eq.f32.partialorder %v3387_v37, 8.507059e+37 }
 0x2d8   : > { %v3366_v62 = vsel %vm3365_vm11, %v11859_v16, %v3362_v10  ;;  %v11328_v16 = vld [vmem:[#allocation4 + $0xd4] sm:$0xf]  ;;  %v9139_v31 = vor.u32 %v11325_v11, %v9138_v39  ;;  %v11319_v10 = vld [vmem:[#allocation4 + $0x84] sm:$0xf0]  ;;  %v9068_v11 = vld [vmem:[#allocation4 + $0x28] sm:$0xf0] }
 0x2d9   : > { %v11863_v14 = vpop.eup %11862  ;;  %v3371_v30 = vsel %vm3368_vm12, %v3370_v33, %v3366_v62  ;;  %v9167_v43 = vor.u32 %v11328_v16, %v9164_v9  ;;  %v11397_v62 = vld [vmem:[#allocation4 + $0x2f4] sm:$0xf0]  ;;  %v9115_v58 = vor.u32 %v11319_v10, %v9114_v1  ;;  %v11391_v9 = vld [vmem:[#allocation4 + $0x2c4] sm:$0xf0] }
 0x2da   : > { %v3379_v49 = vmul.f32 %v11863_v14, %v12870_v4  ;;  %v3393_v32 = vmul.f32 %v3371_v30, %v3303_v50  ;;  %vm3384_vm7 = vweird.f32 %v11863_v14  ;;  %v9426_v50 = vld [vmem:[#allocation4 + $0x2e0] sm:$0xf]  ;;  %v9428_v30 = vld [vmem:[#allocation4 + $0x2f8] sm:$0xf0]  ;;  %v11307_v39 = vld [vmem:[#allocation4 + $0x24] sm:$0xf0]  ;;  %v9403_v35 = vor.u32 %v11391_v9, %v9402_v17 }
 0x2db   : > { %4101 = vmatpush.bf16.msra.mxu0 %v9211_v52  ;;  %4127 = vmatpush.bf16.msrb.mxu2 %v9215_v28  ;;  %vm3385_vm13 = vmor %vm3383_vm9, %vm3384_vm7  ;;  %v11316_v28 = vld [vmem:[#allocation4 + $0x74] sm:$0xf]  ;;  %v9282_v17 = vld [vmem:[#allocation4 + $0x1c0] sm:$0xf] }
 0x2dc   : > { %v3380_v47 = vsub.f32 1.0, %v3379_v49  ;;  %v3394_v20 = vadd.f32 %v3393_v32, %v821_v26  ;;  %v9119_v0 = vor.u32 %v11316_v28, %v9116_v41  ;;  %v9090_v26 = vld [vmem:[#allocation4 + $0x40] sm:$0xf]  ;;  %v11313_v32 = vld [vmem:[#allocation4 + $0x54] sm:$0xf0] }
 0x2dd   : > { %v9091_v37 = vor.u32 %v11313_v32, %v9090_v26  ;;  %v11376_v28 = vld [vmem:[#allocation4 + $0x254] sm:$0xf]  ;;  %v9356_v41 = vld [vmem:[#allocation4 + $0x268] sm:$0xf0]  ;;  %v9306_v26 = vld [vmem:[#allocation4 + $0x1f0] sm:$0xf] }
 0x2de   : > { %v3381_v23 = vmul.f32 %v11863_v14, %v3380_v47  ;;  %11864 = vtanh.f32 %v3394_v20  ;;  %v9427_v20 = vor.u32 %v11397_v62, %v9426_v50  ;;  %v9330_v50 = vld [vmem:[#allocation4 + $0x220] sm:$0xf]  ;;  %v11373_v62 = vld [vmem:[#allocation4 + $0x234] sm:$0xf0]  ;;  %v11364_v32 = vld [vmem:[#allocation4 + $0x1f4] sm:$0xf] }
 0x2df   : > { %4102 = vmatpush.bf16.msra.mxu0 %v9187_v5  ;;  %4128 = vmatpush.bf16.msrb.mxu2 %v9191_v45  ;;  %v11310_v5 = vld [vmem:[#allocation4 + $0x44] sm:$0xf]  ;;  %v9092_v45 = vld [vmem:[#allocation4 + $0x58] sm:$0xf0] }
 0x2e0   : > { %v3382_v8 = vadd.f32 %v11863_v14, %v3381_v23 }
 0x2e2   : > { %v3386_v60 = vsel %vm3385_vm13, %v11863_v14, %v3382_v8  ;;  %v11394_v14 = vld [vmem:[#allocation4 + $0x2e4] sm:$0xf]  ;;  %v11304_v8 = vld [vmem:[#allocation4 + $0x14] sm:$0xf] }
 0x2e3   : > { %v3391_v59 = vsel %vm3388_vm14, %v3390_v25, %v3386_v60  ;;  %4103 = vmatpush.bf16.msra.mxu0 %v9163_v55  ;;  %4129 = vmatpush.bf16.msrb.mxu2 %v9167_v43  ;;  %v9431_v16 = vor.u32 %v11394_v14, %v9428_v30  ;;  %v9095_v55 = vor.u32 %v11310_v5, %v9092_v45  ;;  %v9404_v43 = vld [vmem:[#allocation4 + $0x2c8] sm:$0xf0]  ;;  %v9378_v60 = vld [vmem:[#allocation4 + $0x280] sm:$0xf] }
 0x2e4   : > { %v11865_v33 = vpop.eup %11864  ;;  %v3396_v52 = vsub.f32 1.0, %v3391_v59  ;;  %v3398_v7 = vmul.f32 %v3391_v59, %v12792_v15  ;;  %v9407_v46 = vor.u32 %v11388_v36, %v9404_v43  ;;  %v9071_v25 = vor.u32 %v11304_v8, %v9068_v11  ;;  %v11385_v59 = vld [vmem:[#allocation4 + $0x294] sm:$0xf0]  ;;  %v9308_v5 = vld [vmem:[#allocation4 + $0x208] sm:$0xf0] }
 0x2e5   : > { %v9379_v1 = vor.u32 %v11385_v59, %v9378_v60  ;;  %v9331_v14 = vor.u32 %v11373_v62, %v9330_v50  ;;  %v9311_v45 = vor.u32 %v11364_v32, %v9308_v5  ;;  %v11352_v43 = vld [vmem:[#allocation4 + $0x194] sm:$0xf]  ;;  %v9606_v11 = vld [vmem:[#allocation4 + $0x150] sm:$0xf]  ;;  %v9582_v60 = vld [vmem:[#allocation4 + $0x120] sm:$0xf] }
 0x2e6   : > { %v3397_v4 = vmul.f32 %v11865_v33, %v3396_v52  ;;  %4056 = vmatmul.bf16.vlgmr.msrb.gmra.mxu0 %v12887_v6  ;;  %4082 = vmatmul.bf16.vlgmr.msra.gmra.mxu2 %v12887_v6  ;;  %v9354_v33 = vld [vmem:[#allocation4 + $0x250] sm:$0xf]  ;;  %v11379_v52 = vld [vmem:[#allocation4 + $0x264] sm:$0xf0]  ;;  %v11437_v59 = vld [vmem:[#allocation4 + $0x134] sm:$0xf0] }
 0x2e7   : > { %4104 = vmatpush.bf16.msra.mxu0 %v9139_v31  ;;  %4130 = vmatpush.bf16.msrb.mxu2 %v9143_v61  ;;  %v11382_v31 = vld [vmem:[#allocation4 + $0x284] sm:$0xf]  ;;  %v9380_v61 = vld [vmem:[#allocation4 + $0x298] sm:$0xf0]  ;;  %v9534_v50 = vld [vmem:[#allocation4 + $0xc0] sm:$0xf] }
 0x2e8   : > { %v3399_v49 = vadd.f32 %v3398_v7, %v3397_v4  ;;  %v9383_v10 = vor.u32 %v11382_v31, %v9380_v61  ;;  %v9355_v4 = vor.u32 %v11379_v52, %v9354_v33  ;;  %v9359_v7 = vor.u32 %v11376_v28, %v9356_v41  ;;  %v11434_v61 = vld [vmem:[#allocation4 + $0x124] sm:$0xf]  ;;  %v9558_v52 = vld [vmem:[#allocation4 + $0xf0] sm:$0xf]  ;;  %v11431_v28 = vld [vmem:[#allocation4 + $0x104] sm:$0xf0] }
 0x2e9   : > { %v11428_v41 = vld [vmem:[#allocation4 + $0xf4] sm:$0xf]  ;;  %v11425_v62 = vld [vmem:[#allocation4 + $0xd4] sm:$0xf0]  ;;  %v11419_v32 = vld [vmem:[#allocation4 + $0xa4] sm:$0xf0] }
 0x2ea   : > { %v12908_v48 = vsel %vm3403_vm0, %v3399_v49, %v12792_v15  ;;  %v3408_v47 = vsel %vm3403_vm0, %v3399_v49, 0.0  ;;  %v9066_v15 = vld [vmem:[#allocation4 + $0x10] sm:$0xf]  ;;  %v11367_v49 = vld [vmem:[#allocation4 + $0x204] sm:$0xf0] }
 0x2eb   : > { %3409 = vst [vmem:[%s12111_s27 + $0x28] sm:$0xff] %v3408_v47  ;;  %4105 = vmatpush.bf16.msra.mxu0 %v9115_v58  ;;  %4131 = vmatpush.bf16.msrb.mxu2 %v9119_v0  ;;  %v12916_v23 = vpack.c.bf16 %v12908_v48, %v12908_v48  ;;  %v9067_v53 = vor.u32 %v11307_v39, %v9066_v15  ;;  %v11370_v58 = vld [vmem:[#allocation4 + $0x224] sm:$0xf]  ;;  %v9332_v0 = vld [vmem:[#allocation4 + $0x238] sm:$0xf0] }
 0x2ec   : > { %v9335_v30 = vor.u32 %v11370_v58, %v9332_v0  ;;  %v11361_v47 = vld [vmem:[#allocation4 + $0x1d4] sm:$0xf0]  ;;  %v9260_v15 = vld [vmem:[#allocation4 + $0x1a8] sm:$0xf0]  ;;  %v11422_v58 = vld [vmem:[#allocation4 + $0xc4] sm:$0xf] }
 0x2ed   : > { %4017 = vmatmul.bf16.vlgmr.msra.gmra.mxu1 %v12916_v23  ;;  %4043 = vmatmul.bf16.vlgmr.msrb.gmra.mxu3 %v12916_v23  ;;  %v9283_v9 = vor.u32 %v11361_v47, %v9282_v17  ;;  %v9263_v8 = vor.u32 %v11352_v43, %v9260_v15  ;;  %v11416_v5 = vld [vmem:[#allocation4 + $0x94] sm:$0xf]  ;;  %v9798_v15 = vld [vmem:[#allocation4 + $0x2d0] sm:$0xf] }
 0x2ee   : > { %4113 = vmatpush.bf16.msra.mxu1 %v9427_v20  ;;  %4139 = vmatpush.bf16.msrb.mxu3 %v9431_v16  ;;  %v11358_v20 = vld [vmem:[#allocation4 + $0x1c4] sm:$0xf]  ;;  %v9284_v16 = vld [vmem:[#allocation4 + $0x1d8] sm:$0xf0] }
 0x2ef   : > { %4106 = vmatpush.bf16.msra.mxu0 %v9091_v37  ;;  %4132 = vmatpush.bf16.msrb.mxu2 %v9095_v55  ;;  %v9287_v36 = vor.u32 %v11358_v20, %v9284_v16  ;;  %v9258_v37 = vld [vmem:[#allocation4 + $0x190] sm:$0xf]  ;;  %v11355_v55 = vld [vmem:[#allocation4 + $0x1a4] sm:$0xf0]  ;;  %v9486_v20 = vld [vmem:[#allocation4 + $0x60] sm:$0xf] }
 0x2f0   : > { %v9259_v39 = vor.u32 %v11355_v55, %v9258_v37  ;;  %v11413_v16 = vld [vmem:[#allocation4 + $0x74] sm:$0xf0]  ;;  %v9488_v55 = vld [vmem:[#allocation4 + $0x78] sm:$0xf0] }
 0x2f1   : > { %v9487_v37 = vor.u32 %v11413_v16, %v9486_v20  ;;  %v11479_v20 = vld [vmem:[#allocation4 + $0x284] sm:$0xf0]  ;;  %v11476_v16 = vld [vmem:[#allocation4 + $0x274] sm:$0xf] }
 0x2f2   : > { %4114 = vmatpush.bf16.msra.mxu1 %v9403_v35  ;;  %4140 = vmatpush.bf16.msrb.mxu3 %v9407_v46  ;;  %v11443_v35 = vld [vmem:[#allocation4 + $0x164] sm:$0xf0]  ;;  %v11440_v46 = vld [vmem:[#allocation4 + $0x154] sm:$0xf] }
 0x2f3   : > { %4107 = vmatpush.bf16.msra.mxu0 %v9067_v53  ;;  %4133 = vmatpush.bf16.msrb.mxu2 %v9071_v25  ;;  %v9607_v53 = vor.u32 %v11443_v35, %v9606_v11  ;;  %v9608_v25 = vld [vmem:[#allocation4 + $0x168] sm:$0xf0] }
 0x2f4   : > { %v9611_v31 = vor.u32 %v11440_v46, %v9608_v25  ;;  %v9800_v35 = vld [vmem:[#allocation4 + $0x2e8] sm:$0xf0]  ;;  %v9462_v46 = vld [vmem:[#allocation4 + $0x30] sm:$0xf] }
 0x2f6   : > { %4108 = vmatmul.bf16.vlgmr.msra.gmra.mxu0 %v12887_v6  ;;  %4115 = vmatpush.bf16.msra.mxu1 %v9379_v1  ;;  %v9584_v1 = vld [vmem:[#allocation4 + $0x138] sm:$0xf0] }
 0x2f7   : > { %4134 = vmatmul.bf16.vlgmr.msrb.gmra.mxu2 %v12887_v6  ;;  %4141 = vmatpush.bf16.msrb.mxu3 %v9383_v10  ;;  %v9307_v6 = vor.u32 %v11367_v49, %v9306_v26  ;;  %v9583_v10 = vor.u32 %v11437_v59, %v9582_v60  ;;  %v9587_v33 = vor.u32 %v11434_v61, %v9584_v1  ;;  %v9510_v49 = vld [vmem:[#allocation4 + $0x90] sm:$0xf]  ;;  %v11404_v59 = vld [vmem:[#allocation4 + $0x34] sm:$0xf] }
 0x2f8   : > { %4842 = vmatpush.bf16.msrb.mxu0 %v9607_v53  ;;  %4868 = vmatpush.bf16.msra.mxu2 %v9611_v31  ;;  %v11407_v53 = vld [vmem:[#allocation4 + $0x44] sm:$0xf0]  ;;  %v9464_v31 = vld [vmem:[#allocation4 + $0x48] sm:$0xf0] }
 0x2f9   : > { %v9463_v60 = vor.u32 %v11407_v53, %v9462_v46  ;;  %v9467_v61 = vor.u32 %v11404_v59, %v9464_v31  ;;  %v9726_v53 = vld [vmem:[#allocation4 + $0x240] sm:$0xf] }
 0x2fa   : > { %4116 = vmatpush.bf16.msra.mxu1 %v9355_v4  ;;  %v9560_v4 = vld [vmem:[#allocation4 + $0x108] sm:$0xf0] }
 0x2fb   : > { %4142 = vmatpush.bf16.msrb.mxu3 %v9359_v7  ;;  %v9563_v7 = vor.u32 %v11428_v41, %v9560_v4  ;;  %v9776_v41 = vld [vmem:[#allocation4 + $0x2b8] sm:$0xf0]  ;;  %v11401_v4 = vld [vmem:[#allocation4 + $0x14] sm:$0xf0] }
 0x2fc   : > { %4843 = vmatpush.bf16.msrb.mxu0 %v9583_v10  ;;  %4869 = vmatpush.bf16.msra.mxu2 %v9587_v33  ;;  %v9774_v10 = vld [vmem:[#allocation4 + $0x2a0] sm:$0xf]  ;;  %v11485_v33 = vld [vmem:[#allocation4 + $0x2b4] sm:$0xf0] }
 0x2fd   : > { %4069 = vmatmul.bf16.vlgmr.msrb.gmra.mxu1 %v12916_v23  ;;  %4095 = vmatmul.bf16.vlgmr.msra.gmra.mxu3 %v12916_v23 }
 0x2fe   : > { %4117 = vmatpush.bf16.msra.mxu1 %v9331_v14  ;;  %v9535_v14 = vor.u32 %v11425_v62, %v9534_v50 }
 0x2ff   : > { %4143 = vmatpush.bf16.msrb.mxu3 %v9335_v30  ;;  %v9536_v30 = vld [vmem:[#allocation4 + $0xd8] sm:$0xf0] }
 0x300   : > { %4870 = vmatpush.bf16.msra.mxu2 %v9563_v7  ;;  %v9539_v26 = vor.u32 %v11422_v58, %v9536_v30  ;;  %v11398_v58 = vld [vmem:[#allocation4 + $0x4] sm:$0xf]  ;;  %v9614_v30 = vld [vmem:[#allocation4 + $0x158] sm:$0xf] }
 0x302   : > { %4118 = vmatpush.bf16.msra.mxu1 %v9307_v6  ;;  %v9511_v6 = vor.u32 %v11419_v32, %v9510_v49  ;;  %v11444_v49 = vld [vmem:[#allocation4 + $0x16c] sm:$0xf0]  ;;  %v11441_v32 = vld [vmem:[#allocation4 + $0x15c] sm:$0xf] }
 0x303   : > { %4144 = vmatpush.bf16.msrb.mxu3 %v9311_v45  ;;  %v9512_v45 = vld [vmem:[#allocation4 + $0xa8] sm:$0xf0] }
 0x304   : > { %4871 = vmatpush.bf16.msra.mxu2 %v9539_v26  ;;  %v9515_v17 = vor.u32 %v11416_v5, %v9512_v45  ;;  %v9616_v5 = vld [vmem:[#allocation4 + $0x170] sm:$0xf0] }
 0x305   : > { %v9619_v45 = vor.u32 %v11441_v32, %v9616_v5 }
 0x306   : > { %4119 = vmatpush.bf16.msra.mxu1 %v9283_v9  ;;  %v11410_v9 = vld [vmem:[#allocation4 + $0x64] sm:$0xf] }
 0x307   : > { %4145 = vmatpush.bf16.msrb.mxu3 %v9287_v36  ;;  %v9491_v43 = vor.u32 %v11410_v9, %v9488_v55  ;;  %v9590_v55 = vld [vmem:[#allocation4 + $0x128] sm:$0xf] }
 0x308   : > { %4872 = vmatpush.bf16.msra.mxu2 %v9515_v17  ;;  %v9750_v17 = vld [vmem:[#allocation4 + $0x270] sm:$0xf] }
 0x309   : > { %v9751_v9 = vor.u32 %v11479_v20, %v9750_v17 }
 0x30a   : > { %4120 = vmatpush.bf16.msra.mxu1 %v9259_v39  ;;  %v11491_v39 = vld [vmem:[#allocation4 + $0x2e4] sm:$0xf0] }
 0x30b   : > { %4146 = vmatpush.bf16.msrb.mxu3 %v9263_v8  ;;  %v11488_v8 = vld [vmem:[#allocation4 + $0x2d4] sm:$0xf]  ;;  %v9799_v11 = vor.u32 %v11491_v39, %v9798_v15  ;;  %v11435_v15 = vld [vmem:[#allocation4 + $0x12c] sm:$0xf] }
 0x30c   : > { %4873 = vmatpush.bf16.msra.mxu2 %v9491_v43  ;;  %v9803_v25 = vor.u32 %v11488_v8, %v9800_v35  ;;  %v11438_v43 = vld [vmem:[#allocation4 + $0x13c] sm:$0xf0]  ;;  %v9592_v8 = vld [vmem:[#allocation4 + $0x140] sm:$0xf0] }
 0x30d   : > { %4121 = vmatmul.bf16.vlgmr.msra.gmra.mxu1 %v12916_v23  ;;  %v9591_v39 = vor.u32 %v11438_v43, %v9590_v55  ;;  %v9595_v46 = vor.u32 %v11435_v15, %v9592_v8  ;;  %v11461_v15 = vld [vmem:[#allocation4 + $0x1f4] sm:$0xf0] }
 0x30e   : > { %4147 = vmatmul.bf16.vlgmr.msrb.gmra.mxu3 %v12916_v23  ;;  %v9559_v23 = vor.u32 %v11431_v28, %v9558_v52  ;;  %4855 = vmatpush.bf16.msrb.mxu1 %v9799_v11  ;;  %v11482_v52 = vld [vmem:[#allocation4 + $0x2a4] sm:$0xf]  ;;  %v9775_v28 = vor.u32 %v11485_v33, %v9774_v10 }
 0x30f   : > { %4881 = vmatpush.bf16.msra.mxu3 %v9803_v25  ;;  %v9779_v50 = vor.u32 %v11482_v52, %v9776_v41  ;;  %v11473_v25 = vld [vmem:[#allocation4 + $0x254] sm:$0xf0]  ;;  %v11429_v41 = vld [vmem:[#allocation4 + $0xfc] sm:$0xf] }
 0x310   : > { %4844 = vmatpush.bf16.msrb.mxu0 %v9559_v23  ;;  %4874 = vmatpush.bf16.msra.mxu2 %v9467_v61  ;;  %v9438_v23 = vld [vmem:[#allocation4] sm:$0xf]  ;;  %v9727_v31 = vor.u32 %v11473_v25, %v9726_v53  ;;  %v9728_v61 = vld [vmem:[#allocation4 + $0x258] sm:$0xf0] }
 0x311   : > { %v9439_v62 = vor.u32 %v11401_v4, %v9438_v23  ;;  %v9568_v4 = vld [vmem:[#allocation4 + $0x110] sm:$0xf0] }
 0x312   : > { %4856 = vmatpush.bf16.msrb.mxu1 %v9775_v28  ;;  %v9566_v28 = vld [vmem:[#allocation4 + $0xf8] sm:$0xf] }
 0x313   : > { %4882 = vmatpush.bf16.msra.mxu3 %v9779_v50 }
 0x314   : > { %4845 = vmatpush.bf16.msrb.mxu0 %v9535_v14  ;;  %v9440_v14 = vld [vmem:[#allocation4 + $0x18] sm:$0xf0] }
 0x315   : > { %v9443_v26 = vor.u32 %v11398_v58, %v9440_v14  ;;  %v9702_v58 = vld [vmem:[#allocation4 + $0x210] sm:$0xf]  ;;  %v11467_v14 = vld [vmem:[#allocation4 + $0x224] sm:$0xf0] }
 0x316   : > { %4857 = vmatpush.bf16.msrb.mxu1 %v9751_v9  ;;  %v9544_v9 = vld [vmem:[#allocation4 + $0xe0] sm:$0xf0] }
 0x317   : > { %4875 = vmatpush.bf16.msra.mxu2 %v9443_v26  ;;  %v9703_v26 = vor.u32 %v11467_v14, %v9702_v58  ;;  %v11414_v58 = vld [vmem:[#allocation4 + $0x7c] sm:$0xf0]  ;;  %v11411_v14 = vld [vmem:[#allocation4 + $0x6c] sm:$0xf] }
 0x318   : > { %4846 = vmatpush.bf16.msrb.mxu0 %v9511_v6  ;;  %v9615_v6 = vor.u32 %v11444_v49, %v9614_v30  ;;  %v11464_v30 = vld [vmem:[#allocation4 + $0x214] sm:$0xf]  ;;  %v9704_v49 = vld [vmem:[#allocation4 + $0x228] sm:$0xf0] }
 0x319   : > { %v9707_v5 = vor.u32 %v11464_v30, %v9704_v49 }
 0x31a   : > { %4858 = vmatpush.bf16.msrb.mxu1 %v9727_v31  ;;  %v11420_v31 = vld [vmem:[#allocation4 + $0xac] sm:$0xf0] }
 0x31b   : > { %4920 = vmatpush.bf16.msrb.mxu2 %v9619_v45  ;;  %v11426_v45 = vld [vmem:[#allocation4 + $0xdc] sm:$0xf0] }
 0x31c   : > { %4847 = vmatpush.bf16.msrb.mxu0 %v9487_v37 }
 0x31e   : > { %4859 = vmatpush.bf16.msrb.mxu1 %v9703_v26 }
 0x31f   : > { %4921 = vmatpush.bf16.msrb.mxu2 %v9595_v46  ;;  %v9680_v46 = vld [vmem:[#allocation4 + $0x1f8] sm:$0xf0] }
 0x320   : > { %4848 = vmatpush.bf16.msrb.mxu0 %v9463_v60  ;;  %v11470_v60 = vld [vmem:[#allocation4 + $0x244] sm:$0xf] }
 0x321   : > { %v9731_v52 = vor.u32 %v11470_v60, %v9728_v61 }
 0x324   : > { %4849 = vmatpush.bf16.msrb.mxu0 %v9439_v62  ;;  %v9571_v62 = vor.u32 %v11429_v41, %v9568_v4  ;;  %v11452_v41 = vld [vmem:[#allocation4 + $0x1b4] sm:$0xf] }
 0x326   : > { %4922 = vmatpush.bf16.msrb.mxu2 %v9571_v62  ;;  %v9494_v62 = vld [vmem:[#allocation4 + $0x68] sm:$0xf] }
 0x327   : > { %v9495_v49 = vor.u32 %v11414_v58, %v9494_v62 }
 0x328   : > { %4894 = vmatpush.bf16.msra.mxu0 %v9615_v6  ;;  %v9542_v6 = vld [vmem:[#allocation4 + $0xc8] sm:$0xf] }
 0x329   : > { %v9543_v20 = vor.u32 %v11426_v45, %v9542_v6  ;;  %v11449_v6 = vld [vmem:[#allocation4 + $0x194] sm:$0xf0]  ;;  %v11446_v45 = vld [vmem:[#allocation4 + $0x184] sm:$0xf] }
 0x32c   : > { %4895 = vmatpush.bf16.msra.mxu0 %v9591_v39  ;;  %v11458_v39 = vld [vmem:[#allocation4 + $0x1e4] sm:$0xf] }
 0x32d   : > { %v9683_v60 = vor.u32 %v11458_v39, %v9680_v46  ;;  %v9808_v39 = vld [vmem:[#allocation4 + $0x2f0] sm:$0xf0] }
 0x353   : > { %v12926_v0 = vpop.f32.mrf.mxu0 }
 0x354   : > { %v4006_v11 = vadd.f32 %v12926_v0, %v12377_v3  ;;  %v11432_v0 = vld [vmem:[#allocation4 + $0x10c] sm:$0xf0] }
 0x355   : > { %v9567_v23 = vor.u32 %v11432_v0, %v9566_v28  ;;  %v11455_v28 = vld [vmem:[#allocation4 + $0x1c4] sm:$0xf0] }
 0x357   : > { %4896 = vmatpush.bf16.msra.mxu0 %v9567_v23  ;;  %v9656_v23 = vld [vmem:[#allocation4 + $0x1c8] sm:$0xf0] }
 0x359   : > { %v12928_v47 = vpop.f32.mrf.mxu2 }
 0x35b   : > { %v4007_v36 = vpop.f32.mrf.mxu0  ;;  %4897 = vmatpush.bf16.msra.mxu0 %v9543_v20 }
 0x35c   : > { %v9752_v36 = vld [vmem:[#allocation4 + $0x288] sm:$0xf0] }
 0x35d   : > { %v9755_v37 = vor.u32 %v11476_v16, %v9752_v36  ;;  %v11423_v16 = vld [vmem:[#allocation4 + $0xcc] sm:$0xf]  ;;  %v588_v36 = vadd.f32 %v12312_v56, %v12293_v44  ;;  %v11417_v56 = vld [vmem:[#allocation4 + $0x9c] sm:$0xf] }
 0x35e   : > { %v9547_v43 = vor.u32 %v11423_v16, %v9544_v9  ;;  %v9632_v16 = vld [vmem:[#allocation4 + $0x198] sm:$0xf0] }
 0x35f   : > { %4883 = vmatpush.bf16.msra.mxu3 %v9755_v37 }
 0x360   : > { %4923 = vmatpush.bf16.msrb.mxu2 %v9547_v43  ;;  %v11489_v43 = vld [vmem:[#allocation4 + $0x2dc] sm:$0xf] }
 0x361   : > { %v4033_v1 = vpop.f32.mrf.mxu2  ;;  %v9811_v46 = vor.u32 %v11489_v43, %v9808_v39  ;;  %v9760_v43 = vld [vmem:[#allocation4 + $0x290] sm:$0xf0] }
 0x362   : > { %v559_v1 = vadd.f32 %v12310_v54, %v12289_v42  ;;  %v4032_v54 = vadd.f32 %v12928_v47, %v12393_v38  ;;  %v9678_v47 = vld [vmem:[#allocation4 + $0x1e0] sm:$0xf] }
 0x363   : > { %v12930_v7 = vpop.f32.mrf.mxu0  ;;  %4884 = vmatpush.bf16.msra.mxu3 %v9731_v52  ;;  %v9654_v52 = vld [vmem:[#allocation4 + $0x1b0] sm:$0xf] }
 0x364   : > { %v9655_v0 = vor.u32 %v11455_v28, %v9654_v52  ;;  %v11483_v28 = vld [vmem:[#allocation4 + $0x2ac] sm:$0xf] }
 0x367   : > { %4885 = vmatpush.bf16.msra.mxu3 %v9707_v5  ;;  %v9630_v5 = vld [vmem:[#allocation4 + $0x180] sm:$0xf] }
 0x369   : > { %v12934_v35 = vpop.f32.mrf.mxu2 }
 0x36a   : > { %v4018_v59 = vpop.f32.mrf.mxu1 }
 0x36b   : > { %v4019_v10 = vadd.f32 %v4018_v59, %v4006_v11  ;;  %v4059_v33 = vpop.f32.mrf.mxu0  ;;  %v9679_v11 = vor.u32 %v11461_v15, %v9678_v47  ;;  %v9518_v59 = vld [vmem:[#allocation4 + $0x98] sm:$0xf]  ;;  %4886 = vmatpush.bf16.msra.mxu3 %v9683_v60  ;;  %v9635_v47 = vor.u32 %v11446_v45, %v9632_v16  ;;  %v11405_v60 = vld [vmem:[#allocation4 + $0x3c] sm:$0xf] }
 0x36c   : > { %v9519_v61 = vor.u32 %v11420_v31, %v9518_v59  ;;  %v9472_v59 = vld [vmem:[#allocation4 + $0x50] sm:$0xf0] }
 0x36d   : > { %v4152_v50 = vadd.f32 %v4019_v10, %v559_v1  ;;  %4860 = vmatpush.bf16.msrb.mxu1 %v9679_v11  ;;  %v9520_v1 = vld [vmem:[#allocation4 + $0xb0] sm:$0xf0] }
 0x36e   : > { %v9523_v33 = vor.u32 %v11417_v56, %v9520_v1  ;;  %4898 = vmatpush.bf16.msra.mxu0 %v9519_v61  ;;  %v9475_v61 = vor.u32 %v11405_v60, %v9472_v59  ;;  %v9782_v1 = vld [vmem:[#allocation4 + $0x2a8] sm:$0xf] }
 0x36f   : > { %v9432_v32 = vmul.f32 -1.442695, %v4152_v50  ;;  %v9659_v50 = vor.u32 %v11452_v41, %v9656_v23  ;;  %v9446_v41 = vld [vmem:[#allocation4 + $0x8] sm:$0xf] }
 0x370   : > { %v4044_v17 = vpop.f32.mrf.mxu3  ;;  %4924 = vmatpush.bf16.msrb.mxu2 %v9523_v33  ;;  %v4084_v33 = vadd.f32 %v12934_v35, %v12411_v24 }
 0x371   : > { %11866 = vpow2.f32 %v9432_v32  ;;  %v4045_v37 = vadd.f32 %v4044_v17, %v4032_v54  ;;  %v4085_v55 = vpop.f32.mrf.mxu2  ;;  %4861 = vmatpush.bf16.msrb.mxu1 %v9655_v0  ;;  %v9496_v54 = vld [vmem:[#allocation4 + $0x80] sm:$0xf0]  ;;  %4887 = vmatpush.bf16.msra.mxu3 %v9659_v50  ;;  %v11402_v50 = vld [vmem:[#allocation4 + $0x1c] sm:$0xf0] }
 0x372   : > { %v4020_v8 = vpop.f32.mrf.mxu1  ;;  %v9499_v32 = vor.u32 %v11411_v14, %v9496_v54  ;;  %4899 = vmatpush.bf16.msra.mxu0 %v9495_v49  ;;  %v11492_v55 = vld [vmem:[#allocation4 + $0x2ec] sm:$0xf0]  ;;  %v9784_v0 = vld [vmem:[#allocation4 + $0x2c0] sm:$0xf0] }
 0x373   : > { %v4172_v53 = vadd.f32 %v4045_v37, %v588_v36  ;;  %v12942_v25 = vpop.f32.mrf.mxu0  ;;  %v9631_v36 = vor.u32 %v11449_v6, %v9630_v5  ;;  %v9806_v37 = vld [vmem:[#allocation4 + $0x2d8] sm:$0xf]  ;;  %v9787_v14 = vor.u32 %v11483_v28, %v9784_v0  ;;  %v9448_v49 = vld [vmem:[#allocation4 + $0x20] sm:$0xf0] }
 0x374   : > { %4925 = vmatpush.bf16.msrb.mxu2 %v9499_v32  ;;  %v9807_v15 = vor.u32 %v11492_v55, %v9806_v37  ;;  %v9470_v8 = vld [vmem:[#allocation4 + $0x38] sm:$0xf]  ;;  %v9447_v32 = vor.u32 %v11402_v50, %v9446_v41  ;;  %v11480_v37 = vld [vmem:[#allocation4 + $0x28c] sm:$0xf0]  ;;  %v11477_v55 = vld [vmem:[#allocation4 + $0x27c] sm:$0xf] }
 0x375   : > { %v9433_v10 = vmul.f32 -1.442695, %v4172_v53  ;;  %4862 = vmatpush.bf16.msrb.mxu1 %v9631_v36  ;;  %v11408_v53 = vld [vmem:[#allocation4 + $0x4c] sm:$0xf0]  ;;  %4888 = vmatpush.bf16.msra.mxu3 %v9635_v47  ;;  %v9758_v36 = vld [vmem:[#allocation4 + $0x278] sm:$0xf] }
 0x376   : > { %v9471_v56 = vor.u32 %v11408_v53, %v9470_v8  ;;  %v9759_v39 = vor.u32 %v11480_v37, %v9758_v36  ;;  %v9763_v8 = vor.u32 %v11477_v55, %v9760_v43  ;;  %v4110_v53 = vadd.f32 %v12942_v25, %v12495_v21 }
 0x377   : > { %v11867_v4 = vpop.eup %11866  ;;  %11868 = vpow2.f32 %v9433_v10  ;;  %v11486_v10 = vld [vmem:[#allocation4 + $0x2bc] sm:$0xf0] }
 0x378   : > { %v12944_v30 = vadd.f32 1.0, %v11867_v4  ;;  %v4046_v26 = vpop.f32.mrf.mxu3  ;;  %v9783_v52 = vor.u32 %v11486_v10, %v9782_v1  ;;  %4900 = vmatpush.bf16.msra.mxu0 %v9471_v56  ;;  %4926 = vmatpush.bf16.msrb.mxu2 %v9475_v61  ;;  %v11474_v56 = vld [vmem:[#allocation4 + $0x25c] sm:$0xf0]  ;;  %v11471_v61 = vld [vmem:[#allocation4 + $0x24c] sm:$0xf] }
 0x379   : > { %4907 = vmatpush.bf16.msra.mxu1 %v9807_v15  ;;  %4933 = vmatpush.bf16.msrb.mxu3 %v9811_v46  ;;  %v11399_v26 = vld [vmem:[#allocation4 + $0xc] sm:$0xf]  ;;  %v4058_v46 = vadd.f32 %v12930_v7, %v12446_v18  ;;  %v9736_v1 = vld [vmem:[#allocation4 + $0x260] sm:$0xf0] }
 0x37a   : > { %11870 = vrcp.f32 %v12944_v30  ;;  %v12947_v17 = vpop.f32.mrf.mxu2  ;;  %v12949_v20 = vpop.f32.mrf.mxu1  ;;  %v9451_v5 = vor.u32 %v11399_v26, %v9448_v49  ;;  %v4166_v45 = vand.u32 2147483647, %v12944_v30  ;;  %v4168_v16 = vand.u32 2147483648, %v12944_v30  ;;  %v11465_v26 = vld [vmem:[#allocation4 + $0x21c] sm:$0xf] }
 0x37b   : > { %v4111_v9 = vpop.f32.mrf.mxu0  ;;  %vm4162_vm10 = vweird.f32 %v12944_v30  ;;  %v4071_v10 = vadd.f32 %v12949_v20, %v4058_v46  ;;  %v9739_v25 = vor.u32 %v11471_v61, %v9736_v1  ;;  %v11459_v46 = vld [vmem:[#allocation4 + $0x1ec] sm:$0xf]  ;;  %v9662_v61 = vld [vmem:[#allocation4 + $0x1b8] sm:$0xf]  ;;  %v11456_v1 = vld [vmem:[#allocation4 + $0x1cc] sm:$0xf0] }
 0x37c   : > { %4901 = vmatpush.bf16.msra.mxu0 %v9447_v32  ;;  %4927 = vmatpush.bf16.msrb.mxu2 %v9451_v5  ;;  %v4169_v7 = vor.u32 1.1754944e-38, %v4168_v16  ;;  %vm4167_vm11 = vcmp.eq.f32.partialorder %v4166_v45, 8.507059e+37 }
 0x37d   : > { %v11869_v11 = vpop.eup %11868  ;;  %4908 = vmatpush.bf16.msra.mxu1 %v9783_v52  ;;  %4934 = vmatpush.bf16.msrb.mxu3 %v9787_v14  ;;  %v11468_v14 = vld [vmem:[#allocation4 + $0x22c] sm:$0xf0] }
 0x37e   : > { %v12951_v31 = vadd.f32 1.0, %v11869_v11 }
 0x380   : > { %v11871_v23 = vpop.eup %11870  ;;  %11872 = vrcp.f32 %v12951_v31  ;;  %v4096_v4 = vpop.f32.mrf.mxu3  ;;  %v4188_v0 = vand.u32 2147483648, %v12951_v31  ;;  %v4186_v32 = vand.u32 2147483647, %v12951_v31  ;;  %vm4182_vm7 = vweird.f32 %v12951_v31 }
 0x381   : > { %v4158_v62 = vmul.f32 %v11871_v23, %v12944_v30  ;;  %v4097_v58 = vadd.f32 %v4096_v4, %v4084_v33  ;;  %vm4163_vm0 = vweird.f32 %v11871_v23  ;;  %4909 = vmatpush.bf16.msra.mxu1 %v9759_v39  ;;  %4935 = vmatpush.bf16.msrb.mxu3 %v9763_v8  ;;  %v13506_v30 = vld [vmem:[#allocation10_spill] sm:$0xff] }
 0x382   : > { %v4137_v54 = vpop.f32.mrf.mxu2  ;;  %v4072_v35 = vpop.f32.mrf.mxu1  ;;  %vm4164_vm15 = vmor %vm4162_vm10, %vm4163_vm0  ;;  %v617_v4 = vadd.f32 %v13506_v30, %v12305_v51  ;;  %v4189_v55 = vor.u32 1.1754944e-38, %v4188_v0  ;;  %vm4187_vm13 = vcmp.eq.f32.partialorder %v4186_v32, 8.507059e+37  ;;  %v9638_v30 = vld [vmem:[#allocation4 + $0x188] sm:$0xf] }
 0x383   : > { %v4159_v6 = vsub.f32 1.0, %v4158_v62  ;;  %v4199_v9 = vadd.f32 %v4097_v58, %v12335_v2  ;;  %v9734_v2 = vld [vmem:[#allocation4 + $0x248] sm:$0xf]  ;;  %v9710_v58 = vld [vmem:[#allocation4 + $0x218] sm:$0xf] }
 0x384   : > { %v9735_v52 = vor.u32 %v11474_v56, %v9734_v2  ;;  %v9712_v35 = vld [vmem:[#allocation4 + $0x230] sm:$0xf0]  ;;  %v9711_v5 = vor.u32 %v11468_v14, %v9710_v58  ;;  %v9624_v14 = vld [vmem:[#allocation4 + $0x178] sm:$0xf0] }
 0x385   : > { %v4160_v47 = vmul.f32 %v11871_v23, %v4159_v6  ;;  %v9434_v15 = vmul.f32 -1.442695, %v4199_v9  ;;  %4936 = vmatpush.bf16.msrb.mxu3 %v9739_v25  ;;  %v13507_v9 = vld [vmem:[#allocation32_spill] sm:$0xff]  ;;  %v11445_v25 = vld [vmem:[#allocation4 + $0x174] sm:$0xf0] }
 0x386   : > { %v11873_v11 = vpop.eup %11872  ;;  %4910 = vmatpush.bf16.msra.mxu1 %v9735_v52  ;;  %v9622_v52 = vld [vmem:[#allocation4 + $0x160] sm:$0xf] }
 0x387   : > { %v4178_v60 = vmul.f32 %v11873_v11, %v12951_v31  ;;  %v4161_v59 = vadd.f32 %v11871_v23, %v4160_v47  ;;  %11874 = vpow2.f32 %v9434_v15  ;;  %vm4183_vm12 = vweird.f32 %v11873_v11  ;;  %v9686_v47 = vld [vmem:[#allocation4 + $0x1e8] sm:$0xf]  ;;  %v11462_v15 = vld [vmem:[#allocation4 + $0x1fc] sm:$0xf0] }
 0x388   : > { %v4098_v33 = vpop.f32.mrf.mxu3  ;;  %vm12974_vm9 = vmor %vm4182_vm7, %vm4183_vm12  ;;  %v9687_v31 = vor.u32 %v11462_v15, %v9686_v47 }
 0x389   : > { %v4179_v28 = vsub.f32 1.0, %v4178_v60  ;;  %v4165_v41 = vsel %vm4164_vm15, %v11871_v23, %v4161_v59  ;;  %v9715_v23 = vor.u32 %v11465_v26, %v9712_v35  ;;  %v11447_v26 = vld [vmem:[#allocation4 + $0x18c] sm:$0xf] }
 0x38a   : > { %v4170_v50 = vsel %vm4167_vm11, %v4169_v7, %v4165_v41  ;;  %v4122_v62 = vpop.f32.mrf.mxu1  ;;  %4911 = vmatpush.bf16.msra.mxu1 %v9711_v5  ;;  %v9664_v7 = vld [vmem:[#allocation4 + $0x1d0] sm:$0xf0]  ;;  %v11442_v41 = vld [vmem:[#allocation4 + $0x164] sm:$0xf] }
 0x38b   : > { %v4180_v20 = vmul.f32 %v11873_v11, %v4179_v28  ;;  %v4192_v49 = vmul.f32 %v4170_v50, %v4071_v10  ;;  %v4123_v54 = vadd.f32 %v4122_v62, %v4110_v53  ;;  %4937 = vmatpush.bf16.msrb.mxu3 %v9715_v23  ;;  %v9688_v53 = vld [vmem:[#allocation4 + $0x200] sm:$0xf0]  ;;  %v11453_v10 = vld [vmem:[#allocation4 + $0x1bc] sm:$0xf] }
 0x38c   : > { %v9691_v56 = vor.u32 %v11459_v46, %v9688_v53  ;;  %v9667_v28 = vor.u32 %v11453_v10, %v9664_v7  ;;  %v11433_v10 = vld [vmem:[#allocation4 + $0x114] sm:$0xf0] }
 0x38d   : > { %v11875_v6 = vpop.eup %11874  ;;  %v4181_v45 = vadd.f32 %v11873_v11, %v4180_v20  ;;  %v4193_v16 = vadd.f32 %v4192_v49, %v617_v4  ;;  %v4219_v36 = vadd.f32 %v4123_v54, %v13507_v9  ;;  %v11450_v4 = vld [vmem:[#allocation4 + $0x19c] sm:$0xf0]  ;;  %v9640_v20 = vld [vmem:[#allocation4 + $0x1a0] sm:$0xf0]  ;;  %v9627_v9 = vor.u32 %v11442_v41, %v9624_v14  ;;  %v13511_v14 = vld [vmem:[#allocation33_spill] sm:$0xff] }
 0x38e   : > { %v12978_v43 = vadd.f32 1.0, %v11875_v6  ;;  %4912 = vmatpush.bf16.msra.mxu1 %v9687_v31  ;;  %v9639_v35 = vor.u32 %v11450_v4, %v9638_v30  ;;  %v9643_v23 = vor.u32 %v11447_v26, %v9640_v20  ;;  %v9550_v4 = vld [vmem:[#allocation4 + $0xd0] sm:$0xf]  ;;  %v11424_v20 = vld [vmem:[#allocation4 + $0xd4] sm:$0xf] }
 0x38f   : > { %v4185_v39 = vsel %vm12974_vm9, %v11873_v11, %v4181_v45  ;;  %11876 = vtanh.f32 %v4193_v16  ;;  %v9435_v8 = vmul.f32 -1.442695, %v4219_v36  ;;  %v9663_v11 = vor.u32 %v11456_v1, %v9662_v61  ;;  %4938 = vmatpush.bf16.msrb.mxu3 %v9691_v56  ;;  %v9598_v36 = vld [vmem:[#allocation4 + $0x130] sm:$0xf] }
 0x390   : > { %11878 = vrcp.f32 %v12978_v43  ;;  %v4190_v2 = vsel %vm4187_vm13, %v4189_v55, %v4185_v39  ;;  %v9623_v16 = vor.u32 %v11445_v25, %v9622_v52  ;;  %v4215_v15 = vand.u32 2147483648, %v12978_v43  ;;  %v11439_v39 = vld [vmem:[#allocation4 + $0x144] sm:$0xf0]  ;;  %v9576_v52 = vld [vmem:[#allocation4 + $0x118] sm:$0xf0] }
 0x391   : > { %11880 = vpow2.f32 %v9435_v8  ;;  %v12983_v60 = vpop.f32.mrf.mxu3  ;;  %v4195_v33 = vsub.f32 1.0, %v4190_v2  ;;  %v4197_v58 = vmul.f32 %v4190_v2, %v12876_v29  ;;  %v11436_v8 = vld [vmem:[#allocation4 + $0x134] sm:$0xf]  ;;  %v4213_v46 = vand.u32 2147483647, %v12978_v43 }
 0x392   : > { %v4124_v59 = vpop.f32.mrf.mxu1  ;;  %4913 = vmatpush.bf16.msra.mxu1 %v9663_v11  ;;  %v4136_v2 = vadd.f32 %v12947_v17, %v12501_v63  ;;  %v4216_v56 = vor.u32 1.1754944e-38, %v4215_v15  ;;  %v9599_v61 = vor.u32 %v11439_v39, %v9598_v36  ;;  %v9574_v11 = vld [vmem:[#allocation4 + $0x100] sm:$0xf]  ;;  %v11430_v17 = vld [vmem:[#allocation4 + $0x104] sm:$0xf] }
 0x393   : > { %4939 = vmatpush.bf16.msrb.mxu3 %v9667_v28  ;;  %vm4214_vm10 = vcmp.eq.f32.partialorder %v4213_v46, 8.507059e+37  ;;  %v9575_v41 = vor.u32 %v11433_v10, %v9574_v11  ;;  %v9579_v30 = vor.u32 %v11430_v17, %v9576_v52  ;;  %v9478_v17 = vld [vmem:[#allocation4 + $0x40] sm:$0xf] }
 0x394   : > { %v4149_v7 = vadd.f32 %v12983_v60, %v4136_v2  ;;  %v9552_v60 = vld [vmem:[#allocation4 + $0xe8] sm:$0xf0]  ;;  %v11412_v2 = vld [vmem:[#allocation4 + $0x74] sm:$0xf] }
 0x395   : > { %v11877_v0 = vpop.eup %11876 }
 0x396   : > { %v11879_v50 = vpop.eup %11878  ;;  %v4196_v62 = vmul.f32 %v11877_v0, %v4195_v33  ;;  %4914 = vmatpush.bf16.msra.mxu1 %v9639_v35 }
 0x397   : > { %v11881_v49 = vpop.eup %11880  ;;  %v4205_v54 = vmul.f32 %v11879_v50, %v12978_v43  ;;  %vm4210_vm14 = vweird.f32 %v11879_v50  ;;  %4940 = vmatpush.bf16.msrb.mxu3 %v9643_v23  ;;  %v9526_v23 = vld [vmem:[#allocation4 + $0xa0] sm:$0xf] }
 0x398   : > { %v4198_v32 = vadd.f32 %v4197_v58, %v4196_v62  ;;  %v12987_v5 = vadd.f32 1.0, %v11881_v49  ;;  %v11427_v62 = vld [vmem:[#allocation4 + $0xe4] sm:$0xf0] }
 0x399   : > { %v4206_v6 = vsub.f32 1.0, %v4205_v54  ;;  %v4150_v45 = vpop.f32.mrf.mxu3  ;;  %v9551_v35 = vor.u32 %v11427_v62, %v9550_v4 }
 0x39a   : > { %v12993_v55 = vsel %vm4247_vm1, %v4198_v32, %v12876_v29  ;;  %v4252_v47 = vsel %vm4247_vm1, %v4198_v32, 0.0  ;;  %11882 = vrcp.f32 %v12987_v5  ;;  %v9600_v29 = vld [vmem:[#allocation4 + $0x148] sm:$0xf0]  ;;  %vm4209_vm1 = vweird.f32 %v12978_v43  ;;  %v11421_v45 = vld [vmem:[#allocation4 + $0xb4] sm:$0xf0] }
 0x39b   : > { %4253 = vst [vmem:[%s12106_s22 + $0x18] sm:$0xff] %v4252_v47  ;;  %v4207_v31 = vmul.f32 %v11879_v50, %v4206_v6  ;;  %v13004_v53 = vpack.c.bf16 %v12993_v55, %v12993_v55  ;;  %vm4211_vm0 = vmor %vm4209_vm1, %vm4210_vm14  ;;  %v9603_v1 = vor.u32 %v11436_v8, %v9600_v29  ;;  %v4233_v54 = vand.u32 2147483647, %v12987_v5  ;;  %v9502_v8 = vld [vmem:[#allocation4 + $0x70] sm:$0xf] }
 0x39c   : > { %v9555_v32 = vor.u32 %v11424_v20, %v9552_v60  ;;  %vm4229_vm11 = vweird.f32 %v12987_v5  ;;  %v9527_v15 = vor.u32 %v11421_v45, %v9526_v23  ;;  %v9766_v45 = vld [vmem:[#allocation4 + $0x280] sm:$0xf] }
 0x39d   : > { %v4208_v59 = vadd.f32 %v11879_v50, %v4207_v31  ;;  %4850 = vmatmul.bf16.vlgmr.msrb.gmra.mxu0 %v13004_v53  ;;  %4876 = vmatmul.bf16.vlgmr.msra.gmra.mxu2 %v13004_v53  ;;  %vm4234_vm7 = vcmp.eq.f32.partialorder %v4233_v54, 8.507059e+37  ;;  %v11415_v31 = vld [vmem:[#allocation4 + $0x84] sm:$0xf0]  ;;  %v11400_v54 = vld [vmem:[#allocation4 + $0x14] sm:$0xf] }
 0x39e   : > { %4946 = vmatpush.bf16.msrb.mxu0 %v9623_v16  ;;  %4972 = vmatpush.bf16.msra.mxu2 %v9627_v9  ;;  %v11418_v16 = vld [vmem:[#allocation4 + $0xa4] sm:$0xf]  ;;  %v9528_v9 = vld [vmem:[#allocation4 + $0xb8] sm:$0xf0]  ;;  %v9503_v11 = vor.u32 %v11415_v31, %v9502_v8  ;;  %v11472_v8 = vld [vmem:[#allocation4 + $0x254] sm:$0xf] }
 0x39f   : > { %v4212_v33 = vsel %vm4211_vm0, %v11879_v50, %v4208_v59  ;;  %v4235_v50 = vand.u32 2147483648, %v12987_v5  ;;  %v9531_v39 = vor.u32 %v11418_v16, %v9528_v9  ;;  %v9504_v59 = vld [vmem:[#allocation4 + $0x88] sm:$0xf0]  ;;  %v11481_v16 = vld [vmem:[#allocation4 + $0x294] sm:$0xf0] }
 0x3a0   : > { %v11883_v25 = vpop.eup %11882  ;;  %v4217_v43 = vsel %vm4214_vm10, %v4216_v56, %v4212_v33  ;;  %v9507_v10 = vor.u32 %v11412_v2, %v9504_v59  ;;  %v9816_v33 = vld [vmem:[#allocation4 + $0x2f8] sm:$0xf0]  ;;  %v11478_v9 = vld [vmem:[#allocation4 + $0x284] sm:$0xf]  ;;  %v9744_v31 = vld [vmem:[#allocation4 + $0x268] sm:$0xf0] }
 0x3a1   : > { %v4225_v28 = vmul.f32 %v11883_v25, %v12987_v5  ;;  %v4239_v0 = vmul.f32 %v4217_v43, %v4149_v7  ;;  %vm4230_vm15 = vweird.f32 %v11883_v25  ;;  %v4236_v36 = vor.u32 1.1754944e-38, %v4235_v50  ;;  %v11490_v7 = vld [vmem:[#allocation4 + $0x2e4] sm:$0xf]  ;;  %v9792_v50 = vld [vmem:[#allocation4 + $0x2c8] sm:$0xf0] }
 0x3a2   : > { %4947 = vmatpush.bf16.msrb.mxu0 %v9599_v61  ;;  %4973 = vmatpush.bf16.msra.mxu2 %v9603_v1  ;;  %vm4231_vm12 = vmor %vm4229_vm11, %vm4230_vm15  ;;  %v9814_v61 = vld [vmem:[#allocation4 + $0x2e0] sm:$0xf]  ;;  %v11493_v1 = vld [vmem:[#allocation4 + $0x2f4] sm:$0xf0]  ;;  %v9819_v62 = vor.u32 %v11490_v7, %v9816_v33 }
 0x3a3   : > { %v4226_v58 = vsub.f32 1.0, %v4225_v28  ;;  %v4240_v26 = vadd.f32 %v4239_v0, %v13511_v14  ;;  %v11406_v43 = vld [vmem:[#allocation4 + $0x44] sm:$0xf]  ;;  %v9480_v28 = vld [vmem:[#allocation4 + $0x58] sm:$0xf0]  ;;  %v9815_v4 = vor.u32 %v11493_v1, %v9814_v61 }
 0x3a4   : > { %v9790_v0 = vld [vmem:[#allocation4 + $0x2b0] sm:$0xf]  ;;  %v11484_v14 = vld [vmem:[#allocation4 + $0x2b4] sm:$0xf]  ;;  %v9483_v60 = vor.u32 %v11406_v43, %v9480_v28  ;;  %v9718_v2 = vld [vmem:[#allocation4 + $0x220] sm:$0xf] }
 0x3a5   : > { %v4227_v49 = vmul.f32 %v11883_v25, %v4226_v58  ;;  %11884 = vtanh.f32 %v4240_v26  ;;  %v11487_v58 = vld [vmem:[#allocation4 + $0x2c4] sm:$0xf0]  ;;  %v11469_v59 = vld [vmem:[#allocation4 + $0x234] sm:$0xf0]  ;;  %v11460_v7 = vld [vmem:[#allocation4 + $0x1f4] sm:$0xf] }
 0x3a6   : > { %4948 = vmatpush.bf16.msrb.mxu0 %v9575_v41  ;;  %4974 = vmatpush.bf16.msra.mxu2 %v9579_v30  ;;  %v9791_v27 = vor.u32 %v11487_v58, %v9790_v0  ;;  %v9719_v61 = vor.u32 %v11469_v59, %v9718_v2  ;;  %v9696_v33 = vld [vmem:[#allocation4 + $0x208] sm:$0xf0]  ;;  %v11454_v43 = vld [vmem:[#allocation4 + $0x1c4] sm:$0xf]  ;;  %v9672_v28 = vld [vmem:[#allocation4 + $0x1d8] sm:$0xf0] }
 0x3a7   : > { %v4228_v6 = vadd.f32 %v11883_v25, %v4227_v49  ;;  %v11403_v49 = vld [vmem:[#allocation4 + $0x24] sm:$0xf0]  ;;  %v11448_v58 = vld [vmem:[#allocation4 + $0x194] sm:$0xf]  ;;  %v9924_v59 = vld [vmem:[#allocation4 + $0xd8] sm:$0xf0] }
 0x3a9   : > { %v4232_v37 = vsel %vm4231_vm12, %v11883_v25, %v4228_v6  ;;  %v11409_v25 = vld [vmem:[#allocation4 + $0x54] sm:$0xf0] }
 0x3aa   : > { %v4237_v47 = vsel %vm4234_vm7, %v4236_v36, %v4232_v37  ;;  %4949 = vmatpush.bf16.msrb.mxu0 %v9551_v35  ;;  %4975 = vmatpush.bf16.msra.mxu2 %v9555_v32  ;;  %v9479_v20 = vor.u32 %v11409_v25, %v9478_v17  ;;  %v9456_v35 = vld [vmem:[#allocation4 + $0x28] sm:$0xf0]  ;;  %v9795_v32 = vor.u32 %v11484_v14, %v9792_v50  ;;  %v9768_v36 = vld [vmem:[#allocation4 + $0x298] sm:$0xf0]  ;;  %v11457_v25 = vld [vmem:[#allocation4 + $0x1d4] sm:$0xf0] }
 0x3ab   : > { %v11885_v46 = vpop.eup %11884  ;;  %v4242_v29 = vsub.f32 1.0, %v4237_v47  ;;  %v4244_v56 = vmul.f32 %v4237_v47, %v12908_v48  ;;  %v9459_v6 = vor.u32 %v11400_v54, %v9456_v35  ;;  %v9767_v37 = vor.u32 %v11481_v16, %v9766_v45  ;;  %v9648_v14 = vld [vmem:[#allocation4 + $0x1a8] sm:$0xf0]  ;;  %v9994_v50 = vld [vmem:[#allocation4 + $0x150] sm:$0xf] }
 0x3ac   : > { %v9771_v47 = vor.u32 %v11478_v9, %v9768_v36  ;;  %v9699_v17 = vor.u32 %v11460_v7, %v9696_v33  ;;  %v9996_v35 = vld [vmem:[#allocation4 + $0x168] sm:$0xf0]  ;;  %v9972_v45 = vld [vmem:[#allocation4 + $0x138] sm:$0xf0]  ;;  %v9946_v36 = vld [vmem:[#allocation4 + $0xf0] sm:$0xf] }
 0x3ad   : > { %v4243_v5 = vmul.f32 %v11885_v46, %v4242_v29  ;;  %4902 = vmatmul.bf16.vlgmr.msra.gmra.mxu0 %v13004_v53  ;;  %4928 = vmatmul.bf16.vlgmr.msrb.gmra.mxu2 %v13004_v53  ;;  %v9747_v29 = vor.u32 %v11472_v8, %v9744_v31  ;;  %v9922_v8 = vld [vmem:[#allocation4 + $0xc0] sm:$0xf]  ;;  %v11521_v31 = vld [vmem:[#allocation4 + $0xd4] sm:$0xf0] }
 0x3ae   : > { %4950 = vmatpush.bf16.msrb.mxu0 %v9527_v15  ;;  %4976 = vmatpush.bf16.msra.mxu2 %v9531_v39  ;;  %v9742_v15 = vld [vmem:[#allocation4 + $0x250] sm:$0xf]  ;;  %v11475_v39 = vld [vmem:[#allocation4 + $0x264] sm:$0xf0]  ;;  %v9923_v2 = vor.u32 %v11521_v31, %v9922_v8  ;;  %v10002_v8 = vld [vmem:[#allocation4 + $0x158] sm:$0xf] }
 0x3af   : > { %v4245_v52 = vadd.f32 %v4244_v56, %v4243_v5  ;;  %v9743_v46 = vor.u32 %v11475_v39, %v9742_v15  ;;  %v11466_v5 = vld [vmem:[#allocation4 + $0x224] sm:$0xf]  ;;  %v9720_v56 = vld [vmem:[#allocation4 + $0x238] sm:$0xf0]  ;;  %v9948_v15 = vld [vmem:[#allocation4 + $0x108] sm:$0xf0] }
 0x3b0   : > { %v9723_v1 = vor.u32 %v11466_v5, %v9720_v56  ;;  %v9898_v56 = vld [vmem:[#allocation4 + $0x90] sm:$0xf] }
 0x3b1   : > { %v13024_v41 = vsel %vm4249_vm2, %v4245_v52, %v12908_v48  ;;  %v4254_v30 = vsel %vm4249_vm2, %v4245_v52, 0.0  ;;  %v9454_v48 = vld [vmem:[#allocation4 + $0x10] sm:$0xf]  ;;  %v9670_v52 = vld [vmem:[#allocation4 + $0x1c0] sm:$0xf] }
 0x3b2   : > { %4255 = vst [vmem:[%s12111_s27 + $0x20] sm:$0xff] %v4254_v30  ;;  %4951 = vmatpush.bf16.msrb.mxu0 %v9503_v11  ;;  %4977 = vmatpush.bf16.msra.mxu2 %v9507_v10  ;;  %v13032_v26 = vpack.c.bf16 %v13024_v41, %v13024_v41  ;;  %v9455_v23 = vor.u32 %v11403_v49, %v9454_v48  ;;  %v9694_v11 = vld [vmem:[#allocation4 + $0x1f0] sm:$0xf]  ;;  %v11463_v10 = vld [vmem:[#allocation4 + $0x204] sm:$0xf0] }
 0x3b3   : > { %v9671_v0 = vor.u32 %v11457_v25, %v9670_v52  ;;  %v9675_v30 = vor.u32 %v11454_v43, %v9672_v28  ;;  %v11539_v48 = vld [vmem:[#allocation4 + $0x164] sm:$0xf0]  ;;  %v11536_v49 = vld [vmem:[#allocation4 + $0x154] sm:$0xf]  ;;  %v11506_v52 = vld [vmem:[#allocation4 + $0x64] sm:$0xf] }
 0x3b4   : > { %4863 = vmatmul.bf16.vlgmr.msrb.gmra.mxu1 %v13032_v26  ;;  %4889 = vmatmul.bf16.vlgmr.msra.gmra.mxu3 %v13032_v26  ;;  %v9995_v54 = vor.u32 %v11539_v48, %v9994_v50  ;;  %v9876_v28 = vld [vmem:[#allocation4 + $0x78] sm:$0xf0] }
 0x3b5   : > { %4959 = vmatpush.bf16.msrb.mxu1 %v9815_v4  ;;  %4985 = vmatpush.bf16.msra.mxu3 %v9819_v62  ;;  %v9646_v4 = vld [vmem:[#allocation4 + $0x190] sm:$0xf]  ;;  %v11451_v62 = vld [vmem:[#allocation4 + $0x1a4] sm:$0xf0] }
 0x3b6   : > { %4952 = vmatpush.bf16.msrb.mxu0 %v9479_v20  ;;  %4978 = vmatpush.bf16.msra.mxu2 %v9483_v60  ;;  %v9647_v20 = vor.u32 %v11451_v62, %v9646_v4  ;;  %v9651_v60 = vor.u32 %v11448_v58, %v9648_v14  ;;  %v11587_v4 = vld [vmem:[#allocation4 + $0x2e4] sm:$0xf0]  ;;  %v11584_v62 = vld [vmem:[#allocation4 + $0x2d4] sm:$0xf]  ;;  %v10188_v14 = vld [vmem:[#allocation4 + $0x2e8] sm:$0xf0] }
 0x3b7   : > { %v10191_v50 = vor.u32 %v11584_v62, %v10188_v14  ;;  %v10114_v62 = vld [vmem:[#allocation4 + $0x240] sm:$0xf]  ;;  %v11566_v14 = vld [vmem:[#allocation4 + $0x244] sm:$0xf] }
 0x3b9   : > { %4960 = vmatpush.bf16.msrb.mxu1 %v9791_v27  ;;  %4986 = vmatpush.bf16.msra.mxu3 %v9795_v32  ;;  %v9970_v27 = vld [vmem:[#allocation4 + $0x120] sm:$0xf]  ;;  %v11533_v32 = vld [vmem:[#allocation4 + $0x134] sm:$0xf0] }
 0x3ba   : > { %4953 = vmatpush.bf16.msrb.mxu0 %v9455_v23  ;;  %4979 = vmatpush.bf16.msra.mxu2 %v9459_v6  ;;  %v9999_v23 = vor.u32 %v11536_v49, %v9996_v35  ;;  %v11530_v6 = vld [vmem:[#allocation4 + $0x124] sm:$0xf]  ;;  %v9971_v16 = vor.u32 %v11533_v32, %v9970_v27  ;;  %v11500_v49 = vld [vmem:[#allocation4 + $0x34] sm:$0xf]  ;;  %v10162_v32 = vld [vmem:[#allocation4 + $0x2a0] sm:$0xf] }
 0x3bb   : > { %v9975_v9 = vor.u32 %v11530_v6, %v9972_v45  ;;  %v11578_v6 = vld [vmem:[#allocation4 + $0x2a4] sm:$0xf] }
 0x3bd   : > { %4954 = vmatmul.bf16.vlgmr.msrb.gmra.mxu0 %v13004_v53  ;;  %4961 = vmatpush.bf16.msrb.mxu1 %v9767_v37  ;;  %v11527_v37 = vld [vmem:[#allocation4 + $0x104] sm:$0xf0] }
 0x3be   : > { %4980 = vmatmul.bf16.vlgmr.msra.gmra.mxu2 %v13004_v53  ;;  %4987 = vmatpush.bf16.msra.mxu3 %v9771_v47  ;;  %v9695_v53 = vor.u32 %v11463_v10, %v9694_v11  ;;  %v11524_v47 = vld [vmem:[#allocation4 + $0xf4] sm:$0xf]  ;;  %v9900_v10 = vld [vmem:[#allocation4 + $0xa8] sm:$0xf0] }
 0x3bf   : > { %5688 = vmatpush.bf16.msra.mxu0 %v9995_v54  ;;  %5714 = vmatpush.bf16.msrb.mxu2 %v9999_v23  ;;  %v9951_v39 = vor.u32 %v11524_v47, %v9948_v15  ;;  %v9852_v54 = vld [vmem:[#allocation4 + $0x48] sm:$0xf0]  ;;  %v11581_v23 = vld [vmem:[#allocation4 + $0x2b4] sm:$0xf0]  ;;  %v11494_v15 = vld [vmem:[#allocation4 + $0x4] sm:$0xf] }
 0x3c0   : > { %v9855_v35 = vor.u32 %v11500_v49, %v9852_v54  ;;  %v10163_v45 = vor.u32 %v11581_v23, %v10162_v32  ;;  %v11525_v32 = vld [vmem:[#allocation4 + $0xfc] sm:$0xf]  ;;  %v9956_v23 = vld [vmem:[#allocation4 + $0x110] sm:$0xf0] }
 0x3c1   : > { %4962 = vmatpush.bf16.msrb.mxu1 %v9743_v46  ;;  %v11518_v46 = vld [vmem:[#allocation4 + $0xc4] sm:$0xf] }
 0x3c2   : > { %4988 = vmatpush.bf16.msra.mxu3 %v9747_v29  ;;  %v9927_v5 = vor.u32 %v11518_v46, %v9924_v59  ;;  %v11540_v46 = vld [vmem:[#allocation4 + $0x16c] sm:$0xf0]  ;;  %v10004_v59 = vld [vmem:[#allocation4 + $0x170] sm:$0xf0] }
 0x3c3   : > { %5689 = vmatpush.bf16.msra.mxu0 %v9971_v16  ;;  %5715 = vmatpush.bf16.msrb.mxu2 %v9975_v9  ;;  %v10164_v16 = vld [vmem:[#allocation4 + $0x2b8] sm:$0xf0]  ;;  %v9826_v9 = vld [vmem:[#allocation4] sm:$0xf] }
 0x3c4   : > { %4915 = vmatmul.bf16.vlgmr.msra.gmra.mxu1 %v13032_v26  ;;  %4941 = vmatmul.bf16.vlgmr.msrb.gmra.mxu3 %v13032_v26  ;;  %v10167_v47 = vor.u32 %v11578_v6, %v10164_v16  ;;  %v13512_v6 = vld [vmem:[#allocation12_spill] sm:$0xff]  ;;  %v9959_v16 = vor.u32 %v11525_v32, %v9956_v23 }
 0x3c5   : > { %4963 = vmatpush.bf16.msrb.mxu1 %v9719_v61  ;;  %v11515_v61 = vld [vmem:[#allocation4 + $0xa4] sm:$0xf0]  ;;  %v10044_v32 = vld [vmem:[#allocation4 + $0x1c8] sm:$0xf0] }
 0x3c6   : > { %4989 = vmatpush.bf16.msra.mxu3 %v9723_v1  ;;  %v11512_v1 = vld [vmem:[#allocation4 + $0x94] sm:$0xf]  ;;  %v9899_v11 = vor.u32 %v11515_v61, %v9898_v56  ;;  %v10138_v61 = vld [vmem:[#allocation4 + $0x270] sm:$0xf] }
 0x3c7   : > { %5716 = vmatpush.bf16.msrb.mxu2 %v9951_v39  ;;  %v9903_v7 = vor.u32 %v11512_v1, %v9900_v10  ;;  %v9828_v39 = vld [vmem:[#allocation4 + $0x18] sm:$0xf0]  ;;  %v11575_v1 = vld [vmem:[#allocation4 + $0x284] sm:$0xf0] }
 0x3c8   : > { %v9831_v31 = vor.u32 %v11494_v15, %v9828_v39  ;;  %v10139_v10 = vor.u32 %v11575_v1, %v10138_v61  ;;  %v10092_v15 = vld [vmem:[#allocation4 + $0x228] sm:$0xf0]  ;;  %v9932_v61 = vld [vmem:[#allocation4 + $0xe0] sm:$0xf0] }
 0x3c9   : > { %4964 = vmatpush.bf16.msrb.mxu1 %v9695_v53  ;;  %v9874_v53 = vld [vmem:[#allocation4 + $0x60] sm:$0xf] }
 0x3ca   : > { %4990 = vmatpush.bf16.msra.mxu3 %v9699_v17  ;;  %v11509_v17 = vld [vmem:[#allocation4 + $0x74] sm:$0xf0] }
 0x3cb   : > { %5717 = vmatpush.bf16.msrb.mxu2 %v9927_v5  ;;  %v9875_v43 = vor.u32 %v11509_v17, %v9874_v53  ;;  %v10003_v5 = vor.u32 %v11540_v46, %v10002_v8  ;;  %v9978_v17 = vld [vmem:[#allocation4 + $0x128] sm:$0xf] }
 0x3cc   : > { %v9930_v46 = vld [vmem:[#allocation4 + $0xc8] sm:$0xf] }
 0x3cd   : > { %4965 = vmatpush.bf16.msrb.mxu1 %v9671_v0  ;;  %v9879_v0 = vor.u32 %v11506_v52, %v9876_v28  ;;  %v11534_v52 = vld [vmem:[#allocation4 + $0x13c] sm:$0xf0]  ;;  %v9980_v28 = vld [vmem:[#allocation4 + $0x140] sm:$0xf0] }
 0x3ce   : > { %4991 = vmatpush.bf16.msra.mxu3 %v9675_v30  ;;  %v10186_v30 = vld [vmem:[#allocation4 + $0x2d0] sm:$0xf] }
 0x3cf   : > { %5718 = vmatpush.bf16.msrb.mxu2 %v9903_v7  ;;  %v10187_v58 = vor.u32 %v11587_v4, %v10186_v30  ;;  %v10140_v7 = vld [vmem:[#allocation4 + $0x288] sm:$0xf0] }
 0x3d1   : > { %4966 = vmatpush.bf16.msrb.mxu1 %v9647_v20  ;;  %v9850_v20 = vld [vmem:[#allocation4 + $0x30] sm:$0xf] }
 0x3d2   : > { %4992 = vmatpush.bf16.msra.mxu3 %v9651_v60  ;;  %v11503_v60 = vld [vmem:[#allocation4 + $0x44] sm:$0xf0] }
 0x3d3   : > { %5719 = vmatpush.bf16.msrb.mxu2 %v9879_v0  ;;  %v9851_v48 = vor.u32 %v11503_v60, %v9850_v20 }
 0x3d4   : > { %4967 = vmatmul.bf16.vlgmr.msrb.gmra.mxu1 %v13032_v26 }
 0x3d5   : > { %4993 = vmatmul.bf16.vlgmr.msra.gmra.mxu3 %v13032_v26  ;;  %v9947_v26 = vor.u32 %v11527_v37, %v9946_v36  ;;  %5701 = vmatpush.bf16.msra.mxu1 %v10187_v58  ;;  %v11497_v36 = vld [vmem:[#allocation4 + $0x14] sm:$0xf0] }
 0x3d6   : > { %5727 = vmatpush.bf16.msrb.mxu3 %v10191_v50  ;;  %v11569_v58 = vld [vmem:[#allocation4 + $0x254] sm:$0xf0]  ;;  %v10116_v50 = vld [vmem:[#allocation4 + $0x258] sm:$0xf0] }
 0x3d7   : > { %5690 = vmatpush.bf16.msra.mxu0 %v9947_v26  ;;  %5720 = vmatpush.bf16.msrb.mxu2 %v9855_v35  ;;  %v9827_v26 = vor.u32 %v11497_v36, %v9826_v9  ;;  %v10115_v60 = vor.u32 %v11569_v58, %v10114_v62  ;;  %v10119_v54 = vor.u32 %v11566_v14, %v10116_v50  ;;  %v9954_v35 = vld [vmem:[#allocation4 + $0xf8] sm:$0xf]  ;;  %v10090_v9 = vld [vmem:[#allocation4 + $0x210] sm:$0xf]  ;;  %v11563_v36 = vld [vmem:[#allocation4 + $0x224] sm:$0xf0] }
 0x3d8   : > { %v9906_v62 = vld [vmem:[#allocation4 + $0x98] sm:$0xf]  ;;  %v11516_v58 = vld [vmem:[#allocation4 + $0xac] sm:$0xf0]  ;;  %v11513_v14 = vld [vmem:[#allocation4 + $0x9c] sm:$0xf] }
 0x3d9   : > { %5702 = vmatpush.bf16.msra.mxu1 %v10163_v45 }
 0x3da   : > { %5728 = vmatpush.bf16.msrb.mxu3 %v10167_v47  ;;  %v11560_v47 = vld [vmem:[#allocation4 + $0x214] sm:$0xf] }
 0x3db   : > { %5691 = vmatpush.bf16.msra.mxu0 %v9923_v2  ;;  %v11537_v2 = vld [vmem:[#allocation4 + $0x15c] sm:$0xf]  ;;  %5721 = vmatpush.bf16.msrb.mxu2 %v9831_v31  ;;  %v10095_v31 = vor.u32 %v11560_v47, %v10092_v15 }
 0x3dc   : > { %v10007_v56 = vor.u32 %v11537_v2, %v10004_v59  ;;  %v11522_v2 = vld [vmem:[#allocation4 + $0xdc] sm:$0xf0] }
 0x3dd   : > { %5703 = vmatpush.bf16.msra.mxu1 %v10139_v10 }
 0x3df   : > { %5692 = vmatpush.bf16.msra.mxu0 %v9899_v11  ;;  %v11572_v11 = vld [vmem:[#allocation4 + $0x274] sm:$0xf]  ;;  %5766 = vmatpush.bf16.msra.mxu2 %v10007_v56  ;;  %v11519_v56 = vld [vmem:[#allocation4 + $0xcc] sm:$0xf] }
 0x3e0   : > { %v10143_v53 = vor.u32 %v11572_v11, %v10140_v7  ;;  %v9935_v10 = vor.u32 %v11519_v56, %v9932_v61  ;;  %v10066_v7 = vld [vmem:[#allocation4 + $0x1e0] sm:$0xf]  ;;  %v10194_v61 = vld [vmem:[#allocation4 + $0x2d8] sm:$0xf] }
 0x3e1   : > { %5704 = vmatpush.bf16.msra.mxu1 %v10115_v60  ;;  %v9908_v60 = vld [vmem:[#allocation4 + $0xb0] sm:$0xf0] }
 0x3e2   : > { %5729 = vmatpush.bf16.msrb.mxu3 %v10143_v53  ;;  %v11557_v53 = vld [vmem:[#allocation4 + $0x1f4] sm:$0xf0] }
 0x3e3   : > { %5693 = vmatpush.bf16.msra.mxu0 %v9875_v43  ;;  %v9979_v43 = vor.u32 %v11534_v52, %v9978_v17  ;;  %v11554_v17 = vld [vmem:[#allocation4 + $0x1e4] sm:$0xf]  ;;  %v10067_v52 = vor.u32 %v11557_v53, %v10066_v7  ;;  %v10196_v53 = vld [vmem:[#allocation4 + $0x2f0] sm:$0xf0] }
 0x3e6   : > { %5730 = vmatpush.bf16.msrb.mxu3 %v10119_v54  ;;  %v11551_v54 = vld [vmem:[#allocation4 + $0x1c4] sm:$0xf0] }
 0x3e7   : > { %5694 = vmatpush.bf16.msra.mxu0 %v9851_v48 }
 0x3ea   : > { %5731 = vmatpush.bf16.msrb.mxu3 %v10095_v31  ;;  %v11542_v31 = vld [vmem:[#allocation4 + $0x184] sm:$0xf] }
 0x3eb   : > { %5695 = vmatpush.bf16.msra.mxu0 %v9827_v26  ;;  %v10091_v26 = vor.u32 %v11563_v36, %v10090_v9 }
 0x3ed   : > { %5705 = vmatpush.bf16.msra.mxu1 %v10091_v26  ;;  %v9884_v26 = vld [vmem:[#allocation4 + $0x80] sm:$0xf0] }
 0x3ef   : > { %5740 = vmatpush.bf16.msrb.mxu0 %v10003_v5  ;;  %v9931_v5 = vor.u32 %v11522_v2, %v9930_v46 }
 0x3f1   : > { %5706 = vmatpush.bf16.msra.mxu1 %v10067_v52 }
 0x3f3   : > { %5741 = vmatpush.bf16.msrb.mxu0 %v9979_v43  ;;  %v13513_v43 = vld [vmem:[#allocation13_spill] sm:$0xff] }
 0x41a   : > { %v13042_v29 = vpop.f32.mrf.mxu0 }
 0x41b   : > { %v4852_v0 = vadd.f32 %v13042_v29, %v12377_v3 }
 0x420   : > { %v13044_v33 = vpop.f32.mrf.mxu2 }
 0x421   : > { %v4878_v39 = vadd.f32 %v13044_v33, %v12393_v38 }
 0x422   : > { %v4853_v25 = vpop.f32.mrf.mxu0 }
 0x423   : > { %v11531_v25 = vld [vmem:[#allocation4 + $0x12c] sm:$0xf] }
 0x424   : > { %v9983_v4 = vor.u32 %v11531_v25, %v9980_v28  ;;  %v10068_v25 = vld [vmem:[#allocation4 + $0x1f8] sm:$0xf0] }
 0x426   : > { %5767 = vmatpush.bf16.msra.mxu2 %v9983_v4  ;;  %v10071_v4 = vor.u32 %v11554_v17, %v10068_v25  ;;  %v9858_v17 = vld [vmem:[#allocation4 + $0x38] sm:$0xf]  ;;  %v11504_v25 = vld [vmem:[#allocation4 + $0x4c] sm:$0xf0] }
 0x428   : > { %v4879_v27 = vpop.f32.mrf.mxu2  ;;  %5732 = vmatpush.bf16.msrb.mxu3 %v10071_v4 }
 0x429   : > { %v11528_v27 = vld [vmem:[#allocation4 + $0x10c] sm:$0xf0] }
 0x42a   : > { %v13046_v37 = vpop.f32.mrf.mxu0  ;;  %v9955_v29 = vor.u32 %v11528_v27, %v9954_v35  ;;  %5768 = vmatpush.bf16.msra.mxu2 %v9959_v16  ;;  %v11548_v27 = vld [vmem:[#allocation4 + $0x1b4] sm:$0xf]  ;;  %v11507_v16 = vld [vmem:[#allocation4 + $0x6c] sm:$0xf] }
 0x42b   : > { %v10047_v23 = vor.u32 %v11548_v27, %v10044_v32  ;;  %v9887_v15 = vor.u32 %v11507_v16, %v9884_v26  ;;  %v11498_v32 = vld [vmem:[#allocation4 + $0x1c] sm:$0xf0] }
 0x42c   : > { %5742 = vmatpush.bf16.msrb.mxu0 %v9955_v29 }
 0x42d   : > { %5733 = vmatpush.bf16.msrb.mxu3 %v10047_v23 }
 0x42e   : > { %5769 = vmatpush.bf16.msra.mxu2 %v9935_v10 }
 0x430   : > { %v13050_v30 = vpop.f32.mrf.mxu2  ;;  %5743 = vmatpush.bf16.msrb.mxu0 %v9931_v5 }
 0x431   : > { %v4864_v20 = vpop.f32.mrf.mxu1 }
 0x432   : > { %v4865_v48 = vadd.f32 %v4864_v20, %v4852_v0  ;;  %v4905_v49 = vpop.f32.mrf.mxu0  ;;  %v9907_v20 = vor.u32 %v11516_v58, %v9906_v62  ;;  %v9859_v62 = vor.u32 %v11504_v25, %v9858_v17 }
 0x433   : > { %v10042_v49 = vld [vmem:[#allocation4 + $0x1b0] sm:$0xf] }
 0x434   : > { %v4998_v45 = vadd.f32 %v4865_v48, %v13512_v6  ;;  %v9911_v48 = vor.u32 %v11513_v14, %v9908_v60  ;;  %v10043_v35 = vor.u32 %v11551_v54, %v10042_v49  ;;  %5744 = vmatpush.bf16.msrb.mxu0 %v9907_v20  ;;  %v9882_v6 = vld [vmem:[#allocation4 + $0x68] sm:$0xf]  ;;  %v11582_v20 = vld [vmem:[#allocation4 + $0x2bc] sm:$0xf0]  ;;  %v4930_v60 = vadd.f32 %v13050_v30, %v12411_v24  ;;  %v10172_v49 = vld [vmem:[#allocation4 + $0x2c0] sm:$0xf0] }
 0x435   : > { %v10170_v14 = vld [vmem:[#allocation4 + $0x2a8] sm:$0xf]  ;;  %v11495_v30 = vld [vmem:[#allocation4 + $0xc] sm:$0xf] }
 0x436   : > { %v9820_v8 = vmul.f32 -1.442695, %v4998_v45  ;;  %5770 = vmatpush.bf16.msra.mxu2 %v9911_v48  ;;  %v11510_v45 = vld [vmem:[#allocation4 + $0x7c] sm:$0xf0]  ;;  %5707 = vmatpush.bf16.msra.mxu1 %v10043_v35  ;;  %v11579_v48 = vld [vmem:[#allocation4 + $0x2ac] sm:$0xf] }
 0x437   : > { %v4890_v59 = vpop.f32.mrf.mxu3  ;;  %v9883_v47 = vor.u32 %v11510_v45, %v9882_v6  ;;  %v9834_v54 = vld [vmem:[#allocation4 + $0x8] sm:$0xf]  ;;  %v10175_v16 = vor.u32 %v11579_v48, %v10172_v49 }
 0x438   : > { %11886 = vpow2.f32 %v9820_v8  ;;  %v4891_v1 = vadd.f32 %v4890_v59, %v4878_v39  ;;  %v4931_v11 = vpop.f32.mrf.mxu2  ;;  %v10018_v39 = vld [vmem:[#allocation4 + $0x180] sm:$0xf]  ;;  %v11545_v8 = vld [vmem:[#allocation4 + $0x194] sm:$0xf0]  ;;  %v10020_v59 = vld [vmem:[#allocation4 + $0x198] sm:$0xf0] }
 0x439   : > { %v4866_v33 = vpop.f32.mrf.mxu1  ;;  %5745 = vmatpush.bf16.msrb.mxu0 %v9883_v47  ;;  %v10019_v56 = vor.u32 %v11545_v8, %v10018_v39  ;;  %v11585_v11 = vld [vmem:[#allocation4 + $0x2dc] sm:$0xf]  ;;  %v10023_v10 = vor.u32 %v11542_v31, %v10020_v59 }
 0x43a   : > { %v5018_v28 = vadd.f32 %v4891_v1, %v13513_v43  ;;  %v13056_v0 = vpop.f32.mrf.mxu0  ;;  %5771 = vmatpush.bf16.msra.mxu2 %v9887_v15  ;;  %v11588_v1 = vld [vmem:[#allocation4 + $0x2ec] sm:$0xf0]  ;;  %v10199_v52 = vor.u32 %v11585_v11, %v10196_v53  ;;  %v11501_v43 = vld [vmem:[#allocation4 + $0x3c] sm:$0xf]  ;;  %v9835_v15 = vor.u32 %v11498_v32, %v9834_v54  ;;  %v10148_v11 = vld [vmem:[#allocation4 + $0x290] sm:$0xf0] }
 0x43b   : > { %v10195_v7 = vor.u32 %v11588_v1, %v10194_v61  ;;  %5708 = vmatpush.bf16.msra.mxu1 %v10019_v56  ;;  %5734 = vmatpush.bf16.msrb.mxu3 %v10023_v10  ;;  %v10146_v56 = vld [vmem:[#allocation4 + $0x278] sm:$0xf]  ;;  %v11576_v61 = vld [vmem:[#allocation4 + $0x28c] sm:$0xf0]  ;;  %v11573_v1 = vld [vmem:[#allocation4 + $0x27c] sm:$0xf]  ;;  %v4956_v25 = vadd.f32 %v13056_v0, %v12495_v21 }
 0x43c   : > { %v9821_v50 = vmul.f32 -1.442695, %v5018_v28  ;;  %v9860_v28 = vld [vmem:[#allocation4 + $0x50] sm:$0xf0]  ;;  %v10147_v53 = vor.u32 %v11576_v61, %v10146_v56  ;;  %v10151_v17 = vor.u32 %v11573_v1, %v10148_v11  ;;  %v10074_v11 = vld [vmem:[#allocation4 + $0x1e8] sm:$0xf] }
 0x43d   : > { %v9863_v58 = vor.u32 %v11501_v43, %v9860_v28  ;;  %5746 = vmatpush.bf16.msrb.mxu0 %v9859_v62  ;;  %v10122_v43 = vld [vmem:[#allocation4 + $0x248] sm:$0xf] }
 0x43e   : > { %v11887_v29 = vpop.eup %11886  ;;  %11888 = vpow2.f32 %v9821_v50  ;;  %v10171_v50 = vor.u32 %v11582_v20, %v10170_v14  ;;  %v11567_v14 = vld [vmem:[#allocation4 + $0x24c] sm:$0xf]  ;;  %v10124_v20 = vld [vmem:[#allocation4 + $0x260] sm:$0xf0] }
 0x43f   : > { %v13058_v9 = vadd.f32 1.0, %v11887_v29  ;;  %v4892_v36 = vpop.f32.mrf.mxu3  ;;  %5753 = vmatpush.bf16.msrb.mxu1 %v10195_v7  ;;  %5779 = vmatpush.bf16.msra.mxu3 %v10199_v52  ;;  %v13514_v29 = vld [vmem:[#allocation11_spill] sm:$0xff]  ;;  %v4904_v52 = vadd.f32 %v13046_v37, %v12446_v18  ;;  %v10127_v0 = vor.u32 %v11567_v14, %v10124_v20  ;;  %v11552_v14 = vld [vmem:[#allocation4 + $0x1cc] sm:$0xf0]  ;;  %v11549_v20 = vld [vmem:[#allocation4 + $0x1bc] sm:$0xf] }
 0x440   : > { %5772 = vmatpush.bf16.msra.mxu2 %v9863_v58  ;;  %v758_v23 = vadd.f32 %v13514_v29, %v12275_v34  ;;  %v9836_v36 = vld [vmem:[#allocation4 + $0x20] sm:$0xf0]  ;;  %v11570_v58 = vld [vmem:[#allocation4 + $0x25c] sm:$0xf0] }
 0x441   : > { %11890 = vrcp.f32 %v13058_v9  ;;  %v13061_v46 = vpop.f32.mrf.mxu2  ;;  %v13063_v2 = vpop.f32.mrf.mxu1  ;;  %v9839_v39 = vor.u32 %v11495_v30, %v9836_v36  ;;  %v5012_v31 = vand.u32 2147483647, %v13058_v9  ;;  %v5014_v59 = vand.u32 2147483648, %v13058_v9  ;;  %5747 = vmatpush.bf16.msrb.mxu0 %v9835_v15 }
 0x442   : > { %v4957_v5 = vpop.f32.mrf.mxu0  ;;  %vm5008_vm9 = vweird.f32 %v13058_v9  ;;  %v10123_v48 = vor.u32 %v11570_v58, %v10122_v43  ;;  %v10050_v58 = vld [vmem:[#allocation4 + $0x1b8] sm:$0xf]  ;;  %v4982_v57 = vadd.f32 %v13061_v46, %v12501_v63  ;;  %v11526_v46 = vld [vmem:[#allocation4 + $0x104] sm:$0xf] }
 0x443   : > { %5754 = vmatpush.bf16.msrb.mxu1 %v10171_v50  ;;  %5780 = vmatpush.bf16.msra.mxu3 %v10175_v16  ;;  %v5015_v37 = vor.u32 1.1754944e-38, %v5014_v59  ;;  %vm5013_vm14 = vcmp.eq.f32.partialorder %v5012_v31, 8.507059e+37  ;;  %v11561_v16 = vld [vmem:[#allocation4 + $0x21c] sm:$0xf] }
 0x444   : > { %v11889_v33 = vpop.eup %11888  ;;  %5773 = vmatpush.bf16.msra.mxu2 %v9839_v39  ;;  %v13516_v31 = vld [vmem:[#allocation14_spill] sm:$0xff] }
 0x445   : > { %v13065_v4 = vadd.f32 1.0, %v11889_v33 }
 0x447   : > { %v11891_v35 = vpop.eup %11890  ;;  %11892 = vrcp.f32 %v13065_v4  ;;  %v4942_v27 = vpop.f32.mrf.mxu3  ;;  %5755 = vmatpush.bf16.msrb.mxu1 %v10147_v53  ;;  %5781 = vmatpush.bf16.msra.mxu3 %v10151_v17  ;;  %v5034_v54 = vand.u32 2147483648, %v13065_v4  ;;  %vm5028_vm0 = vweird.f32 %v13065_v4  ;;  %v11555_v17 = vld [vmem:[#allocation4 + $0x1ec] sm:$0xf] }
 0x448   : > { %v5004_v6 = vmul.f32 %v11891_v35, %v13058_v9  ;;  %v4943_v45 = vadd.f32 %v4942_v27, %v4930_v60  ;;  %vm5009_vm2 = vweird.f32 %v11891_v35  ;;  %v4917_v60 = vadd.f32 %v13063_v2, %v4904_v52  ;;  %v13515_v9 = vld [vmem:[#allocation30_spill] sm:$0xff]  ;;  %v10076_v52 = vld [vmem:[#allocation4 + $0x200] sm:$0xf0] }
 0x449   : > { %v4983_v47 = vpop.f32.mrf.mxu2  ;;  %v4918_v26 = vpop.f32.mrf.mxu1  ;;  %vm5010_vm13 = vmor %vm5008_vm9, %vm5009_vm2  ;;  %v787_v32 = vadd.f32 %v13515_v9, %v12357_v19  ;;  %v5035_v61 = vor.u32 1.1754944e-38, %v5034_v54  ;;  %v11538_v54 = vld [vmem:[#allocation4 + $0x164] sm:$0xf]  ;;  %v11546_v9 = vld [vmem:[#allocation4 + $0x19c] sm:$0xf0] }
 0x44a   : > { %v5005_v8 = vsub.f32 1.0, %v5004_v6  ;;  %v5045_v5 = vadd.f32 %v4943_v45, %v758_v23  ;;  %v10098_v6 = vld [vmem:[#allocation4 + $0x218] sm:$0xf]  ;;  %v11564_v45 = vld [vmem:[#allocation4 + $0x22c] sm:$0xf0] }
 0x44b   : > { %5756 = vmatpush.bf16.msrb.mxu1 %v10123_v48  ;;  %5782 = vmatpush.bf16.msra.mxu3 %v10127_v0  ;;  %v10100_v47 = vld [vmem:[#allocation4 + $0x230] sm:$0xf0]  ;;  %v5032_v26 = vand.u32 2147483647, %v13065_v4  ;;  %v10099_v15 = vor.u32 %v11564_v45, %v10098_v6  ;;  %v11541_v48 = vld [vmem:[#allocation4 + $0x174] sm:$0xf0] }
 0x44c   : > { %v5006_v10 = vmul.f32 %v11891_v35, %v5005_v8  ;;  %v9822_v7 = vmul.f32 -1.442695, %v5045_v5  ;;  %v10012_v6 = vld [vmem:[#allocation4 + $0x178] sm:$0xf0]  ;;  %v11543_v45 = vld [vmem:[#allocation4 + $0x18c] sm:$0xf] }
 0x44d   : > { %v11893_v33 = vpop.eup %11892  ;;  %vm5033_vm15 = vcmp.eq.f32.partialorder %v5032_v26, 8.507059e+37 }
 0x44e   : > { %v5024_v28 = vmul.f32 %v11893_v33, %v13065_v4  ;;  %v5007_v62 = vadd.f32 %v11891_v35, %v5006_v10  ;;  %11894 = vpow2.f32 %v9822_v7  ;;  %vm5029_vm1 = vweird.f32 %v11893_v33  ;;  %v11558_v10 = vld [vmem:[#allocation4 + $0x1fc] sm:$0xf0] }
 0x44f   : > { %v4944_v50 = vpop.f32.mrf.mxu3  ;;  %vm13089_vm10 = vmor %vm5028_vm0, %vm5029_vm1  ;;  %5757 = vmatpush.bf16.msrb.mxu1 %v10099_v15  ;;  %v10075_v4 = vor.u32 %v11558_v10, %v10074_v11  ;;  %v11535_v11 = vld [vmem:[#allocation4 + $0x144] sm:$0xf0]  ;;  %v11532_v10 = vld [vmem:[#allocation4 + $0x134] sm:$0xf] }
 0x450   : > { %v5025_v49 = vsub.f32 1.0, %v5024_v28  ;;  %v5011_v27 = vsel %vm5010_vm13, %v11891_v35, %v5007_v62  ;;  %v10103_v35 = vor.u32 %v11561_v16, %v10100_v47  ;;  %v10079_v62 = vor.u32 %v11555_v17, %v10076_v52  ;;  %v10010_v50 = vld [vmem:[#allocation4 + $0x160] sm:$0xf]  ;;  %v10028_v16 = vld [vmem:[#allocation4 + $0x1a0] sm:$0xf0] }
 0x451   : > { %v5016_v29 = vsel %vm5013_vm14, %v5015_v37, %v5011_v27  ;;  %v4968_v23 = vpop.f32.mrf.mxu1  ;;  %v10026_v27 = vld [vmem:[#allocation4 + $0x188] sm:$0xf]  ;;  %v10031_v15 = vor.u32 %v11543_v45, %v10028_v16 }
 0x452   : > { %v5026_v2 = vmul.f32 %v11893_v33, %v5025_v49  ;;  %v5038_v30 = vmul.f32 %v5016_v29, %v4917_v60  ;;  %v4969_v36 = vadd.f32 %v4968_v23, %v4956_v25  ;;  %5783 = vmatpush.bf16.msra.mxu3 %v10103_v35  ;;  %v10052_v60 = vld [vmem:[#allocation4 + $0x1d0] sm:$0xf0] }
 0x453   : > { %5758 = vmatpush.bf16.msrb.mxu1 %v10075_v4  ;;  %v10055_v0 = vor.u32 %v11549_v20, %v10052_v60  ;;  %v9964_v20 = vld [vmem:[#allocation4 + $0x118] sm:$0xf0] }
 0x454   : > { %v11895_v39 = vpop.eup %11894  ;;  %v5027_v8 = vadd.f32 %v11893_v33, %v5026_v2  ;;  %v5039_v59 = vadd.f32 %v5038_v30, %v13516_v31  ;;  %v5065_v5 = vadd.f32 %v4969_v36, %v787_v32  ;;  %v10027_v36 = vor.u32 %v11546_v9, %v10026_v27  ;;  %v9938_v27 = vld [vmem:[#allocation4 + $0xd0] sm:$0xf]  ;;  %v11523_v9 = vld [vmem:[#allocation4 + $0xe4] sm:$0xf0] }
 0x455   : > { %v13093_v1 = vadd.f32 1.0, %v11895_v39  ;;  %v10015_v31 = vor.u32 %v11538_v54, %v10012_v6  ;;  %v9967_v54 = vor.u32 %v11526_v46, %v9964_v20  ;;  %v11505_v20 = vld [vmem:[#allocation4 + $0x54] sm:$0xf0] }
 0x456   : > { %v5031_v7 = vsel %vm13089_vm10, %v11893_v33, %v5027_v8  ;;  %11896 = vtanh.f32 %v5039_v59  ;;  %v9823_v53 = vmul.f32 -1.442695, %v5065_v5  ;;  %v10051_v33 = vor.u32 %v11552_v14, %v10050_v58  ;;  %5784 = vmatpush.bf16.msra.mxu3 %v10079_v62  ;;  %v9986_v59 = vld [vmem:[#allocation4 + $0x130] sm:$0xf]  ;;  %v9962_v62 = vld [vmem:[#allocation4 + $0x100] sm:$0xf] }
 0x457   : > { %11898 = vrcp.f32 %v13093_v1  ;;  %v5036_v25 = vsel %vm5033_vm15, %v5035_v61, %v5031_v7  ;;  %v10011_v8 = vor.u32 %v11541_v48, %v10010_v50  ;;  %v5061_v61 = vand.u32 2147483648, %v13093_v1  ;;  %v11529_v58 = vld [vmem:[#allocation4 + $0x114] sm:$0xf0] }
 0x458   : > { %11900 = vpow2.f32 %v9823_v53  ;;  %v13098_v43 = vpop.f32.mrf.mxu3  ;;  %v5041_v37 = vsub.f32 1.0, %v5036_v25  ;;  %v5043_v23 = vmul.f32 %v5036_v25, %v12993_v55  ;;  %5759 = vmatpush.bf16.msrb.mxu1 %v10051_v33  ;;  %v5059_v53 = vand.u32 2147483647, %v13093_v1 }
 0x459   : > { %v4970_v28 = vpop.f32.mrf.mxu1  ;;  %v5062_v52 = vor.u32 1.1754944e-38, %v5061_v61  ;;  %v9987_v25 = vor.u32 %v11535_v11, %v9986_v59  ;;  %v4995_v14 = vadd.f32 %v13098_v43, %v4982_v57  ;;  %v9890_v11 = vld [vmem:[#allocation4 + $0x70] sm:$0xf]  ;;  %v9892_v57 = vld [vmem:[#allocation4 + $0x88] sm:$0xf0] }
 0x45a   : > { %5785 = vmatpush.bf16.msra.mxu3 %v10055_v0  ;;  %vm5060_vm7 = vcmp.eq.f32.partialorder %v5059_v53, 8.507059e+37 }
 0x45c   : > { %v11897_v49 = vpop.eup %11896  ;;  %5760 = vmatpush.bf16.msrb.mxu1 %v10027_v36  ;;  %v9914_v36 = vld [vmem:[#allocation4 + $0xa0] sm:$0xf] }
 0x45d   : > { %v11899_v32 = vpop.eup %11898  ;;  %v5042_v29 = vmul.f32 %v11897_v49, %v5041_v37  ;;  %v13519_v37 = vld [vmem:[#allocation31_spill] sm:$0xff]  ;;  %v9963_v49 = vor.u32 %v11529_v58, %v9962_v62 }
 0x45e   : > { %v11901_v2 = vpop.eup %11900  ;;  %v5051_v30 = vmul.f32 %v11899_v32, %v13093_v1  ;;  %vm5056_vm11 = vweird.f32 %v11899_v32  ;;  %5786 = vmatpush.bf16.msra.mxu3 %v10031_v15  ;;  %v816_v50 = vadd.f32 %v13519_v37, %v12359_v22  ;;  %v11517_v15 = vld [vmem:[#allocation4 + $0xb4] sm:$0xf0]  ;;  %v11586_v58 = vld [vmem:[#allocation4 + $0x2e4] sm:$0xf]  ;;  %v10178_v37 = vld [vmem:[#allocation4 + $0x2b0] sm:$0xf] }
 0x45f   : > { %v5044_v47 = vadd.f32 %v5043_v23, %v5042_v29  ;;  %v13102_v26 = vadd.f32 1.0, %v11901_v2  ;;  %v9940_v23 = vld [vmem:[#allocation4 + $0xe8] sm:$0xf0]  ;;  %v9939_v2 = vor.u32 %v11523_v9, %v9938_v27  ;;  %v11583_v27 = vld [vmem:[#allocation4 + $0x2c4] sm:$0xf0] }
 0x460   : > { %v5052_v35 = vsub.f32 1.0, %v5051_v30  ;;  %v4996_v39 = vpop.f32.mrf.mxu3  ;;  %v11580_v9 = vld [vmem:[#allocation4 + $0x2b4] sm:$0xf] }
 0x461   : > { %v13108_v5 = vsel %vm5093_vm3, %v5044_v47, %v12993_v55  ;;  %v5098_v56 = vsel %vm5093_vm3, %v5044_v47, 0.0  ;;  %11902 = vrcp.f32 %v13102_v26  ;;  %v9988_v55 = vld [vmem:[#allocation4 + $0x148] sm:$0xf0]  ;;  %vm5055_vm3 = vweird.f32 %v13093_v1  ;;  %v9916_v39 = vld [vmem:[#allocation4 + $0xb8] sm:$0xf0] }
 0x462   : > { %5099 = vst [vmem:[%s12106_s22 + $0x20] sm:$0xff] %v5098_v56  ;;  %v5053_v7 = vmul.f32 %v11899_v32, %v5052_v35  ;;  %v13119_v4 = vpack.c.bf16 %v13108_v5, %v13108_v5  ;;  %vm5057_vm12 = vmor %vm5055_vm3, %vm5056_vm11  ;;  %v9991_v28 = vor.u32 %v11532_v10, %v9988_v55  ;;  %v5081_v6 = vand.u32 2147483648, %v13102_v26  ;;  %v11514_v35 = vld [vmem:[#allocation4 + $0xa4] sm:$0xf]  ;;  %v11511_v10 = vld [vmem:[#allocation4 + $0x84] sm:$0xf0] }
 0x463   : > { %v5079_v16 = vand.u32 2147483647, %v13102_v26  ;;  %vm5075_vm9 = vweird.f32 %v13102_v26  ;;  %v9915_v56 = vor.u32 %v11517_v15, %v9914_v36  ;;  %v9919_v61 = vor.u32 %v11514_v35, %v9916_v39  ;;  %v11508_v55 = vld [vmem:[#allocation4 + $0x74] sm:$0xf]  ;;  %v10154_v15 = vld [vmem:[#allocation4 + $0x280] sm:$0xf] }
 0x464   : > { %v5054_v17 = vadd.f32 %v11899_v32, %v5053_v7  ;;  %5696 = vmatmul.bf16.vlgmr.msra.gmra.mxu0 %v13119_v4  ;;  %5722 = vmatmul.bf16.vlgmr.msrb.gmra.mxu2 %v13119_v4  ;;  %v9895_v62 = vor.u32 %v11508_v55, %v9892_v57  ;;  %v11577_v35 = vld [vmem:[#allocation4 + $0x294] sm:$0xf0]  ;;  %v11574_v39 = vld [vmem:[#allocation4 + $0x284] sm:$0xf]  ;;  %v10106_v55 = vld [vmem:[#allocation4 + $0x220] sm:$0xf] }
 0x465   : > { %5792 = vmatpush.bf16.msra.mxu0 %v10011_v8  ;;  %5818 = vmatpush.bf16.msrb.mxu2 %v10015_v31  ;;  %v5082_v8 = vor.u32 1.1754944e-38, %v5081_v6  ;;  %vm5080_vm14 = vcmp.eq.f32.partialorder %v5079_v16, 8.507059e+37  ;;  %v11499_v6 = vld [vmem:[#allocation4 + $0x24] sm:$0xf0]  ;;  %v9844_v16 = vld [vmem:[#allocation4 + $0x28] sm:$0xf0] }
 0x466   : > { %v5058_v33 = vsel %vm5057_vm12, %v11899_v32, %v5054_v17  ;;  %v11520_v32 = vld [vmem:[#allocation4 + $0xd4] sm:$0xf]  ;;  %v11565_v57 = vld [vmem:[#allocation4 + $0x234] sm:$0xf0] }
 0x467   : > { %v11903_v60 = vpop.eup %11902  ;;  %v5063_v1 = vsel %vm5060_vm7, %v5062_v52, %v5058_v33  ;;  %v9943_v30 = vor.u32 %v11520_v32, %v9940_v23  ;;  %v10202_v52 = vld [vmem:[#allocation4 + $0x2e0] sm:$0xf]  ;;  %v10180_v23 = vld [vmem:[#allocation4 + $0x2c8] sm:$0xf0] }
 0x468   : > { %v5071_v48 = vmul.f32 %v11903_v60, %v13102_v26  ;;  %v5085_v0 = vmul.f32 %v5063_v1, %v4995_v14  ;;  %vm5076_vm2 = vweird.f32 %v11903_v60  ;;  %v10204_v14 = vld [vmem:[#allocation4 + $0x2f8] sm:$0xf0]  ;;  %v9866_v33 = vld [vmem:[#allocation4 + $0x40] sm:$0xf] }
 0x469   : > { %5793 = vmatpush.bf16.msra.mxu0 %v9987_v25  ;;  %5819 = vmatpush.bf16.msrb.mxu2 %v9991_v28  ;;  %vm5077_vm13 = vmor %vm5075_vm9, %vm5076_vm2  ;;  %v11589_v25 = vld [vmem:[#allocation4 + $0x2f4] sm:$0xf0]  ;;  %v9891_v28 = vor.u32 %v11511_v10, %v9890_v11  ;;  %v9868_v1 = vld [vmem:[#allocation4 + $0x58] sm:$0xf0] }
 0x46a   : > { %v5072_v29 = vsub.f32 1.0, %v5071_v48  ;;  %v5086_v43 = vadd.f32 %v5085_v0, %v816_v50  ;;  %v11568_v11 = vld [vmem:[#allocation4 + $0x254] sm:$0xf]  ;;  %v10132_v10 = vld [vmem:[#allocation4 + $0x268] sm:$0xf0] }
 0x46c   : > { %v5073_v45 = vmul.f32 %v11903_v60, %v5072_v29  ;;  %11904 = vtanh.f32 %v5086_v43  ;;  %v9867_v43 = vor.u32 %v11505_v20, %v9866_v33  ;;  %v11553_v20 = vld [vmem:[#allocation4 + $0x1d4] sm:$0xf0] }
 0x46d   : > { %5794 = vmatpush.bf16.msra.mxu0 %v9963_v49  ;;  %5820 = vmatpush.bf16.msrb.mxu2 %v9967_v54  ;;  %v10203_v49 = vor.u32 %v11589_v25, %v10202_v52  ;;  %v10207_v54 = vor.u32 %v11586_v58, %v10204_v14  ;;  %v10107_v52 = vor.u32 %v11565_v57, %v10106_v55  ;;  %v11556_v58 = vld [vmem:[#allocation4 + $0x1f4] sm:$0xf]  ;;  %v10084_v14 = vld [vmem:[#allocation4 + $0x208] sm:$0xf0]  ;;  %v10312_v55 = vld [vmem:[#allocation4 + $0xd8] sm:$0xf0] }
 0x46e   : > { %v5074_v47 = vadd.f32 %v11903_v60, %v5073_v45  ;;  %v11496_v45 = vld [vmem:[#allocation4 + $0x14] sm:$0xf]  ;;  %v10087_v33 = vor.u32 %v11556_v58, %v10084_v14  ;;  %v10262_v14 = vld [vmem:[#allocation4 + $0x60] sm:$0xf] }
 0x470   : > { %v5078_v31 = vsel %vm5077_vm13, %v11903_v60, %v5074_v47  ;;  %v11502_v60 = vld [vmem:[#allocation4 + $0x44] sm:$0xf]  ;;  %v9847_v47 = vor.u32 %v11496_v45, %v9844_v16  ;;  %v10384_v45 = vld [vmem:[#allocation4 + $0x168] sm:$0xf0]  ;;  %v10358_v16 = vld [vmem:[#allocation4 + $0x120] sm:$0xf] }
 0x471   : > { %v5083_v59 = vsel %vm5080_vm14, %v5082_v8, %v5078_v31  ;;  %5795 = vmatpush.bf16.msra.mxu0 %v9939_v2  ;;  %5821 = vmatpush.bf16.msrb.mxu2 %v9943_v30  ;;  %v9871_v32 = vor.u32 %v11502_v60, %v9868_v1  ;;  %v10179_v2 = vor.u32 %v11583_v27, %v10178_v37  ;;  %v10156_v8 = vld [vmem:[#allocation4 + $0x298] sm:$0xf0]  ;;  %v11550_v60 = vld [vmem:[#allocation4 + $0x1c4] sm:$0xf]  ;;  %v10036_v27 = vld [vmem:[#allocation4 + $0x1a8] sm:$0xf0] }
 0x472   : > { %v11905_v7 = vpop.eup %11904  ;;  %v5088_v53 = vsub.f32 1.0, %v5083_v59  ;;  %v5090_v17 = vmul.f32 %v5083_v59, %v13024_v41  ;;  %v10183_v30 = vor.u32 %v11580_v9, %v10180_v23  ;;  %v10155_v31 = vor.u32 %v11577_v35, %v10154_v15  ;;  %v10060_v1 = vld [vmem:[#allocation4 + $0x1d8] sm:$0xf0]  ;;  %v11635_v23 = vld [vmem:[#allocation4 + $0x164] sm:$0xf0] }
 0x473   : > { %v10159_v59 = vor.u32 %v11574_v39, %v10156_v8  ;;  %v10063_v50 = vor.u32 %v11550_v60, %v10060_v1  ;;  %v10334_v39 = vld [vmem:[#allocation4 + $0xf0] sm:$0xf]  ;;  %v11623_v8 = vld [vmem:[#allocation4 + $0x104] sm:$0xf0]  ;;  %v10264_v60 = vld [vmem:[#allocation4 + $0x78] sm:$0xf0] }
 0x474   : > { %v5089_v26 = vmul.f32 %v11905_v7, %v5088_v53  ;;  %5748 = vmatmul.bf16.vlgmr.msrb.gmra.mxu0 %v13119_v4  ;;  %5774 = vmatmul.bf16.vlgmr.msra.gmra.mxu2 %v13119_v4  ;;  %v10135_v53 = vor.u32 %v11568_v11, %v10132_v10  ;;  %v11617_v11 = vld [vmem:[#allocation4 + $0xd4] sm:$0xf0]  ;;  %v11614_v10 = vld [vmem:[#allocation4 + $0xc4] sm:$0xf] }
 0x475   : > { %5796 = vmatpush.bf16.msra.mxu0 %v9915_v56  ;;  %5822 = vmatpush.bf16.msrb.mxu2 %v9919_v61  ;;  %v10130_v56 = vld [vmem:[#allocation4 + $0x250] sm:$0xf]  ;;  %v11571_v61 = vld [vmem:[#allocation4 + $0x264] sm:$0xf0]  ;;  %v10315_v57 = vor.u32 %v11614_v10, %v10312_v55  ;;  %v11633_v10 = vld [vmem:[#allocation4 + $0x15c] sm:$0xf] }
 0x476   : > { %v5091_v46 = vadd.f32 %v5090_v17, %v5089_v26  ;;  %v10131_v7 = vor.u32 %v11571_v61, %v10130_v56  ;;  %v11562_v26 = vld [vmem:[#allocation4 + $0x224] sm:$0xf]  ;;  %v10108_v17 = vld [vmem:[#allocation4 + $0x238] sm:$0xf0]  ;;  %v10310_v61 = vld [vmem:[#allocation4 + $0xc0] sm:$0xf] }
 0x477   : > { %v10111_v25 = vor.u32 %v11562_v26, %v10108_v17  ;;  %v10286_v26 = vld [vmem:[#allocation4 + $0x90] sm:$0xf]  ;;  %v11611_v17 = vld [vmem:[#allocation4 + $0xa4] sm:$0xf0] }
 0x478   : > { %v13140_v48 = vsel %vm5095_vm4, %v5091_v46, %v13024_v41  ;;  %v5100_v0 = vsel %vm5095_vm4, %v5091_v46, 0.0  ;;  %v9842_v41 = vld [vmem:[#allocation4 + $0x10] sm:$0xf]  ;;  %v10058_v46 = vld [vmem:[#allocation4 + $0x1c0] sm:$0xf] }
 0x479   : > { %5101 = vst [vmem:[%s12111_s27 + $0x18] sm:$0xff] %v5100_v0  ;;  %5797 = vmatpush.bf16.msra.mxu0 %v9891_v28  ;;  %5823 = vmatpush.bf16.msrb.mxu2 %v9895_v62  ;;  %v13148_v29 = vpack.c.bf16 %v13140_v48, %v13140_v48  ;;  %v9843_v36 = vor.u32 %v11499_v6, %v9842_v41  ;;  %v10082_v28 = vld [vmem:[#allocation4 + $0x1f0] sm:$0xf]  ;;  %v11559_v62 = vld [vmem:[#allocation4 + $0x204] sm:$0xf0] }
 0x47a   : > { %v10059_v37 = vor.u32 %v11553_v20, %v10058_v46  ;;  %v10034_v0 = vld [vmem:[#allocation4 + $0x190] sm:$0xf]  ;;  %v11632_v41 = vld [vmem:[#allocation4 + $0x154] sm:$0xf] }
 0x47b   : > { %5709 = vmatmul.bf16.vlgmr.msra.gmra.mxu1 %v13148_v29  ;;  %5735 = vmatmul.bf16.vlgmr.msrb.gmra.mxu3 %v13148_v29 }
 0x47c   : > { %5805 = vmatpush.bf16.msra.mxu1 %v10203_v49  ;;  %5831 = vmatpush.bf16.msrb.mxu3 %v10207_v54  ;;  %v11547_v49 = vld [vmem:[#allocation4 + $0x1a4] sm:$0xf0]  ;;  %v11544_v54 = vld [vmem:[#allocation4 + $0x194] sm:$0xf] }
 0x47d   : > { %5798 = vmatpush.bf16.msra.mxu0 %v9867_v43  ;;  %5824 = vmatpush.bf16.msrb.mxu2 %v9871_v32  ;;  %v10035_v9 = vor.u32 %v11547_v49, %v10034_v0  ;;  %v10039_v43 = vor.u32 %v11544_v54, %v10036_v27  ;;  %v10382_v32 = vld [vmem:[#allocation4 + $0x150] sm:$0xf]  ;;  %v11680_v0 = vld [vmem:[#allocation4 + $0x2d4] sm:$0xf]  ;;  %v10576_v54 = vld [vmem:[#allocation4 + $0x2e8] sm:$0xf0] }
 0x47e   : > { %v10383_v6 = vor.u32 %v11635_v23, %v10382_v32  ;;  %v10238_v27 = vld [vmem:[#allocation4 + $0x30] sm:$0xf]  ;;  %v11596_v23 = vld [vmem:[#allocation4 + $0x34] sm:$0xf] }
 0x480   : > { %5806 = vmatpush.bf16.msra.mxu1 %v10179_v2  ;;  %5832 = vmatpush.bf16.msrb.mxu3 %v10183_v30  ;;  %v11629_v2 = vld [vmem:[#allocation4 + $0x134] sm:$0xf0]  ;;  %v10387_v30 = vor.u32 %v11632_v41, %v10384_v45  ;;  %v10240_v41 = vld [vmem:[#allocation4 + $0x48] sm:$0xf0] }
 0x481   : > { %5799 = vmatpush.bf16.msra.mxu0 %v9843_v36  ;;  %5825 = vmatpush.bf16.msrb.mxu2 %v9847_v47  ;;  %v11626_v36 = vld [vmem:[#allocation4 + $0x124] sm:$0xf]  ;;  %v10360_v47 = vld [vmem:[#allocation4 + $0x138] sm:$0xf0]  ;;  %v10359_v15 = vor.u32 %v11629_v2, %v10358_v16  ;;  %v10550_v16 = vld [vmem:[#allocation4 + $0x2a0] sm:$0xf] }
 0x482   : > { %v10363_v35 = vor.u32 %v11626_v36, %v10360_v47  ;;  %v11677_v2 = vld [vmem:[#allocation4 + $0x2b4] sm:$0xf0]  ;;  %v10552_v47 = vld [vmem:[#allocation4 + $0x2b8] sm:$0xf0] }
 0x483   : > { %v10551_v36 = vor.u32 %v11677_v2, %v10550_v16  ;;  %v11621_v16 = vld [vmem:[#allocation4 + $0xfc] sm:$0xf] }
 0x484   : > { %5800 = vmatmul.bf16.vlgmr.msra.gmra.mxu0 %v13119_v4  ;;  %5807 = vmatpush.bf16.msra.mxu1 %v10155_v31  ;;  %v11620_v31 = vld [vmem:[#allocation4 + $0xf4] sm:$0xf] }
 0x485   : > { %5826 = vmatmul.bf16.vlgmr.msrb.gmra.mxu2 %v13119_v4  ;;  %5833 = vmatpush.bf16.msrb.mxu3 %v10159_v59  ;;  %v10083_v4 = vor.u32 %v11559_v62, %v10082_v28  ;;  %v10336_v59 = vld [vmem:[#allocation4 + $0x108] sm:$0xf0] }
 0x486   : > { %6534 = vmatpush.bf16.msrb.mxu0 %v10383_v6  ;;  %6560 = vmatpush.bf16.msra.mxu2 %v10387_v30  ;;  %v10339_v56 = vor.u32 %v11620_v31, %v10336_v59  ;;  %v10288_v28 = vld [vmem:[#allocation4 + $0xa8] sm:$0xf0]  ;;  %v10243_v6 = vor.u32 %v11596_v23, %v10240_v41  ;;  %v11674_v30 = vld [vmem:[#allocation4 + $0x2a4] sm:$0xf]  ;;  %v10216_v59 = vld [vmem:[#allocation4 + $0x18] sm:$0xf0] }
 0x488   : > { %5808 = vmatpush.bf16.msra.mxu1 %v10131_v7 }
 0x489   : > { %5834 = vmatpush.bf16.msrb.mxu3 %v10135_v53  ;;  %v10311_v53 = vor.u32 %v11617_v11, %v10310_v61  ;;  %v11636_v11 = vld [vmem:[#allocation4 + $0x16c] sm:$0xf0] }
 0x48a   : > { %6535 = vmatpush.bf16.msrb.mxu0 %v10359_v15  ;;  %6561 = vmatpush.bf16.msra.mxu2 %v10363_v35  ;;  %v10214_v15 = vld [vmem:[#allocation4] sm:$0xf]  ;;  %v11593_v35 = vld [vmem:[#allocation4 + $0x14] sm:$0xf0] }
 0x48b   : > { %5761 = vmatmul.bf16.vlgmr.msrb.gmra.mxu1 %v13148_v29  ;;  %5787 = vmatmul.bf16.vlgmr.msra.gmra.mxu3 %v13148_v29  ;;  %v10215_v31 = vor.u32 %v11593_v35, %v10214_v15  ;;  %v10478_v15 = vld [vmem:[#allocation4 + $0x210] sm:$0xf]  ;;  %v11659_v35 = vld [vmem:[#allocation4 + $0x224] sm:$0xf0] }
 0x48c   : > { %5809 = vmatpush.bf16.msra.mxu1 %v10107_v52  ;;  %v11608_v52 = vld [vmem:[#allocation4 + $0x94] sm:$0xf] }
 0x48d   : > { %5835 = vmatpush.bf16.msrb.mxu3 %v10111_v25  ;;  %v10287_v25 = vor.u32 %v11611_v17, %v10286_v26  ;;  %v10291_v62 = vor.u32 %v11608_v52, %v10288_v28  ;;  %v10526_v26 = vld [vmem:[#allocation4 + $0x270] sm:$0xf]  ;;  %v11671_v17 = vld [vmem:[#allocation4 + $0x284] sm:$0xf0]  ;;  %v11668_v52 = vld [vmem:[#allocation4 + $0x274] sm:$0xf] }
 0x48e   : > { %6562 = vmatpush.bf16.msra.mxu2 %v10339_v56  ;;  %v10390_v56 = vld [vmem:[#allocation4 + $0x158] sm:$0xf]  ;;  %v10528_v28 = vld [vmem:[#allocation4 + $0x288] sm:$0xf0] }
 0x48f   : > { %v10391_v55 = vor.u32 %v11636_v11, %v10390_v56  ;;  %v10318_v11 = vld [vmem:[#allocation4 + $0xc8] sm:$0xf] }
 0x490   : > { %5810 = vmatpush.bf16.msra.mxu1 %v10083_v4  ;;  %v11605_v4 = vld [vmem:[#allocation4 + $0x74] sm:$0xf0] }
 0x491   : > { %5836 = vmatpush.bf16.msrb.mxu3 %v10087_v33  ;;  %v11602_v33 = vld [vmem:[#allocation4 + $0x64] sm:$0xf]  ;;  %v10263_v20 = vor.u32 %v11605_v4, %v10262_v14  ;;  %v10366_v14 = vld [vmem:[#allocation4 + $0x128] sm:$0xf]  ;;  %v11630_v4 = vld [vmem:[#allocation4 + $0x13c] sm:$0xf0] }
 0x492   : > { %6563 = vmatpush.bf16.msra.mxu2 %v10315_v57  ;;  %v10267_v1 = vor.u32 %v11602_v33, %v10264_v60  ;;  %v11627_v33 = vld [vmem:[#allocation4 + $0x12c] sm:$0xf] }
 0x494   : > { %5811 = vmatpush.bf16.msra.mxu1 %v10059_v37  ;;  %v10574_v37 = vld [vmem:[#allocation4 + $0x2d0] sm:$0xf] }
 0x495   : > { %5837 = vmatpush.bf16.msrb.mxu3 %v10063_v50  ;;  %v11683_v50 = vld [vmem:[#allocation4 + $0x2e4] sm:$0xf0] }
 0x496   : > { %6564 = vmatpush.bf16.msra.mxu2 %v10291_v62  ;;  %v10575_v49 = vor.u32 %v11683_v50, %v10574_v37  ;;  %v10531_v62 = vor.u32 %v11668_v52, %v10528_v28  ;;  %v10502_v50 = vld [vmem:[#allocation4 + $0x240] sm:$0xf] }
 0x498   : > { %5812 = vmatpush.bf16.msra.mxu1 %v10035_v9  ;;  %v11599_v9 = vld [vmem:[#allocation4 + $0x44] sm:$0xf0] }
 0x499   : > { %5838 = vmatpush.bf16.msrb.mxu3 %v10039_v43  ;;  %v10579_v43 = vor.u32 %v11680_v0, %v10576_v54  ;;  %v10239_v32 = vor.u32 %v11599_v9, %v10238_v27  ;;  %v11665_v0 = vld [vmem:[#allocation4 + $0x254] sm:$0xf0]  ;;  %v10504_v9 = vld [vmem:[#allocation4 + $0x258] sm:$0xf0] }
 0x49a   : > { %6565 = vmatpush.bf16.msra.mxu2 %v10267_v1  ;;  %v10503_v27 = vor.u32 %v11665_v0, %v10502_v50  ;;  %v10294_v0 = vld [vmem:[#allocation4 + $0x98] sm:$0xf] }
 0x49b   : > { %5813 = vmatmul.bf16.vlgmr.msra.gmra.mxu1 %v13148_v29 }
 0x49c   : > { %5839 = vmatmul.bf16.vlgmr.msrb.gmra.mxu3 %v13148_v29  ;;  %v10335_v29 = vor.u32 %v11623_v8, %v10334_v39  ;;  %6547 = vmatpush.bf16.msrb.mxu1 %v10575_v49  ;;  %v10555_v8 = vor.u32 %v11674_v30, %v10552_v47  ;;  %v11662_v49 = vld [vmem:[#allocation4 + $0x244] sm:$0xf]  ;;  %v10344_v30 = vld [vmem:[#allocation4 + $0x110] sm:$0xf0] }
 0x49d   : > { %6573 = vmatpush.bf16.msra.mxu3 %v10579_v43  ;;  %v13521_v43 = vld [vmem:[#allocation15_spill] sm:$0xff]  ;;  %v10347_v47 = vor.u32 %v11621_v16, %v10344_v30  ;;  %v10270_v30 = vld [vmem:[#allocation4 + $0x68] sm:$0xf] }
 0x49e   : > { %6536 = vmatpush.bf16.msrb.mxu0 %v10335_v29  ;;  %6566 = vmatpush.bf16.msra.mxu2 %v10243_v6  ;;  %v11590_v29 = vld [vmem:[#allocation4 + $0x4] sm:$0xf]  ;;  %v10507_v6 = vor.u32 %v11662_v49, %v10504_v9  ;;  %v11612_v49 = vld [vmem:[#allocation4 + $0xac] sm:$0xf0]  ;;  %v10296_v9 = vld [vmem:[#allocation4 + $0xb0] sm:$0xf0] }
 0x49f   : > { %v10219_v61 = vor.u32 %v11590_v29, %v10216_v59  ;;  %v10480_v29 = vld [vmem:[#allocation4 + $0x228] sm:$0xf0] }
 0x4a0   : > { %6548 = vmatpush.bf16.msrb.mxu1 %v10551_v36 }
 0x4a1   : > { %6574 = vmatpush.bf16.msra.mxu3 %v10555_v8  ;;  %v11656_v8 = vld [vmem:[#allocation4 + $0x214] sm:$0xf] }
 0x4a2   : > { %6537 = vmatpush.bf16.msrb.mxu0 %v10311_v53  ;;  %v10392_v53 = vld [vmem:[#allocation4 + $0x170] sm:$0xf0]  ;;  %6567 = vmatpush.bf16.msra.mxu2 %v10219_v61  ;;  %v10483_v61 = vor.u32 %v11656_v8, %v10480_v29 }
 0x4a3   : > { %v10395_v57 = vor.u32 %v11633_v10, %v10392_v53  ;;  %v11618_v10 = vld [vmem:[#allocation4 + $0xdc] sm:$0xf0] }
 0x4a5   : > { %6575 = vmatpush.bf16.msra.mxu3 %v10531_v62 }
 0x4a6   : > { %6538 = vmatpush.bf16.msrb.mxu0 %v10287_v25  ;;  %v10527_v25 = vor.u32 %v11671_v17, %v10526_v26  ;;  %6612 = vmatpush.bf16.msrb.mxu2 %v10395_v57  ;;  %v11615_v57 = vld [vmem:[#allocation4 + $0xcc] sm:$0xf]  ;;  %v10320_v26 = vld [vmem:[#allocation4 + $0xe0] sm:$0xf0] }
 0x4a7   : > { %v13522_v17 = vld [vmem:[#allocation16_spill] sm:$0xff]  ;;  %v10323_v62 = vor.u32 %v11615_v57, %v10320_v26  ;;  %v10582_v26 = vld [vmem:[#allocation4 + $0x2d8] sm:$0xf] }
 0x4a8   : > { %6549 = vmatpush.bf16.msrb.mxu1 %v10527_v25  ;;  %v593_v52 = vadd.f32 %v13522_v17, %v12293_v44  ;;  %v11684_v17 = vld [vmem:[#allocation4 + $0x2ec] sm:$0xf0] }
 0x4a9   : > { %6576 = vmatpush.bf16.msra.mxu3 %v10507_v6 }
 0x4aa   : > { %6539 = vmatpush.bf16.msrb.mxu0 %v10263_v20  ;;  %v10368_v20 = vld [vmem:[#allocation4 + $0x140] sm:$0xf0] }
 0x4ab   : > { %v10371_v37 = vor.u32 %v11627_v33, %v10368_v20  ;;  %v10456_v20 = vld [vmem:[#allocation4 + $0x1f8] sm:$0xf0] }
 0x4ac   : > { %6550 = vmatpush.bf16.msrb.mxu1 %v10503_v27  ;;  %v10295_v27 = vor.u32 %v11612_v49, %v10294_v0  ;;  %v10558_v49 = vld [vmem:[#allocation4 + $0x2a8] sm:$0xf] }
 0x4ad   : > { %6613 = vmatpush.bf16.msrb.mxu2 %v10371_v37  ;;  %6577 = vmatpush.bf16.msra.mxu3 %v10483_v61  ;;  %v11638_v61 = vld [vmem:[#allocation4 + $0x184] sm:$0xf] }
 0x4ae   : > { %6540 = vmatpush.bf16.msrb.mxu0 %v10239_v32  ;;  %v564_v32 = vadd.f32 %v13521_v43, %v12289_v42 }
 0x4b1   : > { %6614 = vmatpush.bf16.msrb.mxu2 %v10347_v47  ;;  %v11603_v47 = vld [vmem:[#allocation4 + $0x6c] sm:$0xf] }
 0x4b2   : > { %6541 = vmatpush.bf16.msrb.mxu0 %v10215_v31  ;;  %v10479_v31 = vor.u32 %v11659_v35, %v10478_v15 }
 0x4b4   : > { %6551 = vmatpush.bf16.msrb.mxu1 %v10479_v31  ;;  %v10272_v31 = vld [vmem:[#allocation4 + $0x80] sm:$0xf0] }
 0x4b5   : > { %6615 = vmatpush.bf16.msrb.mxu2 %v10323_v62  ;;  %v10275_v29 = vor.u32 %v11603_v47, %v10272_v31  ;;  %v10584_v62 = vld [vmem:[#allocation4 + $0x2f0] sm:$0xf0] }
 0x4b6   : > { %6586 = vmatpush.bf16.msra.mxu0 %v10391_v55  ;;  %v10319_v55 = vor.u32 %v11618_v10, %v10318_v11 }
 0x4e1   : > { %v13158_v7 = vpop.f32.mrf.mxu0 }
 0x4e2   : > { %v5698_v60 = vadd.f32 %v13158_v7, %v12377_v3  ;;  %v11624_v7 = vld [vmem:[#allocation4 + $0x10c] sm:$0xf0] }
 0x4e7   : > { %v13160_v58 = vpop.f32.mrf.mxu2 }
 0x4e8   : > { %v5724_v59 = vadd.f32 %v13160_v58, %v12393_v38  ;;  %v10454_v58 = vld [vmem:[#allocation4 + $0x1e0] sm:$0xf] }
 0x4e9   : > { %v5699_v46 = vpop.f32.mrf.mxu0 }
 0x4ea   : > { %v10367_v46 = vor.u32 %v11630_v4, %v10366_v14  ;;  %v11653_v14 = vld [vmem:[#allocation4 + $0x1f4] sm:$0xf0]  ;;  %v11650_v4 = vld [vmem:[#allocation4 + $0x1e4] sm:$0xf] }
 0x4eb   : > { %v10459_v50 = vor.u32 %v11650_v4, %v10456_v20  ;;  %v10248_v20 = vld [vmem:[#allocation4 + $0x50] sm:$0xf0] }
 0x4ec   : > { %6587 = vmatpush.bf16.msra.mxu0 %v10367_v46  ;;  %v10455_v46 = vor.u32 %v11653_v14, %v10454_v58  ;;  %v10246_v58 = vld [vmem:[#allocation4 + $0x38] sm:$0xf] }
 0x4ed   : > { %6578 = vmatpush.bf16.msra.mxu3 %v10459_v50 }
 0x4ee   : > { %6552 = vmatpush.bf16.msrb.mxu1 %v10455_v46  ;;  %v11597_v46 = vld [vmem:[#allocation4 + $0x3c] sm:$0xf] }
 0x4ef   : > { %v5725_v45 = vpop.f32.mrf.mxu2  ;;  %v10251_v0 = vor.u32 %v11597_v46, %v10248_v20  ;;  %v11666_v20 = vld [vmem:[#allocation4 + $0x25c] sm:$0xf0] }
 0x4f0   : > { %v10342_v45 = vld [vmem:[#allocation4 + $0xf8] sm:$0xf] }
 0x4f1   : > { %v13162_v39 = vpop.f32.mrf.mxu0  ;;  %v10343_v2 = vor.u32 %v11624_v7, %v10342_v45  ;;  %v11644_v45 = vld [vmem:[#allocation4 + $0x1b4] sm:$0xf]  ;;  %v10432_v7 = vld [vmem:[#allocation4 + $0x1c8] sm:$0xf0] }
 0x4f3   : > { %6588 = vmatpush.bf16.msra.mxu0 %v10343_v2  ;;  %v10435_v2 = vor.u32 %v11644_v45, %v10432_v7  ;;  %v11594_v45 = vld [vmem:[#allocation4 + $0x1c] sm:$0xf0] }
 0x4f5   : > { %6579 = vmatpush.bf16.msra.mxu3 %v10435_v2 }
 0x4f7   : > { %v13166_v1 = vpop.f32.mrf.mxu2  ;;  %6589 = vmatpush.bf16.msra.mxu0 %v10319_v55 }
 0x4f8   : > { %v5710_v54 = vpop.f32.mrf.mxu1 }
 0x4f9   : > { %v5711_v23 = vadd.f32 %v5710_v54, %v5698_v60  ;;  %v5751_v41 = vpop.f32.mrf.mxu0  ;;  %v11609_v54 = vld [vmem:[#allocation4 + $0x9c] sm:$0xf] }
 0x4fa   : > { %v11647_v41 = vld [vmem:[#allocation4 + $0x1c4] sm:$0xf0] }
 0x4fb   : > { %v5844_v36 = vadd.f32 %v5711_v23, %v564_v32  ;;  %v10299_v32 = vor.u32 %v11609_v54, %v10296_v9  ;;  %v10430_v23 = vld [vmem:[#allocation4 + $0x1b0] sm:$0xf]  ;;  %6590 = vmatpush.bf16.msra.mxu0 %v10295_v27  ;;  %v11678_v54 = vld [vmem:[#allocation4 + $0x2bc] sm:$0xf0]  ;;  %v5776_v27 = vadd.f32 %v13166_v1, %v12411_v24 }
 0x4fc   : > { %v10431_v6 = vor.u32 %v11647_v41, %v10430_v23  ;;  %v10559_v9 = vor.u32 %v11678_v54, %v10558_v49  ;;  %v10222_v23 = vld [vmem:[#allocation4 + $0x8] sm:$0xf] }
 0x4fd   : > { %v10208_v56 = vmul.f32 -1.442695, %v5844_v36  ;;  %6616 = vmatpush.bf16.msrb.mxu2 %v10299_v32  ;;  %v11606_v36 = vld [vmem:[#allocation4 + $0x7c] sm:$0xf0]  ;;  %v10560_v32 = vld [vmem:[#allocation4 + $0x2c0] sm:$0xf0] }
 0x4fe   : > { %v5736_v53 = vpop.f32.mrf.mxu3  ;;  %6553 = vmatpush.bf16.msrb.mxu1 %v10431_v6  ;;  %v10271_v8 = vor.u32 %v11606_v36, %v10270_v30  ;;  %v11591_v30 = vld [vmem:[#allocation4 + $0xc] sm:$0xf]  ;;  %v10224_v36 = vld [vmem:[#allocation4 + $0x20] sm:$0xf0] }
 0x4ff   : > { %11906 = vpow2.f32 %v10208_v56  ;;  %v5737_v25 = vadd.f32 %v5736_v53, %v5724_v59  ;;  %v5777_v28 = vpop.f32.mrf.mxu2  ;;  %v10406_v59 = vld [vmem:[#allocation4 + $0x180] sm:$0xf]  ;;  %v11641_v56 = vld [vmem:[#allocation4 + $0x194] sm:$0xf0]  ;;  %v10408_v53 = vld [vmem:[#allocation4 + $0x198] sm:$0xf0] }
 0x500   : > { %v5712_v33 = vpop.f32.mrf.mxu1  ;;  %6591 = vmatpush.bf16.msra.mxu0 %v10271_v8  ;;  %v10407_v57 = vor.u32 %v11641_v56, %v10406_v59  ;;  %v10583_v28 = vor.u32 %v11684_v17, %v10582_v26  ;;  %v10227_v8 = vor.u32 %v11591_v30, %v10224_v36  ;;  %v13523_v56 = vld [vmem:[#allocation9_spill] sm:$0xff] }
 0x501   : > { %v5864_v60 = vadd.f32 %v5737_v25, %v593_v52  ;;  %v13174_v37 = vpop.f32.mrf.mxu0  ;;  %6617 = vmatpush.bf16.msrb.mxu2 %v10275_v29  ;;  %v11681_v52 = vld [vmem:[#allocation4 + $0x2dc] sm:$0xf]  ;;  %v10411_v25 = vor.u32 %v11638_v61, %v10408_v53  ;;  %v11600_v33 = vld [vmem:[#allocation4 + $0x4c] sm:$0xf0]  ;;  %v10534_v53 = vld [vmem:[#allocation4 + $0x278] sm:$0xf] }
 0x502   : > { %6554 = vmatpush.bf16.msrb.mxu1 %v10407_v57  ;;  %v10587_v4 = vor.u32 %v11681_v52, %v10584_v62  ;;  %v10247_v50 = vor.u32 %v11600_v33, %v10246_v58  ;;  %v11669_v57 = vld [vmem:[#allocation4 + $0x27c] sm:$0xf]  ;;  %v10536_v26 = vld [vmem:[#allocation4 + $0x290] sm:$0xf0]  ;;  %v5750_v58 = vadd.f32 %v13162_v39, %v12446_v18 }
 0x503   : > { %v10209_v43 = vmul.f32 -1.442695, %v5864_v60  ;;  %6580 = vmatpush.bf16.msra.mxu3 %v10411_v25 }
 0x504   : > { %6592 = vmatpush.bf16.msra.mxu0 %v10247_v50  ;;  %v11663_v50 = vld [vmem:[#allocation4 + $0x24c] sm:$0xf] }
 0x505   : > { %v11907_v16 = vpop.eup %11906  ;;  %11908 = vpow2.f32 %v10209_v43  ;;  %v11675_v43 = vld [vmem:[#allocation4 + $0x2ac] sm:$0xf]  ;;  %6618 = vmatpush.bf16.msrb.mxu2 %v10251_v0  ;;  %v10512_v0 = vld [vmem:[#allocation4 + $0x260] sm:$0xf0] }
 0x506   : > { %v13176_v15 = vadd.f32 1.0, %v11907_v16  ;;  %v5738_v35 = vpop.f32.mrf.mxu3  ;;  %6599 = vmatpush.bf16.msra.mxu1 %v10583_v28  ;;  %v10563_v2 = vor.u32 %v11675_v43, %v10560_v32  ;;  %v10539_v28 = vor.u32 %v11669_v57, %v10536_v26  ;;  %v10462_v57 = vld [vmem:[#allocation4 + $0x1e8] sm:$0xf]  ;;  %v11654_v26 = vld [vmem:[#allocation4 + $0x1fc] sm:$0xf0] }
 0x507   : > { %6625 = vmatpush.bf16.msrb.mxu3 %v10587_v4  ;;  %v10223_v35 = vor.u32 %v11594_v45, %v10222_v23  ;;  %v10510_v4 = vld [vmem:[#allocation4 + $0x248] sm:$0xf] }
 0x508   : > { %11910 = vrcp.f32 %v13176_v15  ;;  %v13179_v11 = vpop.f32.mrf.mxu2  ;;  %v13181_v10 = vpop.f32.mrf.mxu1  ;;  %v5858_v29 = vand.u32 2147483647, %v13176_v15  ;;  %v5860_v59 = vand.u32 2147483648, %v13176_v15  ;;  %vm5854_vm1 = vweird.f32 %v13176_v15 }
 0x509   : > { %v5803_v55 = vpop.f32.mrf.mxu0  ;;  %6593 = vmatpush.bf16.msra.mxu0 %v10223_v35  ;;  %6619 = vmatpush.bf16.msrb.mxu2 %v10227_v8  ;;  %v5763_v49 = vadd.f32 %v13181_v10, %v5750_v58  ;;  %v5828_v40 = vadd.f32 %v13179_v11, %v12501_v63  ;;  %v11622_v11 = vld [vmem:[#allocation4 + $0x104] sm:$0xf] }
 0x50a   : > { %6600 = vmatpush.bf16.msra.mxu1 %v10559_v9  ;;  %v11672_v55 = vld [vmem:[#allocation4 + $0x28c] sm:$0xf0]  ;;  %v5861_v39 = vor.u32 1.1754944e-38, %v5860_v59  ;;  %vm5859_vm10 = vcmp.eq.f32.partialorder %v5858_v29, 8.507059e+37  ;;  %v13525_v59 = vld [vmem:[#allocation28_spill] sm:$0xff] }
 0x50b   : > { %v11909_v14 = vpop.eup %11908  ;;  %6626 = vmatpush.bf16.msrb.mxu3 %v10563_v2  ;;  %v10535_v25 = vor.u32 %v11672_v55, %v10534_v53  ;;  %v11657_v2 = vld [vmem:[#allocation4 + $0x21c] sm:$0xf] }
 0x50c   : > { %v13183_v60 = vadd.f32 1.0, %v11909_v14  ;;  %v5802_v14 = vadd.f32 %v13174_v37, %v12495_v21  ;;  %v10515_v37 = vor.u32 %v11663_v50, %v10512_v0  ;;  %v11645_v50 = vld [vmem:[#allocation4 + $0x1bc] sm:$0xf]  ;;  %v10440_v0 = vld [vmem:[#allocation4 + $0x1d0] sm:$0xf0] }
 0x50e   : > { %v11911_v41 = vpop.eup %11910  ;;  %11912 = vrcp.f32 %v13183_v60  ;;  %v5788_v6 = vpop.f32.mrf.mxu3  ;;  %6601 = vmatpush.bf16.msra.mxu1 %v10535_v25  ;;  %v5880_v43 = vand.u32 2147483648, %v13183_v60  ;;  %vm5874_vm11 = vweird.f32 %v13183_v60  ;;  %v11651_v25 = vld [vmem:[#allocation4 + $0x1ec] sm:$0xf] }
 0x50f   : > { %v5850_v7 = vmul.f32 %v11911_v41, %v13176_v15  ;;  %v5789_v16 = vadd.f32 %v5788_v6, %v5776_v27  ;;  %vm5855_vm4 = vweird.f32 %v11911_v41  ;;  %6627 = vmatpush.bf16.msrb.mxu3 %v10539_v28  ;;  %v10511_v27 = vor.u32 %v11666_v20, %v10510_v4  ;;  %v13524_v15 = vld [vmem:[#allocation17_spill] sm:$0xff]  ;;  %v10464_v28 = vld [vmem:[#allocation4 + $0x200] sm:$0xf0] }
 0x510   : > { %v5829_v47 = vpop.f32.mrf.mxu2  ;;  %v5764_v1 = vpop.f32.mrf.mxu1  ;;  %vm5856_vm0 = vmor %vm5854_vm1, %vm5855_vm4  ;;  %v622_v23 = vadd.f32 %v13524_v15, %v12305_v51  ;;  %v5881_v53 = vor.u32 1.1754944e-38, %v5880_v43  ;;  %v11648_v20 = vld [vmem:[#allocation4 + $0x1cc] sm:$0xf0]  ;;  %v10414_v43 = vld [vmem:[#allocation4 + $0x188] sm:$0xf] }
 0x511   : > { %v5851_v31 = vsub.f32 1.0, %v5850_v7  ;;  %v5891_v61 = vadd.f32 %v5789_v16, %v13523_v56  ;;  %v10486_v7 = vld [vmem:[#allocation4 + $0x218] sm:$0xf]  ;;  %v11660_v16 = vld [vmem:[#allocation4 + $0x22c] sm:$0xf0] }
 0x512   : > { %6602 = vmatpush.bf16.msra.mxu1 %v10511_v27  ;;  %v10488_v47 = vld [vmem:[#allocation4 + $0x230] sm:$0xf0]  ;;  %v5878_v1 = vand.u32 2147483647, %v13183_v60  ;;  %v10487_v35 = vor.u32 %v11660_v16, %v10486_v7  ;;  %v10443_v27 = vor.u32 %v11645_v50, %v10440_v0  ;;  %v11639_v7 = vld [vmem:[#allocation4 + $0x18c] sm:$0xf] }
 0x513   : > { %v5852_v17 = vmul.f32 %v11911_v41, %v5851_v31  ;;  %v10210_v52 = vmul.f32 -1.442695, %v5891_v61  ;;  %6628 = vmatpush.bf16.msrb.mxu3 %v10515_v37  ;;  %v10416_v16 = vld [vmem:[#allocation4 + $0x1a0] sm:$0xf0] }
 0x514   : > { %v11913_v62 = vpop.eup %11912  ;;  %vm5879_vm12 = vcmp.eq.f32.partialorder %v5878_v1, 8.507059e+37  ;;  %v10419_v1 = vor.u32 %v11639_v7, %v10416_v16 }
 0x515   : > { %v5870_v33 = vmul.f32 %v11913_v62, %v13183_v60  ;;  %v5853_v46 = vadd.f32 %v11911_v41, %v5852_v17  ;;  %11914 = vpow2.f32 %v10210_v52  ;;  %vm5875_vm15 = vweird.f32 %v11913_v62 }
 0x516   : > { %v5790_v54 = vpop.f32.mrf.mxu3  ;;  %vm13206_vm3 = vmor %vm5874_vm11, %vm5875_vm15  ;;  %6603 = vmatpush.bf16.msra.mxu1 %v10487_v35  ;;  %v10463_v60 = vor.u32 %v11654_v26, %v10462_v57  ;;  %v11628_v57 = vld [vmem:[#allocation4 + $0x134] sm:$0xf] }
 0x517   : > { %v5871_v9 = vsub.f32 1.0, %v5870_v33  ;;  %v5857_v32 = vsel %vm5856_vm0, %v11911_v41, %v5853_v46  ;;  %v10491_v41 = vor.u32 %v11657_v2, %v10488_v47  ;;  %v10467_v33 = vor.u32 %v11651_v25, %v10464_v28  ;;  %v10438_v46 = vld [vmem:[#allocation4 + $0x1b8] sm:$0xf] }
 0x518   : > { %v5862_v6 = vsel %vm5859_vm10, %v5861_v39, %v5857_v32  ;;  %v5814_v45 = vpop.f32.mrf.mxu1  ;;  %v10398_v39 = vld [vmem:[#allocation4 + $0x160] sm:$0xf]  ;;  %v11637_v54 = vld [vmem:[#allocation4 + $0x174] sm:$0xf0] }
 0x519   : > { %v5872_v10 = vmul.f32 %v11913_v62, %v5871_v9  ;;  %v5884_v30 = vmul.f32 %v5862_v6, %v5763_v49  ;;  %v5815_v36 = vadd.f32 %v5814_v45, %v5802_v14  ;;  %6629 = vmatpush.bf16.msrb.mxu3 %v10491_v41  ;;  %v11634_v9 = vld [vmem:[#allocation4 + $0x164] sm:$0xf]  ;;  %v11642_v32 = vld [vmem:[#allocation4 + $0x19c] sm:$0xf0]  ;;  %v10400_v45 = vld [vmem:[#allocation4 + $0x178] sm:$0xf0] }
 0x51a   : > { %6604 = vmatpush.bf16.msra.mxu1 %v10463_v60 }
 0x51b   : > { %v11915_v8 = vpop.eup %11914  ;;  %v5873_v31 = vadd.f32 %v11913_v62, %v5872_v10  ;;  %v5885_v29 = vadd.f32 %v5884_v30, %v622_v23  ;;  %v5911_v56 = vadd.f32 %v5815_v36, %v13525_v59  ;;  %v10415_v30 = vor.u32 %v11642_v32, %v10414_v43  ;;  %v13528_v43 = vld [vmem:[#allocation29_spill] sm:$0xff] }
 0x51c   : > { %v13210_v55 = vadd.f32 1.0, %v11915_v8  ;;  %v10399_v8 = vor.u32 %v11637_v54, %v10398_v39 }
 0x51d   : > { %v5877_v17 = vsel %vm13206_vm3, %v11913_v62, %v5873_v31  ;;  %11916 = vtanh.f32 %v5885_v29  ;;  %v10211_v52 = vmul.f32 -1.442695, %v5911_v56  ;;  %v10439_v62 = vor.u32 %v11648_v20, %v10438_v46  ;;  %6630 = vmatpush.bf16.msrb.mxu3 %v10467_v33  ;;  %v10374_v29 = vld [vmem:[#allocation4 + $0x130] sm:$0xf]  ;;  %v11625_v33 = vld [vmem:[#allocation4 + $0x114] sm:$0xf0] }
 0x51e   : > { %11918 = vrcp.f32 %v13210_v55  ;;  %v5882_v58 = vsel %vm5879_vm12, %v5881_v53, %v5877_v17  ;;  %v10403_v31 = vor.u32 %v11634_v9, %v10400_v45  ;;  %v5907_v61 = vand.u32 2147483648, %v13210_v55  ;;  %v11631_v53 = vld [vmem:[#allocation4 + $0x144] sm:$0xf0] }
 0x51f   : > { %11920 = vpow2.f32 %v10211_v52  ;;  %v13215_v14 = vpop.f32.mrf.mxu3  ;;  %v5887_v49 = vsub.f32 1.0, %v5882_v58  ;;  %v5889_v6 = vmul.f32 %v5882_v58, %v13108_v5  ;;  %6605 = vmatpush.bf16.msra.mxu1 %v10439_v62  ;;  %v5905_v17 = vand.u32 2147483647, %v13210_v55  ;;  %v10352_v62 = vld [vmem:[#allocation4 + $0x118] sm:$0xf0] }
 0x520   : > { %v5816_v4 = vpop.f32.mrf.mxu1  ;;  %v5908_v25 = vor.u32 1.1754944e-38, %v5907_v61  ;;  %v10375_v28 = vor.u32 %v11631_v53, %v10374_v29  ;;  %v5841_v46 = vadd.f32 %v13215_v14, %v5828_v40  ;;  %v10355_v54 = vor.u32 %v11622_v11, %v10352_v62  ;;  %v10328_v14 = vld [vmem:[#allocation4 + $0xe8] sm:$0xf0]  ;;  %v11607_v61 = vld [vmem:[#allocation4 + $0x84] sm:$0xf0] }
 0x521   : > { %6631 = vmatpush.bf16.msrb.mxu3 %v10443_v27  ;;  %v10350_v4 = vld [vmem:[#allocation4 + $0x100] sm:$0xf]  ;;  %vm5906_vm9 = vcmp.eq.f32.partialorder %v5905_v17, 8.507059e+37  ;;  %v10326_v27 = vld [vmem:[#allocation4 + $0xd0] sm:$0xf] }
 0x522   : > { %v10351_v39 = vor.u32 %v11625_v33, %v10350_v4  ;;  %v10280_v17 = vld [vmem:[#allocation4 + $0x88] sm:$0xf0]  ;;  %v10590_v40 = vld [vmem:[#allocation4 + $0x2e0] sm:$0xf]  ;;  %v10592_v4 = vld [vmem:[#allocation4 + $0x2f8] sm:$0xf0] }
 0x523   : > { %v11917_v37 = vpop.eup %11916  ;;  %6606 = vmatpush.bf16.msra.mxu1 %v10415_v30  ;;  %v11613_v30 = vld [vmem:[#allocation4 + $0xb4] sm:$0xf0]  ;;  %v10254_v33 = vld [vmem:[#allocation4 + $0x40] sm:$0xf]  ;;  %v11598_v11 = vld [vmem:[#allocation4 + $0x44] sm:$0xf] }
 0x524   : > { %v11919_v15 = vpop.eup %11918  ;;  %v5888_v23 = vmul.f32 %v11917_v37, %v5887_v49  ;;  %v11619_v37 = vld [vmem:[#allocation4 + $0xe4] sm:$0xf0]  ;;  %v10256_v62 = vld [vmem:[#allocation4 + $0x58] sm:$0xf0] }
 0x525   : > { %v11921_v2 = vpop.eup %11920  ;;  %v5897_v10 = vmul.f32 %v11919_v15, %v13210_v55  ;;  %vm5902_vm7 = vweird.f32 %v11919_v15  ;;  %6632 = vmatpush.bf16.msrb.mxu3 %v10419_v1  ;;  %v10327_v7 = vor.u32 %v11619_v37, %v10326_v27  ;;  %v10304_v1 = vld [vmem:[#allocation4 + $0xb8] sm:$0xf0]  ;;  %v11676_v27 = vld [vmem:[#allocation4 + $0x2b4] sm:$0xf] }
 0x526   : > { %v5890_v36 = vadd.f32 %v5889_v6, %v5888_v23  ;;  %v13219_v47 = vadd.f32 1.0, %v11921_v2  ;;  %v11616_v23 = vld [vmem:[#allocation4 + $0xd4] sm:$0xf]  ;;  %v10302_v2 = vld [vmem:[#allocation4 + $0xa0] sm:$0xf] }
 0x527   : > { %v5898_v35 = vsub.f32 1.0, %v5897_v10  ;;  %v5842_v41 = vpop.f32.mrf.mxu3  ;;  %v10331_v16 = vor.u32 %v11616_v23, %v10328_v14  ;;  %v11595_v23 = vld [vmem:[#allocation4 + $0x24] sm:$0xf0]  ;;  %v11592_v14 = vld [vmem:[#allocation4 + $0x14] sm:$0xf] }
 0x528   : > { %v13225_v59 = vsel %vm5939_vm5, %v5890_v36, %v13108_v5  ;;  %v5944_v56 = vsel %vm5939_vm5, %v5890_v36, 0.0  ;;  %11922 = vrcp.f32 %v13219_v47  ;;  %v10376_v5 = vld [vmem:[#allocation4 + $0x148] sm:$0xf0]  ;;  %vm5901_vm5 = vweird.f32 %v13210_v55  ;;  %v11610_v36 = vld [vmem:[#allocation4 + $0xa4] sm:$0xf] }
 0x529   : > { %5945 = vst [vmem:[%s12106_s22 + $0x28] sm:$0xff] %v5944_v56  ;;  %v5899_v26 = vmul.f32 %v11919_v15, %v5898_v35  ;;  %v13236_v52 = vpack.c.bf16 %v13225_v59, %v13225_v59  ;;  %vm5903_vm2 = vmor %vm5901_vm5, %vm5902_vm7  ;;  %v10379_v58 = vor.u32 %v11628_v57, %v10376_v5  ;;  %v5925_v45 = vand.u32 2147483647, %v13219_v47  ;;  %v10278_v56 = vld [vmem:[#allocation4 + $0x70] sm:$0xf] }
 0x52a   : > { %vm5921_vm14 = vweird.f32 %v13219_v47  ;;  %v10307_v29 = vor.u32 %v11610_v36, %v10304_v1 }
 0x52b   : > { %v5900_v60 = vadd.f32 %v11919_v15, %v5899_v26  ;;  %6542 = vmatmul.bf16.vlgmr.msrb.gmra.mxu0 %v13236_v52  ;;  %6568 = vmatmul.bf16.vlgmr.msra.gmra.mxu2 %v13236_v52  ;;  %vm5926_vm1 = vcmp.eq.f32.partialorder %v5925_v45, 8.507059e+37  ;;  %v11604_v26 = vld [vmem:[#allocation4 + $0x74] sm:$0xf] }
 0x52c   : > { %6638 = vmatpush.bf16.msrb.mxu0 %v10399_v8  ;;  %6664 = vmatpush.bf16.msra.mxu2 %v10403_v31  ;;  %v10303_v31 = vor.u32 %v11613_v30, %v10302_v2  ;;  %v11673_v2 = vld [vmem:[#allocation4 + $0x294] sm:$0xf0]  ;;  %v10544_v30 = vld [vmem:[#allocation4 + $0x298] sm:$0xf0] }
 0x52d   : > { %v5904_v20 = vsel %vm5903_vm2, %v11919_v15, %v5900_v60  ;;  %v5927_v15 = vand.u32 2147483648, %v13219_v47  ;;  %v11685_v60 = vld [vmem:[#allocation4 + $0x2f4] sm:$0xf0] }
 0x52e   : > { %v11923_v50 = vpop.eup %11922  ;;  %v5909_v55 = vsel %vm5906_vm9, %v5908_v25, %v5904_v20  ;;  %v10279_v25 = vor.u32 %v11607_v61, %v10278_v56  ;;  %v11601_v20 = vld [vmem:[#allocation4 + $0x54] sm:$0xf0]  ;;  %v10494_v61 = vld [vmem:[#allocation4 + $0x220] sm:$0xf] }
 0x52f   : > { %v5917_v0 = vmul.f32 %v11923_v50, %v13219_v47  ;;  %v5931_v49 = vmul.f32 %v5909_v55, %v5841_v46  ;;  %vm5922_vm13 = vweird.f32 %v11923_v50  ;;  %v5928_v35 = vor.u32 1.1754944e-38, %v5927_v15  ;;  %v10232_v15 = vld [vmem:[#allocation4 + $0x28] sm:$0xf0] }
 0x530   : > { %6639 = vmatpush.bf16.msrb.mxu0 %v10375_v28  ;;  %6665 = vmatpush.bf16.msra.mxu2 %v10379_v58  ;;  %vm5923_vm4 = vmor %vm5921_vm14, %vm5922_vm13  ;;  %v10283_v28 = vor.u32 %v11604_v26, %v10280_v17  ;;  %v11682_v58 = vld [vmem:[#allocation4 + $0x2e4] sm:$0xf]  ;;  %v10496_v26 = vld [vmem:[#allocation4 + $0x238] sm:$0xf0] }
 0x531   : > { %v5918_v9 = vsub.f32 1.0, %v5917_v0  ;;  %v5932_v32 = vadd.f32 %v5931_v49, %v13528_v43  ;;  %v10591_v49 = vor.u32 %v11685_v60, %v10590_v40  ;;  %v10259_v43 = vor.u32 %v11598_v11, %v10256_v62  ;;  %v11655_v40 = vld [vmem:[#allocation4 + $0x204] sm:$0xf0]  ;;  %v11652_v60 = vld [vmem:[#allocation4 + $0x1f4] sm:$0xf] }
 0x532   : > { %v10422_v62 = vld [vmem:[#allocation4 + $0x190] sm:$0xf] }
 0x533   : > { %v5919_v6 = vmul.f32 %v11923_v50, %v5918_v9  ;;  %11924 = vtanh.f32 %v5932_v32  ;;  %v10255_v9 = vor.u32 %v11601_v20, %v10254_v33  ;;  %v10568_v32 = vld [vmem:[#allocation4 + $0x2c8] sm:$0xf0]  ;;  %v11646_v33 = vld [vmem:[#allocation4 + $0x1c4] sm:$0xf] }
 0x534   : > { %6640 = vmatpush.bf16.msrb.mxu0 %v10351_v39  ;;  %6666 = vmatpush.bf16.msra.mxu2 %v10355_v54  ;;  %v10595_v39 = vor.u32 %v11682_v58, %v10592_v4  ;;  %v11679_v54 = vld [vmem:[#allocation4 + $0x2c4] sm:$0xf0]  ;;  %v10446_v58 = vld [vmem:[#allocation4 + $0x1c0] sm:$0xf]  ;;  %v11649_v4 = vld [vmem:[#allocation4 + $0x1d4] sm:$0xf0] }
 0x535   : > { %v5920_v10 = vadd.f32 %v11923_v50, %v5919_v6  ;;  %v10571_v6 = vor.u32 %v11676_v27, %v10568_v32  ;;  %v10447_v20 = vor.u32 %v11649_v4, %v10446_v58  ;;  %v10770_v27 = vld [vmem:[#allocation4 + $0x150] sm:$0xf]  ;;  %v10652_v58 = vld [vmem:[#allocation4 + $0x78] sm:$0xf0] }
 0x537   : > { %v5924_v41 = vsel %vm5923_vm4, %v11923_v50, %v5920_v10  ;;  %v10566_v50 = vld [vmem:[#allocation4 + $0x2b0] sm:$0xf]  ;;  %v11670_v10 = vld [vmem:[#allocation4 + $0x284] sm:$0xf] }
 0x538   : > { %v5929_v8 = vsel %vm5926_vm1, %v5928_v35, %v5924_v41  ;;  %6641 = vmatpush.bf16.msrb.mxu0 %v10327_v7  ;;  %6667 = vmatpush.bf16.msra.mxu2 %v10331_v16  ;;  %v10567_v12 = vor.u32 %v11679_v54, %v10566_v50  ;;  %v10235_v7 = vor.u32 %v11592_v14, %v10232_v15  ;;  %v10542_v16 = vld [vmem:[#allocation4 + $0x280] sm:$0xf]  ;;  %v10518_v35 = vld [vmem:[#allocation4 + $0x250] sm:$0xf]  ;;  %v11667_v41 = vld [vmem:[#allocation4 + $0x264] sm:$0xf0] }
 0x539   : > { %v11925_v53 = vpop.eup %11924  ;;  %v5934_v57 = vsub.f32 1.0, %v5929_v8  ;;  %v5936_v5 = vmul.f32 %v5929_v8, %v13140_v48  ;;  %v10543_v36 = vor.u32 %v11673_v2, %v10542_v16  ;;  %v10547_v1 = vor.u32 %v11670_v10, %v10544_v30  ;;  %v11664_v8 = vld [vmem:[#allocation4 + $0x254] sm:$0xf]  ;;  %v11643_v50 = vld [vmem:[#allocation4 + $0x1a4] sm:$0xf0] }
 0x53a   : > { %v11725_v14 = vld [vmem:[#allocation4 + $0x134] sm:$0xf0]  ;;  %v10722_v16 = vld [vmem:[#allocation4 + $0xf0] sm:$0xf]  ;;  %v11719_v2 = vld [vmem:[#allocation4 + $0x104] sm:$0xf0] }
 0x53b   : > { %v5935_v47 = vmul.f32 %v11925_v53, %v5934_v57  ;;  %6594 = vmatmul.bf16.vlgmr.msra.gmra.mxu0 %v13236_v52  ;;  %6620 = vmatmul.bf16.vlgmr.msrb.gmra.mxu2 %v13236_v52  ;;  %v11661_v53 = vld [vmem:[#allocation4 + $0x234] sm:$0xf0]  ;;  %v11658_v57 = vld [vmem:[#allocation4 + $0x224] sm:$0xf]  ;;  %v11716_v10 = vld [vmem:[#allocation4 + $0xf4] sm:$0xf] }
 0x53c   : > { %6642 = vmatpush.bf16.msrb.mxu0 %v10303_v31  ;;  %6668 = vmatpush.bf16.msra.mxu2 %v10307_v29  ;;  %v10520_v31 = vld [vmem:[#allocation4 + $0x268] sm:$0xf0]  ;;  %v10519_v29 = vor.u32 %v11667_v41, %v10518_v35  ;;  %v10495_v17 = vor.u32 %v11661_v53, %v10494_v61  ;;  %v11713_v35 = vld [vmem:[#allocation4 + $0xd4] sm:$0xf0]  ;;  %v11710_v41 = vld [vmem:[#allocation4 + $0xc4] sm:$0xf] }
 0x53d   : > { %v5937_v46 = vadd.f32 %v5936_v5, %v5935_v47  ;;  %v10523_v56 = vor.u32 %v11664_v8, %v10520_v31  ;;  %v10499_v47 = vor.u32 %v11658_v57, %v10496_v26  ;;  %v10470_v5 = vld [vmem:[#allocation4 + $0x1f0] sm:$0xf]  ;;  %v10724_v30 = vld [vmem:[#allocation4 + $0x108] sm:$0xf0]  ;;  %v11707_v53 = vld [vmem:[#allocation4 + $0xa4] sm:$0xf0] }
 0x53e   : > { %v10674_v61 = vld [vmem:[#allocation4 + $0x90] sm:$0xf]  ;;  %v11704_v57 = vld [vmem:[#allocation4 + $0x94] sm:$0xf] }
 0x53f   : > { %v13256_v55 = vsel %vm5941_vm6, %v5937_v46, %v13140_v48  ;;  %v5946_v0 = vsel %vm5941_vm6, %v5937_v46, 0.0  ;;  %v10230_v48 = vld [vmem:[#allocation4 + $0x10] sm:$0xf]  ;;  %v10448_v46 = vld [vmem:[#allocation4 + $0x1d8] sm:$0xf0]  ;;  %v10675_v26 = vor.u32 %v11707_v53, %v10674_v61 }
 0x540   : > { %5947 = vst [vmem:[%s12111_s27 + $0x10] sm:$0xff] %v5946_v0  ;;  %6643 = vmatpush.bf16.msrb.mxu0 %v10279_v25  ;;  %6669 = vmatpush.bf16.msra.mxu2 %v10283_v28  ;;  %v13264_v37 = vpack.c.bf16 %v13256_v55, %v13256_v55  ;;  %v10231_v45 = vor.u32 %v11595_v23, %v10230_v48  ;;  %v10472_v25 = vld [vmem:[#allocation4 + $0x208] sm:$0xf0]  ;;  %v11640_v0 = vld [vmem:[#allocation4 + $0x194] sm:$0xf] }
 0x541   : > { %v10475_v28 = vor.u32 %v11652_v60, %v10472_v25  ;;  %v10451_v11 = vor.u32 %v11646_v33, %v10448_v46  ;;  %v10772_v48 = vld [vmem:[#allocation4 + $0x168] sm:$0xf0]  ;;  %v10746_v23 = vld [vmem:[#allocation4 + $0x120] sm:$0xf]  ;;  %v11701_v60 = vld [vmem:[#allocation4 + $0x74] sm:$0xf0] }
 0x542   : > { %6555 = vmatmul.bf16.vlgmr.msrb.gmra.mxu1 %v13264_v37  ;;  %6581 = vmatmul.bf16.vlgmr.msra.gmra.mxu3 %v13264_v37  ;;  %v11698_v25 = vld [vmem:[#allocation4 + $0x64] sm:$0xf]  ;;  %v10962_v33 = vld [vmem:[#allocation4 + $0x2d0] sm:$0xf]  ;;  %v11779_v46 = vld [vmem:[#allocation4 + $0x2e4] sm:$0xf0] }
 0x543   : > { %6651 = vmatpush.bf16.msrb.mxu1 %v10591_v49  ;;  %6677 = vmatpush.bf16.msra.mxu3 %v10595_v39  ;;  %v10424_v49 = vld [vmem:[#allocation4 + $0x1a8] sm:$0xf0]  ;;  %v10423_v39 = vor.u32 %v11643_v50, %v10422_v62  ;;  %v10655_v4 = vor.u32 %v11698_v25, %v10652_v58  ;;  %v10626_v50 = vld [vmem:[#allocation4 + $0x30] sm:$0xf]  ;;  %v11764_v61 = vld [vmem:[#allocation4 + $0x274] sm:$0xf] }
 0x544   : > { %6644 = vmatpush.bf16.msrb.mxu0 %v10255_v9  ;;  %6670 = vmatpush.bf16.msra.mxu2 %v10259_v43  ;;  %v10427_v54 = vor.u32 %v11640_v0, %v10424_v49  ;;  %v11731_v9 = vld [vmem:[#allocation4 + $0x164] sm:$0xf0]  ;;  %v11728_v43 = vld [vmem:[#allocation4 + $0x154] sm:$0xf]  ;;  %v10964_v62 = vld [vmem:[#allocation4 + $0x2e8] sm:$0xf0] }
 0x545   : > { %v10771_v32 = vor.u32 %v11731_v9, %v10770_v27  ;;  %v10775_v15 = vor.u32 %v11728_v43, %v10772_v48  ;;  %v11695_v0 = vld [vmem:[#allocation4 + $0x44] sm:$0xf0]  ;;  %v10628_v27 = vld [vmem:[#allocation4 + $0x48] sm:$0xf0]  ;;  %v11773_v48 = vld [vmem:[#allocation4 + $0x2b4] sm:$0xf0] }
 0x546   : > { %v10756_v25 = vld [vmem:[#allocation4 + $0x140] sm:$0xf0] }
 0x547   : > { %6652 = vmatpush.bf16.msrb.mxu1 %v10567_v12  ;;  %6678 = vmatpush.bf16.msra.mxu3 %v10571_v6  ;;  %v11722_v12 = vld [vmem:[#allocation4 + $0x124] sm:$0xf]  ;;  %v10748_v6 = vld [vmem:[#allocation4 + $0x138] sm:$0xf0] }
 0x548   : > { %6645 = vmatpush.bf16.msrb.mxu0 %v10231_v45  ;;  %6671 = vmatpush.bf16.msra.mxu2 %v10235_v7  ;;  %v10747_v45 = vor.u32 %v11725_v14, %v10746_v23  ;;  %v10751_v7 = vor.u32 %v11722_v12, %v10748_v6  ;;  %v11770_v23 = vld [vmem:[#allocation4 + $0x2a4] sm:$0xf]  ;;  %v10602_v12 = vld [vmem:[#allocation4] sm:$0xf]  ;;  %v11689_v6 = vld [vmem:[#allocation4 + $0x14] sm:$0xf0] }
 0x54b   : > { %6646 = vmatmul.bf16.vlgmr.msrb.gmra.mxu0 %v13236_v52  ;;  %6653 = vmatpush.bf16.msrb.mxu1 %v10543_v36  ;;  %v10727_v36 = vor.u32 %v11716_v10, %v10724_v30  ;;  %v10604_v10 = vld [vmem:[#allocation4 + $0x18] sm:$0xf0] }
 0x54c   : > { %6672 = vmatmul.bf16.vlgmr.msra.gmra.mxu2 %v13236_v52  ;;  %6679 = vmatpush.bf16.msra.mxu3 %v10547_v1  ;;  %v10471_v52 = vor.u32 %v11655_v40, %v10470_v5  ;;  %v10698_v1 = vld [vmem:[#allocation4 + $0xc0] sm:$0xf] }
 0x54d   : > { %7380 = vmatpush.bf16.msra.mxu0 %v10771_v32  ;;  %7406 = vmatpush.bf16.msrb.mxu2 %v10775_v15  ;;  %v10699_v31 = vor.u32 %v11713_v35, %v10698_v1  ;;  %v10650_v40 = vld [vmem:[#allocation4 + $0x60] sm:$0xf]  ;;  %v10940_v15 = vld [vmem:[#allocation4 + $0x2b8] sm:$0xf0]  ;;  %v10780_v35 = vld [vmem:[#allocation4 + $0x170] sm:$0xf0] }
 0x54e   : > { %v10938_v32 = vld [vmem:[#allocation4 + $0x2a0] sm:$0xf]  ;;  %v11729_v1 = vld [vmem:[#allocation4 + $0x15c] sm:$0xf] }
 0x54f   : > { %6654 = vmatpush.bf16.msrb.mxu1 %v10519_v29  ;;  %v10700_v29 = vld [vmem:[#allocation4 + $0xd8] sm:$0xf0]  ;;  %v10939_v14 = vor.u32 %v11773_v48, %v10938_v32 }
 0x550   : > { %6680 = vmatpush.bf16.msra.mxu3 %v10523_v56  ;;  %v10703_v56 = vor.u32 %v11710_v41, %v10700_v29  ;;  %v10914_v29 = vld [vmem:[#allocation4 + $0x270] sm:$0xf] }
 0x551   : > { %7381 = vmatpush.bf16.msra.mxu0 %v10747_v45  ;;  %7407 = vmatpush.bf16.msrb.mxu2 %v10751_v7  ;;  %v10943_v7 = vor.u32 %v11770_v23, %v10940_v15  ;;  %v10866_v23 = vld [vmem:[#allocation4 + $0x210] sm:$0xf]  ;;  %v11752_v15 = vld [vmem:[#allocation4 + $0x214] sm:$0xf] }
 0x552   : > { %6607 = vmatmul.bf16.vlgmr.msra.gmra.mxu1 %v13264_v37  ;;  %6633 = vmatmul.bf16.vlgmr.msrb.gmra.mxu3 %v13264_v37 }
 0x553   : > { %6655 = vmatpush.bf16.msrb.mxu1 %v10495_v17  ;;  %v10676_v17 = vld [vmem:[#allocation4 + $0xa8] sm:$0xf0] }
 0x554   : > { %6681 = vmatpush.bf16.msra.mxu3 %v10499_v47  ;;  %v10679_v47 = vor.u32 %v11704_v57, %v10676_v17  ;;  %v10916_v57 = vld [vmem:[#allocation4 + $0x288] sm:$0xf0]  ;;  %v10754_v17 = vld [vmem:[#allocation4 + $0x128] sm:$0xf] }
 0x555   : > { %7408 = vmatpush.bf16.msrb.mxu2 %v10727_v36  ;;  %v11732_v36 = vld [vmem:[#allocation4 + $0x16c] sm:$0xf0] }
 0x557   : > { %6656 = vmatpush.bf16.msrb.mxu1 %v10471_v52 }
 0x558   : > { %6682 = vmatpush.bf16.msra.mxu3 %v10475_v28  ;;  %v10651_v28 = vor.u32 %v11701_v60, %v10650_v40  ;;  %v11723_v40 = vld [vmem:[#allocation4 + $0x12c] sm:$0xf] }
 0x559   : > { %7409 = vmatpush.bf16.msrb.mxu2 %v10703_v56  ;;  %v11767_v56 = vld [vmem:[#allocation4 + $0x284] sm:$0xf0]  ;;  %v10759_v58 = vor.u32 %v11723_v40, %v10756_v25  ;;  %v10682_v25 = vld [vmem:[#allocation4 + $0x98] sm:$0xf] }
 0x55a   : > { %v10915_v53 = vor.u32 %v11767_v56, %v10914_v29  ;;  %v10842_v56 = vld [vmem:[#allocation4 + $0x1e0] sm:$0xf] }
 0x55b   : > { %6657 = vmatpush.bf16.msrb.mxu1 %v10447_v20  ;;  %v11776_v20 = vld [vmem:[#allocation4 + $0x2d4] sm:$0xf] }
 0x55c   : > { %6683 = vmatpush.bf16.msra.mxu3 %v10451_v11  ;;  %v10963_v11 = vor.u32 %v11779_v46, %v10962_v33  ;;  %v10967_v49 = vor.u32 %v11776_v20, %v10964_v62  ;;  %v11761_v33 = vld [vmem:[#allocation4 + $0x254] sm:$0xf0]  ;;  %v11758_v46 = vld [vmem:[#allocation4 + $0x244] sm:$0xf]  ;;  %v10892_v62 = vld [vmem:[#allocation4 + $0x258] sm:$0xf0] }
 0x55d   : > { %7410 = vmatpush.bf16.msrb.mxu2 %v10679_v47  ;;  %v11726_v47 = vld [vmem:[#allocation4 + $0x13c] sm:$0xf0] }
 0x55e   : > { %v10755_v60 = vor.u32 %v11726_v47, %v10754_v17  ;;  %v13530_v17 = vld [vmem:[#allocation19_spill] sm:$0xff] }
 0x55f   : > { %6658 = vmatpush.bf16.msrb.mxu1 %v10423_v39  ;;  %v10627_v39 = vor.u32 %v11695_v0, %v10626_v50 }
 0x560   : > { %6684 = vmatpush.bf16.msra.mxu3 %v10427_v54  ;;  %v11692_v54 = vld [vmem:[#allocation4 + $0x34] sm:$0xf] }
 0x561   : > { %7411 = vmatpush.bf16.msrb.mxu2 %v10655_v4  ;;  %v10631_v9 = vor.u32 %v11692_v54, %v10628_v27  ;;  %v10890_v4 = vld [vmem:[#allocation4 + $0x240] sm:$0xf]  ;;  %v11720_v54 = vld [vmem:[#allocation4 + $0x10c] sm:$0xf0]  ;;  %v11717_v27 = vld [vmem:[#allocation4 + $0xfc] sm:$0xf] }
 0x562   : > { %6659 = vmatmul.bf16.vlgmr.msrb.gmra.mxu1 %v13264_v37 }
 0x563   : > { %6685 = vmatmul.bf16.vlgmr.msra.gmra.mxu3 %v13264_v37  ;;  %v10723_v37 = vor.u32 %v11719_v2, %v10722_v16  ;;  %7393 = vmatpush.bf16.msra.mxu1 %v10963_v11  ;;  %v10603_v16 = vor.u32 %v11689_v6, %v10602_v12  ;;  %v11686_v2 = vld [vmem:[#allocation4 + $0x4] sm:$0xf]  ;;  %v10891_v11 = vor.u32 %v11761_v33, %v10890_v4  ;;  %v10868_v6 = vld [vmem:[#allocation4 + $0x228] sm:$0xf0]  ;;  %v10684_v33 = vld [vmem:[#allocation4 + $0xb0] sm:$0xf0] }
 0x564   : > { %7419 = vmatpush.bf16.msrb.mxu3 %v10967_v49  ;;  %v10607_v30 = vor.u32 %v11686_v2, %v10604_v10  ;;  %v10895_v49 = vor.u32 %v11758_v46, %v10892_v62  ;;  %v10871_v2 = vor.u32 %v11752_v15, %v10868_v6  ;;  %v10706_v10 = vld [vmem:[#allocation4 + $0xc8] sm:$0xf]  ;;  %v10794_v15 = vld [vmem:[#allocation4 + $0x180] sm:$0xf]  ;;  %v11734_v6 = vld [vmem:[#allocation4 + $0x184] sm:$0xf] }
 0x565   : > { %7382 = vmatpush.bf16.msra.mxu0 %v10723_v37  ;;  %7412 = vmatpush.bf16.msrb.mxu2 %v10631_v9  ;;  %v10778_v37 = vld [vmem:[#allocation4 + $0x158] sm:$0xf]  ;;  %v10732_v9 = vld [vmem:[#allocation4 + $0x110] sm:$0xf0]  ;;  %v11743_v62 = vld [vmem:[#allocation4 + $0x1c4] sm:$0xf0] }
 0x566   : > { %v10779_v41 = vor.u32 %v11732_v36, %v10778_v37  ;;  %v10735_v48 = vor.u32 %v11717_v27, %v10732_v9  ;;  %v11714_v37 = vld [vmem:[#allocation4 + $0xdc] sm:$0xf0]  ;;  %v10658_v27 = vld [vmem:[#allocation4 + $0x68] sm:$0xf]  ;;  %v11699_v9 = vld [vmem:[#allocation4 + $0x6c] sm:$0xf] }
 0x567   : > { %7394 = vmatpush.bf16.msra.mxu1 %v10939_v14  ;;  %v11755_v14 = vld [vmem:[#allocation4 + $0x224] sm:$0xf0]  ;;  %v10707_v36 = vor.u32 %v11714_v37, %v10706_v10 }
 0x568   : > { %7420 = vmatpush.bf16.msrb.mxu3 %v10943_v7  ;;  %v10867_v12 = vor.u32 %v11755_v14, %v10866_v23  ;;  %v10660_v23 = vld [vmem:[#allocation4 + $0x80] sm:$0xf0] }
 0x569   : > { %7383 = vmatpush.bf16.msra.mxu0 %v10699_v31  ;;  %v10783_v31 = vor.u32 %v11729_v1, %v10780_v35  ;;  %7413 = vmatpush.bf16.msrb.mxu2 %v10607_v30  ;;  %v11711_v1 = vld [vmem:[#allocation4 + $0xcc] sm:$0xf]  ;;  %v10708_v35 = vld [vmem:[#allocation4 + $0xe0] sm:$0xf0]  ;;  %v10663_v14 = vor.u32 %v11699_v9, %v10660_v23 }
 0x56a   : > { %v10711_v29 = vor.u32 %v11711_v1, %v10708_v35  ;;  %v11777_v1 = vld [vmem:[#allocation4 + $0x2dc] sm:$0xf] }
 0x56b   : > { %7395 = vmatpush.bf16.msra.mxu1 %v10915_v53  ;;  %v11746_v53 = vld [vmem:[#allocation4 + $0x1e4] sm:$0xf] }
 0x56d   : > { %7384 = vmatpush.bf16.msra.mxu0 %v10675_v26  ;;  %7458 = vmatpush.bf16.msra.mxu2 %v10783_v31  ;;  %v10919_v26 = vor.u32 %v11764_v61, %v10916_v57  ;;  %v11749_v61 = vld [vmem:[#allocation4 + $0x1f4] sm:$0xf0] }
 0x56e   : > { %v10843_v57 = vor.u32 %v11749_v61, %v10842_v56 }
 0x56f   : > { %7421 = vmatpush.bf16.msrb.mxu3 %v10919_v26  ;;  %7396 = vmatpush.bf16.msra.mxu1 %v10891_v11  ;;  %v10844_v26 = vld [vmem:[#allocation4 + $0x1f8] sm:$0xf0]  ;;  %v10818_v11 = vld [vmem:[#allocation4 + $0x1b0] sm:$0xf] }
 0x571   : > { %7385 = vmatpush.bf16.msra.mxu0 %v10651_v28  ;;  %7459 = vmatpush.bf16.msra.mxu2 %v10759_v58  ;;  %v11705_v58 = vld [vmem:[#allocation4 + $0x9c] sm:$0xf] }
 0x573   : > { %7422 = vmatpush.bf16.msrb.mxu3 %v10895_v49  ;;  %7397 = vmatpush.bf16.msra.mxu1 %v10867_v12  ;;  %v10820_v49 = vld [vmem:[#allocation4 + $0x1c8] sm:$0xf0]  ;;  %v11737_v12 = vld [vmem:[#allocation4 + $0x194] sm:$0xf0] }
 0x574   : > { %v10795_v37 = vor.u32 %v11737_v12, %v10794_v15 }
 0x575   : > { %7386 = vmatpush.bf16.msra.mxu0 %v10627_v39  ;;  %v10730_v39 = vld [vmem:[#allocation4 + $0xf8] sm:$0xf]  ;;  %7460 = vmatpush.bf16.msra.mxu2 %v10735_v48 }
 0x577   : > { %7423 = vmatpush.bf16.msrb.mxu3 %v10871_v2  ;;  %7398 = vmatpush.bf16.msra.mxu1 %v10843_v57  ;;  %v10796_v2 = vld [vmem:[#allocation4 + $0x198] sm:$0xf0]  ;;  %v10636_v57 = vld [vmem:[#allocation4 + $0x50] sm:$0xf0] }
 0x578   : > { %v10799_v35 = vor.u32 %v11734_v6, %v10796_v2  ;;  %v10922_v6 = vld [vmem:[#allocation4 + $0x278] sm:$0xf]  ;;  %v11765_v2 = vld [vmem:[#allocation4 + $0x27c] sm:$0xf] }
 0x579   : > { %7387 = vmatpush.bf16.msra.mxu0 %v10603_v16  ;;  %7461 = vmatpush.bf16.msra.mxu2 %v10711_v29  ;;  %v10634_v29 = vld [vmem:[#allocation4 + $0x38] sm:$0xf] }
 0x57d   : > { %7432 = vmatpush.bf16.msrb.mxu0 %v10779_v41 }
 0x581   : > { %7433 = vmatpush.bf16.msrb.mxu0 %v10755_v60  ;;  %v10847_v60 = vor.u32 %v11746_v53, %v10844_v26  ;;  %v11696_v53 = vld [vmem:[#allocation4 + $0x4c] sm:$0xf0] }
 0x583   : > { %7424 = vmatpush.bf16.msrb.mxu3 %v10847_v60  ;;  %v10946_v60 = vld [vmem:[#allocation4 + $0x2a8] sm:$0xf] }
 0x5a8   : > { %v13274_v8 = vpop.f32.mrf.mxu0 }
 0x5ae   : > { %v13276_v5 = vpop.f32.mrf.mxu2 }
 0x5af   : > { %v6570_v7 = vadd.f32 %v13276_v5, %v12393_v38 }
 0x5b0   : > { %v6545_v52 = vpop.f32.mrf.mxu0 }
 0x5b1   : > { %v6544_v52 = vadd.f32 %v13274_v8, %v12377_v3  ;;  %v10731_v8 = vor.u32 %v11720_v54, %v10730_v39 }
 0x5b3   : > { %7434 = vmatpush.bf16.msrb.mxu0 %v10731_v8  ;;  %v11702_v8 = vld [vmem:[#allocation4 + $0x7c] sm:$0xf0] }
 0x5b4   : > { %v10659_v48 = vor.u32 %v11702_v8, %v10658_v27  ;;  %v10612_v27 = vld [vmem:[#allocation4 + $0x20] sm:$0xf0] }
 0x5b6   : > { %v6571_v43 = vpop.f32.mrf.mxu2 }
 0x5b7   : > { %v13529_v43 = vld [vmem:[#allocation18_spill] sm:$0xff]  ;;  %7435 = vmatpush.bf16.msrb.mxu0 %v10707_v36  ;;  %v11780_v36 = vld [vmem:[#allocation4 + $0x2ec] sm:$0xf0] }
 0x5b8   : > { %v13278_v45 = vpop.f32.mrf.mxu0 }
 0x5be   : > { %v13282_v28 = vpop.f32.mrf.mxu2 }
 0x5bf   : > { %v6556_v20 = vpop.f32.mrf.mxu1 }
 0x5c0   : > { %v6557_v50 = vadd.f32 %v6556_v20, %v6544_v52  ;;  %v6597_v0 = vpop.f32.mrf.mxu0  ;;  %v11708_v52 = vld [vmem:[#allocation4 + $0xac] sm:$0xf0]  ;;  %v10687_v20 = vor.u32 %v11705_v58, %v10684_v33  ;;  %v10948_v33 = vld [vmem:[#allocation4 + $0x2c0] sm:$0xf0] }
 0x5c1   : > { %v10683_v4 = vor.u32 %v11708_v52, %v10682_v25  ;;  %v11740_v0 = vld [vmem:[#allocation4 + $0x1b4] sm:$0xf]  ;;  %v11774_v25 = vld [vmem:[#allocation4 + $0x2bc] sm:$0xf0]  ;;  %v6622_v52 = vadd.f32 %v13282_v28, %v12411_v24  ;;  %v11687_v28 = vld [vmem:[#allocation4 + $0xc] sm:$0xf] }
 0x5c2   : > { %v6690_v32 = vadd.f32 %v6557_v50, %v13529_v43  ;;  %v10819_v50 = vor.u32 %v11743_v62, %v10818_v11  ;;  %7462 = vmatpush.bf16.msra.mxu2 %v10687_v20  ;;  %v10823_v54 = vor.u32 %v11740_v0, %v10820_v49  ;;  %v10947_v58 = vor.u32 %v11774_v25, %v10946_v60  ;;  %v11690_v62 = vld [vmem:[#allocation4 + $0x1c] sm:$0xf0] }
 0x5c3   : > { %7436 = vmatpush.bf16.msrb.mxu0 %v10683_v4  ;;  %v11771_v4 = vld [vmem:[#allocation4 + $0x2ac] sm:$0xf] }
 0x5c4   : > { %v10596_v16 = vmul.f32 -1.442695, %v6690_v32  ;;  %7399 = vmatpush.bf16.msra.mxu1 %v10819_v50  ;;  %7425 = vmatpush.bf16.msrb.mxu3 %v10823_v54  ;;  %v13531_v50 = vld [vmem:[#allocation8_spill] sm:$0xff]  ;;  %v10951_v54 = vor.u32 %v11771_v4, %v10948_v33 }
 0x5c5   : > { %v6582_v30 = vpop.f32.mrf.mxu3  ;;  %v753_v0 = vadd.f32 %v13531_v50, %v12275_v34  ;;  %v11768_v34 = vld [vmem:[#allocation4 + $0x28c] sm:$0xf0]  ;;  %v11753_v50 = vld [vmem:[#allocation4 + $0x21c] sm:$0xf] }
 0x5c6   : > { %11926 = vpow2.f32 %v10596_v16  ;;  %v6583_v41 = vadd.f32 %v6582_v30, %v6570_v7  ;;  %v6623_v31 = vpop.f32.mrf.mxu2  ;;  %7463 = vmatpush.bf16.msra.mxu2 %v10663_v14  ;;  %v10970_v30 = vld [vmem:[#allocation4 + $0x2d8] sm:$0xf] }
 0x5c7   : > { %v6558_v5 = vpop.f32.mrf.mxu1  ;;  %7437 = vmatpush.bf16.msrb.mxu0 %v10659_v48  ;;  %v10972_v31 = vld [vmem:[#allocation4 + $0x2f0] sm:$0xf0]  ;;  %v10615_v48 = vor.u32 %v11687_v28, %v10612_v27 }
 0x5c8   : > { %v6710_v47 = vadd.f32 %v6583_v41, %v13530_v17  ;;  %v13288_v40 = vpop.f32.mrf.mxu0  ;;  %v10971_v41 = vor.u32 %v11780_v36, %v10970_v30  ;;  %7400 = vmatpush.bf16.msra.mxu1 %v10795_v37  ;;  %v10975_v61 = vor.u32 %v11777_v1, %v10972_v31  ;;  %v11693_v5 = vld [vmem:[#allocation4 + $0x3c] sm:$0xf]  ;;  %7426 = vmatpush.bf16.msrb.mxu3 %v10799_v35 }
 0x5c9   : > { %v10635_v17 = vor.u32 %v11696_v53, %v10634_v29  ;;  %v10923_v36 = vor.u32 %v11768_v34, %v10922_v6  ;;  %v6648_v31 = vadd.f32 %v13288_v40, %v12495_v21  ;;  %v10898_v29 = vld [vmem:[#allocation4 + $0x248] sm:$0xf]  ;;  %v11762_v53 = vld [vmem:[#allocation4 + $0x25c] sm:$0xf0] }
 0x5ca   : > { %v10597_v46 = vmul.f32 -1.442695, %v6710_v47  ;;  %v10639_v47 = vor.u32 %v11693_v5, %v10636_v57  ;;  %v11759_v5 = vld [vmem:[#allocation4 + $0x24c] sm:$0xf]  ;;  %v10900_v57 = vld [vmem:[#allocation4 + $0x260] sm:$0xf0]  ;;  %v10899_v60 = vor.u32 %v11762_v53, %v10898_v29 }
 0x5cb   : > { %7438 = vmatpush.bf16.msrb.mxu0 %v10635_v17  ;;  %v10903_v40 = vor.u32 %v11759_v5, %v10900_v57  ;;  %v11741_v29 = vld [vmem:[#allocation4 + $0x1bc] sm:$0xf]  ;;  %v10786_v53 = vld [vmem:[#allocation4 + $0x160] sm:$0xf]  ;;  %v11733_v5 = vld [vmem:[#allocation4 + $0x174] sm:$0xf0] }
 0x5cc   : > { %v11927_v39 = vpop.eup %11926  ;;  %11928 = vpow2.f32 %v10597_v46  ;;  %7445 = vmatpush.bf16.msrb.mxu1 %v10971_v41  ;;  %7471 = vmatpush.bf16.msra.mxu3 %v10975_v61  ;;  %v10610_v46 = vld [vmem:[#allocation4 + $0x8] sm:$0xf]  ;;  %v6596_v41 = vadd.f32 %v13278_v45, %v12446_v18 }
 0x5cd   : > { %v13290_v43 = vadd.f32 1.0, %v11927_v39  ;;  %v6584_v32 = vpop.f32.mrf.mxu3  ;;  %7464 = vmatpush.bf16.msra.mxu2 %v10639_v47 }
 0x5ce   : > { %v10611_v32 = vor.u32 %v11690_v62, %v10610_v46  ;;  %v11756_v62 = vld [vmem:[#allocation4 + $0x22c] sm:$0xf0] }
 0x5cf   : > { %11930 = vrcp.f32 %v13290_v43  ;;  %v13293_v7 = vpop.f32.mrf.mxu2  ;;  %v13295_v16 = vpop.f32.mrf.mxu1  ;;  %v6704_v14 = vand.u32 2147483647, %v13290_v43  ;;  %v6706_v15 = vand.u32 2147483648, %v13290_v43  ;;  %vm6700_vm0 = vweird.f32 %v13290_v43 }
 0x5d0   : > { %v6649_v10 = vpop.f32.mrf.mxu0  ;;  %7446 = vmatpush.bf16.msrb.mxu1 %v10947_v58  ;;  %7472 = vmatpush.bf16.msra.mxu3 %v10951_v54  ;;  %v6609_v17 = vadd.f32 %v13295_v16, %v6596_v41  ;;  %v10826_v41 = vld [vmem:[#allocation4 + $0x1b8] sm:$0xf] }
 0x5d1   : > { %7439 = vmatpush.bf16.msrb.mxu0 %v10611_v32  ;;  %7465 = vmatpush.bf16.msra.mxu2 %v10615_v48  ;;  %v10924_v10 = vld [vmem:[#allocation4 + $0x290] sm:$0xf0]  ;;  %v6707_v45 = vor.u32 1.1754944e-38, %v6706_v15  ;;  %vm6705_vm15 = vcmp.eq.f32.partialorder %v6704_v14, 8.507059e+37  ;;  %v10850_v15 = vld [vmem:[#allocation4 + $0x1e8] sm:$0xf] }
 0x5d2   : > { %v11929_v56 = vpop.eup %11928  ;;  %v10927_v1 = vor.u32 %v11765_v2, %v10924_v10  ;;  %v11747_v2 = vld [vmem:[#allocation4 + $0x1ec] sm:$0xf]  ;;  %v10852_v10 = vld [vmem:[#allocation4 + $0x200] sm:$0xf0] }
 0x5d3   : > { %v13297_v26 = vadd.f32 1.0, %v11929_v56 }
 0x5d4   : > { %7447 = vmatpush.bf16.msrb.mxu1 %v10923_v36  ;;  %7473 = vmatpush.bf16.msra.mxu3 %v10927_v1  ;;  %v10855_v1 = vor.u32 %v11747_v2, %v10852_v10  ;;  %v10738_v10 = vld [vmem:[#allocation4 + $0x100] sm:$0xf] }
 0x5d5   : > { %v11931_v20 = vpop.eup %11930  ;;  %11932 = vrcp.f32 %v13297_v26  ;;  %v6634_v11 = vpop.f32.mrf.mxu3  ;;  %v6724_v54 = vand.u32 2147483647, %v13297_v26  ;;  %vm6720_vm3 = vweird.f32 %v13297_v26 }
 0x5d6   : > { %v6696_v49 = vmul.f32 %v11931_v20, %v13290_v43  ;;  %v6635_v39 = vadd.f32 %v6634_v11, %v6622_v52  ;;  %vm6701_vm6 = vweird.f32 %v11931_v20  ;;  %v6726_v52 = vand.u32 2147483648, %v13297_v26  ;;  %v13532_v43 = vld [vmem:[#allocation26_spill] sm:$0xff] }
 0x5d7   : > { %v6675_v8 = vpop.f32.mrf.mxu2  ;;  %v6610_v9 = vpop.f32.mrf.mxu1  ;;  %vm6702_vm10 = vmor %vm6700_vm0, %vm6701_vm6  ;;  %v782_v4 = vadd.f32 %v13532_v43, %v12357_v19  ;;  %v10874_v11 = vld [vmem:[#allocation4 + $0x218] sm:$0xf]  ;;  %vm6725_vm7 = vcmp.eq.f32.partialorder %v6724_v54, 8.507059e+37  ;;  %v11735_v43 = vld [vmem:[#allocation4 + $0x18c] sm:$0xf] }
 0x5d8   : > { %v6697_v23 = vsub.f32 1.0, %v6696_v49  ;;  %v6737_v12 = vadd.f32 %v6635_v39, %v753_v0  ;;  %7448 = vmatpush.bf16.msrb.mxu1 %v10899_v60  ;;  %7474 = vmatpush.bf16.msra.mxu3 %v10903_v40  ;;  %v10876_v39 = vld [vmem:[#allocation4 + $0x230] sm:$0xf0]  ;;  %v10875_v28 = vor.u32 %v11756_v62, %v10874_v11  ;;  %v13533_v8 = vld [vmem:[#allocation20_spill] sm:$0xff]  ;;  %v11738_v60 = vld [vmem:[#allocation4 + $0x19c] sm:$0xf0] }
 0x5da   : > { %v6698_v37 = vmul.f32 %v11931_v20, %v6697_v23  ;;  %v10598_v30 = vmul.f32 -1.442695, %v6737_v12  ;;  %v6727_v23 = vor.u32 1.1754944e-38, %v6726_v52  ;;  %v11750_v12 = vld [vmem:[#allocation4 + $0x1fc] sm:$0xf0] }
 0x5db   : > { %v11933_v35 = vpop.eup %11932 }
 0x5dc   : > { %v6716_v56 = vmul.f32 %v11933_v35, %v13297_v26  ;;  %v6699_v61 = vadd.f32 %v11931_v20, %v6698_v37  ;;  %11934 = vpow2.f32 %v10598_v30  ;;  %vm6721_vm11 = vweird.f32 %v11933_v35  ;;  %7449 = vmatpush.bf16.msrb.mxu1 %v10875_v28  ;;  %v10762_v28 = vld [vmem:[#allocation4 + $0x130] sm:$0xf] }
 0x5dd   : > { %v6636_v47 = vpop.f32.mrf.mxu3  ;;  %vm13321_vm12 = vmor %vm6720_vm3, %vm6721_vm11  ;;  %v10851_v26 = vor.u32 %v11750_v12, %v10850_v15  ;;  %v6674_v12 = vadd.f32 %v13293_v7, %v12501_v63  ;;  %v11718_v7 = vld [vmem:[#allocation4 + $0x104] sm:$0xf] }
 0x5de   : > { %v6717_v25 = vsub.f32 1.0, %v6716_v56  ;;  %v6703_v58 = vsel %vm6702_vm10, %v11931_v20, %v6699_v61  ;;  %v10879_v20 = vor.u32 %v11753_v50, %v10876_v39  ;;  %v10828_v56 = vld [vmem:[#allocation4 + $0x1d0] sm:$0xf0]  ;;  %v10802_v47 = vld [vmem:[#allocation4 + $0x188] sm:$0xf]  ;;  %v10787_v39 = vor.u32 %v11733_v5, %v10786_v53 }
 0x5df   : > { %v6708_v33 = vsel %vm6705_vm15, %v6707_v45, %v6703_v58  ;;  %v6660_v46 = vpop.f32.mrf.mxu1  ;;  %v10831_v57 = vor.u32 %v11741_v29, %v10828_v56  ;;  %v11730_v45 = vld [vmem:[#allocation4 + $0x164] sm:$0xf]  ;;  %v10788_v58 = vld [vmem:[#allocation4 + $0x178] sm:$0xf0]  ;;  %v10803_v11 = vor.u32 %v11738_v60, %v10802_v47  ;;  %v11712_v47 = vld [vmem:[#allocation4 + $0xd4] sm:$0xf] }
 0x5e0   : > { %v6718_v16 = vmul.f32 %v11933_v35, %v6717_v25  ;;  %v6730_v0 = vmul.f32 %v6708_v33, %v6609_v17  ;;  %v6661_v49 = vadd.f32 %v6660_v46, %v6648_v31  ;;  %7475 = vmatpush.bf16.msra.mxu3 %v10879_v20  ;;  %v11744_v31 = vld [vmem:[#allocation4 + $0x1cc] sm:$0xf0]  ;;  %7450 = vmatpush.bf16.msrb.mxu1 %v10851_v26  ;;  %v10716_v60 = vld [vmem:[#allocation4 + $0xe8] sm:$0xf0] }
 0x5e1   : > { %v10791_v54 = vor.u32 %v11730_v45, %v10788_v58  ;;  %v10719_v58 = vor.u32 %v11712_v47, %v10716_v60 }
 0x5e2   : > { %v11935_v27 = vpop.eup %11934  ;;  %v6719_v19 = vadd.f32 %v11933_v35, %v6718_v16  ;;  %v6731_v9 = vadd.f32 %v6730_v0, %v13533_v8  ;;  %v6757_v32 = vadd.f32 %v6661_v49, %v782_v4  ;;  %v10804_v4 = vld [vmem:[#allocation4 + $0x1a0] sm:$0xf0] }
 0x5e3   : > { %v13325_v14 = vadd.f32 1.0, %v11935_v27  ;;  %v10807_v16 = vor.u32 %v11735_v43, %v10804_v4  ;;  %v10690_v43 = vld [vmem:[#allocation4 + $0xa0] sm:$0xf] }
 0x5e4   : > { %v6723_v6 = vsel %vm13321_vm12, %v11933_v35, %v6719_v19  ;;  %11936 = vtanh.f32 %v6731_v9  ;;  %v10599_v34 = vmul.f32 -1.442695, %v6757_v32  ;;  %v10827_v35 = vor.u32 %v11744_v31, %v10826_v41  ;;  %7476 = vmatpush.bf16.msra.mxu3 %v10855_v1  ;;  %v11727_v9 = vld [vmem:[#allocation4 + $0x144] sm:$0xf0]  ;;  %v11724_v32 = vld [vmem:[#allocation4 + $0x134] sm:$0xf] }
 0x5e5   : > { %11938 = vrcp.f32 %v13325_v14  ;;  %v6728_v37 = vsel %vm6725_vm7, %v6727_v23, %v6723_v6  ;;  %v6753_v8 = vand.u32 2147483648, %v13325_v14  ;;  %v6751_v23 = vand.u32 2147483647, %v13325_v14  ;;  %v10740_v41 = vld [vmem:[#allocation4 + $0x118] sm:$0xf0] }
 0x5e6   : > { %11940 = vpow2.f32 %v10599_v34  ;;  %v13330_v30 = vpop.f32.mrf.mxu3  ;;  %v6733_v61 = vsub.f32 1.0, %v6728_v37  ;;  %v6735_v52 = vmul.f32 %v6728_v37, %v13225_v59  ;;  %7451 = vmatpush.bf16.msrb.mxu1 %v10827_v35  ;;  %v10763_v26 = vor.u32 %v11727_v9, %v10762_v28  ;;  %v11721_v37 = vld [vmem:[#allocation4 + $0x114] sm:$0xf0]  ;;  %v13537_v35 = vld [vmem:[#allocation27_spill] sm:$0xff]  ;;  %v11703_v28 = vld [vmem:[#allocation4 + $0x84] sm:$0xf0] }
 0x5e7   : > { %v6662_v36 = vpop.f32.mrf.mxu1  ;;  %v6754_v34 = vor.u32 1.1754944e-38, %v6753_v8  ;;  %vm6752_vm9 = vcmp.eq.f32.partialorder %v6751_v23, 8.507059e+37  ;;  %v811_v29 = vadd.f32 %v13537_v35, %v12359_v22  ;;  %v10739_v53 = vor.u32 %v11721_v37, %v10738_v10  ;;  %v11700_v8 = vld [vmem:[#allocation4 + $0x74] sm:$0xf]  ;;  %v10668_v9 = vld [vmem:[#allocation4 + $0x88] sm:$0xf0] }
 0x5e8   : > { %7477 = vmatpush.bf16.msra.mxu3 %v10831_v57  ;;  %v6687_v36 = vadd.f32 %v13330_v30, %v6674_v12  ;;  %v10743_v5 = vor.u32 %v11718_v7, %v10740_v41  ;;  %v10714_v57 = vld [vmem:[#allocation4 + $0xd0] sm:$0xf]  ;;  %v11781_v23 = vld [vmem:[#allocation4 + $0x2f4] sm:$0xf0]  ;;  %v10671_v12 = vor.u32 %v11700_v8, %v10668_v9  ;;  %v11694_v37 = vld [vmem:[#allocation4 + $0x44] sm:$0xf] }
 0x5e9   : > { %v11697_v10 = vld [vmem:[#allocation4 + $0x54] sm:$0xf0]  ;;  %v13538_v7 = vld [vmem:[#allocation37_spill] sm:$0xff] }
 0x5ea   : > { %v11937_v17 = vpop.eup %11936  ;;  %7452 = vmatpush.bf16.msrb.mxu1 %v10803_v11  ;;  %v10692_v11 = vld [vmem:[#allocation4 + $0xb8] sm:$0xf0]  ;;  %vm13539_vm6 = vcmp.lt.s32.totalorder %v13538_v7, %v12497_v13  ;;  %v10858_v9 = vld [vmem:[#allocation4 + $0x1f0] sm:$0xf] }
 0x5eb   : > { %v11939_v40 = vpop.eup %11938  ;;  %v6734_v25 = vmul.f32 %v11937_v17, %v6733_v61  ;;  %v11715_v17 = vld [vmem:[#allocation4 + $0xe4] sm:$0xf0]  ;;  %vm13540_vm0 = vmmov %vm13539_vm6 }
 0x5ec   : > { %v11941_v33 = vpop.eup %11940  ;;  %v6743_v46 = vmul.f32 %v11939_v40, %v13325_v14  ;;  %vm6748_vm5 = vweird.f32 %v11939_v40  ;;  %7478 = vmatpush.bf16.msra.mxu3 %v10807_v16  ;;  %v10715_v22 = vor.u32 %v11715_v17, %v10714_v57  ;;  %v10956_v57 = vld [vmem:[#allocation4 + $0x2c8] sm:$0xf0]  ;;  %v11691_v17 = vld [vmem:[#allocation4 + $0x24] sm:$0xf0] }
 0x5ed   : > { %v6736_v62 = vadd.f32 %v6735_v52, %v6734_v25  ;;  %v13334_v50 = vadd.f32 1.0, %v11941_v33  ;;  %v11709_v33 = vld [vmem:[#allocation4 + $0xb4] sm:$0xf0] }
 0x5ee   : > { %v6744_v0 = vsub.f32 1.0, %v6743_v46  ;;  %v6688_v49 = vpop.f32.mrf.mxu3  ;;  %v11706_v46 = vld [vmem:[#allocation4 + $0xa4] sm:$0xf] }
 0x5ef   : > { %v13340_v27 = vsel %vm6785_vm8, %v6736_v62, %v13225_v59  ;;  %v6790_v19 = vsel %vm6785_vm8, %v6736_v62, 0.0  ;;  %11942 = vrcp.f32 %v13334_v50  ;;  %v10764_v59 = vld [vmem:[#allocation4 + $0x148] sm:$0xf0]  ;;  %vm6747_vm8 = vweird.f32 %v13325_v14 }
 0x5f0   : > { %6791 = vst [vmem:[%s12106_s22 + $0x30] sm:$0xff] %v6790_v19  ;;  %v6745_v48 = vmul.f32 %v11939_v40, %v6744_v0  ;;  %v13351_v15 = vpack.c.bf16 %v13340_v27, %v13340_v27  ;;  %vm6749_vm2 = vmor %vm6747_vm8, %vm6748_vm5  ;;  %v10767_v2 = vor.u32 %v11724_v32, %v10764_v59  ;;  %v6771_v52 = vand.u32 2147483647, %v13334_v50 }
 0x5f1   : > { %vm6767_vm14 = vweird.f32 %v13334_v50  ;;  %v10691_v49 = vor.u32 %v11709_v33, %v10690_v43  ;;  %v10932_v43 = vld [vmem:[#allocation4 + $0x298] sm:$0xf0] }
 0x5f2   : > { %v6746_v6 = vadd.f32 %v11939_v40, %v6745_v48  ;;  %7388 = vmatmul.bf16.vlgmr.msra.gmra.mxu0 %v13351_v15  ;;  %7414 = vmatmul.bf16.vlgmr.msrb.gmra.mxu2 %v13351_v15  ;;  %vm6772_vm1 = vcmp.eq.f32.partialorder %v6771_v52, 8.507059e+37  ;;  %v10978_v48 = vld [vmem:[#allocation4 + $0x2e0] sm:$0xf] }
 0x5f3   : > { %7484 = vmatpush.bf16.msra.mxu0 %v10787_v39  ;;  %7510 = vmatpush.bf16.msrb.mxu2 %v10791_v54  ;;  %v10695_v39 = vor.u32 %v11706_v46, %v10692_v11  ;;  %v10666_v54 = vld [vmem:[#allocation4 + $0x70] sm:$0xf]  ;;  %v10930_v52 = vld [vmem:[#allocation4 + $0x280] sm:$0xf]  ;;  %v11763_v11 = vld [vmem:[#allocation4 + $0x264] sm:$0xf0] }
 0x5f4   : > { %v6750_v1 = vsel %vm6749_vm2, %v11939_v40, %v6746_v6  ;;  %v6773_v40 = vand.u32 2147483648, %v13334_v50  ;;  %v10667_v59 = vor.u32 %v11703_v28, %v10666_v54  ;;  %v11778_v6 = vld [vmem:[#allocation4 + $0x2e4] sm:$0xf]  ;;  %v10906_v46 = vld [vmem:[#allocation4 + $0x250] sm:$0xf] }
 0x5f5   : > { %v11943_v31 = vpop.eup %11942  ;;  %v6755_v14 = vsel %vm6752_vm9, %v6754_v34, %v6750_v1  ;;  %v10980_v34 = vld [vmem:[#allocation4 + $0x2f8] sm:$0xf0]  ;;  %v10954_v1 = vld [vmem:[#allocation4 + $0x2b0] sm:$0xf]  ;;  %v11757_v54 = vld [vmem:[#allocation4 + $0x234] sm:$0xf0] }
 0x5f6   : > { %v6763_v56 = vmul.f32 %v11943_v31, %v13334_v50  ;;  %v6777_v61 = vmul.f32 %v6755_v14, %v6687_v36  ;;  %vm6768_vm13 = vweird.f32 %v11943_v31  ;;  %v6774_v62 = vor.u32 1.1754944e-38, %v6773_v40  ;;  %v10644_v36 = vld [vmem:[#allocation4 + $0x58] sm:$0xf0]  ;;  %v11754_v28 = vld [vmem:[#allocation4 + $0x224] sm:$0xf] }
 0x5f7   : > { %7485 = vmatpush.bf16.msra.mxu0 %v10763_v26  ;;  %7511 = vmatpush.bf16.msrb.mxu2 %v10767_v2  ;;  %vm6769_vm4 = vmor %vm6767_vm14, %vm6768_vm13  ;;  %v10642_v26 = vld [vmem:[#allocation4 + $0x40] sm:$0xf]  ;;  %v10979_v14 = vor.u32 %v11781_v23, %v10978_v48  ;;  %v10983_v35 = vor.u32 %v11778_v6, %v10980_v34  ;;  %v10860_v48 = vld [vmem:[#allocation4 + $0x208] sm:$0xf0] }
 0x5f8   : > { %v6764_v45 = vsub.f32 1.0, %v6763_v56  ;;  %v6778_v30 = vadd.f32 %v6777_v61, %v811_v29  ;;  %v11775_v29 = vld [vmem:[#allocation4 + $0x2c4] sm:$0xf0]  ;;  %v11772_v56 = vld [vmem:[#allocation4 + $0x2b4] sm:$0xf] }
 0x5f9   : > { %v10955_v47 = vor.u32 %v11775_v29, %v10954_v1  ;;  %v10959_v60 = vor.u32 %v11772_v56, %v10956_v57  ;;  %v11742_v6 = vld [vmem:[#allocation4 + $0x1c4] sm:$0xf]  ;;  %v10836_v34 = vld [vmem:[#allocation4 + $0x1d8] sm:$0xf0]  ;;  %v10812_v1 = vld [vmem:[#allocation4 + $0x1a8] sm:$0xf0] }
 0x5fa   : > { %v6765_v25 = vmul.f32 %v11943_v31, %v6764_v45  ;;  %11944 = vtanh.f32 %v6778_v30  ;;  %v11688_v45 = vld [vmem:[#allocation4 + $0x14] sm:$0xf]  ;;  %v10620_v30 = vld [vmem:[#allocation4 + $0x28] sm:$0xf0] }
 0x5fb   : > { %7486 = vmatpush.bf16.msra.mxu0 %v10739_v53  ;;  %7512 = vmatpush.bf16.msrb.mxu2 %v10743_v5  ;;  %v10643_v53 = vor.u32 %v11697_v10, %v10642_v26  ;;  %v10647_v5 = vor.u32 %v11694_v37, %v10644_v36  ;;  %v10810_v10 = vld [vmem:[#allocation4 + $0x190] sm:$0xf]  ;;  %v11739_v37 = vld [vmem:[#allocation4 + $0x1a4] sm:$0xf0]  ;;  %v11736_v36 = vld [vmem:[#allocation4 + $0x194] sm:$0xf] }
 0x5fc   : > { %v6766_v4 = vadd.f32 %v11943_v31, %v6765_v25  ;;  %v10623_v25 = vor.u32 %v11688_v45, %v10620_v30  ;;  %v10811_v7 = vor.u32 %v11739_v37, %v10810_v10 }
 0x5fe   : > { %v6770_v16 = vsel %vm6769_vm4, %v11943_v31, %v6766_v4 }
 0x5ff   : > { %v6775_v0 = vsel %vm6772_vm1, %v6774_v62, %v6770_v16  ;;  %7487 = vmatpush.bf16.msra.mxu0 %v10715_v22  ;;  %7513 = vmatpush.bf16.msrb.mxu2 %v10719_v58  ;;  %v11769_v22 = vld [vmem:[#allocation4 + $0x294] sm:$0xf0]  ;;  %v11766_v58 = vld [vmem:[#allocation4 + $0x284] sm:$0xf]  ;;  %v11760_v62 = vld [vmem:[#allocation4 + $0x254] sm:$0xf] }
 0x600   : > { %v11945_v20 = vpop.eup %11944  ;;  %v6780_v19 = vsub.f32 1.0, %v6775_v0  ;;  %v6782_v32 = vmul.f32 %v6775_v0, %v13256_v55  ;;  %v10931_v4 = vor.u32 %v11769_v22, %v10930_v52  ;;  %v10935_v33 = vor.u32 %v11766_v58, %v10932_v43  ;;  %v10908_v16 = vld [vmem:[#allocation4 + $0x268] sm:$0xf0] }
 0x601   : > { %v10907_v0 = vor.u32 %v11763_v11, %v10906_v46 }
 0x602   : > { %v6781_v50 = vmul.f32 %v11945_v20, %v6780_v19  ;;  %7440 = vmatmul.bf16.vlgmr.msrb.gmra.mxu0 %v13351_v15  ;;  %7466 = vmatmul.bf16.vlgmr.msra.gmra.mxu2 %v13351_v15  ;;  %v10884_v20 = vld [vmem:[#allocation4 + $0x238] sm:$0xf0] }
 0x603   : > { %7488 = vmatpush.bf16.msra.mxu0 %v10691_v49  ;;  %7514 = vmatpush.bf16.msrb.mxu2 %v10695_v39  ;;  %v10911_v49 = vor.u32 %v11760_v62, %v10908_v16  ;;  %v10882_v39 = vld [vmem:[#allocation4 + $0x220] sm:$0xf]  ;;  %v10887_v8 = vor.u32 %v11754_v28, %v10884_v20 }
 0x604   : > { %v6783_v2 = vadd.f32 %v6782_v32, %v6781_v50  ;;  %v10883_v19 = vor.u32 %v11757_v54, %v10882_v39  ;;  %v11751_v50 = vld [vmem:[#allocation4 + $0x204] sm:$0xf0]  ;;  %v11748_v32 = vld [vmem:[#allocation4 + $0x1f4] sm:$0xf] }
 0x605   : > { %v10863_v23 = vor.u32 %v11748_v32, %v10860_v48  ;;  %v13543_v32 = vld [vmem:[#allocation7_spill] sm:$0xff] }
 0x606   : > { %v13372_v41 = vsel %vm13539_vm6, %v6783_v2, %v13256_v55  ;;  %v6792_v31 = vsel %vm13540_vm0, %v6783_v2, 0.0  ;;  %v10618_v55 = vld [vmem:[#allocation4 + $0x10] sm:$0xf]  ;;  %v10839_v2 = vor.u32 %v11742_v6, %v10836_v34 }
 0x607   : > { %6793 = vst [vmem:[%s12111_s27 + $0x8] sm:$0xff] %v6792_v31  ;;  %7489 = vmatpush.bf16.msra.mxu0 %v10667_v59  ;;  %7515 = vmatpush.bf16.msrb.mxu2 %v10671_v12  ;;  %v13380_v61 = vpack.c.bf16 %v13372_v41, %v13372_v41  ;;  %v10619_v40 = vor.u32 %v11691_v17, %v10618_v55  ;;  %v10834_v59 = vld [vmem:[#allocation4 + $0x1c0] sm:$0xf]  ;;  %v11745_v12 = vld [vmem:[#allocation4 + $0x1d4] sm:$0xf0]  ;;  %v13541_v17 = vld [vmem:[#allocation21_spill] sm:$0xff] }
 0x608   : > { %v10835_v26 = vor.u32 %v11745_v12, %v10834_v59  ;;  %v10815_v31 = vor.u32 %v11736_v36, %v10812_v1  ;;  %v569_v45 = vadd.f32 %v13541_v17, %v12289_v42 }
 0x609   : > { %7401 = vmatmul.bf16.vlgmr.msra.gmra.mxu1 %v13380_v61  ;;  %7427 = vmatmul.bf16.vlgmr.msrb.gmra.mxu3 %v13380_v61 }
 0x60a   : > { %7497 = vmatpush.bf16.msra.mxu1 %v10979_v14  ;;  %7523 = vmatpush.bf16.msrb.mxu3 %v10983_v35 }
 0x60b   : > { %7490 = vmatpush.bf16.msra.mxu0 %v10643_v53  ;;  %7516 = vmatpush.bf16.msrb.mxu2 %v10647_v5 }
 0x60e   : > { %7498 = vmatpush.bf16.msra.mxu1 %v10955_v47  ;;  %7524 = vmatpush.bf16.msrb.mxu3 %v10959_v60 }
 0x60f   : > { %7491 = vmatpush.bf16.msra.mxu0 %v10619_v40  ;;  %7517 = vmatpush.bf16.msrb.mxu2 %v10623_v25 }
 0x612   : > { %7492 = vmatmul.bf16.vlgmr.msra.gmra.mxu0 %v13351_v15  ;;  %7499 = vmatpush.bf16.msra.mxu1 %v10931_v4 }
 0x613   : > { %7518 = vmatmul.bf16.vlgmr.msrb.gmra.mxu2 %v13351_v15  ;;  %7525 = vmatpush.bf16.msrb.mxu3 %v10935_v33  ;;  %v10859_v15 = vor.u32 %v11751_v50, %v10858_v9 }
 0x616   : > { %7500 = vmatpush.bf16.msra.mxu1 %v10907_v0 }
 0x617   : > { %7526 = vmatpush.bf16.msrb.mxu3 %v10911_v49 }
 0x619   : > { %7453 = vmatmul.bf16.vlgmr.msrb.gmra.mxu1 %v13380_v61  ;;  %7479 = vmatmul.bf16.vlgmr.msra.gmra.mxu3 %v13380_v61 }
 0x61a   : > { %7501 = vmatpush.bf16.msra.mxu1 %v10883_v19 }
 0x61b   : > { %7527 = vmatpush.bf16.msrb.mxu3 %v10887_v8 }
 0x61e   : > { %7502 = vmatpush.bf16.msra.mxu1 %v10859_v15 }
 0x61f   : > { %7528 = vmatpush.bf16.msrb.mxu3 %v10863_v23 }
 0x622   : > { %7503 = vmatpush.bf16.msra.mxu1 %v10835_v26 }
 0x623   : > { %7529 = vmatpush.bf16.msrb.mxu3 %v10839_v2 }
 0x626   : > { %7504 = vmatpush.bf16.msra.mxu1 %v10811_v7 }
 0x627   : > { %7530 = vmatpush.bf16.msrb.mxu3 %v10815_v31  ;;  %v13544_v31 = vld [vmem:[#allocation23_spill] sm:$0xff] }
 0x629   : > { %7505 = vmatmul.bf16.vlgmr.msra.gmra.mxu1 %v13380_v61 }
 0x62a   : > { %7531 = vmatmul.bf16.vlgmr.msrb.gmra.mxu3 %v13380_v61  ;;  %v13542_v61 = vld [vmem:[#allocation22_spill] sm:$0xff] }
 0x62b   : > { %v598_v22 = vadd.f32 %v13542_v61, %v12293_v44 }
 0x66f   : > { %v7389_v14 = vpop.f32.mrf.mxu0 }
 0x670   : > { %v7390_v5 = vadd.f32 %v7389_v14, %v12377_v3  ;;  %v627_v14 = vadd.f32 %v13544_v31, %v12305_v51  ;;  %v13550_v31 = vld [vmem:[#allocation39_spill] sm:$0xff] }
 0x675   : > { %v7415_v35 = vpop.f32.mrf.mxu2 }
 0x676   : > { %v7416_v40 = vadd.f32 %v7415_v35, %v12393_v38 }
 0x677   : > { %v7391_v29 = vpop.f32.mrf.mxu0 }
 0x67d   : > { %v7417_v56 = vpop.f32.mrf.mxu2 }
 0x67f   : > { %v7441_v53 = vpop.f32.mrf.mxu0 }
 0x680   : > { %v7442_v34 = vadd.f32 %v7441_v53, %v12446_v18 }
 0x685   : > { %v7467_v57 = vpop.f32.mrf.mxu2 }
 0x686   : > { %v7402_v55 = vpop.f32.mrf.mxu1  ;;  %v7468_v44 = vadd.f32 %v7467_v57, %v12411_v24 }
 0x687   : > { %v7403_v30 = vadd.f32 %v7402_v55, %v7390_v5  ;;  %v7443_v47 = vpop.f32.mrf.mxu0 }
 0x689   : > { %v7536_v60 = vadd.f32 %v7403_v30, %v569_v45  ;;  %v13545_v45 = vld [vmem:[#allocation24_spill] sm:$0xff] }
 0x68b   : > { %v10984_v25 = vmul.f32 -1.442695, %v7536_v60 }
 0x68c   : > { %v7428_v52 = vpop.f32.mrf.mxu3 }
 0x68d   : > { %11946 = vpow2.f32 %v10984_v25  ;;  %v7429_v58 = vadd.f32 %v7428_v52, %v7416_v40  ;;  %v7469_v43 = vpop.f32.mrf.mxu2 }
 0x68e   : > { %v7404_v4 = vpop.f32.mrf.mxu1 }
 0x68f   : > { %v7556_v3 = vadd.f32 %v7429_v58, %v598_v22  ;;  %v7493_v33 = vpop.f32.mrf.mxu0 }
 0x690   : > { %v7494_v2 = vadd.f32 %v7493_v33, %v12495_v21 }
 0x691   : > { %v10985_v46 = vmul.f32 -1.442695, %v7556_v3 }
 0x693   : > { %v11947_v11 = vpop.eup %11946  ;;  %11948 = vpow2.f32 %v10985_v46 }
 0x694   : > { %v7540_v42 = vadd.f32 1.0, %v11947_v11  ;;  %v7430_v62 = vpop.f32.mrf.mxu3 }
 0x696   : > { %11950 = vrcp.f32 %v7540_v42  ;;  %v13396_v16 = vpop.f32.mrf.mxu2  ;;  %v7454_v38 = vpop.f32.mrf.mxu1  ;;  %v7552_v15 = vand.u32 2147483648, %v7540_v42  ;;  %v7550_v59 = vand.u32 2147483647, %v7540_v42  ;;  %vm7546_vm15 = vweird.f32 %v7540_v42 }
 0x697   : > { %v7495_v0 = vpop.f32.mrf.mxu0  ;;  %v7455_v1 = vadd.f32 %v7454_v38, %v7442_v34 }
 0x698   : > { %v7553_v10 = vor.u32 1.1754944e-38, %v7552_v15  ;;  %vm7551_vm3 = vcmp.eq.f32.partialorder %v7550_v59, 8.507059e+37  ;;  %v13546_v0 = vld [vmem:[#allocation38_spill] sm:$0xff]  ;;  %v13549_v59 = vld [vmem:[#allocation25_spill] sm:$0xff] }
 0x699   : > { %v11949_v49 = vpop.eup %11948  ;;  %vm13547_vm2 = vcmp.lt.s32.totalorder %v13546_v0, %v12497_v13 }
 0x69a   : > { %v7560_v39 = vadd.f32 1.0, %v11949_v49  ;;  %vm13548_vm9 = vmmov %vm13547_vm2 }
 0x69c   : > { %v11951_v54 = vpop.eup %11950  ;;  %11952 = vrcp.f32 %v7560_v39  ;;  %v7480_v28 = vpop.f32.mrf.mxu3  ;;  %v7572_v35 = vand.u32 2147483648, %v7560_v39  ;;  %v7570_v57 = vand.u32 2147483647, %v7560_v39  ;;  %vm7566_vm7 = vweird.f32 %v7560_v39 }
 0x69d   : > { %v7542_v20 = vmul.f32 %v11951_v54, %v7540_v42  ;;  %v7481_v19 = vadd.f32 %v7480_v28, %v7468_v44  ;;  %vm7547_vm10 = vweird.f32 %v11951_v54 }
 0x69e   : > { %v7521_v8 = vpop.f32.mrf.mxu2  ;;  %v7456_v9 = vpop.f32.mrf.mxu1  ;;  %vm7548_vm11 = vmor %vm7546_vm15, %vm7547_vm10  ;;  %v7573_v60 = vor.u32 1.1754944e-38, %v7572_v35  ;;  %vm7571_vm8 = vcmp.eq.f32.partialorder %v7570_v57, 8.507059e+37 }
 0x69f   : > { %v7543_v50 = vsub.f32 1.0, %v7542_v20  ;;  %v7583_v48 = vadd.f32 %v7481_v19, %v13543_v32  ;;  %v7520_v20 = vadd.f32 %v13396_v16, %v12501_v63 }
 0x6a1   : > { %v7544_v23 = vmul.f32 %v11951_v54, %v7543_v50  ;;  %v10986_v12 = vmul.f32 -1.442695, %v7583_v48 }
 0x6a2   : > { %v11953_v6 = vpop.eup %11952 }
 0x6a3   : > { %v7562_v26 = vmul.f32 %v11953_v6, %v7560_v39  ;;  %v7545_v24 = vadd.f32 %v11951_v54, %v7544_v23  ;;  %11954 = vpow2.f32 %v10986_v12  ;;  %vm7567_vm12 = vweird.f32 %v11953_v6 }
 0x6a4   : > { %v7482_v37 = vpop.f32.mrf.mxu3  ;;  %vm7568_vm5 = vmor %vm7566_vm7, %vm7567_vm12 }
 0x6a5   : > { %v7563_v36 = vsub.f32 1.0, %v7562_v26  ;;  %v7549_v7 = vsel %vm7548_vm11, %v11951_v54, %v7545_v24  ;;  %vm13551_vm11 = vcmp.lt.s32.totalorder %v13550_v31, %v12497_v13 }
 0x6a6   : > { %v7554_v29 = vsel %vm7551_vm3, %v7553_v10, %v7549_v7  ;;  %v7506_v56 = vpop.f32.mrf.mxu1  ;;  %vm13552_vm3 = vmmov %vm13551_vm11 }
 0x6a7   : > { %v7564_v18 = vmul.f32 %v11953_v6, %v7563_v36  ;;  %v7576_v53 = vmul.f32 %v7554_v29, %v7455_v1  ;;  %v7507_v5 = vadd.f32 %v7506_v56, %v7494_v2 }
 0x6a9   : > { %v11955_v55 = vpop.eup %11954  ;;  %v7565_v21 = vadd.f32 %v11953_v6, %v7564_v18  ;;  %v7577_v17 = vadd.f32 %v7576_v53, %v627_v14  ;;  %v7603_v30 = vadd.f32 %v7507_v5, %v13545_v45 }
 0x6aa   : > { %v7587_v47 = vadd.f32 1.0, %v11955_v55 }
 0x6ab   : > { %v7569_v40 = vsel %vm7568_vm5, %v11953_v6, %v7565_v21  ;;  %11956 = vtanh.f32 %v7577_v17  ;;  %v10987_v51 = vmul.f32 -1.442695, %v7603_v30 }
 0x6ac   : > { %11958 = vrcp.f32 %v7587_v47  ;;  %v7574_v25 = vsel %vm7571_vm8, %v7573_v60, %v7569_v40  ;;  %v7599_v44 = vand.u32 2147483648, %v7587_v47  ;;  %v7597_v28 = vand.u32 2147483647, %v7587_v47 }
 0x6ad   : > { %11960 = vpow2.f32 %v10987_v51  ;;  %v7532_v52 = vpop.f32.mrf.mxu3  ;;  %v7579_v22 = vsub.f32 1.0, %v7574_v25  ;;  %v7581_v3 = vmul.f32 %v7574_v25, %v13340_v27  ;;  %vm7593_vm14 = vweird.f32 %v7587_v47 }
 0x6ae   : > { %v7508_v61 = vpop.f32.mrf.mxu1  ;;  %v7533_v8 = vadd.f32 %v7532_v52, %v7520_v20  ;;  %vm7598_vm1 = vcmp.eq.f32.partialorder %v7597_v28, 8.507059e+37 }
 0x6b1   : > { %v11957_v58 = vpop.eup %11956 }
 0x6b2   : > { %v11959_v43 = vpop.eup %11958  ;;  %v7580_v4 = vmul.f32 %v11957_v58, %v7579_v22 }
 0x6b3   : > { %v11961_v33 = vpop.eup %11960  ;;  %v7589_v46 = vmul.f32 %v11959_v43, %v7587_v47  ;;  %vm7594_vm13 = vweird.f32 %v11959_v43 }
 0x6b4   : > { %v7582_v11 = vadd.f32 %v7581_v3, %v7580_v4  ;;  %v7607_v42 = vadd.f32 1.0, %v11961_v33  ;;  %vm7595_vm4 = vmor %vm7593_vm14, %vm7594_vm13 }
 0x6b5   : > { %v7590_v62 = vsub.f32 1.0, %v7589_v46  ;;  %v7534_v38 = vpop.f32.mrf.mxu3 }
 0x6b6   : > { %v7634_v49 = vsel %vm13547_vm2, %v7582_v11, %v13340_v27  ;;  %v7636_v39 = vsel %vm13548_vm9, %v7582_v11, 0.0  ;;  %11962 = vrcp.f32 %v7607_v42  ;;  %v7600_v27 = vor.u32 1.1754944e-38, %v7599_v44 }
 0x6b7   : > { %7637 = vst [vmem:[%s12106_s22 + $0x38] sm:$0xff] %v7636_v39  ;;  %v7591_v54 = vmul.f32 %v11959_v43, %v7590_v62  ;;  %v7619_v6 = vand.u32 2147483648, %v7607_v42  ;;  %v7617_v26 = vand.u32 2147483647, %v7607_v42  ;;  %vm7613_vm0 = vweird.f32 %v7607_v42 }
 0x6b8   : > { %7640 = vst [vmem:[%s13446_s11] sm:$0xff] %v7634_v49 }
 0x6b9   : > { %v7592_v19 = vadd.f32 %v11959_v43, %v7591_v54  ;;  %v7620_v16 = vor.u32 1.1754944e-38, %v7619_v6  ;;  %vm7618_vm15 = vcmp.eq.f32.partialorder %v7617_v26, 8.507059e+37 }
 0x6bb   : > { %v7596_v9 = vsel %vm7595_vm4, %v11959_v43, %v7592_v19 }
 0x6bc   : > { %v11963_v50 = vpop.eup %11962  ;;  %v7601_v32 = vsel %vm7598_vm1, %v7600_v27, %v7596_v9 }
 0x6bd   : > { %v7609_v48 = vmul.f32 %v11963_v50, %v7607_v42  ;;  %v7623_v15 = vmul.f32 %v7601_v32, %v7533_v8  ;;  %vm7614_vm6 = vweird.f32 %v11963_v50 }
 0x6be   : > { %vm7615_vm10 = vmor %vm7613_vm0, %vm7614_vm6 }
 0x6bf   : > { %v7610_v23 = vsub.f32 1.0, %v7609_v48  ;;  %v7624_v12 = vadd.f32 %v7623_v15, %v13549_v59 }
 0x6c1   : > { %v7611_v34 = vmul.f32 %v11963_v50, %v7610_v23  ;;  %11964 = vtanh.f32 %v7624_v12 }
 0x6c3   : > { %v7612_v63 = vadd.f32 %v11963_v50, %v7611_v34 }
 0x6c5   : > { %v7616_v24 = vsel %vm7615_vm10, %v11963_v50, %v7612_v63 }
 0x6c6   : > { %v7621_v2 = vsel %vm7618_vm15, %v7620_v16, %v7616_v24 }
 0x6c7   : > { %v11965_v10 = vpop.eup %11964  ;;  %v7626_v37 = vsub.f32 1.0, %v7621_v2  ;;  %v7628_v1 = vmul.f32 %v7621_v2, %v13372_v41 }
 0x6c9   : > { %v7627_v36 = vmul.f32 %v11965_v10, %v7626_v37 }
 0x6cb   : > { %v7629_v7 = vadd.f32 %v7628_v1, %v7627_v36 }
 0x6cd   : > { %v7635_v14 = vsel %vm13551_vm11, %v7629_v7, %v13372_v41  ;;  %v7638_v35 = vsel %vm13552_vm3, %v7629_v7, 0.0 }
 0x6ce   : > { %7639 = vst [vmem:[%s12111_s27] sm:$0xff] %v7638_v35 }
 0x6cf   : > { %7641 = vst [vmem:[%s13446_s11 + $0x8] sm:$0xff] %v7635_v14 }
 0x6d0 PF: > { %s23_s17 = sadd.s32 1, %s12008_s17  }
 0x6d1   : > { %p20_p9 = scmp.ge.s32.totalorder %s23_s17, 4  }
 0x6d3   :  { %22 = sbr.rel (!%p20_p9) target bundleno = 1 (0x1), region = 118 }
 0x6d8   :  { %7688 = vsyncpa [#allocation5], 1 }
 0x6d9   :  { %7690 = vsyncpa [#allocation5 + $0x1], 1 }

</bundles_post_ra>
